<compile_context>
chip_gen: v5e
topology: v5e:2x2
jax: 0.10.0
libtpu: 0.0.40
codegen_flags: <defaults>
</compile_context>

<pallas_src>
import numpy as np

import jax
import jax.numpy as jnp
from jax.experimental import pallas as pl
from jax.experimental.pallas import tpu as pltpu


def _vmem_spec():
    return pl.BlockSpec(memory_space=pltpu.MemorySpace.VMEM)


# ----------------------------- fused forward kernel --------------------------

def _siamese_kernel(x1_ref, x2_ref,
                    c1wm, c1w0, c1wp, c1b, c1s, c1t,
                    c2wm, c2w0, c2wp, c2b, c2s, c2t,
                    c3wm, c3w0, c3wp, c3b, c3s, c3t,
                    fw1, fb1, fw2, fb2, fw3, fb3,
                    o_ref):
    """Whole SiameseNetwork forward (both branches stacked on the batch axis).

    x1_ref/x2_ref: (B, H, W) f32 inputs (C == 1 already squeezed).
    cKw{m,0,p}:    (W*Cin, W*Cout) banded conv weights for the h-taps -1/0/+1
                   (w-taps + w-reflection folded in).
    cKb/cKs/cKt:   (1, W*Cout) conv bias / BN scale / BN shift, tiled over w.
    fw1:           (H, W*C3, 512) bf16 fc1 weight in HWC row order.
    fw2/fw3:       (512, 512) / (512, 128) bf16.  fb*: (1, N) f32.
    o_ref:         (2B, 128) f32 padded logits (lane-dense store).
    """
    B2 = x1_ref.shape[0] + x2_ref.shape[0]
    H = x1_ref.shape[1]

    def conv_block(x3d, wm_ref, w0_ref, wp_ref, b_ref, s_ref, t_ref):
        # x3d: (2B, H, W*Cin) f32, channel-minor columns (col = w*Cin + ci).
        nb, hh, k = x3d.shape
        # ReflectionPad2d(1) along h: row -1 <- row 1, row H <- row H-2.
        top = jnp.concatenate([x3d[:, 1:2, :], x3d[:, :hh - 1, :]], axis=1)
        bot = jnp.concatenate([x3d[:, 1:, :], x3d[:, hh - 2:hh - 1, :]], axis=1)
        # w-taps + w-reflection live in the banded weights, so a full 3x3 conv
        # is 3 lane-dense MXU dots with M = 2B*H rows.
        y = (jnp.dot(top.reshape(nb * hh, k), wm_ref[...],
                     preferred_element_type=jnp.float32)
             + jnp.dot(x3d.reshape(nb * hh, k), w0_ref[...],
                       preferred_element_type=jnp.float32)
             + jnp.dot(bot.reshape(nb * hh, k), wp_ref[...],
                       preferred_element_type=jnp.float32))
        y = jnp.maximum(y + b_ref[...], 0.0)        # conv bias + ReLU
        y = y * s_ref[...] + t_ref[...]             # BatchNorm2d (eval, folded)
        # TODO(synk): Dropout2d(p=0.2) is identity in eval mode; training-mode
        # channel dropout is not implemented.
        return y                                    # (2B*H, W*Cout)

    # Stack both siamese branches in-kernel (shared weights).
    x = jnp.concatenate([x1_ref[...], x2_ref[...]], axis=0).astype(jnp.float32)

    y = conv_block(x, c1wm, c1w0, c1wp, c1b, c1s, c1t)                      # (2B*H, 64)
    y = conv_block(y.reshape(B2, H, -1), c2wm, c2w0, c2wp, c2b, c2s, c2t)   # (2B*H, 128)
    y = conv_block(y.reshape(B2, H, -1), c3wm, c3w0, c3wp, c3b, c3s, c3t)   # (2B*H, 128)

    # fc1 without any lane-crossing flatten: contract over (h, w*c) as a sum of
    # H small dots; fw1 rows are already permuted CHW -> HWC in the wrapper.
    y3 = y.reshape(B2, H, y.shape[-1])                                      # (2B, H, 128)
    acc = jnp.zeros((B2, fw1.shape[-1]), jnp.float32)
    for h in range(H):
        w1h = fw1[h]                                                        # (128, 512) bf16
        chunk = jax.lax.slice_in_dim(y3, h, h + 1, axis=1).reshape(B2, -1)  # (2B, 128)
        acc = acc + jnp.dot(chunk.astype(w1h.dtype), w1h,
                            preferred_element_type=jnp.float32)
    h1 = jnp.maximum(acc + fb1[...], 0.0)                                   # (2B, 512)

    w2 = fw2[...]
    h2 = jnp.maximum(jnp.dot(h1.astype(w2.dtype), w2,
                             preferred_element_type=jnp.float32) + fb2[...], 0.0)
    w3 = fw3[...]
    out = jnp.dot(h2.astype(w3.dtype), w3,
                  preferred_element_type=jnp.float32) + fb3[...]            # (2B, 128)
    o_ref[...] = out.astype(o_ref.dtype)


# ------------------------------ params / prep --------------------------------

def make_params(key, H=16, W=16):
    """Torch-layout parameters (eval mode) for SiameseNetwork."""
    keys = jax.random.split(key, 8)
    convs = []
    shapes = [(1, 4), (4, 8), (8, 8)]
    for i, (cin, cout) in enumerate(shapes):
        w = 0.1 * jax.random.normal(keys[i], (cout, cin, 3, 3), jnp.float32)
        b = 0.05 * jnp.arange(cout, dtype=jnp.float32)
        gamma = 1.0 + 0.1 * jnp.arange(cout, dtype=jnp.float32)
        beta = 0.02 * jnp.arange(cout, dtype=jnp.float32)
        r_mean = 0.01 * jnp.arange(cout, dtype=jnp.float32)
        r_var = 1.0 + 0.03 * jnp.arange(cout, dtype=jnp.float32)
        convs.append(dict(w=w, b=b, gamma=gamma, beta=beta,
                          r_mean=r_mean, r_var=r_var))
    feat = 8 * H * W
    fc = dict(
        w1=0.02 * jax.random.normal(keys[3], (feat, 500), jnp.float32),
        b1=0.01 * jnp.ones((500,), jnp.float32),
        w2=0.05 * jax.random.normal(keys[4], (500, 500), jnp.float32),
        b2=0.01 * jnp.ones((500,), jnp.float32),
        w3=0.05 * jax.random.normal(keys[5], (500, 5), jnp.float32),
        b3=jnp.zeros((5,), jnp.float32),
    )
    return dict(convs=convs, fc=fc, H=H, W=W)


def _banded_conv_weights(w_torch, W):
    """Fold the 3 w-taps + ReflectionPad(1) in w into 3 (W*Cin, W*Cout) mats."""
    w = np.asarray(w_torch, dtype=np.float64)          # (Cout, Cin, 3, 3)
    cout, cin = w.shape[0], w.shape[1]

    def refl(i):
        if i < 0:
            return -i
        if i > W - 1:
            return 2 * (W - 1) - i
        return i

    bands = np.zeros((3, W * cin, W * cout), dtype=np.float64)
    for dh in range(3):
        for wo in range(W):
            for dw in range(3):
                wi = refl(wo + dw - 1)
                bands[dh, wi * cin:(wi + 1) * cin, wo * cout:(wo + 1) * cout] += \
                    w[:, :, dh, dw].T
    return [jnp.asarray(bands[d], dtype=jnp.float32) for d in range(3)]


def prepare_kernel_params(params):
    """Fold torch-layout params into the lane-dense layouts the kernel expects."""
    H, W = params["H"], params["W"]
    convs = []
    for cp in params["convs"]:
        cout = int(cp["w"].shape[0])
        wm, w0, wp = _banded_conv_weights(cp["w"], W)
        inv_std = 1.0 / np.sqrt(np.asarray(cp["r_var"], np.float64) + 1e-5)
        scale = np.asarray(cp["gamma"], np.float64) * inv_std
        shift = np.asarray(cp["beta"], np.float64) - np.asarray(cp["r_mean"], np.float64) * scale
        convs.append(dict(
            wm=wm, w0=w0, wp=wp,
            b=jnp.asarray(np.tile(np.asarray(cp["b"], np.float64), W)
                          .reshape(1, W * cout), jnp.float32),
            s=jnp.asarray(np.tile(scale, W).reshape(1, W * cout), jnp.float32),
            t=jnp.asarray(np.tile(shift, W).reshape(1, W * cout), jnp.float32)))

    fc = params["fc"]
    C = int(params["convs"][-1]["w"].shape[0])          # 8 output channels
    n_hid = int(fc["w1"].shape[1])                      # 500
    n_out = int(fc["w3"].shape[1])                      # 5
    n_hid_pad = ((n_hid + 127) // 128) * 128            # 512 (lane-dense)
    n_out_pad = max(128, ((n_out + 127) // 128) * 128)  # 128 (lane-dense)

    # fc1 rows are in torch's CHW flatten order; the conv stack emits an
    # HWC-ordered (h, w*C+c) layout, so permute rows CHW -> HWC (exact).
    w1 = np.asarray(fc["w1"], np.float32)               # (C*H*W, 500)
    w1_hwc = w1.reshape(C, H, W, n_hid).transpose(1, 2, 0, 3).reshape(H, W * C, n_hid)
    w1p = np.zeros((H, W * C, n_hid_pad), np.float32)
    w1p[:, :, :n_hid] = w1_hwc
    b1p = np.zeros((1, n_hid_pad), np.float32); b1p[0, :n_hid] = np.asarray(fc["b1"])
    w2p = np.zeros((n_hid_pad, n_hid_pad), np.float32)
    w2p[:n_hid, :n_hid] = np.asarray(fc["w2"], np.float32)
    b2p = np.zeros((1, n_hid_pad), np.float32); b2p[0, :n_hid] = np.asarray(fc["b2"])
    w3p = np.zeros((n_hid_pad, n_out_pad), np.float32)
    w3p[:n_hid, :n_out] = np.asarray(fc["w3"], np.float32)
    b3p = np.zeros((1, n_out_pad), np.float32); b3p[0, :n_out] = np.asarray(fc["b3"])

    fc_k = dict(
        w1=jnp.asarray(w1p, jnp.bfloat16), b1=jnp.asarray(b1p),
        w2=jnp.asarray(w2p, jnp.bfloat16), b2=jnp.asarray(b2p),
        w3=jnp.asarray(w3p, jnp.bfloat16), b3=jnp.asarray(b3p))
    return dict(convs=convs, fc=fc_k, n_logits=n_out)


# ------------------------------- forward wrapper ------------------------------

def siamese_forward(input1, input2, kparams):
    """Both siamese branches through ONE fused, VMEM-resident Pallas kernel."""
    B, C_in, H, W = input1.shape
    assert C_in == 1
    x1 = input1.reshape(B, H, W)      # metadata-only squeeze (C == 1)
    x2 = input2.reshape(B, H, W)

    args = [x1, x2]
    for c in kparams["convs"]:
        args += [c["wm"], c["w0"], c["wp"], c["b"], c["s"], c["t"]]
    fc = kparams["fc"]
    args += [fc["w1"], fc["b1"], fc["w2"], fc["b2"], fc["w3"], fc["b3"]]

    out = pl.pallas_call(
        _siamese_kernel,
        out_shape=jax.ShapeDtypeStruct((2 * B, fc["w3"].shape[-1]), jnp.float32),
        in_specs=[_vmem_spec() for _ in args],
        out_specs=_vmem_spec(),
    )(*args)

    logits = out[:, :kparams["n_logits"]]
    return logits[:B], logits[B:]


if __name__ == "__main__":
    key = jax.random.PRNGKey(0)
    k_in1, k_in2, k_params = jax.random.split(key, 3)

    B, C, H, W = 2, 1, 16, 16
    input1 = jax.random.normal(k_in1, (B, C, H, W), jnp.float32)
    input2 = jax.random.normal(k_in2, (B, C, H, W), jnp.float32)

    params = make_params(k_params, H=H, W=W)
    kparams = prepare_kernel_params(params)

    fwd = jax.jit(lambda a, b: siamese_forward(a, b, kparams))
    out1, out2 = fwd(input1, input2)
    jax.block_until_ready((out1, out2))

    assert out1.shape == (B, 5) and out2.shape == (B, 5)
    assert jnp.all(jnp.isfinite(out1)) and jnp.all(jnp.isfinite(out2))
    print("KERNEL_OK")
</pallas_src>

<mosaic_0001>
module attributes {stable_mosaic.version = 11 : i64} {
  func.func @_siamese_kernel(%arg0: memref<2x16x16xf32, #tpu.memory_space<vmem>>, %arg1: memref<2x16x16xf32, #tpu.memory_space<vmem>>, %arg2: memref<16x64xf32, #tpu.memory_space<vmem>>, %arg3: memref<16x64xf32, #tpu.memory_space<vmem>>, %arg4: memref<16x64xf32, #tpu.memory_space<vmem>>, %arg5: memref<1x64xf32, #tpu.memory_space<vmem>>, %arg6: memref<1x64xf32, #tpu.memory_space<vmem>>, %arg7: memref<1x64xf32, #tpu.memory_space<vmem>>, %arg8: memref<64x128xf32, #tpu.memory_space<vmem>>, %arg9: memref<64x128xf32, #tpu.memory_space<vmem>>, %arg10: memref<64x128xf32, #tpu.memory_space<vmem>>, %arg11: memref<1x128xf32, #tpu.memory_space<vmem>>, %arg12: memref<1x128xf32, #tpu.memory_space<vmem>>, %arg13: memref<1x128xf32, #tpu.memory_space<vmem>>, %arg14: memref<128x128xf32, #tpu.memory_space<vmem>>, %arg15: memref<128x128xf32, #tpu.memory_space<vmem>>, %arg16: memref<128x128xf32, #tpu.memory_space<vmem>>, %arg17: memref<1x128xf32, #tpu.memory_space<vmem>>, %arg18: memref<1x128xf32, #tpu.memory_space<vmem>>, %arg19: memref<1x128xf32, #tpu.memory_space<vmem>>, %arg20: memref<16x128x512xbf16, #tpu.memory_space<vmem>>, %arg21: memref<1x512xf32, #tpu.memory_space<vmem>>, %arg22: memref<512x512xbf16, #tpu.memory_space<vmem>>, %arg23: memref<1x512xf32, #tpu.memory_space<vmem>>, %arg24: memref<512x128xbf16, #tpu.memory_space<vmem>>, %arg25: memref<1x128xf32, #tpu.memory_space<vmem>>, %arg26: memref<4x128xf32, #tpu.memory_space<vmem>>) attributes {dimension_semantics = [], scalar_prefetch = 0 : i64, scratch_operands = 0 : i64, tpu.core_type = #tpu.core_type<tc>} {
    %c0 = arith.constant 0 : index
    %c0_0 = arith.constant 0 : index
    %c0_1 = arith.constant 0 : index
    %0 = vector.load %arg0[%c0, %c0_0, %c0_1] : memref<2x16x16xf32, #tpu.memory_space<vmem>>, vector<2x16x16xf32>
    %c0_2 = arith.constant 0 : index
    %c0_3 = arith.constant 0 : index
    %c0_4 = arith.constant 0 : index
    %1 = vector.load %arg1[%c0_2, %c0_3, %c0_4] : memref<2x16x16xf32, #tpu.memory_space<vmem>>, vector<2x16x16xf32>
    %2 = tpu.concatenate %0, %1 in 0 : vector<2x16x16xf32>, vector<2x16x16xf32> -> vector<4x16x16xf32>
    %3 = vector.extract_strided_slice %2 {offsets = [0, 1, 0], sizes = [4, 1, 16], strides = [1, 1, 1]} : vector<4x16x16xf32> to vector<4x1x16xf32>
    %4 = vector.extract_strided_slice %2 {offsets = [0, 0, 0], sizes = [4, 15, 16], strides = [1, 1, 1]} : vector<4x16x16xf32> to vector<4x15x16xf32>
    %5 = tpu.concatenate %3, %4 in 1 : vector<4x1x16xf32>, vector<4x15x16xf32> -> vector<4x16x16xf32>
    %6 = vector.extract_strided_slice %2 {offsets = [0, 1, 0], sizes = [4, 15, 16], strides = [1, 1, 1]} : vector<4x16x16xf32> to vector<4x15x16xf32>
    %7 = vector.extract_strided_slice %2 {offsets = [0, 14, 0], sizes = [4, 1, 16], strides = [1, 1, 1]} : vector<4x16x16xf32> to vector<4x1x16xf32>
    %8 = tpu.concatenate %6, %7 in 1 : vector<4x15x16xf32>, vector<4x1x16xf32> -> vector<4x16x16xf32>
    %9 = vector.shape_cast %5 : vector<4x16x16xf32> to vector<64x16xf32>
    %c0_5 = arith.constant 0 : index
    %c0_6 = arith.constant 0 : index
    %10 = vector.load %arg2[%c0_5, %c0_6] : memref<16x64xf32, #tpu.memory_space<vmem>>, vector<16x64xf32>
    %cst = arith.constant dense<0.000000e+00> : vector<64x64xf32>
    %11 = tpu.matmul %9, %10, %cst {dimension_numbers = #tpu.dot_dimension_numbers<[1], [0], [0], [1], [0, 0, 1, 1], [], []>} : vector<64x16xf32>, vector<16x64xf32>, vector<64x64xf32> -> vector<64x64xf32>
    %12 = vector.shape_cast %2 : vector<4x16x16xf32> to vector<64x16xf32>
    %c0_7 = arith.constant 0 : index
    %c0_8 = arith.constant 0 : index
    %13 = vector.load %arg3[%c0_7, %c0_8] : memref<16x64xf32, #tpu.memory_space<vmem>>, vector<16x64xf32>
    %cst_9 = arith.constant dense<0.000000e+00> : vector<64x64xf32>
    %14 = tpu.matmul %12, %13, %cst_9 {dimension_numbers = #tpu.dot_dimension_numbers<[1], [0], [0], [1], [0, 0, 1, 1], [], []>} : vector<64x16xf32>, vector<16x64xf32>, vector<64x64xf32> -> vector<64x64xf32>
    %15 = arith.addf %11, %14 : vector<64x64xf32>
    %16 = vector.shape_cast %8 : vector<4x16x16xf32> to vector<64x16xf32>
    %c0_10 = arith.constant 0 : index
    %c0_11 = arith.constant 0 : index
    %17 = vector.load %arg4[%c0_10, %c0_11] : memref<16x64xf32, #tpu.memory_space<vmem>>, vector<16x64xf32>
    %cst_12 = arith.constant dense<0.000000e+00> : vector<64x64xf32>
    %18 = tpu.matmul %16, %17, %cst_12 {dimension_numbers = #tpu.dot_dimension_numbers<[1], [0], [0], [1], [0, 0, 1, 1], [], []>} : vector<64x16xf32>, vector<16x64xf32>, vector<64x64xf32> -> vector<64x64xf32>
    %19 = arith.addf %15, %18 : vector<64x64xf32>
    %c0_13 = arith.constant 0 : index
    %c0_14 = arith.constant 0 : index
    %20 = vector.load %arg5[%c0_13, %c0_14] : memref<1x64xf32, #tpu.memory_space<vmem>>, vector<1x64xf32>
    %21 = vector.broadcast %20 : vector<1x64xf32> to vector<64x64xf32>
    %22 = arith.addf %19, %21 : vector<64x64xf32>
    %cst_15 = arith.constant 0.000000e+00 : f32
    %23 = vector.broadcast %cst_15 : f32 to vector<64x64xf32>
    %24 = arith.maximumf %22, %23 : vector<64x64xf32>
    %c0_16 = arith.constant 0 : index
    %c0_17 = arith.constant 0 : index
    %25 = vector.load %arg6[%c0_16, %c0_17] : memref<1x64xf32, #tpu.memory_space<vmem>>, vector<1x64xf32>
    %26 = vector.broadcast %25 : vector<1x64xf32> to vector<64x64xf32>
    %27 = arith.mulf %24, %26 : vector<64x64xf32>
    %c0_18 = arith.constant 0 : index
    %c0_19 = arith.constant 0 : index
    %28 = vector.load %arg7[%c0_18, %c0_19] : memref<1x64xf32, #tpu.memory_space<vmem>>, vector<1x64xf32>
    %29 = vector.broadcast %28 : vector<1x64xf32> to vector<64x64xf32>
    %30 = arith.addf %27, %29 : vector<64x64xf32>
    %31 = vector.shape_cast %30 : vector<64x64xf32> to vector<4x16x64xf32>
    %32 = vector.extract_strided_slice %31 {offsets = [0, 1, 0], sizes = [4, 1, 64], strides = [1, 1, 1]} : vector<4x16x64xf32> to vector<4x1x64xf32>
    %33 = vector.extract_strided_slice %31 {offsets = [0, 0, 0], sizes = [4, 15, 64], strides = [1, 1, 1]} : vector<4x16x64xf32> to vector<4x15x64xf32>
    %34 = tpu.concatenate %32, %33 in 1 : vector<4x1x64xf32>, vector<4x15x64xf32> -> vector<4x16x64xf32>
    %35 = vector.extract_strided_slice %31 {offsets = [0, 1, 0], sizes = [4, 15, 64], strides = [1, 1, 1]} : vector<4x16x64xf32> to vector<4x15x64xf32>
    %36 = vector.extract_strided_slice %31 {offsets = [0, 14, 0], sizes = [4, 1, 64], strides = [1, 1, 1]} : vector<4x16x64xf32> to vector<4x1x64xf32>
    %37 = tpu.concatenate %35, %36 in 1 : vector<4x15x64xf32>, vector<4x1x64xf32> -> vector<4x16x64xf32>
    %38 = vector.shape_cast %34 : vector<4x16x64xf32> to vector<64x64xf32>
    %c0_20 = arith.constant 0 : index
    %c0_21 = arith.constant 0 : index
    %39 = vector.load %arg8[%c0_20, %c0_21] : memref<64x128xf32, #tpu.memory_space<vmem>>, vector<64x128xf32>
    %cst_22 = arith.constant dense<0.000000e+00> : vector<64x128xf32>
    %40 = tpu.matmul %38, %39, %cst_22 {dimension_numbers = #tpu.dot_dimension_numbers<[1], [0], [0], [1], [0, 0, 1, 1], [], []>} : vector<64x64xf32>, vector<64x128xf32>, vector<64x128xf32> -> vector<64x128xf32>
    %41 = vector.shape_cast %31 : vector<4x16x64xf32> to vector<64x64xf32>
    %c0_23 = arith.constant 0 : index
    %c0_24 = arith.constant 0 : index
    %42 = vector.load %arg9[%c0_23, %c0_24] : memref<64x128xf32, #tpu.memory_space<vmem>>, vector<64x128xf32>
    %cst_25 = arith.constant dense<0.000000e+00> : vector<64x128xf32>
    %43 = tpu.matmul %41, %42, %cst_25 {dimension_numbers = #tpu.dot_dimension_numbers<[1], [0], [0], [1], [0, 0, 1, 1], [], []>} : vector<64x64xf32>, vector<64x128xf32>, vector<64x128xf32> -> vector<64x128xf32>
    %44 = arith.addf %40, %43 : vector<64x128xf32>
    %45 = vector.shape_cast %37 : vector<4x16x64xf32> to vector<64x64xf32>
    %c0_26 = arith.constant 0 : index
    %c0_27 = arith.constant 0 : index
    %46 = vector.load %arg10[%c0_26, %c0_27] : memref<64x128xf32, #tpu.memory_space<vmem>>, vector<64x128xf32>
    %cst_28 = arith.constant dense<0.000000e+00> : vector<64x128xf32>
    %47 = tpu.matmul %45, %46, %cst_28 {dimension_numbers = #tpu.dot_dimension_numbers<[1], [0], [0], [1], [0, 0, 1, 1], [], []>} : vector<64x64xf32>, vector<64x128xf32>, vector<64x128xf32> -> vector<64x128xf32>
    %48 = arith.addf %44, %47 : vector<64x128xf32>
    %c0_29 = arith.constant 0 : index
    %c0_30 = arith.constant 0 : index
    %49 = vector.load %arg11[%c0_29, %c0_30] : memref<1x128xf32, #tpu.memory_space<vmem>>, vector<1x128xf32>
    %50 = vector.broadcast %49 : vector<1x128xf32> to vector<64x128xf32>
    %51 = arith.addf %48, %50 : vector<64x128xf32>
    %cst_31 = arith.constant 0.000000e+00 : f32
    %52 = vector.broadcast %cst_31 : f32 to vector<64x128xf32>
    %53 = arith.maximumf %51, %52 : vector<64x128xf32>
    %c0_32 = arith.constant 0 : index
    %c0_33 = arith.constant 0 : index
    %54 = vector.load %arg12[%c0_32, %c0_33] : memref<1x128xf32, #tpu.memory_space<vmem>>, vector<1x128xf32>
    %55 = vector.broadcast %54 : vector<1x128xf32> to vector<64x128xf32>
    %56 = arith.mulf %53, %55 : vector<64x128xf32>
    %c0_34 = arith.constant 0 : index
    %c0_35 = arith.constant 0 : index
    %57 = vector.load %arg13[%c0_34, %c0_35] : memref<1x128xf32, #tpu.memory_space<vmem>>, vector<1x128xf32>
    %58 = vector.broadcast %57 : vector<1x128xf32> to vector<64x128xf32>
    %59 = arith.addf %56, %58 : vector<64x128xf32>
    %60 = vector.shape_cast %59 : vector<64x128xf32> to vector<4x16x128xf32>
    %61 = vector.extract_strided_slice %60 {offsets = [0, 1, 0], sizes = [4, 1, 128], strides = [1, 1, 1]} : vector<4x16x128xf32> to vector<4x1x128xf32>
    %62 = vector.extract_strided_slice %60 {offsets = [0, 0, 0], sizes = [4, 15, 128], strides = [1, 1, 1]} : vector<4x16x128xf32> to vector<4x15x128xf32>
    %63 = tpu.concatenate %61, %62 in 1 : vector<4x1x128xf32>, vector<4x15x128xf32> -> vector<4x16x128xf32>
    %64 = vector.extract_strided_slice %60 {offsets = [0, 1, 0], sizes = [4, 15, 128], strides = [1, 1, 1]} : vector<4x16x128xf32> to vector<4x15x128xf32>
    %65 = vector.extract_strided_slice %60 {offsets = [0, 14, 0], sizes = [4, 1, 128], strides = [1, 1, 1]} : vector<4x16x128xf32> to vector<4x1x128xf32>
    %66 = tpu.concatenate %64, %65 in 1 : vector<4x15x128xf32>, vector<4x1x128xf32> -> vector<4x16x128xf32>
    %67 = vector.shape_cast %63 : vector<4x16x128xf32> to vector<64x128xf32>
    %c0_36 = arith.constant 0 : index
    %c0_37 = arith.constant 0 : index
    %68 = vector.load %arg14[%c0_36, %c0_37] : memref<128x128xf32, #tpu.memory_space<vmem>>, vector<128x128xf32>
    %cst_38 = arith.constant dense<0.000000e+00> : vector<64x128xf32>
    %69 = tpu.matmul %67, %68, %cst_38 {dimension_numbers = #tpu.dot_dimension_numbers<[1], [0], [0], [1], [0, 0, 1, 1], [], []>} : vector<64x128xf32>, vector<128x128xf32>, vector<64x128xf32> -> vector<64x128xf32>
    %70 = vector.shape_cast %60 : vector<4x16x128xf32> to vector<64x128xf32>
    %c0_39 = arith.constant 0 : index
    %c0_40 = arith.constant 0 : index
    %71 = vector.load %arg15[%c0_39, %c0_40] : memref<128x128xf32, #tpu.memory_space<vmem>>, vector<128x128xf32>
    %cst_41 = arith.constant dense<0.000000e+00> : vector<64x128xf32>
    %72 = tpu.matmul %70, %71, %cst_41 {dimension_numbers = #tpu.dot_dimension_numbers<[1], [0], [0], [1], [0, 0, 1, 1], [], []>} : vector<64x128xf32>, vector<128x128xf32>, vector<64x128xf32> -> vector<64x128xf32>
    %73 = arith.addf %69, %72 : vector<64x128xf32>
    %74 = vector.shape_cast %66 : vector<4x16x128xf32> to vector<64x128xf32>
    %c0_42 = arith.constant 0 : index
    %c0_43 = arith.constant 0 : index
    %75 = vector.load %arg16[%c0_42, %c0_43] : memref<128x128xf32, #tpu.memory_space<vmem>>, vector<128x128xf32>
    %cst_44 = arith.constant dense<0.000000e+00> : vector<64x128xf32>
    %76 = tpu.matmul %74, %75, %cst_44 {dimension_numbers = #tpu.dot_dimension_numbers<[1], [0], [0], [1], [0, 0, 1, 1], [], []>} : vector<64x128xf32>, vector<128x128xf32>, vector<64x128xf32> -> vector<64x128xf32>
    %77 = arith.addf %73, %76 : vector<64x128xf32>
    %c0_45 = arith.constant 0 : index
    %c0_46 = arith.constant 0 : index
    %78 = vector.load %arg17[%c0_45, %c0_46] : memref<1x128xf32, #tpu.memory_space<vmem>>, vector<1x128xf32>
    %79 = vector.broadcast %78 : vector<1x128xf32> to vector<64x128xf32>
    %80 = arith.addf %77, %79 : vector<64x128xf32>
    %cst_47 = arith.constant 0.000000e+00 : f32
    %81 = vector.broadcast %cst_47 : f32 to vector<64x128xf32>
    %82 = arith.maximumf %80, %81 : vector<64x128xf32>
    %c0_48 = arith.constant 0 : index
    %c0_49 = arith.constant 0 : index
    %83 = vector.load %arg18[%c0_48, %c0_49] : memref<1x128xf32, #tpu.memory_space<vmem>>, vector<1x128xf32>
    %84 = vector.broadcast %83 : vector<1x128xf32> to vector<64x128xf32>
    %85 = arith.mulf %82, %84 : vector<64x128xf32>
    %c0_50 = arith.constant 0 : index
    %c0_51 = arith.constant 0 : index
    %86 = vector.load %arg19[%c0_50, %c0_51] : memref<1x128xf32, #tpu.memory_space<vmem>>, vector<1x128xf32>
    %87 = vector.broadcast %86 : vector<1x128xf32> to vector<64x128xf32>
    %88 = arith.addf %85, %87 : vector<64x128xf32>
    %89 = vector.shape_cast %88 : vector<64x128xf32> to vector<4x16x128xf32>
    %cst_52 = arith.constant 0.000000e+00 : f32
    %90 = vector.broadcast %cst_52 : f32 to vector<4x512xf32>
    %c0_53 = arith.constant 0 : index
    %c0_54 = arith.constant 0 : index
    %c0_55 = arith.constant 0 : index
    %91 = vector.load %arg20[%c0_53, %c0_54, %c0_55] : memref<16x128x512xbf16, #tpu.memory_space<vmem>>, vector<1x128x512xbf16>
    %92 = vector.shape_cast %91 : vector<1x128x512xbf16> to vector<128x512xbf16>
    %93 = vector.extract_strided_slice %89 {offsets = [0, 0, 0], sizes = [4, 1, 128], strides = [1, 1, 1]} : vector<4x16x128xf32> to vector<4x1x128xf32>
    %94 = vector.shape_cast %93 : vector<4x1x128xf32> to vector<4x128xf32>
    %95 = arith.truncf %94 : vector<4x128xf32> to vector<4x128xbf16>
    %cst_56 = arith.constant dense<0.000000e+00> : vector<4x512xf32>
    %96 = tpu.matmul %95, %92, %cst_56 {dimension_numbers = #tpu.dot_dimension_numbers<[1], [0], [0], [1], [0, 0, 1, 1], [], []>} : vector<4x128xbf16>, vector<128x512xbf16>, vector<4x512xf32> -> vector<4x512xf32>
    %97 = arith.addf %90, %96 : vector<4x512xf32>
    %c1 = arith.constant 1 : index
    %c0_57 = arith.constant 0 : index
    %c0_58 = arith.constant 0 : index
    %98 = vector.load %arg20[%c1, %c0_57, %c0_58] : memref<16x128x512xbf16, #tpu.memory_space<vmem>>, vector<1x128x512xbf16>
    %99 = vector.shape_cast %98 : vector<1x128x512xbf16> to vector<128x512xbf16>
    %100 = vector.extract_strided_slice %89 {offsets = [0, 1, 0], sizes = [4, 1, 128], strides = [1, 1, 1]} : vector<4x16x128xf32> to vector<4x1x128xf32>
    %101 = vector.shape_cast %100 : vector<4x1x128xf32> to vector<4x128xf32>
    %102 = arith.truncf %101 : vector<4x128xf32> to vector<4x128xbf16>
    %cst_59 = arith.constant dense<0.000000e+00> : vector<4x512xf32>
    %103 = tpu.matmul %102, %99, %cst_59 {dimension_numbers = #tpu.dot_dimension_numbers<[1], [0], [0], [1], [0, 0, 1, 1], [], []>} : vector<4x128xbf16>, vector<128x512xbf16>, vector<4x512xf32> -> vector<4x512xf32>
    %104 = arith.addf %97, %103 : vector<4x512xf32>
    %c2 = arith.constant 2 : index
    %c0_60 = arith.constant 0 : index
    %c0_61 = arith.constant 0 : index
    %105 = vector.load %arg20[%c2, %c0_60, %c0_61] : memref<16x128x512xbf16, #tpu.memory_space<vmem>>, vector<1x128x512xbf16>
    %106 = vector.shape_cast %105 : vector<1x128x512xbf16> to vector<128x512xbf16>
    %107 = vector.extract_strided_slice %89 {offsets = [0, 2, 0], sizes = [4, 1, 128], strides = [1, 1, 1]} : vector<4x16x128xf32> to vector<4x1x128xf32>
    %108 = vector.shape_cast %107 : vector<4x1x128xf32> to vector<4x128xf32>
    %109 = arith.truncf %108 : vector<4x128xf32> to vector<4x128xbf16>
    %cst_62 = arith.constant dense<0.000000e+00> : vector<4x512xf32>
    %110 = tpu.matmul %109, %106, %cst_62 {dimension_numbers = #tpu.dot_dimension_numbers<[1], [0], [0], [1], [0, 0, 1, 1], [], []>} : vector<4x128xbf16>, vector<128x512xbf16>, vector<4x512xf32> -> vector<4x512xf32>
    %111 = arith.addf %104, %110 : vector<4x512xf32>
    %c3 = arith.constant 3 : index
    %c0_63 = arith.constant 0 : index
    %c0_64 = arith.constant 0 : index
    %112 = vector.load %arg20[%c3, %c0_63, %c0_64] : memref<16x128x512xbf16, #tpu.memory_space<vmem>>, vector<1x128x512xbf16>
    %113 = vector.shape_cast %112 : vector<1x128x512xbf16> to vector<128x512xbf16>
    %114 = vector.extract_strided_slice %89 {offsets = [0, 3, 0], sizes = [4, 1, 128], strides = [1, 1, 1]} : vector<4x16x128xf32> to vector<4x1x128xf32>
    %115 = vector.shape_cast %114 : vector<4x1x128xf32> to vector<4x128xf32>
    %116 = arith.truncf %115 : vector<4x128xf32> to vector<4x128xbf16>
    %cst_65 = arith.constant dense<0.000000e+00> : vector<4x512xf32>
    %117 = tpu.matmul %116, %113, %cst_65 {dimension_numbers = #tpu.dot_dimension_numbers<[1], [0], [0], [1], [0, 0, 1, 1], [], []>} : vector<4x128xbf16>, vector<128x512xbf16>, vector<4x512xf32> -> vector<4x512xf32>
    %118 = arith.addf %111, %117 : vector<4x512xf32>
    %c4 = arith.constant 4 : index
    %c0_66 = arith.constant 0 : index
    %c0_67 = arith.constant 0 : index
    %119 = vector.load %arg20[%c4, %c0_66, %c0_67] : memref<16x128x512xbf16, #tpu.memory_space<vmem>>, vector<1x128x512xbf16>
    %120 = vector.shape_cast %119 : vector<1x128x512xbf16> to vector<128x512xbf16>
    %121 = vector.extract_strided_slice %89 {offsets = [0, 4, 0], sizes = [4, 1, 128], strides = [1, 1, 1]} : vector<4x16x128xf32> to vector<4x1x128xf32>
    %122 = vector.shape_cast %121 : vector<4x1x128xf32> to vector<4x128xf32>
    %123 = arith.truncf %122 : vector<4x128xf32> to vector<4x128xbf16>
    %cst_68 = arith.constant dense<0.000000e+00> : vector<4x512xf32>
    %124 = tpu.matmul %123, %120, %cst_68 {dimension_numbers = #tpu.dot_dimension_numbers<[1], [0], [0], [1], [0, 0, 1, 1], [], []>} : vector<4x128xbf16>, vector<128x512xbf16>, vector<4x512xf32> -> vector<4x512xf32>
    %125 = arith.addf %118, %124 : vector<4x512xf32>
    %c5 = arith.constant 5 : index
    %c0_69 = arith.constant 0 : index
    %c0_70 = arith.constant 0 : index
    %126 = vector.load %arg20[%c5, %c0_69, %c0_70] : memref<16x128x512xbf16, #tpu.memory_space<vmem>>, vector<1x128x512xbf16>
    %127 = vector.shape_cast %126 : vector<1x128x512xbf16> to vector<128x512xbf16>
    %128 = vector.extract_strided_slice %89 {offsets = [0, 5, 0], sizes = [4, 1, 128], strides = [1, 1, 1]} : vector<4x16x128xf32> to vector<4x1x128xf32>
    %129 = vector.shape_cast %128 : vector<4x1x128xf32> to vector<4x128xf32>
    %130 = arith.truncf %129 : vector<4x128xf32> to vector<4x128xbf16>
    %cst_71 = arith.constant dense<0.000000e+00> : vector<4x512xf32>
    %131 = tpu.matmul %130, %127, %cst_71 {dimension_numbers = #tpu.dot_dimension_numbers<[1], [0], [0], [1], [0, 0, 1, 1], [], []>} : vector<4x128xbf16>, vector<128x512xbf16>, vector<4x512xf32> -> vector<4x512xf32>
    %132 = arith.addf %125, %131 : vector<4x512xf32>
    %c6 = arith.constant 6 : index
    %c0_72 = arith.constant 0 : index
    %c0_73 = arith.constant 0 : index
    %133 = vector.load %arg20[%c6, %c0_72, %c0_73] : memref<16x128x512xbf16, #tpu.memory_space<vmem>>, vector<1x128x512xbf16>
    %134 = vector.shape_cast %133 : vector<1x128x512xbf16> to vector<128x512xbf16>
    %135 = vector.extract_strided_slice %89 {offsets = [0, 6, 0], sizes = [4, 1, 128], strides = [1, 1, 1]} : vector<4x16x128xf32> to vector<4x1x128xf32>
    %136 = vector.shape_cast %135 : vector<4x1x128xf32> to vector<4x128xf32>
    %137 = arith.truncf %136 : vector<4x128xf32> to vector<4x128xbf16>
    %cst_74 = arith.constant dense<0.000000e+00> : vector<4x512xf32>
    %138 = tpu.matmul %137, %134, %cst_74 {dimension_numbers = #tpu.dot_dimension_numbers<[1], [0], [0], [1], [0, 0, 1, 1], [], []>} : vector<4x128xbf16>, vector<128x512xbf16>, vector<4x512xf32> -> vector<4x512xf32>
    %139 = arith.addf %132, %138 : vector<4x512xf32>
    %c7 = arith.constant 7 : index
    %c0_75 = arith.constant 0 : index
    %c0_76 = arith.constant 0 : index
    %140 = vector.load %arg20[%c7, %c0_75, %c0_76] : memref<16x128x512xbf16, #tpu.memory_space<vmem>>, vector<1x128x512xbf16>
    %141 = vector.shape_cast %140 : vector<1x128x512xbf16> to vector<128x512xbf16>
    %142 = vector.extract_strided_slice %89 {offsets = [0, 7, 0], sizes = [4, 1, 128], strides = [1, 1, 1]} : vector<4x16x128xf32> to vector<4x1x128xf32>
    %143 = vector.shape_cast %142 : vector<4x1x128xf32> to vector<4x128xf32>
    %144 = arith.truncf %143 : vector<4x128xf32> to vector<4x128xbf16>
    %cst_77 = arith.constant dense<0.000000e+00> : vector<4x512xf32>
    %145 = tpu.matmul %144, %141, %cst_77 {dimension_numbers = #tpu.dot_dimension_numbers<[1], [0], [0], [1], [0, 0, 1, 1], [], []>} : vector<4x128xbf16>, vector<128x512xbf16>, vector<4x512xf32> -> vector<4x512xf32>
    %146 = arith.addf %139, %145 : vector<4x512xf32>
    %c8 = arith.constant 8 : index
    %c0_78 = arith.constant 0 : index
    %c0_79 = arith.constant 0 : index
    %147 = vector.load %arg20[%c8, %c0_78, %c0_79] : memref<16x128x512xbf16, #tpu.memory_space<vmem>>, vector<1x128x512xbf16>
    %148 = vector.shape_cast %147 : vector<1x128x512xbf16> to vector<128x512xbf16>
    %149 = vector.extract_strided_slice %89 {offsets = [0, 8, 0], sizes = [4, 1, 128], strides = [1, 1, 1]} : vector<4x16x128xf32> to vector<4x1x128xf32>
    %150 = vector.shape_cast %149 : vector<4x1x128xf32> to vector<4x128xf32>
    %151 = arith.truncf %150 : vector<4x128xf32> to vector<4x128xbf16>
    %cst_80 = arith.constant dense<0.000000e+00> : vector<4x512xf32>
    %152 = tpu.matmul %151, %148, %cst_80 {dimension_numbers = #tpu.dot_dimension_numbers<[1], [0], [0], [1], [0, 0, 1, 1], [], []>} : vector<4x128xbf16>, vector<128x512xbf16>, vector<4x512xf32> -> vector<4x512xf32>
    %153 = arith.addf %146, %152 : vector<4x512xf32>
    %c9 = arith.constant 9 : index
    %c0_81 = arith.constant 0 : index
    %c0_82 = arith.constant 0 : index
    %154 = vector.load %arg20[%c9, %c0_81, %c0_82] : memref<16x128x512xbf16, #tpu.memory_space<vmem>>, vector<1x128x512xbf16>
    %155 = vector.shape_cast %154 : vector<1x128x512xbf16> to vector<128x512xbf16>
    %156 = vector.extract_strided_slice %89 {offsets = [0, 9, 0], sizes = [4, 1, 128], strides = [1, 1, 1]} : vector<4x16x128xf32> to vector<4x1x128xf32>
    %157 = vector.shape_cast %156 : vector<4x1x128xf32> to vector<4x128xf32>
    %158 = arith.truncf %157 : vector<4x128xf32> to vector<4x128xbf16>
    %cst_83 = arith.constant dense<0.000000e+00> : vector<4x512xf32>
    %159 = tpu.matmul %158, %155, %cst_83 {dimension_numbers = #tpu.dot_dimension_numbers<[1], [0], [0], [1], [0, 0, 1, 1], [], []>} : vector<4x128xbf16>, vector<128x512xbf16>, vector<4x512xf32> -> vector<4x512xf32>
    %160 = arith.addf %153, %159 : vector<4x512xf32>
    %c10 = arith.constant 10 : index
    %c0_84 = arith.constant 0 : index
    %c0_85 = arith.constant 0 : index
    %161 = vector.load %arg20[%c10, %c0_84, %c0_85] : memref<16x128x512xbf16, #tpu.memory_space<vmem>>, vector<1x128x512xbf16>
    %162 = vector.shape_cast %161 : vector<1x128x512xbf16> to vector<128x512xbf16>
    %163 = vector.extract_strided_slice %89 {offsets = [0, 10, 0], sizes = [4, 1, 128], strides = [1, 1, 1]} : vector<4x16x128xf32> to vector<4x1x128xf32>
    %164 = vector.shape_cast %163 : vector<4x1x128xf32> to vector<4x128xf32>
    %165 = arith.truncf %164 : vector<4x128xf32> to vector<4x128xbf16>
    %cst_86 = arith.constant dense<0.000000e+00> : vector<4x512xf32>
    %166 = tpu.matmul %165, %162, %cst_86 {dimension_numbers = #tpu.dot_dimension_numbers<[1], [0], [0], [1], [0, 0, 1, 1], [], []>} : vector<4x128xbf16>, vector<128x512xbf16>, vector<4x512xf32> -> vector<4x512xf32>
    %167 = arith.addf %160, %166 : vector<4x512xf32>
    %c11 = arith.constant 11 : index
    %c0_87 = arith.constant 0 : index
    %c0_88 = arith.constant 0 : index
    %168 = vector.load %arg20[%c11, %c0_87, %c0_88] : memref<16x128x512xbf16, #tpu.memory_space<vmem>>, vector<1x128x512xbf16>
    %169 = vector.shape_cast %168 : vector<1x128x512xbf16> to vector<128x512xbf16>
    %170 = vector.extract_strided_slice %89 {offsets = [0, 11, 0], sizes = [4, 1, 128], strides = [1, 1, 1]} : vector<4x16x128xf32> to vector<4x1x128xf32>
    %171 = vector.shape_cast %170 : vector<4x1x128xf32> to vector<4x128xf32>
    %172 = arith.truncf %171 : vector<4x128xf32> to vector<4x128xbf16>
    %cst_89 = arith.constant dense<0.000000e+00> : vector<4x512xf32>
    %173 = tpu.matmul %172, %169, %cst_89 {dimension_numbers = #tpu.dot_dimension_numbers<[1], [0], [0], [1], [0, 0, 1, 1], [], []>} : vector<4x128xbf16>, vector<128x512xbf16>, vector<4x512xf32> -> vector<4x512xf32>
    %174 = arith.addf %167, %173 : vector<4x512xf32>
    %c12 = arith.constant 12 : index
    %c0_90 = arith.constant 0 : index
    %c0_91 = arith.constant 0 : index
    %175 = vector.load %arg20[%c12, %c0_90, %c0_91] : memref<16x128x512xbf16, #tpu.memory_space<vmem>>, vector<1x128x512xbf16>
    %176 = vector.shape_cast %175 : vector<1x128x512xbf16> to vector<128x512xbf16>
    %177 = vector.extract_strided_slice %89 {offsets = [0, 12, 0], sizes = [4, 1, 128], strides = [1, 1, 1]} : vector<4x16x128xf32> to vector<4x1x128xf32>
    %178 = vector.shape_cast %177 : vector<4x1x128xf32> to vector<4x128xf32>
    %179 = arith.truncf %178 : vector<4x128xf32> to vector<4x128xbf16>
    %cst_92 = arith.constant dense<0.000000e+00> : vector<4x512xf32>
    %180 = tpu.matmul %179, %176, %cst_92 {dimension_numbers = #tpu.dot_dimension_numbers<[1], [0], [0], [1], [0, 0, 1, 1], [], []>} : vector<4x128xbf16>, vector<128x512xbf16>, vector<4x512xf32> -> vector<4x512xf32>
    %181 = arith.addf %174, %180 : vector<4x512xf32>
    %c13 = arith.constant 13 : index
    %c0_93 = arith.constant 0 : index
    %c0_94 = arith.constant 0 : index
    %182 = vector.load %arg20[%c13, %c0_93, %c0_94] : memref<16x128x512xbf16, #tpu.memory_space<vmem>>, vector<1x128x512xbf16>
    %183 = vector.shape_cast %182 : vector<1x128x512xbf16> to vector<128x512xbf16>
    %184 = vector.extract_strided_slice %89 {offsets = [0, 13, 0], sizes = [4, 1, 128], strides = [1, 1, 1]} : vector<4x16x128xf32> to vector<4x1x128xf32>
    %185 = vector.shape_cast %184 : vector<4x1x128xf32> to vector<4x128xf32>
    %186 = arith.truncf %185 : vector<4x128xf32> to vector<4x128xbf16>
    %cst_95 = arith.constant dense<0.000000e+00> : vector<4x512xf32>
    %187 = tpu.matmul %186, %183, %cst_95 {dimension_numbers = #tpu.dot_dimension_numbers<[1], [0], [0], [1], [0, 0, 1, 1], [], []>} : vector<4x128xbf16>, vector<128x512xbf16>, vector<4x512xf32> -> vector<4x512xf32>
    %188 = arith.addf %181, %187 : vector<4x512xf32>
    %c14 = arith.constant 14 : index
    %c0_96 = arith.constant 0 : index
    %c0_97 = arith.constant 0 : index
    %189 = vector.load %arg20[%c14, %c0_96, %c0_97] : memref<16x128x512xbf16, #tpu.memory_space<vmem>>, vector<1x128x512xbf16>
    %190 = vector.shape_cast %189 : vector<1x128x512xbf16> to vector<128x512xbf16>
    %191 = vector.extract_strided_slice %89 {offsets = [0, 14, 0], sizes = [4, 1, 128], strides = [1, 1, 1]} : vector<4x16x128xf32> to vector<4x1x128xf32>
    %192 = vector.shape_cast %191 : vector<4x1x128xf32> to vector<4x128xf32>
    %193 = arith.truncf %192 : vector<4x128xf32> to vector<4x128xbf16>
    %cst_98 = arith.constant dense<0.000000e+00> : vector<4x512xf32>
    %194 = tpu.matmul %193, %190, %cst_98 {dimension_numbers = #tpu.dot_dimension_numbers<[1], [0], [0], [1], [0, 0, 1, 1], [], []>} : vector<4x128xbf16>, vector<128x512xbf16>, vector<4x512xf32> -> vector<4x512xf32>
    %195 = arith.addf %188, %194 : vector<4x512xf32>
    %c15 = arith.constant 15 : index
    %c0_99 = arith.constant 0 : index
    %c0_100 = arith.constant 0 : index
    %196 = vector.load %arg20[%c15, %c0_99, %c0_100] : memref<16x128x512xbf16, #tpu.memory_space<vmem>>, vector<1x128x512xbf16>
    %197 = vector.shape_cast %196 : vector<1x128x512xbf16> to vector<128x512xbf16>
    %198 = vector.extract_strided_slice %89 {offsets = [0, 15, 0], sizes = [4, 1, 128], strides = [1, 1, 1]} : vector<4x16x128xf32> to vector<4x1x128xf32>
    %199 = vector.shape_cast %198 : vector<4x1x128xf32> to vector<4x128xf32>
    %200 = arith.truncf %199 : vector<4x128xf32> to vector<4x128xbf16>
    %cst_101 = arith.constant dense<0.000000e+00> : vector<4x512xf32>
    %201 = tpu.matmul %200, %197, %cst_101 {dimension_numbers = #tpu.dot_dimension_numbers<[1], [0], [0], [1], [0, 0, 1, 1], [], []>} : vector<4x128xbf16>, vector<128x512xbf16>, vector<4x512xf32> -> vector<4x512xf32>
    %202 = arith.addf %195, %201 : vector<4x512xf32>
    %c0_102 = arith.constant 0 : index
    %c0_103 = arith.constant 0 : index
    %203 = vector.load %arg21[%c0_102, %c0_103] : memref<1x512xf32, #tpu.memory_space<vmem>>, vector<1x512xf32>
    %204 = vector.broadcast %203 : vector<1x512xf32> to vector<4x512xf32>
    %205 = arith.addf %202, %204 : vector<4x512xf32>
    %cst_104 = arith.constant 0.000000e+00 : f32
    %206 = vector.broadcast %cst_104 : f32 to vector<4x512xf32>
    %207 = arith.maximumf %205, %206 : vector<4x512xf32>
    %c0_105 = arith.constant 0 : index
    %c0_106 = arith.constant 0 : index
    %208 = vector.load %arg22[%c0_105, %c0_106] : memref<512x512xbf16, #tpu.memory_space<vmem>>, vector<512x512xbf16>
    %209 = arith.truncf %207 : vector<4x512xf32> to vector<4x512xbf16>
    %cst_107 = arith.constant dense<0.000000e+00> : vector<4x512xf32>
    %210 = tpu.matmul %209, %208, %cst_107 {dimension_numbers = #tpu.dot_dimension_numbers<[1], [0], [0], [1], [0, 0, 1, 1], [], []>} : vector<4x512xbf16>, vector<512x512xbf16>, vector<4x512xf32> -> vector<4x512xf32>
    %c0_108 = arith.constant 0 : index
    %c0_109 = arith.constant 0 : index
    %211 = vector.load %arg23[%c0_108, %c0_109] : memref<1x512xf32, #tpu.memory_space<vmem>>, vector<1x512xf32>
    %212 = vector.broadcast %211 : vector<1x512xf32> to vector<4x512xf32>
    %213 = arith.addf %210, %212 : vector<4x512xf32>
    %cst_110 = arith.constant 0.000000e+00 : f32
    %214 = vector.broadcast %cst_110 : f32 to vector<4x512xf32>
    %215 = arith.maximumf %213, %214 : vector<4x512xf32>
    %c0_111 = arith.constant 0 : index
    %c0_112 = arith.constant 0 : index
    %216 = vector.load %arg24[%c0_111, %c0_112] : memref<512x128xbf16, #tpu.memory_space<vmem>>, vector<512x128xbf16>
    %217 = arith.truncf %215 : vector<4x512xf32> to vector<4x512xbf16>
    %cst_113 = arith.constant dense<0.000000e+00> : vector<4x128xf32>
    %218 = tpu.matmul %217, %216, %cst_113 {dimension_numbers = #tpu.dot_dimension_numbers<[1], [0], [0], [1], [0, 0, 1, 1], [], []>} : vector<4x512xbf16>, vector<512x128xbf16>, vector<4x128xf32> -> vector<4x128xf32>
    %c0_114 = arith.constant 0 : index
    %c0_115 = arith.constant 0 : index
    %219 = vector.load %arg25[%c0_114, %c0_115] : memref<1x128xf32, #tpu.memory_space<vmem>>, vector<1x128xf32>
    %220 = vector.broadcast %219 : vector<1x128xf32> to vector<4x128xf32>
    %221 = arith.addf %218, %220 : vector<4x128xf32>
    %c0_116 = arith.constant 0 : index
    %c0_117 = arith.constant 0 : index
    %222 = vector.load %arg26[%c0_116, %c0_117] : memref<4x128xf32, #tpu.memory_space<vmem>>, vector<4x128xf32>
    tpu.vector_store %arg26[%c0_116, %c0_117], %221 {strides = array<i32>} : memref<4x128xf32, #tpu.memory_space<vmem>>, vector<4x128xf32>,
    return
  }
}

</mosaic_0001>

<bundles_post_ra>
// kernel: _lambda_.1
= control target key start
LH: loop header
LB: loop body
LE: loop exit
PB: predicated region body
PF: predicated region fallthrough
CT: control target
= control target key end

     0   :  { %s11933_s0 = inlined_call_operand.hbm [shape: f32[2,16,16], index: 0, kind: input, shape index: {}]   ;;  %s11934_s1 = inlined_call_operand.hbm [shape: f32[2,16,16], index: 1, kind: input, shape index: {}]   ;;  %s11935_s2 = inlined_call_operand.hbm [shape: f32[16,64], index: 2, kind: input, shape index: {}]   ;;  %s11936_s3 = inlined_call_operand.hbm [shape: f32[16,64], index: 3, kind: input, shape index: {}]   ;;  %s11937_s4 = inlined_call_operand.hbm [shape: f32[16,64], index: 4, kind: input, shape index: {}]   ;;  %s11938_s5 = inlined_call_operand.hbm [shape: f32[1,64], index: 5, kind: input, shape index: {}]   ;;  %s11939_s6 = inlined_call_operand.hbm [shape: f32[1,64], index: 6, kind: input, shape index: {}]   ;;  %s11940_s7 = inlined_call_operand.hbm [shape: f32[1,64], index: 7, kind: input, shape index: {}]   ;;  %s11941_s8 = inlined_call_operand.hbm [shape: f32[64,128], index: 8, kind: input, shape index: {}]   ;;  %s11942_s9 = inlined_call_operand.hbm [shape: f32[64,128], index: 9, kind: input, shape index: {}]   ;;  %s11943_s10 = inlined_call_operand.hbm [shape: f32[64,128], index: 10, kind: input, shape index: {}]   ;;  %s11944_s11 = inlined_call_operand.hbm [shape: f32[1,128], index: 11, kind: input, shape index: {}, may-alias: {11,17}]   ;;  %s11945_s12 = inlined_call_operand.hbm [shape: f32[1,128], index: 12, kind: input, shape index: {}, may-alias: {12,18}]   ;;  %s11946_s13 = inlined_call_operand.hbm [shape: f32[1,128], index: 13, kind: input, shape index: {}, may-alias: {13,19}]   ;;  %s11947_s14 = inlined_call_operand.hbm [shape: f32[128,128], index: 14, kind: input, shape index: {}]   ;;  %s11948_s15 = inlined_call_operand.hbm [shape: f32[128,128], index: 15, kind: input, shape index: {}]   ;;  %s11949_s16 = inlined_call_operand.hbm [shape: f32[128,128], index: 16, kind: input, shape index: {}]   ;;  %s11950_s17 = inlined_call_operand.hbm [shape: f32[1,128], index: 17, kind: input, shape index: {}, may-alias: {11,17}]   ;;  %s11951_s18 = inlined_call_operand.hbm [shape: f32[1,128], index: 18, kind: input, shape index: {}, may-alias: {12,18}]   ;;  %s11952_s19 = inlined_call_operand.hbm [shape: f32[1,128], index: 19, kind: input, shape index: {}, may-alias: {13,19}]   ;;  %s11953_s20 = inlined_call_operand.hbm [shape: bf16[16,128,512], index: 20, kind: input, shape index: {}]   ;;  %s11954_s21 = inlined_call_operand.hbm [shape: f32[1,512], index: 21, kind: input, shape index: {}, may-alias: {21,23}]   ;;  %s11955_s22 = inlined_call_operand.hbm [shape: bf16[512,512], index: 22, kind: input, shape index: {}]   ;;  %s11956_s23 = inlined_call_operand.hbm [shape: f32[1,512], index: 23, kind: input, shape index: {}, may-alias: {21,23}]   ;;  %s11957_s24 = inlined_call_operand.hbm [shape: bf16[512,128], index: 24, kind: input, shape index: {}]   ;;  %s11958_s25 = inlined_call_operand.vmem [shape: f32[1,128], index: 25, kind: input, shape index: {}]   ;;  %s11959_s26 = inlined_call_operand.vmem [shape: f32[4,128], index: 26, kind: output, shape index: {}]  }
   0x1   :  { %11960 = sst [smem:[#allocation53_spill]] %s11933_s0 }
   0x2   :  { %11961 = sst [smem:[#allocation54_spill]] %s11934_s1 }
   0x3   :  { %11962 = sst [smem:[#allocation55_spill]] %s11935_s2 }
   0x4   :  { %11963 = sst [smem:[#allocation56_spill]] %s11936_s3 }
   0x5   :  { %11964 = sst [smem:[#allocation57_spill]] %s11937_s4 }
   0x6   :  { %11965 = sst [smem:[#allocation58_spill]] %s11938_s5 }
   0x7   :  { %11966 = sst [smem:[#allocation59_spill]] %s11939_s6 }
   0x8   :  { %11967 = sst [smem:[#allocation60_spill]] %s11940_s7 }
   0x9   :  { %11968 = sst [smem:[#allocation61_spill]] %s11941_s8 }
   0xa   :  { %11969 = sst [smem:[#allocation62_spill]] %s11942_s9 }
   0xb   :  { %11970 = sst [smem:[#allocation63_spill]] %s11943_s10 }
   0xc   :  { %11971 = sst [smem:[#allocation64_spill]] %s11957_s24 }
   0xd   :  { %11972 = sst [smem:[#allocation65_spill]] %s11958_s25 }
   0xe   :  { %11973 = sst [smem:[#allocation66_spill]] %s11959_s26 }
   0xf   :  { %31 = vsyncpa [#allocation3], 0 }
  0x10   :  { %32 = vsyncpa [#allocation5], 0 }
  0x11   :  { %33 = vsyncpa [#allocation8], 0 }
  0x12   :  { %34 = vsyncpa [#allocation11], 0 }
  0x13   :  { %35 = vsyncpa [#allocation14], 0 }
  0x14   :  { %36 = vsyncpa [#allocation17], 0 }
  0x15   :  { %37 = vsyncpa [#allocation20], 0 }
  0x16   :  { %38 = vsyncpa [#allocation23], 0 }
  0x17   :  { %39 = vsyncpa [#allocation26], 0 }
  0x18   :  { %40 = vsyncpa [#allocation29], 0 }
  0x19   :  { %41 = vsyncpa [#allocation32], 0 }
  0x1a   :  { %42 = vsyncpa [#allocation35], 0 }
  0x1b   :  { %43 = vsyncpa [#allocation38], 0  ;;  %s11974_s7 = sld [smem:[#allocation54_spill]]  ;;  %s10915_s8 = smov [#allocation4]  }
  0x1c   :  { %s63_s4 = sshll.u32 %s10915_s8, 4  ;;  %s11975_s9 = sld [smem:[#allocation56_spill]]  ;;  %s64_s4 = int_to_ptr.vmem [resolvable:$true] %s63_s4 }
  0x1d   :  { %s10916_s2 = smov 128   ;;  %s10917_s5 = smov 8  }
  0x1e   :  { %s10918_s10 = smov [#allocation7]   ;;  %s11976_s3 = sld [smem:[#allocation58_spill]] }
  0x1f   :  { %s89_s6 = sshll.u32 %s10918_s10, 4  ;;  %s11977_s0 = sld [smem:[#allocation60_spill]]  ;;  %s90_s6 = int_to_ptr.vmem [resolvable:$true] %s89_s6 }
  0x20   :  { %s10919_s26 = smov [#allocation10]   ;;  %s11978_s27 = sld [smem:[#allocation62_spill]] }
  0x21   :  { %s61_s28 = sshll.u32 %s11974_s7, 4  ;;  %s116_s25 = sshll.u32 %s10919_s26, 4  ;;  %s62_s28 = int_to_ptr.hbm [resolvable:$true] %s61_s28  ;;  %s117_s25 = int_to_ptr.vmem [resolvable:$true] %s116_s25 }
  0x22   :  { %s87_s30 = sshll.u32 %s11975_s9, 4  ;;  %s10921_s8 = smov [#allocation16]   ;;  %s88_s30 = int_to_ptr.hbm [resolvable:$true] %s87_s30 }
  0x23   :  { %69 = dma.hbm_to_vmem [thread:$0]  %s62_s28, 512, %s64_s4, [#allocation5], %s10916_s2, %s10916_s2, %s10917_s5  }
  0x24   :  { %s114_s7 = sshll.u32 %s11976_s3, 4  ;;  %s10920_s28 = smov [#allocation13]   ;;  %s115_s7 = int_to_ptr.hbm [resolvable:$true] %s114_s7 }
  0x25   :  { %95 = dma.hbm_to_vmem [thread:$0]  %s88_s30, 256, %s90_s6, [#allocation8], %s10916_s2, %s10916_s2, %s10917_s5  }
  0x26   :  { %s136_s9 = sshll.u32 %s11977_s0, 4  ;;  %s138_s4 = sshll.u32 %s10920_s28, 4  ;;  %s137_s9 = int_to_ptr.hbm [resolvable:$true] %s136_s9  ;;  %s139_s4 = int_to_ptr.vmem [resolvable:$true] %s138_s4 }
  0x27   :  { %119 = dma.hbm_to_vmem [thread:$0]  %s115_s7, 16, %s117_s25, [#allocation11]  }
  0x28   :  { %s159_s3 = sshll.u32 %s11978_s27, 4  ;;  %s186_s6 = sshll.u32 %s11944_s11, 4  ;;  %s160_s3 = int_to_ptr.hbm [resolvable:$true] %s159_s3  ;;  %s187_s6 = int_to_ptr.hbm [resolvable:$true] %s186_s6 }
  0x29   :  { %141 = dma.hbm_to_vmem [thread:$0]  %s137_s9, 16, %s139_s4, [#allocation14]  }
  0x2a   :  { %s161_s29 = sshll.u32 %s10921_s8, 4  ;;  %s10922_s25 = smov [#allocation19]   ;;  %s162_s29 = int_to_ptr.vmem [resolvable:$true] %s161_s29 }
  0x2b   :  { %167 = dma.hbm_to_vmem [thread:$0]  %s160_s3, 1024, %s162_s29, [#allocation17], %s10916_s2, %s10916_s2, %s10917_s5  }
  0x2c   :  { %s188_s26 = sshll.u32 %s10922_s25, 4  ;;  %s208_s28 = sshll.u32 %s11946_s13, 4  ;;  %s189_s26 = int_to_ptr.vmem [resolvable:$true] %s188_s26  ;;  %s209_s28 = int_to_ptr.hbm [resolvable:$true] %s208_s28 }
  0x2d   :  { %191 = dma.hbm_to_vmem [thread:$0]  %s187_s6, 16, %s189_s26, [#allocation20]  }
  0x2e   :  { %s231_s11 = sshll.u32 %s11948_s15, 4  ;;  %s10923_s4 = smov [#allocation22]   ;;  %s232_s11 = int_to_ptr.hbm [resolvable:$true] %s231_s11 }
  0x2f   :  { %s210_s10 = sshll.u32 %s10923_s4, 4  ;;  %s10924_s1 = smov [#allocation25]   ;;  %s211_s10 = int_to_ptr.vmem [resolvable:$true] %s210_s10 }
  0x30   :  { %213 = dma.hbm_to_vmem [thread:$0]  %s209_s28, 16, %s211_s10, [#allocation23]  }
  0x31   :  { %s233_s27 = sshll.u32 %s10924_s1, 4  ;;  %s258_s8 = sshll.u32 %s11950_s17, 4  ;;  %s234_s27 = int_to_ptr.vmem [resolvable:$true] %s233_s27  ;;  %s259_s8 = int_to_ptr.hbm [resolvable:$true] %s258_s8 }
  0x32   :  { %239 = dma.hbm_to_vmem [thread:$0]  %s232_s11, 2048, %s234_s27, [#allocation26], %s10916_s2, %s10916_s2, %s10917_s5  }
  0x33   :  { %s280_s15 = sshll.u32 %s11952_s19, 4  ;;  %s10925_s29 = smov [#allocation28]   ;;  %s281_s15 = int_to_ptr.hbm [resolvable:$true] %s280_s15 }
  0x34   :  { %s260_s25 = sshll.u32 %s10925_s29, 4  ;;  %s10926_s26 = smov [#allocation31]   ;;  %s261_s25 = int_to_ptr.vmem [resolvable:$true] %s260_s25 }
  0x35   :  { %263 = dma.hbm_to_vmem [thread:$0]  %s259_s8, 16, %s261_s25, [#allocation29]  }
  0x36   :  { %s282_s7 = sshll.u32 %s10926_s26, 4  ;;  %s304_s17 = sshll.u32 %s11954_s21, 4  ;;  %s283_s7 = int_to_ptr.vmem [resolvable:$true] %s282_s7  ;;  %s305_s17 = int_to_ptr.hbm [resolvable:$true] %s304_s17 }
  0x37   :  { %285 = dma.hbm_to_vmem [thread:$0]  %s281_s15, 16, %s283_s7, [#allocation32]  }
  0x38   :  { %s328_s11 = sshll.u32 %s11956_s23, 4  ;;  %s10927_s4 = smov [#allocation34]   ;;  %s329_s11 = int_to_ptr.hbm [resolvable:$true] %s328_s11 }
  0x39   :  { %s306_s19 = sshll.u32 %s10927_s4, 4  ;;  %s10928_s10 = smov [#allocation37]   ;;  %s307_s19 = int_to_ptr.vmem [resolvable:$true] %s306_s19 }
  0x3a   :  { %309 = dma.hbm_to_vmem [thread:$0]  %s305_s17, 64, %s307_s19, [#allocation35]  }
  0x3b   :  { %s330_s1 = sshll.u32 %s10928_s10, 4  ;;  %s11979_s30 = sld [smem:[#allocation53_spill]]  ;;  %s331_s1 = int_to_ptr.vmem [resolvable:$true] %s330_s1 }
  0x3c   :  { %333 = dma.hbm_to_vmem [thread:$0]  %s329_s11, 64, %s331_s1, [#allocation38]  }
  0x3d   :  { %s11980_s6 = sld [smem:[#allocation55_spill]]  ;;  %s10929_s29 = smov [#allocation2]  }
  0x3e   :  { %s50_s23 = sshll.u32 %s10929_s29, 4  ;;  %s10930_s25 = smov [#allocation6]   ;;  %s51_s23 = int_to_ptr.vmem [resolvable:$true] %s50_s23 }
  0x3f   :  { %s76_s26 = sshll.u32 %s10930_s25, 4  ;;  %s11981_s28 = sld [smem:[#allocation57_spill]]  ;;  %s77_s26 = int_to_ptr.vmem [resolvable:$true] %s76_s26 }
  0x40   :  { %s11982_s11 = sld [smem:[#allocation59_spill]]  ;;  %s10931_s19 = smov [#allocation9]  }
  0x41   :  { %s48_s8 = sshll.u32 %s11979_s30, 4  ;;  %s102_s10 = sshll.u32 %s10931_s19, 4  ;;  %s49_s8 = int_to_ptr.hbm [resolvable:$true] %s48_s8  ;;  %s103_s10 = int_to_ptr.vmem [resolvable:$true] %s102_s10 }
  0x42   :  { %56 = dma.hbm_to_vmem [thread:$0]  %s49_s8, 512, %s51_s23, [#allocation3], %s10916_s2, %s10916_s2, %s10917_s5  }
  0x43   :  { %s74_s15 = sshll.u32 %s11980_s6, 4  ;;  %s10932_s1 = smov [#allocation12]   ;;  %s75_s15 = int_to_ptr.hbm [resolvable:$true] %s74_s15 }
  0x44   :  { %82 = dma.hbm_to_vmem [thread:$0]  %s75_s15, 256, %s77_s26, [#allocation5], %s10916_s2, %s10916_s2, %s10917_s5  }
  0x45   :  { %s100_s17 = sshll.u32 %s11981_s28, 4  ;;  %s127_s27 = sshll.u32 %s10932_s1, 4  ;;  %s101_s17 = int_to_ptr.hbm [resolvable:$true] %s100_s17  ;;  %s128_s27 = int_to_ptr.vmem [resolvable:$true] %s127_s27 }
  0x46   :  { %s125_s4 = sshll.u32 %s11982_s11, 4  ;;  %s11983_s8 = sld [smem:[#allocation61_spill]]  ;;  %s126_s4 = int_to_ptr.hbm [resolvable:$true] %s125_s4 }
  0x47   :  { %108 = dma.hbm_to_vmem [thread:$0]  %s101_s17, 256, %s103_s10, [#allocation8], %s10916_s2, %s10916_s2, %s10917_s5  }
  0x48   :  { %130 = dma.hbm_to_vmem [thread:$0]  %s126_s4, 16, %s128_s27, [#allocation11]  }
  0x49   :  { %s11984_s15 = sld [smem:[#allocation63_spill]]  ;;  %s10933_s23 = smov [#allocation15]  }
  0x4a   :  { %s148_s25 = sshll.u32 %s10933_s23, 4  ;;  %s10934_s26 = smov [#allocation18]   ;;  %s149_s25 = int_to_ptr.vmem [resolvable:$true] %s148_s25 }
  0x4b   :  { %s174_s7 = sshll.u32 %s10934_s26, 4  ;;  %s197_s17 = sshll.u32 %s11945_s12, 4  ;;  %s175_s7 = int_to_ptr.vmem [resolvable:$true] %s174_s7  ;;  %s198_s17 = int_to_ptr.hbm [resolvable:$true] %s197_s17 }
  0x4c   :  { %s146_s21 = sshll.u32 %s11983_s8, 4  ;;  %s218_s11 = sshll.u32 %s11947_s14, 4  ;;  %s147_s21 = int_to_ptr.hbm [resolvable:$true] %s146_s21  ;;  %s219_s11 = int_to_ptr.hbm [resolvable:$true] %s218_s11 }
  0x4d   :  { %154 = dma.hbm_to_vmem [thread:$0]  %s147_s21, 1024, %s149_s25, [#allocation14], %s10916_s2, %s10916_s2, %s10917_s5  }
  0x4e   :  { %s10935_s4 = smov [#allocation21]   ;;  %s10936_s10 = smov [#allocation24]  }
  0x4f   :  { %s172_s29 = sshll.u32 %s11984_s15, 4  ;;  %s199_s19 = sshll.u32 %s10935_s4, 4  ;;  %s173_s29 = int_to_ptr.hbm [resolvable:$true] %s172_s29  ;;  %s200_s19 = int_to_ptr.vmem [resolvable:$true] %s199_s19 }
  0x50   :  { %180 = dma.hbm_to_vmem [thread:$0]  %s173_s29, 1024, %s175_s7, [#allocation17], %s10916_s2, %s10916_s2, %s10917_s5  }
  0x51   :  { %202 = dma.hbm_to_vmem [thread:$0]  %s198_s17, 16, %s200_s19, [#allocation20]  }
  0x52   :  { %s220_s1 = sshll.u32 %s10936_s10, 4  ;;  %s244_s12 = sshll.u32 %s11949_s16, 4  ;;  %s221_s1 = int_to_ptr.vmem [resolvable:$true] %s220_s1  ;;  %s245_s12 = int_to_ptr.hbm [resolvable:$true] %s244_s12 }
  0x53   :  { %226 = dma.hbm_to_vmem [thread:$0]  %s219_s11, 2048, %s221_s1, [#allocation23], %s10916_s2, %s10916_s2, %s10917_s5  }
  0x54   :  { %s269_s14 = sshll.u32 %s11951_s18, 4  ;;  %s10937_s21 = smov [#allocation27]   ;;  %s270_s14 = int_to_ptr.hbm [resolvable:$true] %s269_s14 }
  0x55   :  { %s246_s13 = sshll.u32 %s10937_s21, 4  ;;  %s10938_s6 = smov [#allocation30]   ;;  %s247_s13 = int_to_ptr.vmem [resolvable:$true] %s246_s13 }
  0x56   :  { %252 = dma.hbm_to_vmem [thread:$0]  %s245_s12, 2048, %s247_s13, [#allocation26], %s10916_s2, %s10916_s2, %s10917_s5  }
  0x57   :  { %s271_s16 = sshll.u32 %s10938_s6, 4  ;;  %s290_s23 = sshll.u32 %s11953_s20, 4  ;;  %s272_s16 = int_to_ptr.vmem [resolvable:$true] %s271_s16  ;;  %s291_s23 = int_to_ptr.hbm [resolvable:$true] %s290_s23 }
  0x58   :  { %274 = dma.hbm_to_vmem [thread:$0]  %s270_s14, 16, %s272_s16, [#allocation29]  }
  0x59   :  { %s10939_s25 = smov [#allocation33]   ;;  %s314_s0 = sshll.u32 %s11955_s22, 4  ;;  %s315_s0 = int_to_ptr.hbm [resolvable:$true] %s314_s0 }
  0x5a   :  { %s292_s26 = sshll.u32 %s10939_s25, 4  ;;  %s10940_s28 = smov 256   ;;  %s293_s26 = int_to_ptr.vmem [resolvable:$true] %s292_s26 }
  0x5b   :  { %s10941_s17 = smov 16   ;;  %s10942_s2 = smov [#allocation36]  }
  0x5c   :  { %298 = dma.hbm_to_vmem [thread:$0]  %s291_s23, 65536, %s293_s26, [#allocation32], %s10940_s28, %s10940_s28, %s10941_s17  }
  0x5d   :  { %s316_s5 = sshll.u32 %s10942_s2, 4  ;;  %s11985_s11 = sld [smem:[#allocation64_spill]]  ;;  %s317_s5 = int_to_ptr.vmem [resolvable:$true] %s316_s5 }
  0x5e   :  { %322 = dma.hbm_to_vmem [thread:$0]  %s315_s0, 16384, %s317_s5, [#allocation35], %s10940_s28, %s10940_s28, %s10941_s17  }
  0x5f   :  { %s10943_s4 = smov [#allocation39]   ;;  %s10944_s10 = smov 64  }
  0x60   :  { %s340_s19 = sshll.u32 %s10943_s4, 4  ;;  %s10945_s1 = smov 4   ;;  %s341_s19 = int_to_ptr.vmem [resolvable:$true] %s340_s19 }
  0x63   :  { %s338_s20 = sshll.u32 %s11985_s11, 4  ;;  %s339_s20 = int_to_ptr.hbm [resolvable:$true] %s338_s20 }
  0x64   :  { %346 = dma.hbm_to_vmem [thread:$0]  %s339_s20, 4096, %s341_s19, [#allocation38], %s10944_s10, %s10944_s10, %s10945_s1  }
  0x65   :  { %10889 = dma.done.wait [#allocation3], 512  }
  0x66   :  { %10890 = vsyncadd [#allocation3], 4294966784 }
  0x67   :  { %10891 = dma.done.wait [#allocation5], 768  }
  0x68   :  { %10892 = vsyncadd [#allocation5], 4294966528 }
  0x69   :  { %10893 = dma.done.wait [#allocation8], 512  }
  0x6a   :  { %10894 = vsyncadd [#allocation8], 4294966784 }
  0x6b   :  { %10895 = dma.done.wait [#allocation11], 32  }
  0x6c   :  { %10896 = vsyncadd [#allocation11], 4294967264 }
  0x6d   :  { %10897 = dma.done.wait [#allocation14], 1040  }
  0x6e   :  { %10898 = vsyncadd [#allocation14], 4294966256 }
  0x6f   :  { %10899 = dma.done.wait [#allocation17], 2048  }
  0x70   :  { %10900 = vsyncadd [#allocation17], 4294965248 }
  0x71   :  { %10901 = dma.done.wait [#allocation20], 32  }
  0x72   :  { %10902 = vsyncadd [#allocation20], 4294967264 }
  0x73   :  { %10903 = dma.done.wait [#allocation23], 2064  }
  0x74   :  { %10904 = vsyncadd [#allocation23], 4294965232 }
  0x75   :  { %10905 = dma.done.wait [#allocation26], 4096  }
  0x76   :  { %10906 = vsyncadd [#allocation26], 4294963200 }
  0x77   :  { %10907 = dma.done.wait [#allocation29], 32  }
  0x78   :  { %10908 = vsyncadd [#allocation29], 4294967264 }
  0x79   :  { %10909 = dma.done.wait [#allocation32], 65552  }
  0x7a   :  { %10910 = vsyncadd [#allocation32], 4294901744 }
  0x7b   :  { %10911 = dma.done.wait [#allocation35], 16448  }
  0x7c   :  { %10912 = vsyncadd [#allocation35], 4294950848 }
  0x7d   :  { %10913 = dma.done.wait [#allocation38], 4160  }
  0x7e   :  { %10914 = vsyncadd [#allocation38], 4294963136  ;;  %v518_v0 = vld [vmem:[#allocation7 + $0x8] sm:$0xff]  ;;  %v517_v1 = vld [vmem:[#allocation7] sm:$0xff]  ;;  %vm519_vm0 = vcmask 130048   ;;  %vm473_vm1 = vcmask 1040384  }
  0x7f   :  { %10244 = vmatpush.msra.mxu2 %v518_v0  ;;  %v11189_v2 = vld [vmem:[#allocation4 + $0x18] sm:$0xff]  ;;  %v516_v3 = vld [vmem:[#allocation6 + $0x8] sm:$0xff]  ;;  %550 = vmatpush.msra.mxu0 %v518_v0  ;;  %v11191_v4 = vld [vmem:[#allocation4 + $0x10] sm:$0xff]  ;;  %vm494_vm2 = vcmask 1046528   ;;  %vm825_vm3 = vcmask 523264   ;;  %vm1430_vm4 = vcmask 1041409  }
  0x80   :  { %v449_v5 = vld [vmem:[#allocation2] sm:$0xff]  ;;  %611 = vmatpush.msra.mxu1 %v516_v3  ;;  %v484_v9 = vrot.slane %v11189_v2, 7  ;;  %v483_v10 = vrot.slane %v11191_v4, 7  ;;  %v639_v11 = vld [vmem:[#allocation9 + $0x8] sm:$0xff]  ;;  %v451_v19 = vld [vmem:[#allocation2 + $0x10] sm:$0xff]  ;;  %v464_v40 = vrot.slane %v11191_v4, 1 }
  0x81   :  { %10245 = vmatpush.msra.mxu2 %v517_v1  ;;  %v515_v6 = vld [vmem:[#allocation6] sm:$0xff]  ;;  %v461_v7 = vrot.slane %v449_v5, 1  ;;  %551 = vmatpush.msra.mxu0 %v517_v1  ;;  %v474_v8 = vrot.slane %v449_v5, 7  ;;  %v450_v14 = vld [vmem:[#allocation2 + $0x8] sm:$0xff]  ;;  %v477_v20 = vrot.slane %v451_v19, 7  ;;  %v462_v22 = vrot.slane %v451_v19, 1 }
  0x82   :  { %6843 = vmatmul.msk.f32.vlgmr.msra.gmra.mxu2 %vm519_vm0, %v11189_v2  ;;  %612 = vmatpush.msra.mxu1 %v515_v6  ;;  %v638_v12 = vld [vmem:[#allocation9] sm:$0xff]  ;;  %v485_v15 = vsel %vm473_vm1, %v483_v10, %v484_v9  ;;  %v475_v16 = vrot.slane %v450_v14, 7  ;;  %v495_v18 = vrot.slane %v450_v14, 1  ;;  %v452_v24 = vld [vmem:[#allocation2 + $0x18] sm:$0xff]  ;;  %v454_v34 = vld [vmem:[#allocation4 + $0x8] sm:$0xff]  ;;  %v493_v41 = vsel %vm473_vm1, %v464_v40, %v483_v10  ;;  %s11986_s3 = sld [smem:[#allocation65_spill]] }
  0x83   :  { %10246 = vmatpush.msrb.mxu2 %v516_v3  ;;  %6836 = vmatmul.msk.f32.vlgmr.msra.gmra.mxu0 %vm519_vm0, %v449_v5  ;;  %v490_v13 = vsel %vm473_vm1, %v461_v7, %v474_v8  ;;  %v491_v23 = vsel %vm473_vm1, %v462_v22, %v477_v20  ;;  %v478_v26 = vrot.slane %v452_v24, 7  ;;  %v497_v28 = vrot.slane %v452_v24, 1  ;;  %v453_v29 = vld [vmem:[#allocation4] sm:$0xff]  ;;  %v824_v46 = vld [vmem:[#allocation16 + $0x38] sm:$0xff]  ;;  %v821_v51 = vld [vmem:[#allocation16 + $0x20] sm:$0xff]  ;;  %s11987_s8 = sld [smem:[#allocation66_spill]] }
  0x84   :  { %6844 = vmatmul.msk.f32.vlgmr.msra.gmra.mxu1 %vm519_vm0, %v490_v13  ;;  %v476_v17 = vsel %vm473_vm1, %v474_v8, %v475_v16  ;;  %v496_v21 = vsel %vm494_vm2, %v461_v7, %v495_v18  ;;  %v511_v25 = vsel %vm494_vm2, %v495_v18, %v475_v16  ;;  %v480_v30 = vrot.slane %v453_v29, 7  ;;  %v823_v47 = vld [vmem:[#allocation16 + $0x30] sm:$0xff]  ;;  %v816_v48 = vld [vmem:[#allocation15 + $0x38] sm:$0xff]  ;;  %850 = vmatpush.msra.mxu3 %v824_v46  ;;  %v822_v49 = vld [vmem:[#allocation16 + $0x28] sm:$0xff] }
  0x85   :  { %10247 = vmatpush.msrb.mxu2 %v515_v6  ;;  %v479_v27 = vsel %vm473_vm1, %v477_v20, %v478_v26  ;;  %v498_v31 = vsel %vm494_vm2, %v462_v22, %v497_v28  ;;  %v463_v32 = vrot.slane %v453_v29, 1  ;;  %v512_v35 = vsel %vm494_vm2, %v497_v28, %v478_v26  ;;  %911 = vmatpush.msrb.mxu0 %v816_v48  ;;  %v815_v50 = vld [vmem:[#allocation15 + $0x30] sm:$0xff]  ;;  %v814_v52 = vld [vmem:[#allocation15 + $0x28] sm:$0xff]  ;;  %v820_v53 = vld [vmem:[#allocation16 + $0x18] sm:$0xff] }
  0x86   :  { %v481_v36 = vrot.slane %v454_v34, 7  ;;  %v499_v38 = vrot.slane %v454_v34, 1  ;;  %v501_v43 = vrot.slane %v11189_v2, 1  ;;  %851 = vmatpush.msra.mxu3 %v823_v47  ;;  %v813_v54 = vld [vmem:[#allocation15 + $0x20] sm:$0xff]  ;;  %v819_v55 = vld [vmem:[#allocation16 + $0x10] sm:$0xff]  ;;  %v812_v56 = vld [vmem:[#allocation15 + $0x18] sm:$0xff] }
  0x87   :  { %674 = vmatpush.msra.mxu2 %v639_v11  ;;  %v492_v33 = vsel %vm473_vm1, %v463_v32, %v480_v30  ;;  %912 = vmatpush.msrb.mxu0 %v815_v50  ;;  %v951_v57 = vld [vmem:[#allocation18 + $0x38] sm:$0xff]  ;;  %v818_v58 = vld [vmem:[#allocation16 + $0x8] sm:$0xff]  ;;  %v811_v59 = vld [vmem:[#allocation15 + $0x10] sm:$0xff]  ;;  %vm1433_vm5 = vcmask 1042434   ;;  %vm1436_vm6 = vcmask 1043459  }
  0x88   :  { %v482_v37 = vsel %vm473_vm1, %v480_v30, %v481_v36  ;;  %v500_v39 = vsel %vm494_vm2, %v463_v32, %v499_v38  ;;  %v513_v42 = vsel %vm494_vm2, %v499_v38, %v481_v36  ;;  %v502_v44 = vsel %vm494_vm2, %v464_v40, %v501_v43  ;;  %852 = vmatpush.msra.mxu3 %v822_v49  ;;  %v950_v60 = vld [vmem:[#allocation18 + $0x30] sm:$0xff]  ;;  %v817_v61 = vld [vmem:[#allocation16] sm:$0xff]  ;;  %v810_v62 = vld [vmem:[#allocation15 + $0x8] sm:$0xff] }
  0x89   :  { %675 = vmatpush.msra.mxu2 %v638_v12  ;;  %v514_v45 = vsel %vm494_vm2, %v501_v43, %v484_v9  ;;  %913 = vmatpush.msrb.mxu0 %v814_v52  ;;  %v949_v63 = vld [vmem:[#allocation18 + $0x28] sm:$0xff]  ;;  %v809_v0 = vld [vmem:[#allocation15] sm:$0xff]  ;;  %v946_v6 = vld [vmem:[#allocation18 + $0x10] sm:$0xff] }
  0x8a   :  { %6851 = vmatmul.msk.f32.vlgmr.msrb.gmra.mxu2 %vm519_vm0, %v485_v15  ;;  %853 = vmatpush.msra.mxu3 %v821_v51  ;;  %v948_v1 = vld [vmem:[#allocation18 + $0x20] sm:$0xff]  ;;  %v945_v7 = vld [vmem:[#allocation18 + $0x8] sm:$0xff]  ;;  %v11247_v13 = vld [vmem:[#allocation10] ss:$0 sm:$0xff] }
  0x8b   :  { %6837 = vmatmul.msk.f32.gmra.mxu0 %vm519_vm0, %v450_v14  ;;  %980 = vmatpush.msrb.mxu1 %v951_v57  ;;  %v944_v8 = vld [vmem:[#allocation18] sm:$0xff]  ;;  %v11252_v22 = vld [vmem:[#allocation13] ss:$0 sm:$0xff] }
  0x8c   :  { %6845 = vmatmul.msk.f32.gmra.mxu1 %vm519_vm0, %v476_v17  ;;  %854 = vmatpush.msra.mxu3 %v820_v53 }
  0x8d   :  { %914 = vmatpush.msrb.mxu0 %v813_v54  ;;  %981 = vmatpush.msrb.mxu1 %v950_v60 }
  0x8e   :  { %855 = vmatpush.msra.mxu3 %v819_v55 }
  0x8f   :  { %915 = vmatpush.msrb.mxu0 %v812_v56  ;;  %982 = vmatpush.msrb.mxu1 %v949_v63 }
  0x90   :  { %856 = vmatpush.msra.mxu3 %v818_v58 }
  0x91   :  { %916 = vmatpush.msrb.mxu0 %v811_v59  ;;  %983 = vmatpush.msrb.mxu1 %v948_v1 }
  0x92   :  { %6852 = vmatmul.msk.f32.vlgmr.msra.gmra.mxu2 %vm519_vm0, %v496_v21  ;;  %857 = vmatpush.msra.mxu3 %v817_v61 }
  0x93   :  { %6838 = vmatmul.msk.f32.gmra.mxu0 %vm519_vm0, %v451_v19  ;;  %v11250_v19 = vld [vmem:[#allocation12] ss:$0 sm:$0xff] }
  0x94   :  { %6846 = vmatmul.msk.f32.gmra.mxu1 %vm519_vm0, %v491_v23  ;;  %917 = vmatpush.msrb.mxu0 %v810_v62 }
  0x96   :  { %918 = vmatpush.msrb.mxu0 %v809_v0 }
  0x9a   :  { %6853 = vmatmul.msk.f32.gmra.mxu2 %vm519_vm0, %v511_v25 }
  0x9b   :  { %6839 = vmatmul.msk.f32.gmra.mxu0 %vm519_vm0, %v452_v24 }
  0x9c   :  { %6847 = vmatmul.msk.f32.gmra.mxu1 %vm519_vm0, %v479_v27 }
  0xa2   :  { %6854 = vmatmul.msk.f32.gmra.mxu2 %vm519_vm0, %v498_v31 }
  0xa3   :  { %6840 = vmatmul.msk.f32.gmra.mxu0 %vm519_vm0, %v453_v29 }
  0xa4   :  { %6848 = vmatmul.msk.f32.gmra.mxu1 %vm519_vm0, %v492_v33 }
  0xaa   :  { %6855 = vmatmul.msk.f32.gmra.mxu2 %vm519_vm0, %v512_v35 }
  0xab   :  { %6841 = vmatmul.msk.f32.gmra.mxu0 %vm519_vm0, %v454_v34 }
  0xac   :  { %6849 = vmatmul.msk.f32.gmra.mxu1 %vm519_vm0, %v482_v37 }
  0xb2   :  { %6856 = vmatmul.msk.f32.gmra.mxu2 %vm519_vm0, %v500_v39 }
  0xb3   :  { %6842 = vmatmul.msk.f32.gmra.mxu0 %vm519_vm0, %v11191_v4  ;;  %v947_v4 = vld [vmem:[#allocation18 + $0x18] sm:$0xff] }
  0xb4   :  { %6850 = vmatmul.msk.f32.gmra.mxu1 %vm519_vm0, %v493_v41 }
  0xb5   :  { %984 = vmatpush.msrb.mxu1 %v947_v4 }
  0xb7   :  { %985 = vmatpush.msrb.mxu1 %v946_v6 }
  0xb9   :  { %986 = vmatpush.msrb.mxu1 %v945_v7 }
  0xba   :  { %6857 = vmatmul.msk.f32.gmra.mxu2 %vm519_vm0, %v513_v42 }
  0xbb   :  { %987 = vmatpush.msrb.mxu1 %v944_v8 }
  0xc2   :  { %6858 = vmatmul.msk.f32.gmra.mxu2 %vm519_vm0, %v502_v44 }
  0xca   :  { %6859 = vmatmul.msk.f32.gmra.mxu2 %vm519_vm0, %v514_v45 }
 0x100   :  { %v553_v2 = vpop.f32.mrf.mxu0 }
 0x101   :  { %v614_v3 = vpop.f32.mrf.mxu1 }
 0x102   :  { %v615_v12 = vadd.f32 %v614_v3, %v553_v2 }
 0x105   :  { %v11243_v5 = vpop.f32.mrf.mxu2 }
 0x108   :  { %v556_v9 = vpop.f32.mrf.mxu0 }
 0x109   :  { %v617_v11 = vpop.f32.mrf.mxu1 }
 0x10a   :  { %v618_v21 = vadd.f32 %v617_v11, %v556_v9 }
 0x10d   :  { %v11245_v10 = vpop.f32.mrf.mxu2 }
 0x110   :  { %v559_v16 = vpop.f32.mrf.mxu0 }
 0x111   :  { %v620_v17 = vpop.f32.mrf.mxu1 }
 0x112   :  { %v621_v33 = vadd.f32 %v620_v17, %v559_v16 }
 0x115   :  { %v677_v14 = vpop.f32.mrf.mxu2 }
 0x116   :  { %v701_v15 = vadd.f32 %v677_v14, %v615_v12 }
 0x118   :  { %v713_v18 = vadd.f32 %v11247_v13, %v701_v15  ;;  %v562_v30 = vpop.f32.mrf.mxu0 }
 0x119   :  { %v623_v31 = vpop.f32.mrf.mxu1 }
 0x11a   :  { %v721_v20 = vmax.f32 %v713_v18, 0.0  ;;  %v624_v43 = vadd.f32 %v623_v31, %v562_v30  ;;  %v1143_v30 = vld [vmem:[#allocation24 + $0x70] sm:$0xff] }
 0x11c   :  { %v733_v23 = vmul.f32 %v11250_v19, %v721_v20 }
 0x11d   :  { %v680_v24 = vpop.f32.mrf.mxu2 }
 0x11e   :  { %v702_v25 = vadd.f32 %v680_v24, %v618_v21  ;;  %v745_v26 = vadd.f32 %v11252_v22, %v733_v23 }
 0x120   :  { %v714_v27 = vadd.f32 %v11247_v13, %v702_v25  ;;  %6860 = vmatmul.msk.f32.vlgmr.msra.gmra.mxu3 %vm825_vm3, %v745_v26  ;;  %v757_v28 = vrot.slane %v745_v26, 1  ;;  %v769_v29 = vrot.slane %v745_v26, 7  ;;  %v565_v46 = vpop.f32.mrf.mxu0  ;;  %v1160_v26 = vld [vmem:[#allocation25 + $0x78] sm:$0xff] }
 0x121   :  { %v626_v47 = vpop.f32.mrf.mxu1  ;;  %1161 = vmatpush.msrb.mxu2 %v1160_v26  ;;  %v1146_v26 = vld [vmem:[#allocation25 + $0x8] sm:$0xff] }
 0x122   :  { %v722_v32 = vmax.f32 %v714_v27, 0.0  ;;  %v785_v34 = vsel %vm473_vm1, %v757_v28, %v769_v29  ;;  %v627_v56 = vadd.f32 %v626_v47, %v565_v46  ;;  %v1159_v27 = vld [vmem:[#allocation25 + $0x70] sm:$0xff]  ;;  %v1140_v47 = vld [vmem:[#allocation24 + $0x58] sm:$0xff] }
 0x123   :  { %6868 = vmatmul.msk.f32.vlgmr.msrb.gmra.mxu0 %vm825_vm3, %v785_v34  ;;  %1162 = vmatpush.msrb.mxu2 %v1159_v27  ;;  %v1155_v46 = vld [vmem:[#allocation25 + $0x50] sm:$0xff] }
 0x124   :  { %v734_v35 = vmul.f32 %v11250_v19, %v722_v32  ;;  %v1158_v32 = vld [vmem:[#allocation25 + $0x68] sm:$0xff]  ;;  %v1131_v27 = vld [vmem:[#allocation24 + $0x10] sm:$0xff] }
 0x125   :  { %v683_v36 = vpop.f32.mrf.mxu2  ;;  %1163 = vmatpush.msrb.mxu2 %v1158_v32  ;;  %v1129_v32 = vld [vmem:[#allocation24] sm:$0xff] }
 0x126   :  { %v703_v37 = vadd.f32 %v683_v36, %v621_v33  ;;  %v746_v38 = vadd.f32 %v11252_v22, %v734_v35  ;;  %v1142_v35 = vld [vmem:[#allocation24 + $0x68] sm:$0xff]  ;;  %v1258_v36 = vld [vmem:[#allocation27 + $0x78] sm:$0xff] }
 0x127   :  { %1259 = vmatpush.msra.mxu0 %v1258_v36  ;;  %v1244_v36 = vld [vmem:[#allocation27 + $0x8] sm:$0xff] }
 0x128   :  { %v715_v39 = vadd.f32 %v11247_v13, %v703_v37  ;;  %6861 = vmatmul.msk.f32.gmra.mxu3 %vm825_vm3, %v746_v38  ;;  %v770_v40 = vrot.slane %v746_v38, 7  ;;  %v789_v41 = vrot.slane %v746_v38, 1  ;;  %v568_v60 = vpop.f32.mrf.mxu0  ;;  %v1157_v37 = vld [vmem:[#allocation25 + $0x60] sm:$0xff] }
 0x129   :  { %v629_v62 = vpop.f32.mrf.mxu1  ;;  %1164 = vmatpush.msrb.mxu2 %v1157_v37  ;;  %v1243_v37 = vld [vmem:[#allocation27] sm:$0xff] }
 0x12a   :  { %v723_v42 = vmax.f32 %v715_v39, 0.0  ;;  %v771_v44 = vsel %vm473_vm1, %v769_v29, %v770_v40  ;;  %v790_v45 = vsel %vm494_vm2, %v757_v28, %v789_v41  ;;  %v805_v58 = vsel %vm494_vm2, %v789_v41, %v770_v40  ;;  %v1144_v28 = vld [vmem:[#allocation24 + $0x78] sm:$0xff] }
 0x12b   :  { %6869 = vmatmul.msk.f32.gmra.mxu0 %vm825_vm3, %v771_v44  ;;  %6876 = vmatmul.msk.f32.vlgmr.msrb.gmra.mxu1 %vm825_vm3, %v790_v45  ;;  %v630_v6 = vadd.f32 %v629_v62, %v568_v60  ;;  %v1156_v41 = vld [vmem:[#allocation25 + $0x58] sm:$0xff] }
 0x12c   :  { %v735_v48 = vmul.f32 %v11250_v19, %v723_v42  ;;  %1202 = vmatpush.msrb.mxu3 %v1144_v28  ;;  %v1141_v42 = vld [vmem:[#allocation24 + $0x60] sm:$0xff]  ;;  %1165 = vmatpush.msrb.mxu2 %v1156_v41  ;;  %v1249_v28 = vld [vmem:[#allocation27 + $0x30] sm:$0xff]  ;;  %v11319_v41 = vld [vmem:[#allocation19] ss:$0 sm:$0xff] }
 0x12d   :  { %v686_v49 = vpop.f32.mrf.mxu2 }
 0x12e   :  { %v704_v50 = vadd.f32 %v686_v49, %v624_v43  ;;  %v747_v51 = vadd.f32 %v11252_v22, %v735_v48  ;;  %1203 = vmatpush.msrb.mxu3 %v1143_v30  ;;  %v636_v48 = vadd.f32 %v11245_v10, %v11243_v5  ;;  %1166 = vmatpush.msrb.mxu2 %v1155_v46  ;;  %v1130_v30 = vld [vmem:[#allocation24 + $0x8] sm:$0xff]  ;;  %v11322_v46 = vld [vmem:[#allocation21] ss:$0 sm:$0xff] }
 0x130   :  { %v716_v52 = vadd.f32 %v11247_v13, %v704_v50  ;;  %6862 = vmatmul.msk.f32.gmra.mxu3 %vm825_vm3, %v747_v51  ;;  %v758_v53 = vrot.slane %v747_v51, 1  ;;  %v772_v54 = vrot.slane %v747_v51, 7  ;;  %v571_v15 = vpop.f32.mrf.mxu0 }
 0x131   :  { %v632_v16 = vpop.f32.mrf.mxu1  ;;  %1204 = vmatpush.msrb.mxu3 %v1142_v35  ;;  %v1245_v35 = vld [vmem:[#allocation27 + $0x10] sm:$0xff] }
 0x132   :  { %v724_v55 = vmax.f32 %v716_v52, 0.0  ;;  %v786_v57 = vsel %vm473_vm1, %v758_v53, %v772_v54  ;;  %v633_v23 = vadd.f32 %v632_v16, %v571_v15  ;;  %v1149_v15 = vld [vmem:[#allocation25 + $0x20] sm:$0xff]  ;;  %v1134_v16 = vld [vmem:[#allocation24 + $0x28] sm:$0xff] }
 0x133   :  { %6870 = vmatmul.msk.f32.gmra.mxu0 %vm825_vm3, %v786_v57  ;;  %6877 = vmatmul.msk.f32.gmra.mxu1 %vm825_vm3, %v805_v58 }
 0x134   :  { %v736_v59 = vmul.f32 %v11250_v19, %v724_v55  ;;  %1205 = vmatpush.msrb.mxu3 %v1141_v42 }
 0x135   :  { %v689_v61 = vpop.f32.mrf.mxu2 }
 0x136   :  { %v705_v63 = vadd.f32 %v689_v61, %v627_v56  ;;  %v748_v0 = vadd.f32 %v11252_v22, %v736_v59  ;;  %1206 = vmatpush.msrb.mxu3 %v1140_v47 }
 0x138   :  { %v717_v1 = vadd.f32 %v11247_v13, %v705_v63  ;;  %6863 = vmatmul.msk.f32.gmra.mxu3 %vm825_vm3, %v748_v0  ;;  %v773_v2 = vrot.slane %v748_v0, 7  ;;  %v791_v3 = vrot.slane %v748_v0, 1  ;;  %v1154_v63 = vld [vmem:[#allocation25 + $0x48] sm:$0xff]  ;;  %v1153_v0 = vld [vmem:[#allocation25 + $0x40] sm:$0xff] }
 0x139   :  { %1167 = vmatpush.msrb.mxu2 %v1154_v63 }
 0x13a   :  { %v725_v4 = vmax.f32 %v717_v1, 0.0  ;;  %v774_v7 = vsel %vm473_vm1, %v772_v54, %v773_v2  ;;  %v792_v8 = vsel %vm494_vm2, %v758_v53, %v791_v3  ;;  %v806_v25 = vsel %vm494_vm2, %v791_v3, %v773_v2  ;;  %v1138_v1 = vld [vmem:[#allocation24 + $0x48] sm:$0xff]  ;;  %v1152_v3 = vld [vmem:[#allocation25 + $0x38] sm:$0xff] }
 0x13b   :  { %6871 = vmatmul.msk.f32.gmra.mxu0 %vm825_vm3, %v774_v7  ;;  %6878 = vmatmul.msk.f32.gmra.mxu1 %vm825_vm3, %v792_v8  ;;  %v1256_v2 = vld [vmem:[#allocation27 + $0x68] sm:$0xff]  ;;  %v1151_v7 = vld [vmem:[#allocation25 + $0x30] sm:$0xff]  ;;  %v1136_v8 = vld [vmem:[#allocation24 + $0x38] sm:$0xff] }
 0x13c   :  { %v737_v9 = vmul.f32 %v11250_v19, %v725_v4  ;;  %1168 = vmatpush.msrb.mxu2 %v1153_v0  ;;  %v1137_v4 = vld [vmem:[#allocation24 + $0x40] sm:$0xff] }
 0x13d   :  { %v692_v11 = vpop.f32.mrf.mxu2 }
 0x13e   :  { %v706_v12 = vadd.f32 %v692_v11, %v630_v6  ;;  %v749_v14 = vadd.f32 %v11252_v22, %v737_v9  ;;  %1169 = vmatpush.msrb.mxu2 %v1152_v3  ;;  %v1255_v6 = vld [vmem:[#allocation27 + $0x60] sm:$0xff]  ;;  %v1254_v9 = vld [vmem:[#allocation27 + $0x58] sm:$0xff]  ;;  %v1150_v11 = vld [vmem:[#allocation25 + $0x28] sm:$0xff] }
 0x140   :  { %v718_v17 = vadd.f32 %v11247_v13, %v706_v12  ;;  %6864 = vmatmul.msk.f32.gmra.mxu3 %vm825_vm3, %v749_v14  ;;  %v759_v18 = vrot.slane %v749_v14, 1  ;;  %v775_v20 = vrot.slane %v749_v14, 7  ;;  %1170 = vmatpush.msrb.mxu2 %v1151_v7  ;;  %v1135_v12 = vld [vmem:[#allocation24 + $0x30] sm:$0xff] }
 0x141   :  { %v1253_v14 = vld [vmem:[#allocation27 + $0x50] sm:$0xff] }
 0x142   :  { %v726_v21 = vmax.f32 %v718_v17, 0.0  ;;  %v787_v24 = vsel %vm473_vm1, %v759_v18, %v775_v20  ;;  %1171 = vmatpush.msrb.mxu2 %v1150_v11  ;;  %v1252_v17 = vld [vmem:[#allocation27 + $0x48] sm:$0xff] }
 0x143   :  { %6872 = vmatmul.msk.f32.gmra.mxu0 %vm825_vm3, %v787_v24  ;;  %6879 = vmatmul.msk.f32.gmra.mxu1 %vm825_vm3, %v806_v25  ;;  %v1132_v24 = vld [vmem:[#allocation24 + $0x18] sm:$0xff] }
 0x144   :  { %v738_v29 = vmul.f32 %v11250_v19, %v726_v21  ;;  %1172 = vmatpush.msrb.mxu2 %v1149_v15  ;;  %v1251_v21 = vld [vmem:[#allocation27 + $0x40] sm:$0xff]  ;;  %v1250_v25 = vld [vmem:[#allocation27 + $0x38] sm:$0xff] }
 0x145   :  { %v695_v31 = vpop.f32.mrf.mxu2 }
 0x146   :  { %v707_v33 = vadd.f32 %v695_v31, %v633_v23  ;;  %v750_v34 = vadd.f32 %v11252_v22, %v738_v29  ;;  %v1147_v23 = vld [vmem:[#allocation25 + $0x10] sm:$0xff]  ;;  %v1145_v29 = vld [vmem:[#allocation25] sm:$0xff]  ;;  %v1248_v31 = vld [vmem:[#allocation27 + $0x28] sm:$0xff] }
 0x148   :  { %v719_v38 = vadd.f32 %v11247_v13, %v707_v33  ;;  %6865 = vmatmul.msk.f32.gmra.mxu3 %vm825_vm3, %v750_v34  ;;  %v776_v39 = vrot.slane %v750_v34, 7  ;;  %v793_v40 = vrot.slane %v750_v34, 1  ;;  %v1247_v33 = vld [vmem:[#allocation27 + $0x20] sm:$0xff]  ;;  %v1246_v34 = vld [vmem:[#allocation27 + $0x18] sm:$0xff] }
 0x14a   :  { %v727_v43 = vmax.f32 %v719_v38, 0.0  ;;  %v777_v44 = vsel %vm473_vm1, %v775_v20, %v776_v39  ;;  %v794_v45 = vsel %vm494_vm2, %v759_v18, %v793_v40  ;;  %v807_v5 = vsel %vm494_vm2, %v793_v40, %v776_v39  ;;  %v1148_v18 = vld [vmem:[#allocation25 + $0x18] sm:$0xff]  ;;  %v1133_v20 = vld [vmem:[#allocation24 + $0x20] sm:$0xff] }
 0x14b   :  { %6873 = vmatmul.msk.f32.gmra.mxu0 %vm825_vm3, %v777_v44  ;;  %6880 = vmatmul.msk.f32.gmra.mxu1 %vm825_vm3, %v794_v45 }
 0x14c   :  { %v739_v49 = vmul.f32 %v11250_v19, %v727_v43  ;;  %1173 = vmatpush.msrb.mxu2 %v1148_v18 }
 0x14d   :  { %v698_v50 = vpop.f32.mrf.mxu2 }
 0x14e   :  { %v708_v51 = vadd.f32 %v698_v50, %v636_v48  ;;  %v751_v52 = vadd.f32 %v11252_v22, %v739_v49  ;;  %1174 = vmatpush.msrb.mxu2 %v1147_v23  ;;  %v11324_v49 = vld [vmem:[#allocation22] ss:$0 sm:$0xff] }
 0x150   :  { %v720_v53 = vadd.f32 %v11247_v13, %v708_v51  ;;  %6866 = vmatmul.msk.f32.gmra.mxu3 %vm825_vm3, %v751_v52  ;;  %v760_v54 = vrot.slane %v751_v52, 1  ;;  %v778_v55 = vrot.slane %v751_v52, 7  ;;  %1175 = vmatpush.msrb.mxu2 %v1146_v26 }
 0x152   :  { %v728_v56 = vmax.f32 %v720_v53, 0.0  ;;  %v788_v57 = vsel %vm473_vm1, %v760_v54, %v778_v55  ;;  %1176 = vmatpush.msrb.mxu2 %v1145_v29 }
 0x153   :  { %6874 = vmatmul.msk.f32.gmra.mxu0 %vm825_vm3, %v788_v57  ;;  %6881 = vmatmul.msk.f32.gmra.mxu1 %vm825_vm3, %v807_v5 }
 0x154   :  { %v740_v10 = vmul.f32 %v11250_v19, %v728_v56  ;;  %v1139_v19 = vld [vmem:[#allocation24 + $0x50] sm:$0xff] }
 0x155   :  { %1207 = vmatpush.msrb.mxu3 %v1139_v19 }
 0x156   :  { %v752_v58 = vadd.f32 %v11252_v22, %v740_v10  ;;  %v1257_v22 = vld [vmem:[#allocation27 + $0x70] sm:$0xff] }
 0x157   :  { %1260 = vmatpush.msra.mxu0 %v1257_v22  ;;  %1208 = vmatpush.msrb.mxu3 %v1138_v1 }
 0x158   :  { %6867 = vmatmul.msk.f32.gmra.mxu3 %vm825_vm3, %v752_v58  ;;  %v779_v13 = vrot.slane %v752_v58, 7  ;;  %v795_v59 = vrot.slane %v752_v58, 1 }
 0x159   :  { %1261 = vmatpush.msra.mxu0 %v1256_v2  ;;  %1209 = vmatpush.msrb.mxu3 %v1137_v4 }
 0x15a   :  { %v780_v60 = vsel %vm473_vm1, %v778_v55, %v779_v13  ;;  %v796_v61 = vsel %vm494_vm2, %v760_v54, %v795_v59  ;;  %v808_v62 = vsel %vm494_vm2, %v795_v59, %v779_v13 }
 0x15b   :  { %6875 = vmatmul.msk.f32.gmra.mxu0 %vm825_vm3, %v780_v60  ;;  %6882 = vmatmul.msk.f32.gmra.mxu1 %vm825_vm3, %v796_v61 }
 0x15c   :  { %1262 = vmatpush.msra.mxu0 %v1255_v6  ;;  %1210 = vmatpush.msrb.mxu3 %v1136_v8 }
 0x15e   :  { %1263 = vmatpush.msra.mxu0 %v1254_v9  ;;  %1211 = vmatpush.msrb.mxu3 %v1135_v12 }
 0x160   :  { %1264 = vmatpush.msra.mxu0 %v1253_v14  ;;  %1212 = vmatpush.msrb.mxu3 %v1134_v16 }
 0x162   :  { %1265 = vmatpush.msra.mxu0 %v1252_v17  ;;  %1213 = vmatpush.msrb.mxu3 %v1133_v20 }
 0x163   :  { %6883 = vmatmul.msk.f32.gmra.mxu1 %vm825_vm3, %v808_v62 }
 0x164   :  { %1266 = vmatpush.msra.mxu0 %v1251_v21  ;;  %1214 = vmatpush.msrb.mxu3 %v1132_v24 }
 0x166   :  { %1267 = vmatpush.msra.mxu0 %v1250_v25  ;;  %1215 = vmatpush.msrb.mxu3 %v1131_v27 }
 0x168   :  { %1268 = vmatpush.msra.mxu0 %v1249_v28  ;;  %1216 = vmatpush.msrb.mxu3 %v1130_v30 }
 0x16a   :  { %1269 = vmatpush.msra.mxu0 %v1248_v31  ;;  %1217 = vmatpush.msrb.mxu3 %v1129_v32 }
 0x16c   :  { %1270 = vmatpush.msra.mxu0 %v1247_v33 }
 0x16e   :  { %1271 = vmatpush.msra.mxu0 %v1246_v34 }
 0x170   :  { %1272 = vmatpush.msra.mxu0 %v1245_v35 }
 0x172   :  { %1273 = vmatpush.msra.mxu0 %v1244_v36 }
 0x174   :  { %1274 = vmatpush.msra.mxu0 %v1243_v37 }
 0x1a0   :  { %v920_v38 = vpop.f32.mrf.mxu0 }
 0x1a3   :  { %v859_v39 = vpop.f32.mrf.mxu3 }
 0x1a4   :  { %v921_v40 = vadd.f32 %v920_v38, %v859_v39 }
 0x1a8   :  { %v923_v42 = vpop.f32.mrf.mxu0  ;;  %v989_v43 = vpop.f32.mrf.mxu1 }
 0x1a9   :  { %v1013_v44 = vadd.f32 %v989_v43, %v921_v40 }
 0x1ab   :  { %v1025_v45 = vadd.f32 %v11319_v41, %v1013_v44  ;;  %v862_v47 = vpop.f32.mrf.mxu3 }
 0x1ac   :  { %v924_v51 = vadd.f32 %v923_v42, %v862_v47 }
 0x1ad   :  { %v1033_v48 = vmax.f32 %v1025_v45, 0.0 }
 0x1af   :  { %v1045_v50 = vmul.f32 %v11322_v46, %v1033_v48 }
 0x1b0   :  { %v926_v52 = vpop.f32.mrf.mxu0  ;;  %v992_v53 = vpop.f32.mrf.mxu1 }
 0x1b1   :  { %v1057_v54 = vadd.f32 %v11324_v49, %v1045_v50  ;;  %v1014_v55 = vadd.f32 %v992_v53, %v924_v51 }
 0x1b3   :  { %v1026_v56 = vadd.f32 %v11319_v41, %v1014_v55  ;;  %v865_v57 = vpop.f32.mrf.mxu3  ;;  %1177 = vmatmul.f32.vlgmr.msrb.gmra.mxu2 %v1057_v54  ;;  %v1069_v5 = vrot.slane %v1057_v54, 1  ;;  %v1081_v10 = vrot.slane %v1057_v54, 7 }
 0x1b4   :  { %v927_v59 = vadd.f32 %v926_v52, %v865_v57 }
 0x1b5   :  { %v1034_v58 = vmax.f32 %v1026_v56, 0.0  ;;  %v1101_v13 = vsel %vm473_vm1, %v1069_v5, %v1081_v10 }
 0x1b6   :  { %1218 = vmatmul.f32.vlgmr.msrb.gmra.mxu3 %v1101_v13 }
 0x1b7   :  { %v1046_v60 = vmul.f32 %v11322_v46, %v1034_v58 }
 0x1b8   :  { %v929_v61 = vpop.f32.mrf.mxu0  ;;  %v995_v62 = vpop.f32.mrf.mxu1 }
 0x1b9   :  { %v1015_v63 = vadd.f32 %v995_v62, %v927_v59  ;;  %v1058_v19 = vadd.f32 %v11324_v49, %v1046_v60 }
 0x1bb   :  { %v1027_v22 = vadd.f32 %v11319_v41, %v1015_v63  ;;  %v868_v0 = vpop.f32.mrf.mxu3  ;;  %1180 = vmatmul.f32.gmra.mxu2 %v1058_v19  ;;  %v1082_v1 = vrot.slane %v1058_v19, 7  ;;  %v1105_v2 = vrot.slane %v1058_v19, 1 }
 0x1bc   :  { %v930_v8 = vadd.f32 %v929_v61, %v868_v0 }
 0x1bd   :  { %v1035_v3 = vmax.f32 %v1027_v22, 0.0  ;;  %v1083_v4 = vsel %vm473_vm1, %v1081_v10, %v1082_v1  ;;  %v1106_v6 = vsel %vm494_vm2, %v1069_v5, %v1105_v2  ;;  %v1125_v23 = vsel %vm494_vm2, %v1105_v2, %v1082_v1 }
 0x1be   :  { %1221 = vmatmul.f32.gmra.mxu3 %v1083_v4  ;;  %1275 = vmatmul.f32.vlgmr.msra.gmra.mxu0 %v1106_v6 }
 0x1bf   :  { %v1047_v7 = vmul.f32 %v11322_v46, %v1035_v3 }
 0x1c0   :  { %v932_v9 = vpop.f32.mrf.mxu0  ;;  %v998_v11 = vpop.f32.mrf.mxu1 }
 0x1c1   :  { %v1016_v12 = vadd.f32 %v998_v11, %v930_v8  ;;  %v1059_v14 = vadd.f32 %v11324_v49, %v1047_v7 }
 0x1c3   :  { %v1028_v15 = vadd.f32 %v11319_v41, %v1016_v12  ;;  %v871_v16 = vpop.f32.mrf.mxu3  ;;  %1183 = vmatmul.f32.gmra.mxu2 %v1059_v14  ;;  %v1070_v17 = vrot.slane %v1059_v14, 1  ;;  %v1084_v18 = vrot.slane %v1059_v14, 7 }
 0x1c4   :  { %v933_v24 = vadd.f32 %v932_v9, %v871_v16 }
 0x1c5   :  { %v1036_v20 = vmax.f32 %v1028_v15, 0.0  ;;  %v1102_v21 = vsel %vm473_vm1, %v1070_v17, %v1084_v18 }
 0x1c6   :  { %1224 = vmatmul.f32.gmra.mxu3 %v1102_v21  ;;  %1278 = vmatmul.f32.gmra.mxu0 %v1125_v23  ;;  %v9632_v21 = vld [vmem:[#allocation33 + $0x1e4] sm:$0xf]  ;;  %v7000_v23 = vld [vmem:[#allocation33 + $0x1f0] sm:$0xf0] }
 0x1c7   :  { %v1048_v25 = vmul.f32 %v11322_v46, %v1036_v20 }
 0x1c8   :  { %v1001_v26 = vpop.f32.mrf.mxu1  ;;  %v935_v29 = vpop.f32.mrf.mxu0 }
 0x1c9   :  { %v1017_v27 = vadd.f32 %v1001_v26, %v933_v24  ;;  %v1060_v28 = vadd.f32 %v11324_v49, %v1048_v25  ;;  %v7003_v24 = vor.u32 %v9632_v21, %v7000_v23  ;;  %v7134_v25 = vld [vmem:[#allocation33 + $0xe8] sm:$0xf]  ;;  %v9603_v26 = vld [vmem:[#allocation33 + $0xf4] sm:$0xf0] }
 0x1ca   :  { %v9615_v21 = vld [vmem:[#allocation33 + $0x154] sm:$0xf0] }
 0x1cb   :  { %v1029_v30 = vadd.f32 %v11319_v41, %v1017_v27  ;;  %v874_v31 = vpop.f32.mrf.mxu3  ;;  %1186 = vmatmul.f32.gmra.mxu2 %v1060_v28  ;;  %v1085_v32 = vrot.slane %v1060_v28, 7  ;;  %v1107_v33 = vrot.slane %v1060_v28, 1  ;;  %v7135_v28 = vor.u32 %v9603_v26, %v7134_v25 }
 0x1cc   :  { %v936_v38 = vadd.f32 %v935_v29, %v874_v31  ;;  %1613 = vmatpush.bf16.msra.mxu2 %v7003_v24  ;;  %v6982_v29 = vld [vmem:[#allocation33 + $0x1c0] sm:$0xf]  ;;  %v9628_v31 = vld [vmem:[#allocation33 + $0x1c4] sm:$0xf]  ;;  %v7054_v24 = vld [vmem:[#allocation33 + $0x48] sm:$0xf] }
 0x1cd   :  { %v1037_v34 = vmax.f32 %v1029_v30, 0.0  ;;  %v1086_v35 = vsel %vm473_vm1, %v1084_v18, %v1085_v32  ;;  %v1108_v36 = vsel %vm494_vm2, %v1070_v17, %v1107_v33  ;;  %v1126_v52 = vsel %vm494_vm2, %v1107_v33, %v1085_v32  ;;  %v6998_v17 = vld [vmem:[#allocation33 + $0x1e0] sm:$0xf]  ;;  %v9634_v18 = vld [vmem:[#allocation33 + $0x1ec] sm:$0xf0]  ;;  %1846 = vmatpush.bf16.msrb.mxu0 %v7135_v28 }
 0x1ce   :  { %1227 = vmatmul.f32.gmra.mxu3 %v1086_v35  ;;  %1281 = vmatmul.f32.gmra.mxu0 %v1108_v36  ;;  %v6999_v20 = vor.u32 %v9634_v18, %v6998_v17  ;;  %v9630_v30 = vld [vmem:[#allocation33 + $0x1cc] sm:$0xf0]  ;;  %v6984_v33 = vld [vmem:[#allocation33 + $0x1d0] sm:$0xf0]  ;;  %v9631_v35 = vld [vmem:[#allocation33 + $0x1d4] sm:$0xf0] }
 0x1cf   :  { %v1049_v37 = vmul.f32 %v11322_v46, %v1037_v34  ;;  %v6983_v32 = vor.u32 %v9630_v30, %v6982_v29  ;;  %v6990_v34 = vld [vmem:[#allocation33 + $0x1c8] sm:$0xf]  ;;  %v6987_v36 = vor.u32 %v9628_v31, %v6984_v33  ;;  %v6920_v18 = vld [vmem:[#allocation33 + $0x150] sm:$0xf0]  ;;  %v9610_v28 = vld [vmem:[#allocation33 + $0x12c] sm:$0xf0] }
 0x1d0   :  { %v1004_v39 = vpop.f32.mrf.mxu1  ;;  %v938_v48 = vpop.f32.mrf.mxu0  ;;  %1600 = vmatpush.bf16.msra.mxu1 %v6999_v20  ;;  %v6926_v20 = vld [vmem:[#allocation33 + $0x148] sm:$0xf]  ;;  %v9608_v29 = vld [vmem:[#allocation33 + $0x124] sm:$0xf] }
 0x1d1   :  { %v1018_v40 = vadd.f32 %v1004_v39, %v936_v38  ;;  %v1061_v42 = vadd.f32 %v11324_v49, %v1049_v37  ;;  %v6991_v37 = vor.u32 %v9631_v35, %v6990_v34  ;;  %v7118_v38 = vld [vmem:[#allocation33 + $0xc8] sm:$0xf]  ;;  %v9599_v39 = vld [vmem:[#allocation33 + $0xd4] sm:$0xf0]  ;;  %1614 = vmatpush.bf16.msra.mxu2 %v6987_v36 }
 0x1d2   :  { %v6910_v33 = vld [vmem:[#allocation33 + $0x128] sm:$0xf]  ;;  %v9611_v34 = vld [vmem:[#allocation33 + $0x134] sm:$0xf0] }
 0x1d3   :  { %v1030_v43 = vadd.f32 %v11319_v41, %v1018_v40  ;;  %v877_v44 = vpop.f32.mrf.mxu3  ;;  %1189 = vmatmul.f32.gmra.mxu2 %v1061_v42  ;;  %v1071_v45 = vrot.slane %v1061_v42, 1  ;;  %v1087_v47 = vrot.slane %v1061_v42, 7  ;;  %v7119_v40 = vor.u32 %v9599_v39, %v7118_v38  ;;  %v6966_v42 = vld [vmem:[#allocation33 + $0x1a0] sm:$0xf]  ;;  %v9579_v38 = vld [vmem:[#allocation33 + $0x34] sm:$0xf0] }
 0x1d4   :  { %v939_v53 = vadd.f32 %v938_v48, %v877_v44  ;;  %1601 = vmatpush.bf16.msra.mxu1 %v6983_v32  ;;  %v9624_v44 = vld [vmem:[#allocation33 + $0x1a4] sm:$0xf]  ;;  %v6974_v48 = vld [vmem:[#allocation33 + $0x1a8] sm:$0xf]  ;;  %v6904_v32 = vld [vmem:[#allocation33 + $0x130] sm:$0xf0]  ;;  %v6911_v36 = vor.u32 %v9611_v34, %v6910_v33 }
 0x1d5   :  { %v1038_v50 = vmax.f32 %v1030_v43, 0.0  ;;  %v1103_v51 = vsel %vm473_vm1, %v1071_v45, %v1087_v47  ;;  %v9626_v43 = vld [vmem:[#allocation33 + $0x1ac] sm:$0xf0]  ;;  %1847 = vmatpush.bf16.msrb.mxu0 %v7119_v40  ;;  %v6907_v35 = vor.u32 %v9608_v29, %v6904_v32  ;;  %v9592_v29 = vld [vmem:[#allocation33 + $0xa4] sm:$0xf] }
 0x1d6   :  { %1230 = vmatmul.f32.gmra.mxu3 %v1103_v51  ;;  %1284 = vmatmul.f32.gmra.mxu0 %v1126_v52  ;;  %v7096_v33 = vld [vmem:[#allocation33 + $0xb0] sm:$0xf0]  ;;  %v7230_v34 = vld [vmem:[#allocation33 + $0x2a8] sm:$0xf] }
 0x1d7   :  { %v1050_v54 = vmul.f32 %v11322_v46, %v1038_v50  ;;  %v9627_v50 = vld [vmem:[#allocation33 + $0x1b4] sm:$0xf0] }
 0x1d8   :  { %v1007_v55 = vpop.f32.mrf.mxu1  ;;  %v941_v62 = vpop.f32.mrf.mxu0  ;;  %v6975_v52 = vor.u32 %v9627_v50, %v6974_v48  ;;  %v6894_v48 = vld [vmem:[#allocation33 + $0x108] sm:$0xf]  ;;  %v9607_v50 = vld [vmem:[#allocation33 + $0x114] sm:$0xf0] }
 0x1d9   :  { %v1019_v56 = vadd.f32 %v1007_v55, %v939_v53  ;;  %v1062_v57 = vadd.f32 %v11324_v49, %v1050_v54  ;;  %v7102_v53 = vld [vmem:[#allocation33 + $0xa8] sm:$0xf]  ;;  %v9595_v54 = vld [vmem:[#allocation33 + $0xb4] sm:$0xf0] }
 0x1da   :  { %v7103_v55 = vor.u32 %v9595_v54, %v7102_v53  ;;  %v7022_v53 = vld [vmem:[#allocation33 + $0x8] sm:$0xf]  ;;  %v9575_v54 = vld [vmem:[#allocation33 + $0x14] sm:$0xf0] }
 0x1db   :  { %v1031_v5 = vadd.f32 %v11319_v41, %v1019_v56  ;;  %1192 = vmatmul.f32.gmra.mxu2 %v1062_v57  ;;  %v1088_v10 = vrot.slane %v1062_v57, 7  ;;  %v1109_v58 = vrot.slane %v1062_v57, 1  ;;  %v880_v13 = vpop.f32.mrf.mxu3  ;;  %v6950_v56 = vld [vmem:[#allocation33 + $0x180] sm:$0xf]  ;;  %v9622_v57 = vld [vmem:[#allocation33 + $0x18c] sm:$0xf0] }
 0x1dc   :  { %v942_v19 = vadd.f32 %v941_v62, %v880_v13  ;;  %1848 = vmatpush.bf16.msrb.mxu0 %v7103_v55  ;;  %v6958_v13 = vld [vmem:[#allocation33 + $0x188] sm:$0xf] }
 0x1dd   :  { %v1039_v59 = vmax.f32 %v1031_v5, 0.0  ;;  %v1089_v60 = vsel %vm473_vm1, %v1087_v47, %v1088_v10  ;;  %v1110_v61 = vsel %vm494_vm2, %v1071_v45, %v1109_v58  ;;  %v1127_v8 = vsel %vm494_vm2, %v1109_v58, %v1088_v10  ;;  %v6968_v47 = vld [vmem:[#allocation33 + $0x1b0] sm:$0xf0]  ;;  %v9620_v5 = vld [vmem:[#allocation33 + $0x184] sm:$0xf] }
 0x1de   :  { %1233 = vmatmul.f32.gmra.mxu3 %v1089_v60  ;;  %1287 = vmatmul.f32.gmra.mxu0 %v1110_v61  ;;  %v6967_v45 = vor.u32 %v9626_v43, %v6966_v42  ;;  %v6971_v51 = vor.u32 %v9624_v44, %v6968_v47  ;;  %v6951_v10 = vor.u32 %v9622_v57, %v6950_v56  ;;  %v6952_v58 = vld [vmem:[#allocation33 + $0x190] sm:$0xf0]  ;;  %v7086_v62 = vld [vmem:[#allocation33 + $0x88] sm:$0xf]  ;;  %v6886_v42 = vld [vmem:[#allocation33 + $0x100] sm:$0xf] }
 0x1df   :  { %v1051_v63 = vmul.f32 %v11322_v46, %v1039_v59  ;;  %v9623_v59 = vld [vmem:[#allocation33 + $0x194] sm:$0xf0]  ;;  %v6955_v60 = vor.u32 %v9620_v5, %v6952_v58  ;;  %v9606_v43 = vld [vmem:[#allocation33 + $0x10c] sm:$0xf0]  ;;  %v9604_v44 = vld [vmem:[#allocation33 + $0x104] sm:$0xf]  ;;  %v7023_v56 = vor.u32 %v9575_v54, %v7022_v53 }
 0x1e0   :  { %v1010_v22 = vpop.f32.mrf.mxu1  ;;  %1602 = vmatpush.bf16.msra.mxu1 %v6967_v45  ;;  %1615 = vmatpush.bf16.msra.mxu2 %v6971_v51  ;;  %v6959_v61 = vor.u32 %v9623_v59, %v6958_v13  ;;  %v6887_v45 = vor.u32 %v9606_v43, %v6886_v42  ;;  %v6888_v47 = vld [vmem:[#allocation33 + $0x110] sm:$0xf0]  ;;  %v9633_v57 = vld [vmem:[#allocation33 + $0x1ec] sm:$0xf]  ;;  %v7008_v5 = vld [vmem:[#allocation33 + $0x1f8] sm:$0xf0] }
 0x1e1   :  { %v1020_v0 = vadd.f32 %v1010_v22, %v942_v19  ;;  %v1063_v1 = vadd.f32 %v11324_v49, %v1051_v63  ;;  %v9591_v63 = vld [vmem:[#allocation33 + $0x94] sm:$0xf0]  ;;  %v6934_v22 = vld [vmem:[#allocation33 + $0x160] sm:$0xf]  ;;  %v6891_v51 = vor.u32 %v9604_v44, %v6888_v47  ;;  %v7011_v59 = vor.u32 %v9633_v57, %v7008_v5  ;;  %v9621_v42 = vld [vmem:[#allocation33 + $0x18c] sm:$0xf] }
 0x1e2   :  { %v7087_v19 = vor.u32 %v9591_v63, %v7086_v62  ;;  %v11369_v58 = vld [vmem:[#allocation28] ss:$0 sm:$0xff]  ;;  %v7128_v62 = vld [vmem:[#allocation33 + $0xf0] sm:$0xf0]  ;;  %v6960_v43 = vld [vmem:[#allocation33 + $0x198] sm:$0xf0] }
 0x1e3   :  { %v1032_v2 = vadd.f32 %v11319_v41, %v1020_v0  ;;  %1195 = vmatmul.f32.gmra.mxu2 %v1063_v1  ;;  %v1072_v3 = vrot.slane %v1063_v1, 1  ;;  %v1090_v4 = vrot.slane %v1063_v1, 7  ;;  %v9618_v0 = vld [vmem:[#allocation33 + $0x16c] sm:$0xf0]  ;;  %v9616_v1 = vld [vmem:[#allocation33 + $0x164] sm:$0xf] }
 0x1e4   :  { %1603 = vmatpush.bf16.msra.mxu1 %v6951_v10  ;;  %1616 = vmatpush.bf16.msra.mxu2 %v6955_v60  ;;  %v7126_v10 = vld [vmem:[#allocation33 + $0xe0] sm:$0xf]  ;;  %v9602_v60 = vld [vmem:[#allocation33 + $0xec] sm:$0xf0]  ;;  %v7080_v53 = vld [vmem:[#allocation33 + $0x90] sm:$0xf0] }
 0x1e5   :  { %v1040_v6 = vmax.f32 %v1032_v2, 0.0  ;;  %v1104_v7 = vsel %vm473_vm1, %v1072_v3, %v1090_v4  ;;  %1849 = vmatpush.bf16.msrb.mxu0 %v7087_v19  ;;  %v6935_v2 = vor.u32 %v9618_v0, %v6934_v22  ;;  %v7127_v19 = vor.u32 %v9602_v60, %v7126_v10  ;;  %v7262_v0 = vld [vmem:[#allocation33 + $0x2e8] sm:$0xf]  ;;  %v7078_v44 = vld [vmem:[#allocation33 + $0x80] sm:$0xf] }
 0x1e6   :  { %1236 = vmatmul.f32.gmra.mxu3 %v1104_v7  ;;  %1290 = vmatmul.f32.gmra.mxu0 %v1127_v8  ;;  %v9655_v57 = vld [vmem:[#allocation33 + $0x294] sm:$0xf0]  ;;  %v6944_v60 = vld [vmem:[#allocation33 + $0x178] sm:$0xf0] }
 0x1e7   :  { %v1052_v9 = vmul.f32 %v11322_v46, %v1040_v6  ;;  %v7006_v46 = vld [vmem:[#allocation33 + $0x1e8] sm:$0xf]  ;;  %v9619_v6 = vld [vmem:[#allocation33 + $0x174] sm:$0xf0] }
 0x1e8   :  { %1604 = vmatpush.bf16.msra.mxu1 %v6935_v2  ;;  %v9629_v2 = vld [vmem:[#allocation33 + $0x1cc] sm:$0xf] }
 0x1e9   :  { %v1064_v11 = vadd.f32 %v11324_v49, %v1052_v9  ;;  %v9635_v49 = vld [vmem:[#allocation33 + $0x1f4] sm:$0xf0]  ;;  %v7070_v9 = vld [vmem:[#allocation33 + $0x68] sm:$0xf] }
 0x1ea   :  { %v7007_v27 = vor.u32 %v9635_v49, %v7006_v46  ;;  %v6927_v46 = vor.u32 %v9615_v21, %v6926_v20  ;;  %v9583_v49 = vld [vmem:[#allocation33 + $0x54] sm:$0xf0] }
 0x1eb   :  { %1198 = vmatmul.f32.gmra.mxu2 %v1064_v11  ;;  %v1091_v12 = vrot.slane %v1064_v11, 7  ;;  %v1111_v14 = vrot.slane %v1064_v11, 1  ;;  %v9587_v11 = vld [vmem:[#allocation33 + $0x74] sm:$0xf0]  ;;  %v7055_v26 = vor.u32 %v9583_v49, %v7054_v24  ;;  %v6976_v24 = vld [vmem:[#allocation33 + $0x1b8] sm:$0xf0] }
 0x1ec   :  { %1626 = vmatpush.bf16.msra.mxu3 %v7007_v27  ;;  %v6902_v27 = vld [vmem:[#allocation33 + $0x120] sm:$0xf]  ;;  %v9663_v21 = vld [vmem:[#allocation33 + $0x2d4] sm:$0xf0] }
 0x1ed   :  { %v1092_v15 = vsel %vm473_vm1, %v1090_v4, %v1091_v12  ;;  %v1112_v41 = vsel %vm494_vm2, %v1072_v3, %v1111_v14  ;;  %v1128_v16 = vsel %vm494_vm2, %v1111_v14, %v1091_v12  ;;  %v6936_v3 = vld [vmem:[#allocation33 + $0x170] sm:$0xf0]  ;;  %v6942_v4 = vld [vmem:[#allocation33 + $0x168] sm:$0xf]  ;;  %v7071_v12 = vor.u32 %v9587_v11, %v7070_v9  ;;  %v9598_v9 = vld [vmem:[#allocation33 + $0xcc] sm:$0xf0] }
 0x1ee   :  { %1239 = vmatmul.f32.gmra.mxu3 %v1092_v15  ;;  %1293 = vmatmul.f32.gmra.mxu0 %v1112_v41  ;;  %v6939_v7 = vor.u32 %v9616_v1, %v6936_v3  ;;  %v6943_v8 = vor.u32 %v9619_v6, %v6942_v4  ;;  %v6918_v15 = vld [vmem:[#allocation33 + $0x140] sm:$0xf]  ;;  %v9614_v41 = vld [vmem:[#allocation33 + $0x14c] sm:$0xf0]  ;;  %v6903_v31 = vor.u32 %v9610_v28, %v6902_v27  ;;  %v9667_v1 = vld [vmem:[#allocation33 + $0x2f4] sm:$0xf0] }
 0x1ef   :  { %1850 = vmatpush.bf16.msrb.mxu0 %v7071_v12  ;;  %v6919_v17 = vor.u32 %v9614_v41, %v6918_v15  ;;  %v7263_v6 = vor.u32 %v9667_v1, %v7262_v0  ;;  %v9596_v15 = vld [vmem:[#allocation33 + $0xc4] sm:$0xf]  ;;  %v7112_v41 = vld [vmem:[#allocation33 + $0xd0] sm:$0xf0]  ;;  %v7094_v49 = vld [vmem:[#allocation33 + $0xa0] sm:$0xf] }
 0x1f0   :  { %1627 = vmatpush.bf16.msra.mxu3 %v6991_v37  ;;  %1617 = vmatpush.bf16.msra.mxu2 %v6939_v7  ;;  %v7038_v37 = vld [vmem:[#allocation33 + $0x28] sm:$0xf]  ;;  %v6992_v7 = vld [vmem:[#allocation33 + $0x1d8] sm:$0xf0]  ;;  %v9594_v28 = vld [vmem:[#allocation33 + $0xac] sm:$0xf0] }
 0x1f1   :  { %1605 = vmatpush.bf16.msra.mxu1 %v6919_v17  ;;  %v7039_v39 = vor.u32 %v9579_v38, %v7038_v37  ;;  %v6995_v11 = vor.u32 %v9629_v2, %v6992_v7  ;;  %v11372_v17 = vld [vmem:[#allocation30] ss:$0 sm:$0xff]  ;;  %v7095_v32 = vor.u32 %v9594_v28, %v7094_v49  ;;  %v9584_v0 = vld [vmem:[#allocation33 + $0x64] sm:$0xf] }
 0x1f3   :  { %1851 = vmatpush.bf16.msrb.mxu0 %v7055_v26 }
 0x1f4   :  { %1628 = vmatpush.bf16.msra.mxu3 %v6975_v52  ;;  %v6895_v52 = vor.u32 %v9607_v50, %v6894_v48  ;;  %v6963_v50 = vor.u32 %v9621_v42, %v6960_v43  ;;  %v7032_v43 = vld [vmem:[#allocation33 + $0x30] sm:$0xf0] }
 0x1f5   :  { %1606 = vmatpush.bf16.msra.mxu1 %v6903_v31 }
 0x1f6   :  { %1296 = vmatmul.f32.gmra.mxu0 %v1128_v16  ;;  %v9612_v16 = vld [vmem:[#allocation33 + $0x144] sm:$0xf] }
 0x1f7   :  { %v6923_v23 = vor.u32 %v9612_v16, %v6920_v18  ;;  %1852 = vmatpush.bf16.msrb.mxu0 %v7039_v39  ;;  %v7246_v16 = vld [vmem:[#allocation33 + $0x2c8] sm:$0xf]  ;;  %v7099_v39 = vor.u32 %v9592_v29, %v7096_v33  ;;  %v7030_v33 = vld [vmem:[#allocation33 + $0x20] sm:$0xf] }
 0x1f8   :  { %1629 = vmatpush.bf16.msra.mxu3 %v6959_v61  ;;  %v9600_v61 = vld [vmem:[#allocation33 + $0xe4] sm:$0xf] }
 0x1f9   :  { %1618 = vmatpush.bf16.msra.mxu2 %v6923_v23  ;;  %1607 = vmatpush.bf16.msra.mxu1 %v6887_v45  ;;  %v7131_v22 = vor.u32 %v9600_v61, %v7128_v62  ;;  %v7247_v23 = vor.u32 %v9663_v21, %v7246_v16  ;;  %v7062_v61 = vld [vmem:[#allocation33 + $0x60] sm:$0xf]  ;;  %v9580_v21 = vld [vmem:[#allocation33 + $0x44] sm:$0xf] }
 0x1fb   :  { %1853 = vmatpush.bf16.msrb.mxu0 %v7023_v56  ;;  %v7214_v56 = vld [vmem:[#allocation33 + $0x288] sm:$0xf] }
 0x1fc   :  { %1630 = vmatpush.bf16.msra.mxu3 %v6943_v8  ;;  %v7110_v8 = vld [vmem:[#allocation33 + $0xc0] sm:$0xf] }
 0x1fd   :  { %1619 = vmatpush.bf16.msra.mxu2 %v6907_v35  ;;  %1639 = vmatpush.bf16.msrb.mxu1 %v7011_v59  ;;  %v7111_v12 = vor.u32 %v9598_v9, %v7110_v8  ;;  %v9659_v35 = vld [vmem:[#allocation33 + $0x2b4] sm:$0xf0]  ;;  %v9617_v59 = vld [vmem:[#allocation33 + $0x16c] sm:$0xf] }
 0x1ff   :  { %2099 = vmatpush.bf16.msra.mxu0 %v7263_v6  ;;  %v9651_v6 = vld [vmem:[#allocation33 + $0x274] sm:$0xf0] }
 0x200   :  { %1631 = vmatpush.bf16.msra.mxu3 %v6927_v46  ;;  %v9625_v46 = vld [vmem:[#allocation33 + $0x1ac] sm:$0xf] }
 0x201   :  { %1620 = vmatpush.bf16.msra.mxu2 %v6891_v51  ;;  %1640 = vmatpush.bf16.msrb.mxu1 %v6995_v11  ;;  %v6979_v27 = vor.u32 %v9625_v46, %v6976_v24  ;;  %v9590_v51 = vld [vmem:[#allocation33 + $0x8c] sm:$0xf0] }
 0x202   :  { %v7079_v54 = vor.u32 %v9590_v51, %v7078_v44  ;;  %v7166_v44 = vld [vmem:[#allocation33 + $0x228] sm:$0xf] }
 0x203   :  { %2100 = vmatpush.bf16.msra.mxu0 %v7247_v23  ;;  %v7048_v23 = vld [vmem:[#allocation33 + $0x50] sm:$0xf0] }
 0x204   :  { %1632 = vmatpush.bf16.msra.mxu3 %v6911_v36  ;;  %v11376_v36 = vld [vmem:[#allocation31] ss:$0 sm:$0xff]  ;;  %v7051_v49 = vor.u32 %v9580_v21, %v7048_v23 }
 0x205   :  { %1820 = vmatpush.bf16.msrb.mxu2 %v7127_v19  ;;  %1641 = vmatpush.bf16.msrb.mxu1 %v6979_v27  ;;  %v6947_v19 = vor.u32 %v9617_v59, %v6944_v60  ;;  %v9574_v59 = vld [vmem:[#allocation33 + $0xc] sm:$0xf0]  ;;  %v9572_v60 = vld [vmem:[#allocation33 + $0x4] sm:$0xf] }
 0x208   :  { %1633 = vmatpush.bf16.msra.mxu3 %v6895_v52  ;;  %v9588_v52 = vld [vmem:[#allocation33 + $0x84] sm:$0xf] }
 0x209   :  { %1821 = vmatpush.bf16.msrb.mxu2 %v7111_v12  ;;  %1642 = vmatpush.bf16.msrb.mxu1 %v6963_v50  ;;  %v9613_v12 = vld [vmem:[#allocation33 + $0x14c] sm:$0xf] }
 0x20c   :  { %1833 = vmatpush.bf16.msrb.mxu3 %v7131_v22  ;;  %v9586_v22 = vld [vmem:[#allocation33 + $0x6c] sm:$0xf0] }
 0x20d   :  { %1822 = vmatpush.bf16.msrb.mxu2 %v7095_v32  ;;  %v7063_v2 = vor.u32 %v9586_v22, %v7062_v61  ;;  %1643 = vmatpush.bf16.msrb.mxu1 %v6947_v19  ;;  %v6912_v32 = vld [vmem:[#allocation33 + $0x138] sm:$0xf0]  ;;  %v7016_v61 = vld [vmem:[#allocation33 + $0x10] sm:$0xf0]  ;;  %v7150_v22 = vld [vmem:[#allocation33 + $0x208] sm:$0xf] }
 0x20e   :  { %v7019_v19 = vor.u32 %v9572_v60, %v7016_v61 }
 0x211   :  { %1823 = vmatpush.bf16.msrb.mxu2 %v7079_v54  ;;  %v9605_v54 = vld [vmem:[#allocation33 + $0x10c] sm:$0xf] }
 0x215   :  { %1824 = vmatpush.bf16.msrb.mxu2 %v7063_v2 }
 0x236   :  { %v11365_v14 = vpop.f32.mrf.mxu2 }
 0x239   :  { %v1219_v25 = vpop.f32.mrf.mxu3 }
 0x23a   :  { %v1220_v3 = vadd.f32 %v1219_v25, %v11365_v14  ;;  %v7115_v14 = vor.u32 %v9596_v15, %v7112_v41  ;;  %v6928_v15 = vld [vmem:[#allocation33 + $0x158] sm:$0xf0]  ;;  %v7046_v41 = vld [vmem:[#allocation33 + $0x40] sm:$0xf] }
 0x23b   :  { %v11367_v30 = vpop.f32.mrf.mxu0 }
 0x23c   :  { %v1300_v25 = vadd.f32 %v11367_v30, %v1220_v3  ;;  %1834 = vmatpush.bf16.msrb.mxu3 %v7115_v14  ;;  %v7231_v30 = vor.u32 %v9659_v35, %v7230_v34  ;;  %v7064_v3 = vld [vmem:[#allocation33 + $0x70] sm:$0xf0]  ;;  %v9582_v14 = vld [vmem:[#allocation33 + $0x4c] sm:$0xf0] }
 0x23d   :  { %v7067_v8 = vor.u32 %v9584_v0, %v7064_v3  ;;  %v7047_v24 = vor.u32 %v9582_v14, %v7046_v41  ;;  %v9639_v0 = vld [vmem:[#allocation33 + $0x214] sm:$0xf0] }
 0x23e   :  { %v1181_v40 = vpop.f32.mrf.mxu2  ;;  %v1312_v45 = vadd.f32 %v11369_v58, %v1300_v25  ;;  %2101 = vmatpush.bf16.msra.mxu0 %v7231_v30  ;;  %v7182_v25 = vld [vmem:[#allocation33 + $0x248] sm:$0xf]  ;;  %v7151_v3 = vor.u32 %v9639_v0, %v7150_v22 }
 0x23f   :  { %1825 = vmatpush.bf16.msrb.mxu2 %v7047_v24 }
 0x240   :  { %1835 = vmatpush.bf16.msrb.mxu3 %v7099_v39  ;;  %v1320_v62 = vmax.f32 %v1312_v45, 0.0  ;;  %v9576_v39 = vld [vmem:[#allocation33 + $0x24] sm:$0xf]  ;;  %v9643_v45 = vld [vmem:[#allocation33 + $0x234] sm:$0xf0] }
 0x241   :  { %v1222_v55 = vpop.f32.mrf.mxu3  ;;  %v7035_v51 = vor.u32 %v9576_v39, %v7032_v43 }
 0x242   :  { %v1223_v13 = vadd.f32 %v1222_v55, %v1181_v40  ;;  %v7083_v55 = vor.u32 %v9588_v52, %v7080_v53  ;;  %v1332_v16 = vmul.f32 %v11372_v17, %v1320_v62  ;;  %v7167_v52 = vor.u32 %v9643_v45, %v7166_v44 }
 0x243   :  { %v1279_v63 = vpop.f32.mrf.mxu0 }
 0x244   :  { %v1301_v4 = vadd.f32 %v1279_v63, %v1223_v13  ;;  %v7215_v13 = vor.u32 %v9655_v57, %v7214_v56  ;;  %1836 = vmatpush.bf16.msrb.mxu3 %v7083_v55  ;;  %v1344_v34 = vadd.f32 %v11376_v36, %v1332_v16  ;;  %v6896_v55 = vld [vmem:[#allocation33 + $0x118] sm:$0xf0]  ;;  %v7014_v56 = vld [vmem:[#allocation33] sm:$0xf] }
 0x246   :  { %v1313_v18 = vadd.f32 %v11369_v58, %v1301_v4  ;;  %v1184_v20 = vpop.f32.mrf.mxu2  ;;  %v7198_v4 = vld [vmem:[#allocation33 + $0x268] sm:$0xf]  ;;  %2102 = vmatpush.bf16.msra.mxu0 %v7215_v13  ;;  %v1384_v57 = vpack.c.bf16 %v1344_v34, %v1344_v34  ;;  %v6899_v13 = vor.u32 %v9605_v54, %v6896_v55 }
 0x247   :  { %v7199_v9 = vor.u32 %v9651_v6, %v7198_v4 }
 0x248   :  { %v1321_v26 = vmax.f32 %v1313_v18, 0.0  ;;  %1837 = vmatpush.bf16.msrb.mxu3 %v7067_v8  ;;  %v11392_v6 = vunpack.c.l.b16 %v1384_v57 }
 0x249   :  { %v1225_v31 = vpop.f32.mrf.mxu3 }
 0x24a   :  { %v1333_v37 = vmul.f32 %v11372_v17, %v1321_v26  ;;  %v1226_v38 = vadd.f32 %v1225_v31, %v1184_v20  ;;  %v6931_v20 = vor.u32 %v9613_v12, %v6928_v15  ;;  %v9647_v26 = vld [vmem:[#allocation33 + $0x254] sm:$0xf0]  ;;  %2103 = vmatpush.bf16.msra.mxu0 %v7199_v9  ;;  %v9609_v31 = vld [vmem:[#allocation33 + $0x12c] sm:$0xf]  ;;  %v2677_v14 = vrot.slane %v11392_v6, 5 }
 0x24b   :  { %v1282_v40 = vpop.f32.mrf.mxu0  ;;  %v7183_v29 = vor.u32 %v9647_v26, %v7182_v25  ;;  %v3193_v34 = vrot.slane %v11392_v6, 7 }
 0x24c   :  { %v11381_v47 = vadd.f32 %v11376_v36, %v1333_v37  ;;  %v1302_v48 = vadd.f32 %v1282_v40, %v1226_v38  ;;  %1644 = vmatpush.bf16.msrb.mxu1 %v6931_v20  ;;  %v6915_v37 = vor.u32 %v9609_v31, %v6912_v32  ;;  %v9578_v38 = vld [vmem:[#allocation33 + $0x2c] sm:$0xf0]  ;;  %1838 = vmatpush.bf16.msrb.mxu3 %v7051_v49 }
 0x24d   :  { %v7031_v42 = vor.u32 %v9578_v38, %v7030_v33 }
 0x24e   :  { %v1314_v5 = vadd.f32 %v11369_v58, %v1302_v48  ;;  %v1187_v10 = vpop.f32.mrf.mxu2  ;;  %2104 = vmatpush.bf16.msra.mxu0 %v7183_v29  ;;  %v3451_v31 = vpack.c.bf16 %v11381_v47, %v11381_v47 }
 0x24f   :  { %1826 = vmatpush.bf16.msrb.mxu2 %v7031_v42 }
 0x250   :  { %v1322_v63 = vmax.f32 %v1314_v5, 0.0  ;;  %1645 = vmatpush.bf16.msrb.mxu1 %v6915_v37  ;;  %1839 = vmatpush.bf16.msrb.mxu3 %v7035_v51  ;;  %v11420_v44 = vunpack.c.l.b16 %v3451_v31 }
 0x251   :  { %v1228_v1 = vpop.f32.mrf.mxu3 }
 0x252   :  { %v1229_v7 = vadd.f32 %v1228_v1, %v1187_v10  ;;  %v1334_v46 = vmul.f32 %v11372_v17, %v1322_v63  ;;  %v7015_v63 = vor.u32 %v9574_v59, %v7014_v56  ;;  %2105 = vmatpush.bf16.msra.mxu0 %v7167_v52 }
 0x253   :  { %v1285_v11 = vpop.f32.mrf.mxu0 }
 0x254   :  { %v1303_v18 = vadd.f32 %v1285_v11, %v1229_v7  ;;  %v1346_v30 = vadd.f32 %v11376_v36, %v1334_v46  ;;  %1646 = vmatpush.bf16.msrb.mxu1 %v6899_v13  ;;  %1827 = vmatpush.bf16.msrb.mxu2 %v7015_v63 }
 0x255   :  { %1840 = vmatpush.bf16.msrb.mxu3 %v7019_v19 }
 0x256   :  { %v1315_v27 = vadd.f32 %v11369_v58, %v1303_v18  ;;  %v1190_v28 = vpop.f32.mrf.mxu2  ;;  %v1385_v62 = vpack.c.bf16 %v1346_v30, %v1346_v30  ;;  %2106 = vmatpush.bf16.msra.mxu0 %v7151_v3  ;;  %v2419_v18 = vrot.slane %v11392_v6, 4 }
 0x258   :  { %v1323_v35 = vmax.f32 %v1315_v27, 0.0  ;;  %v11394_v7 = vunpack.c.l.b16 %v1385_v62  ;;  %v2935_v27 = vrot.slane %v11392_v6, 6 }
 0x259   :  { %v1231_v40 = vpop.f32.mrf.mxu3 }
 0x25a   :  { %v1335_v48 = vmul.f32 %v11372_v17, %v1323_v35  ;;  %v1232_v50 = vadd.f32 %v1231_v40, %v1190_v28  ;;  %v2420_v20 = vrot.slane %v11394_v7, 3  ;;  %v2678_v46 = vrot.slane %v11394_v7, 4 }
 0x25b   :  { %v1288_v53 = vpop.f32.mrf.mxu0  ;;  %v2936_v24 = vrot.slane %v11394_v7, 5  ;;  %v3194_v35 = vrot.slane %v11394_v7, 6 }
 0x25c   :  { %v1347_v5 = vadd.f32 %v11376_v36, %v1335_v48  ;;  %v1304_v10 = vadd.f32 %v1288_v53, %v1232_v50  ;;  %v2421_v26 = vsel %vm1430_vm4, %v2420_v20, %v2419_v18  ;;  %v2679_v29 = vsel %vm1430_vm4, %v2678_v46, %v2677_v14  ;;  %v7136_v20 = vld [vmem:[#allocation33 + $0xf8] sm:$0xf0]  ;;  %v7254_v14 = vld [vmem:[#allocation33 + $0x2e0] sm:$0xf] }
 0x25d   :  { %v2937_v33 = vsel %vm1430_vm4, %v2936_v24, %v2935_v27  ;;  %v3195_v40 = vsel %vm1430_vm4, %v3194_v35, %v3193_v34  ;;  %v1905_v18 = vrot.slane %v11392_v6, 2  ;;  %v9664_v27 = vld [vmem:[#allocation33 + $0x2e4] sm:$0xf]  ;;  %v1906_v34 = vrot.slane %v11394_v7, 1 }
 0x25e   :  { %v1316_v1 = vadd.f32 %v11369_v58, %v1304_v10  ;;  %v1193_v2 = vpop.f32.mrf.mxu2  ;;  %v3452_v12 = vpack.c.bf16 %v1347_v5, %v1347_v5 }
 0x260   :  { %v1324_v4 = vmax.f32 %v1316_v1, 0.0  ;;  %v11404_v49 = vunpack.c.l.b16 %v3452_v12  ;;  %v3720_v12 = vrot.slane %v11420_v44, 1 }
 0x261   :  { %v1234_v8 = vpop.f32.mrf.mxu3 }
 0x262   :  { %v1336_v9 = vmul.f32 %v11372_v17, %v1324_v4  ;;  %v1235_v11 = vadd.f32 %v1234_v8, %v1193_v2  ;;  %v3463_v42 = vrot.slane %v11404_v49, 7  ;;  %v1652_v4 = vrot.slane %v11394_v7, 7 }
 0x263   :  { %v1291_v15 = vpop.f32.mrf.mxu0  ;;  %v1429_v8 = vrot.slane %v11392_v6, 1 }
 0x264   :  { %v1348_v41 = vadd.f32 %v11376_v36, %v1336_v9  ;;  %v1305_v16 = vadd.f32 %v1291_v15, %v1235_v11  ;;  %v3464_v52 = vsel %vm1430_vm4, %v3463_v42, %v11420_v44 }
 0x266   :  { %v1386_v21 = vpack.c.bf16 %v1348_v41, %v1348_v41  ;;  %v1317_v23 = vadd.f32 %v11369_v58, %v1305_v16  ;;  %v1196_v25 = vpop.f32.mrf.mxu2  ;;  %v9601_v16 = vld [vmem:[#allocation33 + $0xec] sm:$0xf] }
 0x268   :  { %v1325_v28 = vmax.f32 %v1317_v23, 0.0  ;;  %v11414_v37 = vunpack.c.l.b16 %v1386_v21  ;;  %v9666_v21 = vld [vmem:[#allocation33 + $0x2ec] sm:$0xf0]  ;;  %v3721_v23 = vsel %vm1430_vm4, %v11404_v49, %v3720_v12 }
 0x269   :  { %v1237_v32 = vpop.f32.mrf.mxu3 }
 0x26a   :  { %v1337_v38 = vmul.f32 %v11372_v17, %v1325_v28  ;;  %v1238_v39 = vadd.f32 %v1237_v32, %v1196_v25  ;;  %v2422_v50 = vrot.slane %v11414_v37, 2  ;;  %v2680_v51 = vrot.slane %v11414_v37, 3  ;;  %v7256_v28 = vld [vmem:[#allocation33 + $0x2f0] sm:$0xf0]  ;;  %v7390_v32 = vld [vmem:[#allocation33 + $0x3e8] sm:$0xf] }
 0x26b   :  { %v1294_v30 = vpop.f32.mrf.mxu0  ;;  %v2938_v60 = vrot.slane %v11414_v37, 4  ;;  %v3196_v61 = vrot.slane %v11414_v37, 5  ;;  %v1432_v9 = vrot.slane %v11414_v37, 7  ;;  %v1654_v11 = vrot.slane %v11414_v37, 6 }
 0x26c   :  { %v1349_v43 = vadd.f32 %v11376_v36, %v1337_v38  ;;  %v1306_v47 = vadd.f32 %v1294_v30, %v1238_v39  ;;  %v11430_v55 = vsel %vm1433_vm5, %v2422_v50, %v2421_v26  ;;  %v11433_v5 = vsel %vm1433_vm5, %v2680_v51, %v2679_v29  ;;  %v7238_v50 = vld [vmem:[#allocation33 + $0x2c0] sm:$0xf]  ;;  %v9662_v51 = vld [vmem:[#allocation33 + $0x2cc] sm:$0xf0] }
 0x26d   :  { %v11441_v22 = vsel %vm1433_vm5, %v2938_v60, %v2937_v33  ;;  %v11444_v0 = vsel %vm1433_vm5, %v3196_v61, %v3195_v40  ;;  %v1653_v25 = vsel %vm1430_vm4, %v1652_v4, %v11392_v6  ;;  %v9699_v33 = vld [vmem:[#allocation33 + $0x3f4] sm:$0xf0]  ;;  %v7139_v30 = vor.u32 %v9601_v16, %v7136_v20  ;;  %v9597_v40 = vld [vmem:[#allocation33 + $0xcc] sm:$0xf]  ;;  %v9656_v16 = vld [vmem:[#allocation33 + $0x2a4] sm:$0xf] }
 0x26e   :  { %v3453_v45 = vpack.c.bf16 %v1349_v43, %v1349_v43  ;;  %v1318_v48 = vadd.f32 %v11369_v58, %v1306_v47  ;;  %v1199_v56 = vpop.f32.mrf.mxu2  ;;  %v1655_v31 = vsel %vm1433_vm5, %v1654_v11, %v1653_v25  ;;  %v7255_v47 = vor.u32 %v9666_v21, %v7254_v14  ;;  %v11482_v60 = vld [vmem:[#allocation33 + $0xac] sm:$0xf] }
 0x26f   :  { %v3977_v4 = vrot.slane %v11420_v44, 2  ;;  %v9589_v25 = vld [vmem:[#allocation33 + $0x8c] sm:$0xf] }
 0x270   :  { %v11427_v53 = vunpack.c.l.b16 %v3453_v45  ;;  %v1326_v54 = vmax.f32 %v1318_v48, 0.0  ;;  %v7259_v45 = vor.u32 %v9664_v27, %v7256_v28  ;;  %v7120_v48 = vld [vmem:[#allocation33 + $0xd8] sm:$0xf0] }
 0x271   :  { %v1240_v57 = vpop.f32.mrf.mxu3 }
 0x272   :  { %v1338_v10 = vmul.f32 %v11372_v17, %v1326_v54  ;;  %v1241_v13 = vadd.f32 %v1240_v57, %v1199_v56  ;;  %v3465_v62 = vrot.slane %v11427_v53, 6  ;;  %v7391_v54 = vor.u32 %v9699_v33, %v7390_v32  ;;  %v9660_v56 = vld [vmem:[#allocation33 + $0x2c4] sm:$0xf]  ;;  %v7240_v57 = vld [vmem:[#allocation33 + $0x2d0] sm:$0xf0] }
 0x273   :  { %v1297_v59 = vpop.f32.mrf.mxu0  ;;  %v9654_v32 = vld [vmem:[#allocation33 + $0x28c] sm:$0xf0] }
 0x274   :  { %v1350_v63 = vadd.f32 %v11376_v36, %v1338_v10  ;;  %v1307_v19 = vadd.f32 %v1297_v59, %v1241_v13  ;;  %v11447_v1 = vsel %vm1433_vm5, %v3465_v62, %v3464_v52  ;;  %v3978_v10 = vrot.slane %v11404_v49, 1  ;;  %v7374_v13 = vld [vmem:[#allocation33 + $0x3c8] sm:$0xf]  ;;  %v9695_v59 = vld [vmem:[#allocation33 + $0x3d4] sm:$0xf0] }
 0x276   :  { %v1387_v2 = vpack.c.bf16 %v1350_v63, %v1350_v63  ;;  %v1319_v3 = vadd.f32 %v11369_v58, %v1307_v19  ;;  %v1431_v58 = vsel %vm1430_vm4, %v11394_v7, %v1429_v8  ;;  %v7123_v63 = vor.u32 %v9597_v40, %v7120_v48  ;;  %v9687_v40 = vld [vmem:[#allocation33 + $0x394] sm:$0xf0]  ;;  %v9585_v48 = vld [vmem:[#allocation33 + $0x6c] sm:$0xf] }
 0x277   :  { %v1434_v29 = vsel %vm1433_vm5, %v1432_v9, %v1431_v58  ;;  %v7239_v19 = vor.u32 %v9662_v51, %v7238_v50  ;;  %v7243_v8 = vor.u32 %v9660_v56, %v7240_v57  ;;  %v9658_v9 = vld [vmem:[#allocation33 + $0x2ac] sm:$0xf0]  ;;  %v7224_v58 = vld [vmem:[#allocation33 + $0x2b0] sm:$0xf0]  ;;  %v3979_v21 = vsel %vm1430_vm4, %v3978_v10, %v3977_v4  ;;  %v7072_v50 = vld [vmem:[#allocation33 + $0x78] sm:$0xf0] }
 0x278   :  { %v11455_v15 = vunpack.c.l.b16 %v1387_v2  ;;  %v1327_v41 = vmax.f32 %v1319_v3, 0.0  ;;  %v7104_v2 = vld [vmem:[#allocation33 + $0xb8] sm:$0xf0]  ;;  %v7222_v3 = vld [vmem:[#allocation33 + $0x2a0] sm:$0xf]  ;;  %v4491_v4 = vrot.slane %v11420_v44, 4 }
 0x279   :  { %v7223_v33 = vor.u32 %v9658_v9, %v7222_v3  ;;  %v7190_v56 = vld [vmem:[#allocation33 + $0x260] sm:$0xf]  ;;  %v9650_v57 = vld [vmem:[#allocation33 + $0x26c] sm:$0xf0]  ;;  %v9683_v3 = vld [vmem:[#allocation33 + $0x374] sm:$0xf0] }
 0x27a   :  { %v1339_v46 = vmul.f32 %v11372_v17, %v1327_v41  ;;  %v1435_v24 = vrot.slane %v11455_v15, 6  ;;  %v1656_v26 = vrot.slane %v11455_v15, 5  ;;  %v2424_v35 = vrot.slane %v11455_v15, 1 }
 0x27b   :  { %v2682_v11 = vrot.slane %v11455_v15, 2  ;;  %v3198_v12 = vrot.slane %v11455_v15, 4  ;;  %v7375_v41 = vor.u32 %v9695_v59, %v7374_v13  ;;  %v1909_v51 = vrot.slane %v11455_v15, 7 }
 0x27c   :  { %v1351_v17 = vadd.f32 %v11376_v36, %v1339_v46  ;;  %v1437_v38 = vsel %vm1436_vm6, %v1435_v24, %v1434_v29  ;;  %v1657_v39 = vsel %vm1436_vm6, %v1656_v26, %v1655_v31  ;;  %v3722_v36 = vrot.slane %v11427_v53, 7  ;;  %v7358_v46 = vld [vmem:[#allocation33 + $0x3a8] sm:$0xf]  ;;  %v9691_v24 = vld [vmem:[#allocation33 + $0x3b4] sm:$0xf0] }
 0x27d   :  { %v11474_v42 = vpack.c.b16 %v1437_v38, %v1437_v38  ;;  %v11476_v43 = vpack.c.b16 %v1657_v39, %v1657_v39  ;;  %v11486_v61 = vsel %vm1436_vm6, %v2424_v35, %v11430_v55  ;;  %v2940_v55 = vrot.slane %v11455_v15, 3  ;;  %v7206_v31 = vld [vmem:[#allocation33 + $0x280] sm:$0xf]  ;;  %v9652_v35 = vld [vmem:[#allocation33 + $0x284] sm:$0xf] }
 0x27e   :  { %v3454_v52 = vpack.c.bf16 %v1351_v17, %v1351_v17  ;;  %v3723_v14 = vsel %vm1433_vm5, %v3722_v36, %v3721_v23  ;;  %v11501_v26 = vsel %vm1436_vm6, %v2682_v11, %v11433_v5  ;;  %v11509_v28 = vsel %vm1436_vm6, %v3198_v12, %v11444_v0  ;;  %v7088_v23 = vld [vmem:[#allocation33 + $0x98] sm:$0xf0]  ;;  %v7208_v17 = vld [vmem:[#allocation33 + $0x290] sm:$0xf0]  ;;  %v9648_v36 = vld [vmem:[#allocation33 + $0x264] sm:$0xf] }
 0x27f   :  { %1608 = vmatmul.bf16.vlgmr.msra.gmra.mxu1 %v11474_v42  ;;  %1621 = vmatmul.bf16.vlgmr.msra.gmra.mxu2 %v11474_v42  ;;  %v11505_v27 = vsel %vm1436_vm6, %v2940_v55, %v11441_v22  ;;  %v7107_v29 = vor.u32 %v11482_v60, %v7104_v2  ;;  %v4234_v22 = vrot.slane %v11420_v44, 3  ;;  %v4235_v38 = vrot.slane %v11404_v49, 2 }
 0x280   :  { %v11488_v62 = vunpack.c.l.b16 %v3454_v52  ;;  %1634 = vmatmul.bf16.vlgmr.msra.gmra.mxu3 %v11474_v42  ;;  %1854 = vmatmul.bf16.vlgmr.msrb.gmra.mxu0 %v11476_v43  ;;  %v7227_v0 = vor.u32 %v9656_v16, %v7224_v58  ;;  %v7359_v39 = vor.u32 %v9691_v24, %v7358_v46  ;;  %v7207_v59 = vor.u32 %v9654_v32, %v7206_v31  ;;  %v9581_v58 = vld [vmem:[#allocation33 + $0x4c] sm:$0xf]  ;;  %v9644_v32 = vld [vmem:[#allocation33 + $0x244] sm:$0xf] }
 0x281   :  { %1859 = vmatpush.bf16.msra.mxu1 %v7139_v30  ;;  %2073 = vmatpush.bf16.msra.mxu2 %v7255_v47  ;;  %v7342_v30 = vld [vmem:[#allocation33 + $0x388] sm:$0xf]  ;;  %v3980_v47 = vsel %vm1433_vm5, %v11427_v53, %v3979_v21  ;;  %v4236_v52 = vsel %vm1430_vm4, %v4235_v38, %v4234_v22  ;;  %v7211_v60 = vor.u32 %v9652_v35, %v7208_v17  ;;  %v4494_v9 = vrot.slane %v11427_v53, 2  ;;  %v7176_v22 = vld [vmem:[#allocation33 + $0x250] sm:$0xf0] }
 0x282   :  { %2086 = vmatpush.bf16.msra.mxu3 %v7259_v45  ;;  %2356 = vmatpush.bf16.msrb.mxu0 %v7391_v54  ;;  %v3467_v20 = vrot.slane %v11488_v62, 5  ;;  %v4237_v45 = vrot.slane %v11427_v53, 1  ;;  %v7091_v54 = vor.u32 %v9589_v25, %v7088_v23  ;;  %v7343_v2 = vor.u32 %v9687_v40, %v7342_v30  ;;  %v7056_v25 = vld [vmem:[#allocation33 + $0x58] sm:$0xf0]  ;;  %v9646_v23 = vld [vmem:[#allocation33 + $0x24c] sm:$0xf0] }
 0x283   :  { %v7191_v16 = vor.u32 %v9650_v57, %v7190_v56  ;;  %v4750_v35 = vrot.slane %v11404_v49, 4  ;;  %v4752_v17 = vrot.slane %v11427_v53, 3  ;;  %v7310_v38 = vld [vmem:[#allocation33 + $0x348] sm:$0xf]  ;;  %v9577_v30 = vld [vmem:[#allocation33 + $0x2c] sm:$0xf] }
 0x284   :  { %v11514_v5 = vsel %vm1436_vm6, %v3467_v20, %v11447_v1  ;;  %v1907_v1 = vsel %vm1430_vm4, %v1906_v34, %v1905_v18  ;;  %v11531_v13 = vsel %vm1433_vm5, %v4237_v45, %v4236_v52  ;;  %v7326_v18 = vld [vmem:[#allocation33 + $0x368] sm:$0xf]  ;;  %v3724_v34 = vrot.slane %v11488_v62, 6  ;;  %v9642_v57 = vld [vmem:[#allocation33 + $0x22c] sm:$0xf0] }
 0x285   :  { %1860 = vmatpush.bf16.msra.mxu1 %v7123_v63  ;;  %2074 = vmatpush.bf16.msra.mxu2 %v7239_v19  ;;  %v1908_v10 = vsel %vm1433_vm5, %v11414_v37, %v1907_v1  ;;  %v7192_v63 = vld [vmem:[#allocation33 + $0x270] sm:$0xf0]  ;;  %v3981_v19 = vrot.slane %v11488_v62, 7  ;;  %v2162_v20 = vrot.slane %v11392_v6, 3  ;;  %v7327_v24 = vor.u32 %v9683_v3, %v7326_v18  ;;  %v9675_v18 = vld [vmem:[#allocation33 + $0x334] sm:$0xf0] }
 0x286   :  { %2087 = vmatpush.bf16.msra.mxu3 %v7243_v8  ;;  %2357 = vmatpush.bf16.msrb.mxu0 %v7375_v41  ;;  %v4492_v8 = vrot.slane %v11404_v49, 3  ;;  %v1910_v11 = vsel %vm1436_vm6, %v1909_v51, %v1908_v10  ;;  %v11540_v55 = vsel %vm1436_vm6, %v3724_v34, %v3723_v14  ;;  %v7075_v41 = vor.u32 %v9585_v48, %v7072_v50  ;;  %v7040_v48 = vld [vmem:[#allocation33 + $0x38] sm:$0xf0]  ;;  %v7158_v50 = vld [vmem:[#allocation33 + $0x220] sm:$0xf] }
 0x287   :  { %v11543_v12 = vsel %vm1436_vm6, %v3981_v19, %v3980_v47  ;;  %v7195_v46 = vor.u32 %v9648_v36, %v7192_v63  ;;  %v11550_v31 = vpack.c.b16 %v1910_v11, %v1910_v11  ;;  %v2163_v40 = vrot.slane %v11394_v7, 2  ;;  %v9640_v36 = vld [vmem:[#allocation33 + $0x224] sm:$0xf]  ;;  %v7294_v63 = vld [vmem:[#allocation33 + $0x328] sm:$0xf] }
 0x288   :  { %v4493_v21 = vsel %vm1430_vm4, %v4492_v8, %v4491_v4  ;;  %v2165_v47 = vrot.slane %v11414_v37, 1  ;;  %v5007_v51 = vrot.slane %v11420_v44, 6  ;;  %v5008_v52 = vrot.slane %v11404_v49, 5  ;;  %v7024_v3 = vld [vmem:[#allocation33 + $0x18] sm:$0xf0] }
 0x289   :  { %1861 = vmatpush.bf16.msra.mxu1 %v7107_v29  ;;  %2075 = vmatpush.bf16.msra.mxu2 %v7223_v33  ;;  %v7174_v29 = vld [vmem:[#allocation33 + $0x240] sm:$0xf]  ;;  %v11548_v14 = vsel %vm1433_vm5, %v4494_v9, %v4493_v21  ;;  %v4749_v33 = vrot.slane %v11420_v44, 5  ;;  %v11570_v10 = vsel %vm1436_vm6, %v11488_v62, %v11531_v13  ;;  %v7043_v19 = vor.u32 %v9577_v30, %v7040_v48  ;;  %v9638_v11 = vld [vmem:[#allocation33 + $0x20c] sm:$0xf0] }
 0x28a   :  { %2088 = vmatpush.bf16.msra.mxu3 %v7227_v0  ;;  %2358 = vmatpush.bf16.msrb.mxu0 %v7359_v39  ;;  %v9679_v0 = vld [vmem:[#allocation33 + $0x354] sm:$0xf0]  ;;  %v7059_v39 = vor.u32 %v9581_v58, %v7056_v25  ;;  %v5009_v34 = vsel %vm1430_vm4, %v5008_v52, %v5007_v51  ;;  %v7142_v4 = vld [vmem:[#allocation33 + $0x200] sm:$0xf]  ;;  %v7159_v9 = vor.u32 %v9642_v57, %v7158_v50  ;;  %v5265_v13 = vrot.slane %v11420_v44, 7 }
 0x28b   :  { %v4751_v45 = vsel %vm1430_vm4, %v4750_v35, %v4749_v33  ;;  %v7311_v56 = vor.u32 %v9679_v0, %v7310_v38  ;;  %v7295_v21 = vor.u32 %v9675_v18, %v7294_v63  ;;  %v7278_v25 = vld [vmem:[#allocation33 + $0x308] sm:$0xf]  ;;  %v7382_v35 = vld [vmem:[#allocation33 + $0x3e0] sm:$0xf]  ;;  %v7384_v38 = vld [vmem:[#allocation33 + $0x3f0] sm:$0xf0]  ;;  %v2164_v51 = vsel %vm1430_vm4, %v2163_v40, %v2162_v20 }
 0x28c   :  { %v11563_v1 = vsel %vm1433_vm5, %v4752_v17, %v4751_v45  ;;  %v9698_v17 = vld [vmem:[#allocation33 + $0x3ec] sm:$0xf0]  ;;  %v7518_v0 = vld [vmem:[#allocation33 + $0x4e8] sm:$0xf]  ;;  %v9661_v52 = vld [vmem:[#allocation33 + $0x2cc] sm:$0xf] }
 0x28d   :  { %1862 = vmatpush.bf16.msra.mxu1 %v7091_v54  ;;  %2076 = vmatpush.bf16.msra.mxu2 %v7207_v59  ;;  %v7179_v54 = vor.u32 %v9644_v32, %v7176_v22  ;;  %v5010_v59 = vrot.slane %v11427_v53, 4  ;;  %v7264_v32 = vld [vmem:[#allocation33 + $0x2f8] sm:$0xf0]  ;;  %v9696_v22 = vld [vmem:[#allocation33 + $0x3e4] sm:$0xf]  ;;  %v7383_v50 = vor.u32 %v9698_v17, %v7382_v35 }
 0x28e   :  { %2089 = vmatpush.bf16.msra.mxu3 %v7211_v60  ;;  %2359 = vmatpush.bf16.msrb.mxu0 %v7343_v2  ;;  %v7160_v60 = vld [vmem:[#allocation33 + $0x230] sm:$0xf0]  ;;  %v9573_v2 = vld [vmem:[#allocation33 + $0xc] sm:$0xf]  ;;  %v9692_v63 = vld [vmem:[#allocation33 + $0x3c4] sm:$0xf] }
 0x28f   :  { %1647 = vmatmul.bf16.vlgmr.msrb.gmra.mxu1 %v11474_v42  ;;  %1828 = vmatmul.bf16.vlgmr.msrb.gmra.mxu2 %v11476_v43  ;;  %v7175_v42 = vor.u32 %v9646_v23, %v7174_v29  ;;  %v11575_v8 = vsel %vm1433_vm5, %v5010_v59, %v5009_v34  ;;  %v7163_v58 = vor.u32 %v9640_v36, %v7160_v60  ;;  %v9671_v29 = vld [vmem:[#allocation33 + $0x314] sm:$0xf0]  ;;  %v9665_v23 = vld [vmem:[#allocation33 + $0x2ec] sm:$0xf]  ;;  %v7366_v59 = vld [vmem:[#allocation33 + $0x3c0] sm:$0xf] }
 0x290   :  { %1841 = vmatmul.bf16.vlgmr.msrb.gmra.mxu3 %v11476_v43  ;;  %2107 = vmatmul.bf16.vlgmr.msra.gmra.mxu0 %v11550_v31  ;;  %v7279_v45 = vor.u32 %v9671_v29, %v7278_v25  ;;  %v7267_v48 = vor.u32 %v9665_v23, %v7264_v32  ;;  %v2166_v36 = vsel %vm1433_vm5, %v2165_v47, %v2164_v51  ;;  %v9694_v60 = vld [vmem:[#allocation33 + $0x3cc] sm:$0xf0]  ;;  %v7368_v7 = vld [vmem:[#allocation33 + $0x3d0] sm:$0xf0]  ;;  %v7502_v20 = vld [vmem:[#allocation33 + $0x4c8] sm:$0xf] }
 0x291   :  { %1863 = vmatpush.bf16.msra.mxu1 %v7075_v41  ;;  %2077 = vmatpush.bf16.msra.mxu2 %v7191_v16  ;;  %v5266_v41 = vrot.slane %v11404_v49, 6  ;;  %v5268_v16 = vrot.slane %v11427_v53, 5  ;;  %v7027_v49 = vor.u32 %v9573_v2, %v7024_v3  ;;  %v7143_v53 = vor.u32 %v9638_v11, %v7142_v4  ;;  %v9727_v40 = vld [vmem:[#allocation33 + $0x4d4] sm:$0xf0]  ;;  %v9657_v34 = vld [vmem:[#allocation33 + $0x2ac] sm:$0xf] }
 0x292   :  { %2090 = vmatpush.bf16.msra.mxu3 %v7195_v46  ;;  %2360 = vmatpush.bf16.msrb.mxu0 %v7327_v24  ;;  %v9636_v46 = vld [vmem:[#allocation33 + $0x204] sm:$0xf]  ;;  %v7144_v24 = vld [vmem:[#allocation33 + $0x210] sm:$0xf0]  ;;  %v2167_v6 = vsel %vm1436_vm6, %v11455_v15, %v2166_v36  ;;  %v7367_v47 = vor.u32 %v9694_v60, %v7366_v59  ;;  %v4754_v2 = vrot.slane %v11488_v62, 2  ;;  %v7371_v15 = vor.u32 %v9692_v63, %v7368_v7 }
 0x293   :  { %v5267_v33 = vsel %vm1430_vm4, %v5266_v41, %v5265_v13  ;;  %v7147_v30 = vor.u32 %v9636_v46, %v7144_v24  ;;  %v11601_v3 = vpack.c.b16 %v2167_v6, %v2167_v6  ;;  %v7503_v4 = vor.u32 %v9727_v40, %v7502_v20  ;;  %v9690_v11 = vld [vmem:[#allocation33 + $0x3ac] sm:$0xf0]  ;;  %v9688_v13 = vld [vmem:[#allocation33 + $0x3a4] sm:$0xf]  ;;  %v7352_v41 = vld [vmem:[#allocation33 + $0x3b0] sm:$0xf0] }
 0x294   :  { %v11582_v44 = vsel %vm1433_vm5, %v5268_v16, %v5267_v33  ;;  %v7486_v16 = vld [vmem:[#allocation33 + $0x4a8] sm:$0xf]  ;;  %v9653_v25 = vld [vmem:[#allocation33 + $0x28c] sm:$0xf]  ;;  %v7216_v29 = vld [vmem:[#allocation33 + $0x298] sm:$0xf0] }
 0x295   :  { %1864 = vmatpush.bf16.msra.mxu1 %v7059_v39  ;;  %2078 = vmatpush.bf16.msra.mxu2 %v7175_v42  ;;  %v9731_v39 = vld [vmem:[#allocation33 + $0x4f4] sm:$0xf0]  ;;  %v4496_v42 = vrot.slane %v11488_v62, 1  ;;  %v5270_v23 = vrot.slane %v11488_v62, 4  ;;  %v7334_v33 = vld [vmem:[#allocation33 + $0x380] sm:$0xf] }
 0x296   :  { %2091 = vmatpush.bf16.msra.mxu3 %v7179_v54  ;;  %2361 = vmatpush.bf16.msrb.mxu0 %v7311_v56  ;;  %v7248_v54 = vld [vmem:[#allocation33 + $0x2d8] sm:$0xf0]  ;;  %v7387_v56 = vor.u32 %v9696_v22, %v7384_v38  ;;  %v7519_v57 = vor.u32 %v9731_v39, %v7518_v0  ;;  %v9686_v35 = vld [vmem:[#allocation33 + $0x38c] sm:$0xf0]  ;;  %v7336_v17 = vld [vmem:[#allocation33 + $0x390] sm:$0xf0]  ;;  %v7219_v38 = vor.u32 %v9653_v25, %v7216_v29 }
 0x297   :  { %v11595_v18 = vsel %vm1436_vm6, %v4496_v42, %v11548_v14  ;;  %v7251_v37 = vor.u32 %v9661_v52, %v7248_v54  ;;  %v5012_v14 = vrot.slane %v11488_v62, 3  ;;  %v7470_v22 = vld [vmem:[#allocation33 + $0x488] sm:$0xf]  ;;  %v7335_v0 = vor.u32 %v9686_v35, %v7334_v33  ;;  %v9649_v39 = vld [vmem:[#allocation33 + $0x26c] sm:$0xf] }
 0x298   :  { %v7200_v62 = vld [vmem:[#allocation33 + $0x278] sm:$0xf0]  ;;  %v7318_v42 = vld [vmem:[#allocation33 + $0x360] sm:$0xf]  ;;  %v7320_v51 = vld [vmem:[#allocation33 + $0x370] sm:$0xf0] }
 0x299   :  { %1865 = vmatpush.bf16.msra.mxu1 %v7043_v19  ;;  %2079 = vmatpush.bf16.msra.mxu2 %v7159_v9  ;;  %v7232_v19 = vld [vmem:[#allocation33 + $0x2b8] sm:$0xf0]  ;;  %v7350_v9 = vld [vmem:[#allocation33 + $0x3a0] sm:$0xf]  ;;  %v11611_v46 = vsel %vm1436_vm6, %v5012_v14, %v11575_v8  ;;  %v9684_v8 = vld [vmem:[#allocation33 + $0x384] sm:$0xf] }
 0x29a   :  { %2092 = vmatpush.bf16.msra.mxu3 %v7163_v58  ;;  %2362 = vmatpush.bf16.msrb.mxu0 %v7295_v21  ;;  %v9723_v58 = vld [vmem:[#allocation33 + $0x4b4] sm:$0xf0]  ;;  %v11607_v21 = vsel %vm1436_vm6, %v4754_v2, %v11563_v1  ;;  %v7351_v24 = vor.u32 %v9690_v11, %v7350_v9  ;;  %v7355_v1 = vor.u32 %v9688_v13, %v7352_v41  ;;  %v7454_v52 = vld [vmem:[#allocation33 + $0x468] sm:$0xf]  ;;  %v7184_v36 = vld [vmem:[#allocation33 + $0x258] sm:$0xf0] }
 0x29b   :  { %v7487_v32 = vor.u32 %v9723_v58, %v7486_v16  ;;  %v9715_v54 = vld [vmem:[#allocation33 + $0x474] sm:$0xf0]  ;;  %v7302_v63 = vld [vmem:[#allocation33 + $0x340] sm:$0xf]  ;;  %v9678_v6 = vld [vmem:[#allocation33 + $0x34c] sm:$0xf0] }
 0x29c   :  { %v7455_v60 = vor.u32 %v9715_v54, %v7454_v52  ;;  %v9676_v7 = vld [vmem:[#allocation33 + $0x344] sm:$0xf]  ;;  %v7304_v20 = vld [vmem:[#allocation33 + $0x350] sm:$0xf0]  ;;  %v7438_v40 = vld [vmem:[#allocation33 + $0x448] sm:$0xf] }
 0x29d   :  { %1866 = vmatpush.bf16.msra.mxu1 %v7027_v49  ;;  %2080 = vmatpush.bf16.msra.mxu2 %v7143_v53  ;;  %v9719_v49 = vld [vmem:[#allocation33 + $0x494] sm:$0xf0]  ;;  %v11618_v53 = vsel %vm1436_vm6, %v5270_v23, %v11582_v44  ;;  %v7203_v44 = vor.u32 %v9649_v39, %v7200_v62  ;;  %v7168_v2 = vld [vmem:[#allocation33 + $0x238] sm:$0xf0]  ;;  %v7307_v14 = vor.u32 %v9676_v7, %v7304_v20  ;;  %v9674_v9 = vld [vmem:[#allocation33 + $0x32c] sm:$0xf0] }
 0x29e   :  { %2093 = vmatpush.bf16.msra.mxu3 %v7147_v30  ;;  %2363 = vmatpush.bf16.msrb.mxu0 %v7279_v45  ;;  %v7339_v30 = vor.u32 %v9684_v8, %v7336_v17  ;;  %v7471_v45 = vor.u32 %v9719_v49, %v7470_v22  ;;  %v9672_v11 = vld [vmem:[#allocation33 + $0x324] sm:$0xf]  ;;  %v7288_v13 = vld [vmem:[#allocation33 + $0x330] sm:$0xf0]  ;;  %v7422_v41 = vld [vmem:[#allocation33 + $0x428] sm:$0xf] }
 0x29f   :  { %v9707_v16 = vld [vmem:[#allocation33 + $0x434] sm:$0xf0]  ;;  %v9637_v58 = vld [vmem:[#allocation33 + $0x20c] sm:$0xf]  ;;  %v7152_v25 = vld [vmem:[#allocation33 + $0x218] sm:$0xf0] }
 0x2a0   :  { %1867 = vmatmul.bf16.vlgmr.msra.gmra.mxu1 %v11476_v43  ;;  %2081 = vmatmul.bf16.vlgmr.msra.gmra.mxu2 %v11550_v31  ;;  %v7235_v43 = vor.u32 %v9657_v34, %v7232_v19  ;;  %v7303_v34 = vor.u32 %v9678_v6, %v7302_v63  ;;  %v9641_v19 = vld [vmem:[#allocation33 + $0x22c] sm:$0xf]  ;;  %v7270_v29 = vld [vmem:[#allocation33 + $0x300] sm:$0xf]  ;;  %v9670_v23 = vld [vmem:[#allocation33 + $0x30c] sm:$0xf0]  ;;  %v7155_v62 = vor.u32 %v9637_v58, %v7152_v25 }
 0x2a1   :  { %2112 = vmatpush.bf16.msrb.mxu1 %v7267_v48  ;;  %2330 = vmatpush.bf16.msrb.mxu2 %v7383_v50  ;;  %v9682_v48 = vld [vmem:[#allocation33 + $0x36c] sm:$0xf0]  ;;  %v9680_v50 = vld [vmem:[#allocation33 + $0x364] sm:$0xf]  ;;  %v7272_v35 = vld [vmem:[#allocation33 + $0x310] sm:$0xf0] }
 0x2a2   :  { %2343 = vmatpush.bf16.msrb.mxu3 %v7387_v56  ;;  %2614 = vmatpush.bf16.msra.mxu0 %v7519_v57  ;;  %v7319_v56 = vor.u32 %v9682_v48, %v7318_v42  ;;  %v9645_v57 = vld [vmem:[#allocation33 + $0x24c] sm:$0xf]  ;;  %v7323_v59 = vor.u32 %v9680_v50, %v7320_v51  ;;  %v9668_v33 = vld [vmem:[#allocation33 + $0x304] sm:$0xf]  ;;  %v7406_v8 = vld [vmem:[#allocation33 + $0x408] sm:$0xf] }
 0x2a3   :  { %2094 = vmatmul.bf16.vlgmr.msra.gmra.mxu3 %v11550_v31  ;;  %2364 = vmatmul.bf16.vlgmr.msrb.gmra.mxu0 %v11601_v3  ;;  %v9703_v17 = vld [vmem:[#allocation33 + $0x414] sm:$0xf0]  ;;  %v9697_v22 = vld [vmem:[#allocation33 + $0x3ec] sm:$0xf]  ;;  %v7392_v49 = vld [vmem:[#allocation33 + $0x3f8] sm:$0xf0]  ;;  %v7275_v50 = vor.u32 %v9668_v33, %v7272_v35 }
 0x2a4   :  { %v9728_v39 = vld [vmem:[#allocation33 + $0x4e4] sm:$0xf]  ;;  %v7646_v42 = vld [vmem:[#allocation33 + $0x5e8] sm:$0xf]  ;;  %v9763_v48 = vld [vmem:[#allocation33 + $0x5f4] sm:$0xf0]  ;;  %v7407_v51 = vor.u32 %v9703_v17, %v7406_v8  ;;  %v7395_v52 = vor.u32 %v9697_v22, %v7392_v49 }
 0x2a5   :  { %2113 = vmatpush.bf16.msrb.mxu1 %v7251_v37  ;;  %2331 = vmatpush.bf16.msrb.mxu2 %v7367_v47  ;;  %v9711_v37 = vld [vmem:[#allocation33 + $0x454] sm:$0xf0]  ;;  %v7187_v47 = vor.u32 %v9645_v57, %v7184_v36  ;;  %v7647_v36 = vor.u32 %v9763_v48, %v7646_v42  ;;  %v9724_v63 = vld [vmem:[#allocation33 + $0x4c4] sm:$0xf]  ;;  %v7496_v6 = vld [vmem:[#allocation33 + $0x4d0] sm:$0xf0] }
 0x2a6   :  { %2344 = vmatpush.bf16.msrb.mxu3 %v7371_v15  ;;  %2615 = vmatpush.bf16.msra.mxu0 %v7503_v4  ;;  %v7439_v15 = vor.u32 %v9711_v37, %v7438_v40  ;;  %v7286_v4 = vld [vmem:[#allocation33 + $0x320] sm:$0xf]  ;;  %v7630_v7 = vld [vmem:[#allocation33 + $0x5c8] sm:$0xf]  ;;  %v9759_v20 = vld [vmem:[#allocation33 + $0x5d4] sm:$0xf0] }
 0x2a7   :  { %v9685_v58 = vld [vmem:[#allocation33 + $0x38c] sm:$0xf]  ;;  %v9751_v33 = vld [vmem:[#allocation33 + $0x594] sm:$0xf0]  ;;  %v7328_v22 = vld [vmem:[#allocation33 + $0x378] sm:$0xf0] }
 0x2a8   :  { %v9681_v17 = vld [vmem:[#allocation33 + $0x36c] sm:$0xf]  ;;  %v9747_v42 = vld [vmem:[#allocation33 + $0x574] sm:$0xf0] }
 0x2a9   :  { %2114 = vmatpush.bf16.msrb.mxu1 %v7235_v43  ;;  %2332 = vmatpush.bf16.msrb.mxu2 %v7351_v24  ;;  %v7171_v43 = vor.u32 %v9641_v19, %v7168_v2  ;;  %v7287_v24 = vor.u32 %v9674_v9, %v7286_v4  ;;  %v11622_v19 = vpack.c.b16 %v11486_v61, %v11486_v61  ;;  %v9722_v4 = vld [vmem:[#allocation33 + $0x4ac] sm:$0xf0]  ;;  %v9720_v9 = vld [vmem:[#allocation33 + $0x4a4] sm:$0xf] }
 0x2aa   :  { %2345 = vmatpush.bf16.msrb.mxu3 %v7355_v1  ;;  %2616 = vmatpush.bf16.msra.mxu0 %v7487_v32  ;;  %v7291_v1 = vor.u32 %v9672_v11, %v7288_v13  ;;  %v7423_v32 = vor.u32 %v9707_v16, %v7422_v41  ;;  %v7499_v2 = vor.u32 %v9724_v63, %v7496_v6  ;;  %v7480_v11 = vld [vmem:[#allocation33 + $0x4b0] sm:$0xf0]  ;;  %v7614_v13 = vld [vmem:[#allocation33 + $0x5a8] sm:$0xf]  ;;  %v9755_v41 = vld [vmem:[#allocation33 + $0x5b4] sm:$0xf0] }
 0x2ab   :  { %v7615_v25 = vor.u32 %v9755_v41, %v7614_v13  ;;  %v7331_v48 = vor.u32 %v9681_v17, %v7328_v22  ;;  %v9743_v63 = vld [vmem:[#allocation33 + $0x554] sm:$0xf0] }
 0x2ad   :  { %2115 = vmatpush.bf16.msrb.mxu1 %v7219_v38  ;;  %2333 = vmatpush.bf16.msrb.mxu2 %v7335_v0  ;;  %v7510_v38 = vld [vmem:[#allocation33 + $0x4e0] sm:$0xf]  ;;  %v9730_v0 = vld [vmem:[#allocation33 + $0x4ec] sm:$0xf0] }
 0x2ae   :  { %2346 = vmatpush.bf16.msrb.mxu3 %v7339_v30  ;;  %2617 = vmatpush.bf16.msra.mxu0 %v7471_v45  ;;  %v7271_v30 = vor.u32 %v9670_v23, %v7270_v29  ;;  %v7512_v45 = vld [vmem:[#allocation33 + $0x4f0] sm:$0xf0]  ;;  %v7511_v54 = vor.u32 %v9730_v0, %v7510_v38  ;;  %v9718_v29 = vld [vmem:[#allocation33 + $0x48c] sm:$0xf0]  ;;  %v9716_v23 = vld [vmem:[#allocation33 + $0x484] sm:$0xf] }
 0x2af   :  { %v7515_v57 = vor.u32 %v9728_v39, %v7512_v45  ;;  %v7446_v0 = vld [vmem:[#allocation33 + $0x460] sm:$0xf]  ;;  %v9714_v39 = vld [vmem:[#allocation33 + $0x46c] sm:$0xf0]  ;;  %v7582_v45 = vld [vmem:[#allocation33 + $0x568] sm:$0xf] }
 0x2b1   :  { %2116 = vmatpush.bf16.msrb.mxu1 %v7203_v44  ;;  %2334 = vmatpush.bf16.msrb.mxu2 %v7319_v56  ;;  %v9693_v44 = vld [vmem:[#allocation33 + $0x3cc] sm:$0xf]  ;;  %v7376_v56 = vld [vmem:[#allocation33 + $0x3d8] sm:$0xf0] }
 0x2b2   :  { %2347 = vmatpush.bf16.msrb.mxu3 %v7323_v59  ;;  %2618 = vmatpush.bf16.msra.mxu0 %v7455_v60  ;;  %v7494_v59 = vld [vmem:[#allocation33 + $0x4c0] sm:$0xf]  ;;  %v9726_v60 = vld [vmem:[#allocation33 + $0x4cc] sm:$0xf0]  ;;  %v7379_v40 = vor.u32 %v9693_v44, %v7376_v56  ;;  %v7583_v44 = vor.u32 %v9747_v42, %v7582_v45  ;;  %v9725_v42 = vld [vmem:[#allocation33 + $0x4cc] sm:$0xf] }
 0x2b3   :  { %v7495_v37 = vor.u32 %v9726_v60, %v7494_v59  ;;  %v7430_v56 = vld [vmem:[#allocation33 + $0x440] sm:$0xf]  ;;  %v7432_v59 = vld [vmem:[#allocation33 + $0x450] sm:$0xf0]  ;;  %v7566_v60 = vld [vmem:[#allocation33 + $0x548] sm:$0xf] }
 0x2b5   :  { %2117 = vmatpush.bf16.msrb.mxu1 %v7187_v47  ;;  %2335 = vmatpush.bf16.msrb.mxu2 %v7303_v34  ;;  %v9689_v47 = vld [vmem:[#allocation33 + $0x3ac] sm:$0xf]  ;;  %v7360_v34 = vld [vmem:[#allocation33 + $0x3b8] sm:$0xf0] }
 0x2b6   :  { %2348 = vmatpush.bf16.msrb.mxu3 %v7307_v14  ;;  %2619 = vmatpush.bf16.msra.mxu0 %v7439_v15  ;;  %v7631_v14 = vor.u32 %v9759_v20, %v7630_v7  ;;  %v7478_v15 = vld [vmem:[#allocation33 + $0x4a0] sm:$0xf]  ;;  %v7363_v61 = vor.u32 %v9689_v47, %v7360_v34  ;;  %v9673_v20 = vld [vmem:[#allocation33 + $0x32c] sm:$0xf]  ;;  %v7567_v47 = vor.u32 %v9743_v63, %v7566_v60 }
 0x2b7   :  { %v7479_v16 = vor.u32 %v9722_v4, %v7478_v15  ;;  %v7414_v34 = vld [vmem:[#allocation33 + $0x420] sm:$0xf]  ;;  %v7416_v15 = vld [vmem:[#allocation33 + $0x430] sm:$0xf0]  ;;  %v7550_v4 = vld [vmem:[#allocation33 + $0x528] sm:$0xf] }
 0x2b8   :  { %v9721_v63 = vld [vmem:[#allocation33 + $0x4ac] sm:$0xf] }
 0x2b9   :  { %2118 = vmatpush.bf16.msrb.mxu1 %v7171_v43  ;;  %2336 = vmatpush.bf16.msrb.mxu2 %v7287_v24  ;;  %v7344_v43 = vld [vmem:[#allocation33 + $0x398] sm:$0xf0]  ;;  %v7483_v24 = vor.u32 %v9720_v9, %v7480_v11  ;;  %v9739_v9 = vld [vmem:[#allocation33 + $0x534] sm:$0xf0]  ;;  %v9669_v11 = vld [vmem:[#allocation33 + $0x30c] sm:$0xf] }
 0x2ba   :  { %2349 = vmatpush.bf16.msrb.mxu3 %v7291_v1  ;;  %2620 = vmatpush.bf16.msra.mxu0 %v7423_v32  ;;  %v7464_v1 = vld [vmem:[#allocation33 + $0x490] sm:$0xf0]  ;;  %v7598_v32 = vld [vmem:[#allocation33 + $0x588] sm:$0xf]  ;;  %v7347_v35 = vor.u32 %v9685_v58, %v7344_v43  ;;  %v9702_v58 = vld [vmem:[#allocation33 + $0x40c] sm:$0xf0] }
 0x2bb   :  { %v7467_v49 = vor.u32 %v9716_v23, %v7464_v1  ;;  %v7599_v38 = vor.u32 %v9751_v33, %v7598_v32  ;;  %v9735_v23 = vld [vmem:[#allocation33 + $0x514] sm:$0xf0]  ;;  %v9729_v1 = vld [vmem:[#allocation33 + $0x4ec] sm:$0xf]  ;;  %v7520_v32 = vld [vmem:[#allocation33 + $0x4f8] sm:$0xf0] }
 0x2bc   :  { %v7638_v33 = vld [vmem:[#allocation33 + $0x5e0] sm:$0xf] }
 0x2bd   :  { %2119 = vmatpush.bf16.msrb.mxu1 %v7155_v62  ;;  %2337 = vmatpush.bf16.msrb.mxu2 %v7271_v30  ;;  %v9712_v62 = vld [vmem:[#allocation33 + $0x464] sm:$0xf]  ;;  %v7448_v30 = vld [vmem:[#allocation33 + $0x470] sm:$0xf0] }
 0x2be   :  { %2350 = vmatpush.bf16.msrb.mxu3 %v7275_v50  ;;  %2621 = vmatpush.bf16.msra.mxu0 %v7407_v51  ;;  %v7447_v50 = vor.u32 %v9714_v39, %v7446_v0  ;;  %v9677_v51 = vld [vmem:[#allocation33 + $0x34c] sm:$0xf]  ;;  %v9795_v0 = vld [vmem:[#allocation33 + $0x6f4] sm:$0xf0] }
 0x2c0   :  { %2120 = vmatmul.bf16.vlgmr.msrb.gmra.mxu1 %v11550_v31  ;;  %2338 = vmatmul.bf16.vlgmr.msrb.gmra.mxu2 %v11601_v3  ;;  %v7462_v31 = vld [vmem:[#allocation33 + $0x480] sm:$0xf] }
 0x2c1   :  { %2369 = vmatpush.bf16.msra.mxu1 %v7395_v52  ;;  %2588 = vmatpush.bf16.msra.mxu2 %v7511_v54  ;;  %v7463_v8 = vor.u32 %v9718_v29, %v7462_v31  ;;  %v7312_v52 = vld [vmem:[#allocation33 + $0x358] sm:$0xf0]  ;;  %v7451_v54 = vor.u32 %v9712_v62, %v7448_v30  ;;  %v7400_v31 = vld [vmem:[#allocation33 + $0x410] sm:$0xf0]  ;;  %v7534_v29 = vld [vmem:[#allocation33 + $0x508] sm:$0xf]  ;;  %v7523_v30 = vor.u32 %v9729_v1, %v7520_v32 }
 0x2c2   :  { %2601 = vmatpush.bf16.msra.mxu3 %v7515_v57  ;;  %2872 = vmatpush.bf16.msrb.mxu0 %v7647_v36  ;;  %v9710_v57 = vld [vmem:[#allocation33 + $0x44c] sm:$0xf0]  ;;  %v9708_v36 = vld [vmem:[#allocation33 + $0x444] sm:$0xf]  ;;  %v7315_v6 = vor.u32 %v9677_v51, %v7312_v52  ;;  %v7535_v62 = vor.u32 %v9735_v23, %v7534_v29  ;;  %v7622_v52 = vld [vmem:[#allocation33 + $0x5c0] sm:$0xf] }
 0x2c3   :  { %2351 = vmatmul.bf16.vlgmr.msrb.gmra.mxu3 %v11601_v3  ;;  %2622 = vmatmul.bf16.vlgmr.msra.gmra.mxu0 %v11622_v19  ;;  %v7431_v7 = vor.u32 %v9710_v57, %v7430_v56  ;;  %v7624_v56 = vld [vmem:[#allocation33 + $0x5d0] sm:$0xf0]  ;;  %v7758_v57 = vld [vmem:[#allocation33 + $0x6c8] sm:$0xf]  ;;  %v9713_v29 = vld [vmem:[#allocation33 + $0x46c] sm:$0xf] }
 0x2c4   :  { %v7456_v23 = vld [vmem:[#allocation33 + $0x478] sm:$0xf0] }
 0x2c5   :  { %2370 = vmatpush.bf16.msra.mxu1 %v7379_v40  ;;  %2589 = vmatpush.bf16.msra.mxu2 %v7495_v37  ;;  %v7296_v40 = vld [vmem:[#allocation33 + $0x338] sm:$0xf0]  ;;  %v7435_v37 = vor.u32 %v9708_v36, %v7432_v59  ;;  %v9791_v36 = vld [vmem:[#allocation33 + $0x6d4] sm:$0xf0] }
 0x2c6   :  { %2602 = vmatpush.bf16.msra.mxu3 %v7499_v2  ;;  %2873 = vmatpush.bf16.msrb.mxu0 %v7631_v14  ;;  %v9706_v2 = vld [vmem:[#allocation33 + $0x42c] sm:$0xf0]  ;;  %v9704_v14 = vld [vmem:[#allocation33 + $0x424] sm:$0xf]  ;;  %v7299_v13 = vor.u32 %v9673_v20, %v7296_v40  ;;  %v7759_v40 = vor.u32 %v9791_v36, %v7758_v57  ;;  %v9705_v57 = vld [vmem:[#allocation33 + $0x42c] sm:$0xf] }
 0x2c7   :  { %v7415_v41 = vor.u32 %v9706_v2, %v7414_v34  ;;  %v7419_v43 = vor.u32 %v9704_v14, %v7416_v15  ;;  %v9752_v34 = vld [vmem:[#allocation33 + $0x5a4] sm:$0xf]  ;;  %v7608_v2 = vld [vmem:[#allocation33 + $0x5b0] sm:$0xf0]  ;;  %v7742_v14 = vld [vmem:[#allocation33 + $0x6a8] sm:$0xf] }
 0x2c8   :  { %v9787_v15 = vld [vmem:[#allocation33 + $0x6b4] sm:$0xf0]  ;;  %v7424_v36 = vld [vmem:[#allocation33 + $0x438] sm:$0xf0] }
 0x2c9   :  { %2371 = vmatpush.bf16.msra.mxu1 %v7363_v61  ;;  %2590 = vmatpush.bf16.msra.mxu2 %v7479_v16  ;;  %v7280_v61 = vld [vmem:[#allocation33 + $0x318] sm:$0xf0]  ;;  %v7398_v16 = vld [vmem:[#allocation33 + $0x400] sm:$0xf] }
 0x2ca   :  { %2603 = vmatpush.bf16.msra.mxu3 %v7483_v24  ;;  %2874 = vmatpush.bf16.msrb.mxu0 %v7615_v25  ;;  %v7551_v24 = vor.u32 %v9739_v9, %v7550_v4  ;;  %v9700_v25 = vld [vmem:[#allocation33 + $0x404] sm:$0xf]  ;;  %v7283_v17 = vor.u32 %v9669_v11, %v7280_v61  ;;  %v7399_v22 = vor.u32 %v9702_v58, %v7398_v16  ;;  %v9717_v9 = vld [vmem:[#allocation33 + $0x48c] sm:$0xf]  ;;  %v7472_v11 = vld [vmem:[#allocation33 + $0x498] sm:$0xf0] }
 0x2cb   :  { %v7403_v39 = vor.u32 %v9700_v25, %v7400_v31  ;;  %v9750_v61 = vld [vmem:[#allocation33 + $0x58c] sm:$0xf0]  ;;  %v9748_v16 = vld [vmem:[#allocation33 + $0x584] sm:$0xf]  ;;  %v7592_v58 = vld [vmem:[#allocation33 + $0x590] sm:$0xf0]  ;;  %v7475_v25 = vor.u32 %v9717_v9, %v7472_v11 }
 0x2cc   :  { %v7595_v1 = vor.u32 %v9748_v16, %v7592_v58  ;;  %v9761_v16 = vld [vmem:[#allocation33 + $0x5ec] sm:$0xf]  ;;  %v7648_v58 = vld [vmem:[#allocation33 + $0x5f8] sm:$0xf0] }
 0x2cd   :  { %2372 = vmatpush.bf16.msra.mxu1 %v7347_v35  ;;  %2591 = vmatpush.bf16.msra.mxu2 %v7463_v8  ;;  %v9762_v35 = vld [vmem:[#allocation33 + $0x5ec] sm:$0xf0]  ;;  %v9760_v8 = vld [vmem:[#allocation33 + $0x5e4] sm:$0xf] }
 0x2ce   :  { %2604 = vmatpush.bf16.msra.mxu3 %v7467_v49  ;;  %2875 = vmatpush.bf16.msrb.mxu0 %v7599_v38  ;;  %v7640_v49 = vld [vmem:[#allocation33 + $0x5f0] sm:$0xf0]  ;;  %v7774_v38 = vld [vmem:[#allocation33 + $0x6e8] sm:$0xf]  ;;  %v7639_v45 = vor.u32 %v9762_v35, %v7638_v33  ;;  %v7574_v33 = vld [vmem:[#allocation33 + $0x560] sm:$0xf] }
 0x2cf   :  { %v7775_v51 = vor.u32 %v9795_v0, %v7774_v38  ;;  %v9746_v35 = vld [vmem:[#allocation33 + $0x56c] sm:$0xf0]  ;;  %v7459_v38 = vor.u32 %v9713_v29, %v7456_v23  ;;  %v7768_v23 = vld [vmem:[#allocation33 + $0x6f0] sm:$0xf0] }
 0x2d0   :  { %v7575_v0 = vor.u32 %v9746_v35, %v7574_v33 }
 0x2d1   :  { %2373 = vmatpush.bf16.msra.mxu1 %v7331_v48  ;;  %2592 = vmatpush.bf16.msra.mxu2 %v7447_v50  ;;  %v7504_v48 = vld [vmem:[#allocation33 + $0x4d8] sm:$0xf0]  ;;  %v7643_v50 = vor.u32 %v9760_v8, %v7640_v49  ;;  %v9744_v8 = vld [vmem:[#allocation33 + $0x564] sm:$0xf]  ;;  %v9779_v49 = vld [vmem:[#allocation33 + $0x674] sm:$0xf0] }
 0x2d2   :  { %2605 = vmatpush.bf16.msra.mxu3 %v7451_v54  ;;  %2876 = vmatpush.bf16.msrb.mxu0 %v7583_v44  ;;  %v9758_v54 = vld [vmem:[#allocation33 + $0x5cc] sm:$0xf0]  ;;  %v9756_v44 = vld [vmem:[#allocation33 + $0x5c4] sm:$0xf]  ;;  %v7507_v59 = vor.u32 %v9725_v42, %v7504_v48  ;;  %v7558_v42 = vld [vmem:[#allocation33 + $0x540] sm:$0xf] }
 0x2d3   :  { %v7623_v60 = vor.u32 %v9758_v54, %v7622_v52  ;;  %v7627_v20 = vor.u32 %v9756_v44, %v7624_v56  ;;  %v9742_v48 = vld [vmem:[#allocation33 + $0x54c] sm:$0xf0]  ;;  %v7694_v52 = vld [vmem:[#allocation33 + $0x648] sm:$0xf]  ;;  %v9775_v54 = vld [vmem:[#allocation33 + $0x654] sm:$0xf0] }
 0x2d4   :  { %v7559_v56 = vor.u32 %v9742_v48, %v7558_v42  ;;  %v7886_v42 = vld [vmem:[#allocation33 + $0x7c8] sm:$0xf]  ;;  %v9823_v48 = vld [vmem:[#allocation33 + $0x7d4] sm:$0xf0] }
 0x2d5   :  { %2374 = vmatpush.bf16.msra.mxu1 %v7315_v6  ;;  %2593 = vmatpush.bf16.msra.mxu2 %v7431_v7  ;;  %v7488_v6 = vld [vmem:[#allocation33 + $0x4b8] sm:$0xf0]  ;;  %v11630_v7 = vpack.c.b16 %v11501_v26, %v11501_v26 }
 0x2d6   :  { %2606 = vmatpush.bf16.msra.mxu3 %v7435_v37  ;;  %2877 = vmatpush.bf16.msrb.mxu0 %v7567_v47  ;;  %v7606_v37 = vld [vmem:[#allocation33 + $0x5a0] sm:$0xf]  ;;  %v9754_v47 = vld [vmem:[#allocation33 + $0x5ac] sm:$0xf0]  ;;  %v7491_v26 = vor.u32 %v9721_v63, %v7488_v6 }
 0x2d7   :  { %v7607_v4 = vor.u32 %v9754_v47, %v7606_v37  ;;  %v7542_v63 = vld [vmem:[#allocation33 + $0x520] sm:$0xf]  ;;  %v9738_v6 = vld [vmem:[#allocation33 + $0x52c] sm:$0xf0]  ;;  %v7678_v37 = vld [vmem:[#allocation33 + $0x628] sm:$0xf] }
 0x2d8   :  { %v9771_v47 = vld [vmem:[#allocation33 + $0x634] sm:$0xf0] }
 0x2d9   :  { %2375 = vmatpush.bf16.msra.mxu1 %v7299_v13  ;;  %2594 = vmatpush.bf16.msra.mxu2 %v7415_v41  ;;  %v7611_v13 = vor.u32 %v9752_v34, %v7608_v2  ;;  %v7743_v41 = vor.u32 %v9787_v15, %v7742_v14  ;;  %v9701_v34 = vld [vmem:[#allocation33 + $0x40c] sm:$0xf]  ;;  %v7427_v2 = vor.u32 %v9705_v57, %v7424_v36  ;;  %v7408_v15 = vld [vmem:[#allocation33 + $0x418] sm:$0xf0]  ;;  %v7734_v36 = vld [vmem:[#allocation33 + $0x6a0] sm:$0xf] }
 0x2da   :  { %2607 = vmatpush.bf16.msra.mxu3 %v7419_v43  ;;  %2878 = vmatpush.bf16.msrb.mxu0 %v7551_v24  ;;  %v7726_v43 = vld [vmem:[#allocation33 + $0x688] sm:$0xf]  ;;  %v9783_v24 = vld [vmem:[#allocation33 + $0x694] sm:$0xf0]  ;;  %v7543_v14 = vor.u32 %v9738_v6, %v7542_v63  ;;  %v7679_v11 = vor.u32 %v9771_v47, %v7678_v37  ;;  %v7887_v57 = vor.u32 %v9823_v48, %v7886_v42  ;;  %v7736_v63 = vld [vmem:[#allocation33 + $0x6b0] sm:$0xf0] }
 0x2db   :  { %v7727_v32 = vor.u32 %v9783_v24, %v7726_v43  ;;  %v7766_v43 = vld [vmem:[#allocation33 + $0x6e0] sm:$0xf]  ;;  %v9794_v24 = vld [vmem:[#allocation33 + $0x6ec] sm:$0xf0]  ;;  %v7870_v6 = vld [vmem:[#allocation33 + $0x7a8] sm:$0xf] }
 0x2dc   :  { %v9772_v42 = vld [vmem:[#allocation33 + $0x644] sm:$0xf]  ;;  %v7688_v48 = vld [vmem:[#allocation33 + $0x650] sm:$0xf0] }
 0x2dd   :  { %2376 = vmatpush.bf16.msra.mxu1 %v7283_v17  ;;  %2595 = vmatpush.bf16.msra.mxu2 %v7399_v22  ;;  %v7576_v17 = vld [vmem:[#allocation33 + $0x570] sm:$0xf0]  ;;  %v7710_v22 = vld [vmem:[#allocation33 + $0x668] sm:$0xf] }
 0x2de   :  { %2608 = vmatpush.bf16.msra.mxu3 %v7403_v39  ;;  %2879 = vmatpush.bf16.msrb.mxu0 %v7535_v62  ;;  %v9709_v39 = vld [vmem:[#allocation33 + $0x44c] sm:$0xf]  ;;  %v7440_v62 = vld [vmem:[#allocation33 + $0x458] sm:$0xf0] }
 0x2df   :  { %v7443_v44 = vor.u32 %v9709_v39, %v7440_v62  ;;  %v7750_v39 = vld [vmem:[#allocation33 + $0x6c0] sm:$0xf]  ;;  %v9790_v62 = vld [vmem:[#allocation33 + $0x6cc] sm:$0xf0] }
 0x2e0   :  { %2377 = vmatmul.bf16.vlgmr.msra.gmra.mxu1 %v11601_v3  ;;  %2596 = vmatmul.bf16.vlgmr.msra.gmra.mxu2 %v11622_v19  ;;  %v7590_v3 = vld [vmem:[#allocation33 + $0x580] sm:$0xf] }
 0x2e1   :  { %2627 = vmatpush.bf16.msrb.mxu1 %v7523_v30  ;;  %2846 = vmatpush.bf16.msrb.mxu2 %v7639_v45  ;;  %v7591_v31 = vor.u32 %v9750_v61, %v7590_v3  ;;  %v7579_v30 = vor.u32 %v9744_v8, %v7576_v17  ;;  %v7711_v45 = vor.u32 %v9779_v49, %v7710_v22  ;;  %v7662_v3 = vld [vmem:[#allocation33 + $0x608] sm:$0xf]  ;;  %v9767_v61 = vld [vmem:[#allocation33 + $0x614] sm:$0xf0]  ;;  %v9757_v22 = vld [vmem:[#allocation33 + $0x5cc] sm:$0xf] }
 0x2e2   :  { %2859 = vmatpush.bf16.msrb.mxu3 %v7643_v50  ;;  %3130 = vmatpush.bf16.msra.mxu0 %v7775_v51  ;;  %v9740_v50 = vld [vmem:[#allocation33 + $0x544] sm:$0xf]  ;;  %v7560_v51 = vld [vmem:[#allocation33 + $0x550] sm:$0xf0]  ;;  %v7663_v35 = vor.u32 %v9767_v61, %v7662_v3  ;;  %v7651_v8 = vor.u32 %v9761_v16, %v7648_v58  ;;  %v7767_v17 = vor.u32 %v9794_v24, %v7766_v43  ;;  %v7632_v49 = vld [vmem:[#allocation33 + $0x5d8] sm:$0xf0] }
 0x2e3   :  { %2609 = vmatmul.bf16.vlgmr.msra.gmra.mxu3 %v11622_v19  ;;  %2880 = vmatmul.bf16.vlgmr.msrb.gmra.mxu0 %v11630_v7  ;;  %v9745_v61 = vld [vmem:[#allocation33 + $0x56c] sm:$0xf]  ;;  %v7584_v16 = vld [vmem:[#allocation33 + $0x578] sm:$0xf0] }
 0x2e5   :  { %2628 = vmatpush.bf16.msrb.mxu1 %v7507_v59  ;;  %2847 = vmatpush.bf16.msrb.mxu2 %v7623_v60  ;;  %v7563_v59 = vor.u32 %v9740_v50, %v7560_v51  ;;  %v7695_v60 = vor.u32 %v9775_v54, %v7694_v52  ;;  %v7635_v50 = vor.u32 %v9757_v22, %v7632_v49  ;;  %v9753_v52 = vld [vmem:[#allocation33 + $0x5ac] sm:$0xf]  ;;  %v7616_v54 = vld [vmem:[#allocation33 + $0x5b8] sm:$0xf0] }
 0x2e6   :  { %2860 = vmatpush.bf16.msrb.mxu3 %v7627_v20  ;;  %3131 = vmatpush.bf16.msra.mxu0 %v7759_v40  ;;  %v9736_v20 = vld [vmem:[#allocation33 + $0x524] sm:$0xf]  ;;  %v7544_v40 = vld [vmem:[#allocation33 + $0x530] sm:$0xf0]  ;;  %v7751_v51 = vor.u32 %v9790_v62, %v7750_v39 }
 0x2e7   :  { %v7547_v9 = vor.u32 %v9736_v20, %v7544_v40  ;;  %v9819_v20 = vld [vmem:[#allocation33 + $0x7b4] sm:$0xf0] }
 0x2e9   :  { %2629 = vmatpush.bf16.msrb.mxu1 %v7491_v26  ;;  %2848 = vmatpush.bf16.msrb.mxu2 %v7607_v4  ;;  %v7526_v26 = vld [vmem:[#allocation33 + $0x500] sm:$0xf]  ;;  %v9734_v4 = vld [vmem:[#allocation33 + $0x50c] sm:$0xf0] }
 0x2ea   :  { %2861 = vmatpush.bf16.msrb.mxu3 %v7611_v13  ;;  %3132 = vmatpush.bf16.msra.mxu0 %v7743_v41  ;;  %v9732_v13 = vld [vmem:[#allocation33 + $0x504] sm:$0xf]  ;;  %v7528_v41 = vld [vmem:[#allocation33 + $0x510] sm:$0xf0]  ;;  %v7527_v29 = vor.u32 %v9734_v4, %v7526_v26  ;;  %v9782_v26 = vld [vmem:[#allocation33 + $0x68c] sm:$0xf0] }
 0x2eb   :  { %v7531_v33 = vor.u32 %v9732_v13, %v7528_v41  ;;  %v9780_v4 = vld [vmem:[#allocation33 + $0x684] sm:$0xf]  ;;  %v9815_v13 = vld [vmem:[#allocation33 + $0x794] sm:$0xf0] }
 0x2ed   :  { %2630 = vmatpush.bf16.msrb.mxu1 %v7475_v25  ;;  %2849 = vmatpush.bf16.msrb.mxu2 %v7591_v31  ;;  %v9792_v25 = vld [vmem:[#allocation33 + $0x6e4] sm:$0xf]  ;;  %v7411_v31 = vor.u32 %v9701_v34, %v7408_v15  ;;  %v9749_v34 = vld [vmem:[#allocation33 + $0x58c] sm:$0xf]  ;;  %v7718_v15 = vld [vmem:[#allocation33 + $0x680] sm:$0xf] }
 0x2ee   :  { %2862 = vmatpush.bf16.msrb.mxu3 %v7595_v1  ;;  %3133 = vmatpush.bf16.msra.mxu0 %v7727_v32  ;;  %v7902_v1 = vld [vmem:[#allocation33 + $0x7e8] sm:$0xf]  ;;  %v9827_v32 = vld [vmem:[#allocation33 + $0x7f4] sm:$0xf0]  ;;  %v7719_v3 = vor.u32 %v9782_v26, %v7718_v15 }
 0x2f1   :  { %2631 = vmatpush.bf16.msrb.mxu1 %v7459_v38  ;;  %2850 = vmatpush.bf16.msrb.mxu2 %v7575_v0  ;;  %v7771_v38 = vor.u32 %v9792_v25, %v7768_v23  ;;  %v7903_v0 = vor.u32 %v9827_v32, %v7902_v1  ;;  %v7702_v25 = vld [vmem:[#allocation33 + $0x660] sm:$0xf]  ;;  %v7704_v1 = vld [vmem:[#allocation33 + $0x670] sm:$0xf0]  ;;  %v7838_v32 = vld [vmem:[#allocation33 + $0x768] sm:$0xf] }
 0x2f2   :  { %2863 = vmatpush.bf16.msrb.mxu3 %v7579_v30  ;;  %3134 = vmatpush.bf16.msra.mxu0 %v7711_v45  ;;  %v9788_v30 = vld [vmem:[#allocation33 + $0x6c4] sm:$0xf]  ;;  %v7752_v45 = vld [vmem:[#allocation33 + $0x6d0] sm:$0xf0] }
 0x2f5   :  { %2632 = vmatpush.bf16.msrb.mxu1 %v7443_v44  ;;  %2851 = vmatpush.bf16.msrb.mxu2 %v7559_v56  ;;  %v11638_v44 = vpack.c.b16 %v11505_v27, %v11505_v27  ;;  %v7755_v56 = vor.u32 %v9788_v30, %v7752_v45  ;;  %v7619_v27 = vor.u32 %v9753_v52, %v7616_v54  ;;  %v7686_v30 = vld [vmem:[#allocation33 + $0x640] sm:$0xf]  ;;  %v9774_v45 = vld [vmem:[#allocation33 + $0x64c] sm:$0xf0] }
 0x2f6   :  { %2864 = vmatpush.bf16.msrb.mxu3 %v7563_v59  ;;  %3135 = vmatpush.bf16.msra.mxu0 %v7695_v60  ;;  %v9786_v59 = vld [vmem:[#allocation33 + $0x6ac] sm:$0xf0]  ;;  %v9784_v60 = vld [vmem:[#allocation33 + $0x6a4] sm:$0xf]  ;;  %v7687_v54 = vor.u32 %v9774_v45, %v7686_v30  ;;  %v9789_v45 = vld [vmem:[#allocation33 + $0x6cc] sm:$0xf] }
 0x2f7   :  { %v7735_v37 = vor.u32 %v9786_v59, %v7734_v36  ;;  %v7691_v36 = vor.u32 %v9772_v42, %v7688_v48  ;;  %v7760_v42 = vld [vmem:[#allocation33 + $0x6d8] sm:$0xf0] }
 0x2f9   :  { %2633 = vmatpush.bf16.msrb.mxu1 %v7427_v2  ;;  %2852 = vmatpush.bf16.msrb.mxu2 %v7543_v14  ;;  %v7600_v2 = vld [vmem:[#allocation33 + $0x598] sm:$0xf0]  ;;  %v7871_v14 = vor.u32 %v9819_v20, %v7870_v6  ;;  %v9770_v6 = vld [vmem:[#allocation33 + $0x62c] sm:$0xf0]  ;;  %v9768_v20 = vld [vmem:[#allocation33 + $0x624] sm:$0xf] }
 0x2fa   :  { %2865 = vmatpush.bf16.msrb.mxu3 %v7547_v9  ;;  %3136 = vmatpush.bf16.msra.mxu0 %v7679_v11  ;;  %v7720_v9 = vld [vmem:[#allocation33 + $0x690] sm:$0xf0]  ;;  %v7854_v11 = vld [vmem:[#allocation33 + $0x788] sm:$0xf]  ;;  %v7603_v41 = vor.u32 %v9749_v34, %v7600_v2  ;;  %v9803_v34 = vld [vmem:[#allocation33 + $0x734] sm:$0xf0] }
 0x2fb   :  { %v7723_v58 = vor.u32 %v9780_v4, %v7720_v9  ;;  %v7855_v43 = vor.u32 %v9815_v13, %v7854_v11  ;;  %v7536_v4 = vld [vmem:[#allocation33 + $0x518] sm:$0xf0]  ;;  %v7654_v9 = vld [vmem:[#allocation33 + $0x600] sm:$0xf]  ;;  %v9766_v11 = vld [vmem:[#allocation33 + $0x60c] sm:$0xf0] }
 0x2fc   :  { %v11644_v40 = vpop.f32.mrf.mxu1 }
 0x2fd   :  { %2634 = vmatpush.bf16.msrb.mxu1 %v7411_v31  ;;  %2853 = vmatpush.bf16.msrb.mxu2 %v7527_v29  ;;  %v1855_v47 = vpop.f32.mrf.mxu0  ;;  %v9778_v31 = vld [vmem:[#allocation33 + $0x66c] sm:$0xf0]  ;;  %v9776_v29 = vld [vmem:[#allocation33 + $0x664] sm:$0xf] }
 0x2fe   :  { %2866 = vmatpush.bf16.msrb.mxu3 %v7531_v33  ;;  %3137 = vmatpush.bf16.msra.mxu0 %v7663_v35  ;;  %v9811_v33 = vld [vmem:[#allocation33 + $0x774] sm:$0xf0]  ;;  %v7703_v22 = vor.u32 %v9778_v31, %v7702_v25  ;;  %v7707_v39 = vor.u32 %v9776_v29, %v7704_v1  ;;  %v9793_v25 = vld [vmem:[#allocation33 + $0x6ec] sm:$0xf]  ;;  %v7776_v31 = vld [vmem:[#allocation33 + $0x6f8] sm:$0xf0] }
 0x2ff   :  { %v7839_v62 = vor.u32 %v9811_v33, %v7838_v32  ;;  %v7894_v29 = vld [vmem:[#allocation33 + $0x7e0] sm:$0xf]  ;;  %v9824_v1 = vld [vmem:[#allocation33 + $0x7e4] sm:$0xf]  ;;  %v7655_v33 = vor.u32 %v9766_v11, %v7654_v9 }
 0x300   :  { %2635 = vmatmul.bf16.vlgmr.msrb.gmra.mxu1 %v11622_v19  ;;  %2854 = vmatmul.bf16.vlgmr.msrb.gmra.mxu2 %v11630_v7  ;;  %v7739_v19 = vor.u32 %v9784_v60, %v7736_v63  ;;  %v7670_v63 = vld [vmem:[#allocation33 + $0x620] sm:$0xf] }
 0x301   :  { %2885 = vmatpush.bf16.msra.mxu1 %v7651_v8  ;;  %3104 = vmatpush.bf16.msra.mxu2 %v7767_v17  ;;  %v7587_v17 = vor.u32 %v9745_v61, %v7584_v16  ;;  %v7671_v15 = vor.u32 %v9770_v6, %v7670_v63  ;;  %v9764_v61 = vld [vmem:[#allocation33 + $0x604] sm:$0xf]  ;;  %v7656_v16 = vld [vmem:[#allocation33 + $0x610] sm:$0xf0]  ;;  %v9855_v63 = vld [vmem:[#allocation33 + $0x8d4] sm:$0xf0] }
 0x302   :  { %3117 = vmatpush.bf16.msra.mxu3 %v7771_v38  ;;  %3388 = vmatpush.bf16.msrb.mxu0 %v7903_v0  ;;  %v11646_v24 = vpop.f32.mrf.mxu2  ;;  %v9741_v38 = vld [vmem:[#allocation33 + $0x54c] sm:$0xf]  ;;  %v7568_v0 = vld [vmem:[#allocation33 + $0x558] sm:$0xf0] }
 0x303   :  { %2867 = vmatmul.bf16.vlgmr.msrb.gmra.mxu3 %v11630_v7  ;;  %3138 = vmatmul.bf16.vlgmr.msra.gmra.mxu0 %v11638_v44  ;;  %v1635_v23 = vpop.f32.mrf.mxu3  ;;  %v7571_v52 = vor.u32 %v9741_v38, %v7568_v0  ;;  %v7779_v0 = vor.u32 %v9793_v25, %v7776_v31  ;;  %v9812_v25 = vld [vmem:[#allocation33 + $0x784] sm:$0xf]  ;;  %v7848_v31 = vld [vmem:[#allocation33 + $0x790] sm:$0xf0] }
 0x304   :  { %v1856_v35 = vadd.f32 %v1855_v47, %v1635_v23  ;;  %v1611_v8 = vpop.f32.mrf.mxu1  ;;  %v7806_v47 = vld [vmem:[#allocation33 + $0x728] sm:$0xf]  ;;  %v9826_v23 = vld [vmem:[#allocation33 + $0x7ec] sm:$0xf0] }
 0x305   :  { %2886 = vmatpush.bf16.msra.mxu1 %v7635_v50  ;;  %3105 = vmatpush.bf16.msra.mxu2 %v7751_v51  ;;  %v1857_v49 = vpop.f32.mrf.mxu0  ;;  %v7822_v50 = vld [vmem:[#allocation33 + $0x748] sm:$0xf]  ;;  %v9807_v51 = vld [vmem:[#allocation33 + $0x754] sm:$0xf0]  ;;  %v7896_v8 = vld [vmem:[#allocation33 + $0x7f0] sm:$0xf0] }
 0x306   :  { %3118 = vmatpush.bf16.msra.mxu3 %v7755_v56  ;;  %3389 = vmatpush.bf16.msrb.mxu0 %v7887_v57  ;;  %v9737_v56 = vld [vmem:[#allocation33 + $0x52c] sm:$0xf]  ;;  %v7552_v57 = vld [vmem:[#allocation33 + $0x538] sm:$0xf0]  ;;  %v7823_v59 = vor.u32 %v9807_v51, %v7822_v50  ;;  %v7899_v48 = vor.u32 %v9824_v1, %v7896_v8 }
 0x309   :  { %2887 = vmatpush.bf16.msra.mxu1 %v7619_v27  ;;  %3106 = vmatpush.bf16.msra.mxu2 %v7735_v37  ;;  %v7672_v37 = vld [vmem:[#allocation33 + $0x630] sm:$0xf0] }
 0x30a   :  { %3119 = vmatpush.bf16.msra.mxu3 %v7739_v19  ;;  %3390 = vmatpush.bf16.msrb.mxu0 %v7871_v14  ;;  %v1624_v60 = vpop.f32.mrf.mxu2  ;;  %v9733_v19 = vld [vmem:[#allocation33 + $0x50c] sm:$0xf]  ;;  %v7555_v14 = vor.u32 %v9737_v56, %v7552_v57  ;;  %v7675_v13 = vor.u32 %v9768_v20, %v7672_v37  ;;  %v9822_v56 = vld [vmem:[#allocation33 + $0x7cc] sm:$0xf0]  ;;  %v9820_v57 = vld [vmem:[#allocation33 + $0x7c4] sm:$0xf] }
 0x30b   :  { %v1637_v27 = vpop.f32.mrf.mxu3  ;;  %v7539_v32 = vor.u32 %v9733_v19, %v7536_v4  ;;  %v8014_v60 = vld [vmem:[#allocation33 + $0x8c8] sm:$0xf]  ;;  %v9785_v20 = vld [vmem:[#allocation33 + $0x6ac] sm:$0xf]  ;;  %v9818_v19 = vld [vmem:[#allocation33 + $0x7ac] sm:$0xf0] }
 0x30c   :  { %v11648_v2 = vpop.f32.mrf.mxu1  ;;  %v7744_v27 = vld [vmem:[#allocation33 + $0x6b8] sm:$0xf0]  ;;  %v9851_v4 = vld [vmem:[#allocation33 + $0x8b4] sm:$0xf0] }
 0x30d   :  { %2888 = vmatpush.bf16.msra.mxu1 %v7603_v41  ;;  %3107 = vmatpush.bf16.msra.mxu2 %v7719_v3  ;;  %v2108_v26 = vpop.f32.mrf.mxu0  ;;  %v7807_v41 = vor.u32 %v9803_v34, %v7806_v47  ;;  %v8015_v47 = vor.u32 %v9855_v63, %v8014_v60  ;;  %v7862_v34 = vld [vmem:[#allocation33 + $0x7a0] sm:$0xf]  ;;  %v9806_v60 = vld [vmem:[#allocation33 + $0x74c] sm:$0xf0]  ;;  %v9804_v63 = vld [vmem:[#allocation33 + $0x744] sm:$0xf] }
 0x30e   :  { %3120 = vmatpush.bf16.msra.mxu3 %v7723_v58  ;;  %3391 = vmatpush.bf16.msrb.mxu0 %v7855_v43  ;;  %v11650_v3 = vadd.f32 %v2108_v26, %v1856_v35  ;;  %v7790_v58 = vld [vmem:[#allocation33 + $0x708] sm:$0xf]  ;;  %v9799_v43 = vld [vmem:[#allocation33 + $0x714] sm:$0xf0]  ;;  %v7659_v35 = vor.u32 %v9764_v61, %v7656_v16  ;;  %v7863_v11 = vor.u32 %v9818_v19, %v7862_v34  ;;  %v7728_v61 = vld [vmem:[#allocation33 + $0x698] sm:$0xf0] }
 0x30f   :  { %v7791_v49 = vor.u32 %v9799_v43, %v7790_v58  ;;  %v7998_v26 = vld [vmem:[#allocation33 + $0x8a8] sm:$0xf]  ;;  %v7846_v58 = vld [vmem:[#allocation33 + $0x780] sm:$0xf]  ;;  %v9814_v43 = vld [vmem:[#allocation33 + $0x78c] sm:$0xf0] }
 0x310   :  { %v7999_v16 = vor.u32 %v9851_v4, %v7998_v26  ;;  %v9769_v26 = vld [vmem:[#allocation33 + $0x62c] sm:$0xf]  ;;  %v7680_v4 = vld [vmem:[#allocation33 + $0x638] sm:$0xf0] }
 0x311   :  { %2889 = vmatpush.bf16.msra.mxu1 %v7587_v17  ;;  %3108 = vmatpush.bf16.msra.mxu2 %v7703_v22  ;;  %v8030_v17 = vld [vmem:[#allocation33 + $0x8e8] sm:$0xf]  ;;  %v9859_v22 = vld [vmem:[#allocation33 + $0x8f4] sm:$0xf0] }
 0x312   :  { %3121 = vmatpush.bf16.msra.mxu3 %v7707_v39  ;;  %3392 = vmatpush.bf16.msrb.mxu0 %v7839_v62  ;;  %v1829_v38 = vpop.f32.mrf.mxu2  ;;  %v7895_v39 = vor.u32 %v9826_v23, %v7894_v29  ;;  %v8031_v50 = vor.u32 %v9859_v22, %v8030_v17  ;;  %v7982_v29 = vld [vmem:[#allocation33 + $0x888] sm:$0xf]  ;;  %v9847_v23 = vld [vmem:[#allocation33 + $0x894] sm:$0xf0]  ;;  %v7847_v17 = vor.u32 %v9814_v43, %v7846_v58  ;;  %v9777_v22 = vld [vmem:[#allocation33 + $0x66c] sm:$0xf] }
 0x313   :  { %v11653_v62 = vadd.f32 %v1829_v38, %v11644_v40  ;;  %v1842_v30 = vpop.f32.mrf.mxu3  ;;  %v7763_v40 = vor.u32 %v9789_v45, %v7760_v42  ;;  %v7851_v38 = vor.u32 %v9812_v25, %v7848_v31  ;;  %v9808_v45 = vld [vmem:[#allocation33 + $0x764] sm:$0xf]  ;;  %v7832_v42 = vld [vmem:[#allocation33 + $0x770] sm:$0xf0]  ;;  %v7664_v43 = vld [vmem:[#allocation33 + $0x618] sm:$0xf0] }
 0x314   :  { %v11656_v51 = vadd.f32 %v1842_v30, %v11646_v24  ;;  %v11660_v24 = vpack.c.b16 %v11509_v28, %v11509_v28  ;;  %v7747_v28 = vor.u32 %v9785_v20, %v7744_v27  ;;  %v9810_v30 = vld [vmem:[#allocation33 + $0x76c] sm:$0xf0]  ;;  %v7816_v20 = vld [vmem:[#allocation33 + $0x750] sm:$0xf0]  ;;  %v7950_v27 = vld [vmem:[#allocation33 + $0x848] sm:$0xf] }
 0x315   :  { %2890 = vmatpush.bf16.msra.mxu1 %v7571_v52  ;;  %3109 = vmatpush.bf16.msra.mxu2 %v7687_v54  ;;  %v1650_v52 = vpop.f32.mrf.mxu1  ;;  %v7878_v54 = vld [vmem:[#allocation33 + $0x7c0] sm:$0xf]  ;;  %v9798_v31 = vld [vmem:[#allocation33 + $0x70c] sm:$0xf0] }
 0x316   :  { %3122 = vmatpush.bf16.msra.mxu3 %v7691_v36  ;;  %3393 = vmatpush.bf16.msrb.mxu0 %v7823_v59  ;;  %v2110_v36 = vpop.f32.mrf.mxu0  ;;  %v7880_v59 = vld [vmem:[#allocation33 + $0x7d0] sm:$0xf0]  ;;  %v7879_v6 = vor.u32 %v9822_v56, %v7878_v54  ;;  %v9773_v54 = vld [vmem:[#allocation33 + $0x64c] sm:$0xf]  ;;  %v7696_v56 = vld [vmem:[#allocation33 + $0x658] sm:$0xf0] }
 0x317   :  { %v7883_v37 = vor.u32 %v9820_v57, %v7880_v59  ;;  %v7835_v57 = vor.u32 %v9808_v45, %v7832_v42  ;;  %v7814_v59 = vld [vmem:[#allocation33 + $0x740] sm:$0xf]  ;;  %v9856_v45 = vld [vmem:[#allocation33 + $0x8e4] sm:$0xf] }
 0x318   :  { %v7782_v25 = vld [vmem:[#allocation33 + $0x700] sm:$0xf] }
 0x319   :  { %2891 = vmatpush.bf16.msra.mxu1 %v7555_v14  ;;  %3110 = vmatpush.bf16.msra.mxu2 %v7671_v15  ;;  %v9816_v14 = vld [vmem:[#allocation33 + $0x7a4] sm:$0xf]  ;;  %v7864_v15 = vld [vmem:[#allocation33 + $0x7b0] sm:$0xf0] }
 0x31a   :  { %3123 = vmatpush.bf16.msra.mxu3 %v7675_v13  ;;  %3394 = vmatpush.bf16.msrb.mxu0 %v7807_v41  ;;  %v1831_v9 = vpop.f32.mrf.mxu2  ;;  %v9781_v41 = vld [vmem:[#allocation33 + $0x68c] sm:$0xf] }
 0x31b   :  { %v1844_v13 = vpop.f32.mrf.mxu3  ;;  %v7731_v8 = vor.u32 %v9781_v41, %v7728_v61  ;;  %v7819_v9 = vor.u32 %v9804_v63, %v7816_v20  ;;  %v7800_v41 = vld [vmem:[#allocation33 + $0x730] sm:$0xf0]  ;;  %v7934_v61 = vld [vmem:[#allocation33 + $0x828] sm:$0xf]  ;;  %v9854_v20 = vld [vmem:[#allocation33 + $0x8cc] sm:$0xf0] }
 0x31c   :  { %v9800_v13 = vld [vmem:[#allocation33 + $0x724] sm:$0xf] }
 0x31d   :  { %2892 = vmatpush.bf16.msra.mxu1 %v7539_v32  ;;  %3111 = vmatpush.bf16.msra.mxu2 %v7655_v33  ;;  %v1868_v1 = vpop.f32.mrf.mxu1 }
 0x31e   :  { %3124 = vmatpush.bf16.msra.mxu3 %v7659_v35  ;;  %3395 = vmatpush.bf16.msrb.mxu0 %v7791_v49  ;;  %v11667_v32 = vadd.f32 %v1868_v1, %v11648_v2  ;;  %v7712_v35 = vld [vmem:[#allocation33 + $0x678] sm:$0xf0] }
 0x31f   :  { %v7715_v2 = vor.u32 %v9777_v22, %v7712_v35  ;;  %v9831_v35 = vld [vmem:[#allocation33 + $0x814] sm:$0xf0] }
 0x320   :  { %2893 = vmatmul.bf16.vlgmr.msra.gmra.mxu1 %v11630_v7  ;;  %3112 = vmatmul.bf16.vlgmr.msra.gmra.mxu2 %v11638_v44  ;;  %v7867_v7 = vor.u32 %v9816_v14, %v7864_v15  ;;  %v2365_v33 = vpop.f32.mrf.mxu0  ;;  %v7699_v14 = vor.u32 %v9773_v54, %v7696_v56  ;;  %v7815_v15 = vor.u32 %v9806_v60, %v7814_v59  ;;  %v7888_v59 = vld [vmem:[#allocation33 + $0x7d8] sm:$0xf0] }
 0x321   :  { %3143 = vmatpush.bf16.msrb.mxu1 %v7779_v0  ;;  %3362 = vmatpush.bf16.msrb.mxu2 %v7895_v39  ;;  %v11670_v49 = vadd.f32 %v2365_v33, %v11650_v3  ;;  %v7983_v0 = vor.u32 %v9847_v23, %v7982_v29  ;;  %v7830_v39 = vld [vmem:[#allocation33 + $0x760] sm:$0xf]  ;;  %v7803_v29 = vor.u32 %v9800_v13, %v7800_v41  ;;  %v9796_v33 = vld [vmem:[#allocation33 + $0x704] sm:$0xf]  ;;  %v9850_v13 = vld [vmem:[#allocation33 + $0x8ac] sm:$0xf0] }
 0x322   :  { %3375 = vmatpush.bf16.msrb.mxu3 %v7899_v48  ;;  %3657 = vmatpush.bf16.msra.mxu0 %v8031_v50  ;;  %v7966_v48 = vld [vmem:[#allocation33 + $0x868] sm:$0xf]  ;;  %v9843_v50 = vld [vmem:[#allocation33 + $0x874] sm:$0xf0]  ;;  %v7831_v52 = vor.u32 %v9810_v30, %v7830_v39  ;;  %v8022_v39 = vld [vmem:[#allocation33 + $0x8e0] sm:$0xf] }
 0x323   :  { %3125 = vmatmul.bf16.vlgmr.msra.gmra.mxu3 %v11638_v44  ;;  %3396 = vmatmul.bf16.vlgmr.msrb.gmra.mxu0 %v11660_v24  ;;  %v7967_v36 = vor.u32 %v9843_v50, %v7966_v48  ;;  %v2082_v3 = vpop.f32.mrf.mxu2  ;;  %v9858_v30 = vld [vmem:[#allocation33 + $0x8ec] sm:$0xf0]  ;;  %v7783_v48 = vor.u32 %v9798_v31, %v7782_v25  ;;  %v8024_v50 = vld [vmem:[#allocation33 + $0x8f0] sm:$0xf0]  ;;  %v9848_v41 = vld [vmem:[#allocation33 + $0x8a4] sm:$0xf] }
 0x324   :  { %v8027_v60 = vor.u32 %v9856_v45, %v8024_v50  ;;  %v7958_v50 = vld [vmem:[#allocation33 + $0x860] sm:$0xf] }
 0x325   :  { %3144 = vmatpush.bf16.msrb.mxu1 %v7763_v40  ;;  %3363 = vmatpush.bf16.msrb.mxu2 %v7879_v6  ;;  %v11673_v40 = vadd.f32 %v2082_v3, %v11653_v62  ;;  %v1870_v34 = vpop.f32.mrf.mxu1  ;;  %v9821_v3 = vld [vmem:[#allocation33 + $0x7cc] sm:$0xf] }
 0x326   :  { %3376 = vmatpush.bf16.msrb.mxu3 %v7883_v37  ;;  %3658 = vmatpush.bf16.msra.mxu0 %v8015_v47  ;;  %v2095_v6 = vpop.f32.mrf.mxu3  ;;  %v9839_v37 = vld [vmem:[#allocation33 + $0x854] sm:$0xf0]  ;;  %v8142_v34 = vld [vmem:[#allocation33 + $0x9c8] sm:$0xf] }
 0x327   :  { %v11676_v47 = vadd.f32 %v2095_v6, %v11656_v51  ;;  %v7951_v62 = vor.u32 %v9839_v37, %v7950_v27  ;;  %v9765_v51 = vld [vmem:[#allocation33 + $0x60c] sm:$0xf]  ;;  %v8006_v6 = vld [vmem:[#allocation33 + $0x8c0] sm:$0xf]  ;;  %v9852_v27 = vld [vmem:[#allocation33 + $0x8c4] sm:$0xf] }
 0x328   :  { %v2367_v19 = vpop.f32.mrf.mxu0  ;;  %v7667_v42 = vor.u32 %v9765_v51, %v7664_v43  ;;  %v8008_v37 = vld [vmem:[#allocation33 + $0x8d0] sm:$0xf0]  ;;  %v9883_v51 = vld [vmem:[#allocation33 + $0x9b4] sm:$0xf0]  ;;  %v7856_v43 = vld [vmem:[#allocation33 + $0x798] sm:$0xf0] }
 0x329   :  { %3145 = vmatpush.bf16.msrb.mxu1 %v7747_v28  ;;  %3364 = vmatpush.bf16.msrb.mxu2 %v7863_v11  ;;  %v7798_v28 = vld [vmem:[#allocation33 + $0x720] sm:$0xf]  ;;  %v9802_v11 = vld [vmem:[#allocation33 + $0x72c] sm:$0xf0]  ;;  %v9887_v19 = vld [vmem:[#allocation33 + $0x9d4] sm:$0xf0] }
 0x32a   :  { %3377 = vmatpush.bf16.msrb.mxu3 %v7867_v7  ;;  %3659 = vmatpush.bf16.msra.mxu0 %v7999_v16  ;;  %v9835_v7 = vld [vmem:[#allocation33 + $0x834] sm:$0xf0]  ;;  %v7683_v16 = vor.u32 %v9769_v26, %v7680_v4  ;;  %v7799_v58 = vor.u32 %v9802_v11, %v7798_v28  ;;  %v9817_v26 = vld [vmem:[#allocation33 + $0x7ac] sm:$0xf]  ;;  %v7872_v4 = vld [vmem:[#allocation33 + $0x7b8] sm:$0xf0]  ;;  %v8143_v28 = vor.u32 %v9887_v19, %v8142_v34 }
 0x32b   :  { %v7935_v23 = vor.u32 %v9835_v7, %v7934_v61  ;;  %v2084_v1 = vpop.f32.mrf.mxu2  ;;  %v7990_v11 = vld [vmem:[#allocation33 + $0x8a0] sm:$0xf]  ;;  %v7992_v61 = vld [vmem:[#allocation33 + $0x8b0] sm:$0xf0]  ;;  %v8126_v7 = vld [vmem:[#allocation33 + $0x9a8] sm:$0xf] }
 0x32c   :  { %v7995_v25 = vor.u32 %v9848_v41, %v7992_v61  ;;  %v8127_v31 = vor.u32 %v9883_v51, %v8126_v7  ;;  %v7976_v1 = vld [vmem:[#allocation33 + $0x890] sm:$0xf0]  ;;  %v7808_v41 = vld [vmem:[#allocation33 + $0x738] sm:$0xf0]  ;;  %v7926_v7 = vld [vmem:[#allocation33 + $0x820] sm:$0xf] }
 0x32d   :  { %3146 = vmatpush.bf16.msrb.mxu1 %v7731_v8  ;;  %3365 = vmatpush.bf16.msrb.mxu2 %v7847_v17  ;;  %v7784_v8 = vld [vmem:[#allocation33 + $0x710] sm:$0xf0]  ;;  %v7918_v17 = vld [vmem:[#allocation33 + $0x808] sm:$0xf]  ;;  %v9834_v51 = vld [vmem:[#allocation33 + $0x82c] sm:$0xf0] }
 0x32e   :  { %3378 = vmatpush.bf16.msrb.mxu3 %v7851_v38  ;;  %3660 = vmatpush.bf16.msra.mxu0 %v7983_v0  ;;  %v2097_v22 = vpop.f32.mrf.mxu3  ;;  %v9825_v38 = vld [vmem:[#allocation33 + $0x7ec] sm:$0xf]  ;;  %v7904_v0 = vld [vmem:[#allocation33 + $0x7f8] sm:$0xf0]  ;;  %v7787_v54 = vor.u32 %v9796_v33, %v7784_v8  ;;  %v7919_v56 = vor.u32 %v9831_v35, %v7918_v17  ;;  %v8110_v33 = vld [vmem:[#allocation33 + $0x988] sm:$0xf] }
 0x32f   :  { %v9879_v8 = vld [vmem:[#allocation33 + $0x994] sm:$0xf0]  ;;  %v7944_v19 = vld [vmem:[#allocation33 + $0x850] sm:$0xf0] }
 0x331   :  { %3147 = vmatpush.bf16.msrb.mxu1 %v7715_v2  ;;  %3366 = vmatpush.bf16.msrb.mxu2 %v7831_v52  ;;  %v8158_v2 = vld [vmem:[#allocation33 + $0x9e8] sm:$0xf]  ;;  %v9891_v52 = vld [vmem:[#allocation33 + $0x9f4] sm:$0xf0] }
 0x332   :  { %3379 = vmatpush.bf16.msrb.mxu3 %v7835_v57  ;;  %3661 = vmatpush.bf16.msra.mxu0 %v7967_v36  ;;  %v7907_v57 = vor.u32 %v9825_v38, %v7904_v0  ;;  %v8023_v36 = vor.u32 %v9858_v30, %v8022_v39  ;;  %v8159_v63 = vor.u32 %v9891_v52, %v8158_v2  ;;  %v9809_v39 = vld [vmem:[#allocation33 + $0x76c] sm:$0xf]  ;;  %v7840_v30 = vld [vmem:[#allocation33 + $0x778] sm:$0xf0]  ;;  %v9842_v2 = vld [vmem:[#allocation33 + $0x86c] sm:$0xf0] }
 0x333   :  { %v9840_v52 = vld [vmem:[#allocation33 + $0x864] sm:$0xf] }
 0x335   :  { %3148 = vmatpush.bf16.msrb.mxu1 %v7699_v14  ;;  %3367 = vmatpush.bf16.msrb.mxu2 %v7815_v15  ;;  %v7891_v14 = vor.u32 %v9821_v3, %v7888_v59  ;;  %v8007_v15 = vor.u32 %v9854_v20, %v8006_v6  ;;  %v9805_v3 = vld [vmem:[#allocation33 + $0x74c] sm:$0xf]  ;;  %v7824_v59 = vld [vmem:[#allocation33 + $0x758] sm:$0xf0]  ;;  %v7942_v6 = vld [vmem:[#allocation33 + $0x840] sm:$0xf] }
 0x336   :  { %3380 = vmatpush.bf16.msrb.mxu3 %v7819_v9  ;;  %3662 = vmatpush.bf16.msra.mxu0 %v7951_v62  ;;  %v11680_v9 = vpack.c.b16 %v11514_v5, %v11514_v5  ;;  %v8011_v62 = vor.u32 %v9852_v27, %v8008_v37  ;;  %v7875_v5 = vor.u32 %v9817_v26, %v7872_v4  ;;  %v9838_v20 = vld [vmem:[#allocation33 + $0x84c] sm:$0xf0]  ;;  %v9836_v27 = vld [vmem:[#allocation33 + $0x844] sm:$0xf] }
 0x337   :  { %v7947_v61 = vor.u32 %v9836_v27, %v7944_v19  ;;  %v8134_v27 = vld [vmem:[#allocation33 + $0x9c0] sm:$0xf]  ;;  %v9884_v19 = vld [vmem:[#allocation33 + $0x9c4] sm:$0xf] }
 0x339   :  { %3149 = vmatpush.bf16.msrb.mxu1 %v7683_v16  ;;  %3368 = vmatpush.bf16.msrb.mxu2 %v7799_v58  ;;  %v7991_v16 = vor.u32 %v9850_v13, %v7990_v11  ;;  %v9813_v58 = vld [vmem:[#allocation33 + $0x78c] sm:$0xf]  ;;  %v7943_v11 = vor.u32 %v9838_v20, %v7942_v6 }
 0x33a   :  { %3381 = vmatpush.bf16.msrb.mxu3 %v7803_v29  ;;  %3663 = vmatpush.bf16.msra.mxu0 %v7935_v23  ;;  %v9846_v29 = vld [vmem:[#allocation33 + $0x88c] sm:$0xf0]  ;;  %v9844_v23 = vld [vmem:[#allocation33 + $0x884] sm:$0xf]  ;;  %v7859_v38 = vor.u32 %v9813_v58, %v7856_v43  ;;  %v9801_v13 = vld [vmem:[#allocation33 + $0x72c] sm:$0xf] }
 0x33b   :  { %v8062_v58 = vld [vmem:[#allocation33 + $0x928] sm:$0xf]  ;;  %v9867_v43 = vld [vmem:[#allocation33 + $0x934] sm:$0xf0] }
 0x33d   :  { %3150 = vmatpush.bf16.msrb.mxu1 %v7667_v42  ;;  %3369 = vmatpush.bf16.msrb.mxu2 %v7783_v48  ;;  %v2121_v17 = vpop.f32.mrf.mxu1  ;;  %v7979_v42 = vor.u32 %v9844_v23, %v7976_v1  ;;  %v8111_v48 = vor.u32 %v9879_v8, %v8110_v33  ;;  %v9830_v23 = vld [vmem:[#allocation33 + $0x80c] sm:$0xf0]  ;;  %v8063_v33 = vor.u32 %v9867_v43, %v8062_v58  ;;  %v8254_v58 = vld [vmem:[#allocation33 + $0xaa8] sm:$0xf]  ;;  %v9915_v43 = vld [vmem:[#allocation33 + $0xab4] sm:$0xf0] }
 0x33e   :  { %3382 = vmatpush.bf16.msrb.mxu3 %v7787_v54  ;;  %3664 = vmatpush.bf16.msra.mxu0 %v7919_v56  ;;  %v11687_v22 = vadd.f32 %v2121_v17, %v11667_v32  ;;  %v7960_v54 = vld [vmem:[#allocation33 + $0x870] sm:$0xf0]  ;;  %v8094_v56 = vld [vmem:[#allocation33 + $0x968] sm:$0xf]  ;;  %v7843_v32 = vor.u32 %v9809_v39, %v7840_v30  ;;  %v9828_v17 = vld [vmem:[#allocation33 + $0x804] sm:$0xf] }
 0x33f   :  { %v9863_v39 = vld [vmem:[#allocation33 + $0x914] sm:$0xf0]  ;;  %v9857_v30 = vld [vmem:[#allocation33 + $0x8ec] sm:$0xf] }
 0x340   :  { %3151 = vmatmul.bf16.vlgmr.msrb.gmra.mxu1 %v11638_v44  ;;  %3370 = vmatmul.bf16.vlgmr.msrb.gmra.mxu2 %v11660_v24  ;;  %v7974_v44 = vld [vmem:[#allocation33 + $0x880] sm:$0xf]  ;;  %v2623_v35 = vpop.f32.mrf.mxu0 }
 0x341   :  { %3401 = vmatpush.bf16.msra.mxu1 %v7907_v57  ;;  %3631 = vmatpush.bf16.msra.mxu2 %v8023_v36  ;;  %v7975_v0 = vor.u32 %v9846_v29, %v7974_v44  ;;  %v11690_v45 = vadd.f32 %v2623_v35, %v11670_v49  ;;  %v9875_v57 = vld [vmem:[#allocation33 + $0x974] sm:$0xf0]  ;;  %v7959_v36 = vor.u32 %v9842_v2, %v7958_v50  ;;  %v7792_v44 = vld [vmem:[#allocation33 + $0x718] sm:$0xf0]  ;;  %v7910_v29 = vld [vmem:[#allocation33 + $0x800] sm:$0xf] }
 0x342   :  { %3644 = vmatpush.bf16.msra.mxu3 %v8027_v60  ;;  %3914 = vmatpush.bf16.msrb.mxu0 %v8159_v63  ;;  %v7963_v60 = vor.u32 %v9840_v52, %v7960_v54  ;;  %v8095_v63 = vor.u32 %v9875_v57, %v8094_v56  ;;  %v7912_v35 = vld [vmem:[#allocation33 + $0x810] sm:$0xf0]  ;;  %v9890_v50 = vld [vmem:[#allocation33 + $0x9ec] sm:$0xf0]  ;;  %v9888_v2 = vld [vmem:[#allocation33 + $0x9e4] sm:$0xf]  ;;  %v7911_v54 = vor.u32 %v9830_v23, %v7910_v29 }
 0x343   :  { %3383 = vmatmul.bf16.vlgmr.msrb.gmra.mxu3 %v11660_v24  ;;  %3665 = vmatmul.bf16.vlgmr.msra.gmra.mxu0 %v11680_v9  ;;  %v2339_v49 = vpop.f32.mrf.mxu2  ;;  %v8152_v56 = vld [vmem:[#allocation33 + $0x9f0] sm:$0xf0]  ;;  %v8286_v57 = vld [vmem:[#allocation33 + $0xae8] sm:$0xf]  ;;  %v8255_v29 = vor.u32 %v9915_v43, %v8254_v58  ;;  %v9878_v23 = vld [vmem:[#allocation33 + $0x98c] sm:$0xf0] }
 0x344   :  { %v11693_v37 = vadd.f32 %v2339_v49, %v11673_v40  ;;  %v8016_v49 = vld [vmem:[#allocation33 + $0x8d8] sm:$0xf0]  ;;  %v8155_v6 = vor.u32 %v9888_v2, %v8152_v56  ;;  %v9874_v56 = vld [vmem:[#allocation33 + $0x96c] sm:$0xf0]  ;;  %v9864_v43 = vld [vmem:[#allocation33 + $0x924] sm:$0xf] }
 0x345   :  { %3402 = vmatpush.bf16.msra.mxu1 %v7891_v14  ;;  %3632 = vmatpush.bf16.msra.mxu2 %v8007_v15  ;;  %v8078_v14 = vld [vmem:[#allocation33 + $0x948] sm:$0xf]  ;;  %v9871_v15 = vld [vmem:[#allocation33 + $0x954] sm:$0xf0]  ;;  %v2123_v4 = vpop.f32.mrf.mxu1  ;;  %v9866_v58 = vld [vmem:[#allocation33 + $0x92c] sm:$0xf0] }
 0x346   :  { %3645 = vmatpush.bf16.msra.mxu3 %v8011_v62  ;;  %3915 = vmatpush.bf16.msrb.mxu0 %v8143_v28  ;;  %v2352_v34 = vpop.f32.mrf.mxu3  ;;  %v7827_v28 = vor.u32 %v9805_v3, %v7824_v59  ;;  %v8079_v40 = vor.u32 %v9871_v15, %v8078_v14  ;;  %v8136_v14 = vld [vmem:[#allocation33 + $0x9d0] sm:$0xf0]  ;;  %v8270_v15 = vld [vmem:[#allocation33 + $0xac8] sm:$0xf]  ;;  %v9919_v4 = vld [vmem:[#allocation33 + $0xad4] sm:$0xf0] }
 0x347   :  { %v11696_v26 = vadd.f32 %v2352_v34, %v11676_v47  ;;  %v9797_v47 = vld [vmem:[#allocation33 + $0x70c] sm:$0xf]  ;;  %v9886_v34 = vld [vmem:[#allocation33 + $0x9cc] sm:$0xf0] }
 0x348   :  { %v2625_v62 = vpop.f32.mrf.mxu0  ;;  %v7795_v52 = vor.u32 %v9797_v47, %v7792_v44 }
 0x349   :  { %3403 = vmatpush.bf16.msra.mxu1 %v7875_v5  ;;  %3633 = vmatpush.bf16.msra.mxu2 %v7991_v16  ;;  %v9832_v5 = vld [vmem:[#allocation33 + $0x824] sm:$0xf]  ;;  %v7928_v16 = vld [vmem:[#allocation33 + $0x830] sm:$0xf0] }
 0x34a   :  { %3646 = vmatpush.bf16.msra.mxu3 %v7995_v25  ;;  %3916 = vmatpush.bf16.msrb.mxu0 %v8127_v31  ;;  %v7811_v25 = vor.u32 %v9801_v13, %v7808_v41  ;;  %v7927_v31 = vor.u32 %v9834_v51, %v7926_v7  ;;  %v7931_v1 = vor.u32 %v9832_v5, %v7928_v16  ;;  %v8000_v13 = vld [vmem:[#allocation33 + $0x8b8] sm:$0xf0]  ;;  %v8118_v7 = vld [vmem:[#allocation33 + $0x9a0] sm:$0xf]  ;;  %v9882_v51 = vld [vmem:[#allocation33 + $0x9ac] sm:$0xf0] }
 0x34b   :  { %v2341_v8 = vpop.f32.mrf.mxu2  ;;  %v11700_v41 = vpack.c.b16 %v11540_v55, %v11540_v55  ;;  %v9880_v5 = vld [vmem:[#allocation33 + $0x9a4] sm:$0xf]  ;;  %v8120_v16 = vld [vmem:[#allocation33 + $0x9b0] sm:$0xf0]  ;;  %v8119_v47 = vor.u32 %v9882_v51, %v8118_v7  ;;  %v9833_v7 = vld [vmem:[#allocation33 + $0x82c] sm:$0xf] }
 0x34c   :  { %v8123_v44 = vor.u32 %v9880_v5, %v8120_v16  ;;  %v8238_v8 = vld [vmem:[#allocation33 + $0xa88] sm:$0xf]  ;;  %v7936_v51 = vld [vmem:[#allocation33 + $0x838] sm:$0xf0]  ;;  %v8054_v16 = vld [vmem:[#allocation33 + $0x920] sm:$0xf] }
 0x34d   :  { %3404 = vmatpush.bf16.msra.mxu1 %v7859_v38  ;;  %3634 = vmatpush.bf16.msra.mxu2 %v7975_v0  ;;  %v8046_v38 = vld [vmem:[#allocation33 + $0x908] sm:$0xf] }
 0x34e   :  { %3647 = vmatpush.bf16.msra.mxu3 %v7979_v42  ;;  %3917 = vmatpush.bf16.msrb.mxu0 %v8111_v48  ;;  %v2354_v0 = vpop.f32.mrf.mxu3  ;;  %v8032_v42 = vld [vmem:[#allocation33 + $0x8f8] sm:$0xf0]  ;;  %v8150_v48 = vld [vmem:[#allocation33 + $0x9e0] sm:$0xf]  ;;  %v8047_v3 = vor.u32 %v9863_v39, %v8046_v38 }
 0x34f   :  { %v8035_v59 = vor.u32 %v9857_v30, %v8032_v42  ;;  %v9841_v42 = vld [vmem:[#allocation33 + $0x86c] sm:$0xf] }
 0x351   :  { %3405 = vmatpush.bf16.msra.mxu1 %v7843_v32  ;;  %3635 = vmatpush.bf16.msra.mxu2 %v7959_v36  ;;  %v9923_v32 = vld [vmem:[#allocation33 + $0xaf4] sm:$0xf0]  ;;  %v7915_v36 = vor.u32 %v9828_v17, %v7912_v35 }
 0x352   :  { %3648 = vmatpush.bf16.msra.mxu3 %v7963_v60  ;;  %3918 = vmatpush.bf16.msrb.mxu0 %v8095_v63  ;;  %v8151_v60 = vor.u32 %v9890_v50, %v8150_v48  ;;  %v9853_v63 = vld [vmem:[#allocation33 + $0x8cc] sm:$0xf]  ;;  %v8287_v20 = vor.u32 %v9923_v32, %v8286_v57  ;;  %v9911_v17 = vld [vmem:[#allocation33 + $0xa94] sm:$0xf0]  ;;  %v7968_v48 = vld [vmem:[#allocation33 + $0x878] sm:$0xf0] }
 0x353   :  { %v8019_v62 = vor.u32 %v9853_v63, %v8016_v49  ;;  %v9872_v57 = vld [vmem:[#allocation33 + $0x964] sm:$0xf]  ;;  %v8088_v32 = vld [vmem:[#allocation33 + $0x970] sm:$0xf0]  ;;  %v7952_v63 = vld [vmem:[#allocation33 + $0x858] sm:$0xf0] }
 0x354   :  { %v8091_v49 = vor.u32 %v9872_v57, %v8088_v32  ;;  %v8280_v32 = vld [vmem:[#allocation33 + $0xaf0] sm:$0xf0] }
 0x355   :  { %3406 = vmatpush.bf16.msra.mxu1 %v7827_v28  ;;  %3636 = vmatpush.bf16.msra.mxu2 %v7943_v11  ;;  %v8135_v28 = vor.u32 %v9886_v34, %v8134_v27  ;;  %v9849_v11 = vld [vmem:[#allocation33 + $0x8ac] sm:$0xf]  ;;  %v9870_v27 = vld [vmem:[#allocation33 + $0x94c] sm:$0xf0]  ;;  %v9868_v34 = vld [vmem:[#allocation33 + $0x944] sm:$0xf] }
 0x356   :  { %3649 = vmatpush.bf16.msra.mxu3 %v7947_v61  ;;  %3919 = vmatpush.bf16.msrb.mxu0 %v8079_v40  ;;  %v8139_v61 = vor.u32 %v9884_v19, %v8136_v14  ;;  %v8271_v40 = vor.u32 %v9919_v4, %v8270_v15  ;;  %v8003_v55 = vor.u32 %v9849_v11, %v8000_v13  ;;  %v8072_v15 = vld [vmem:[#allocation33 + $0x950] sm:$0xf0]  ;;  %v8206_v4 = vld [vmem:[#allocation33 + $0xa48] sm:$0xf] }
 0x357   :  { %v8075_v5 = vor.u32 %v9868_v34, %v8072_v15  ;;  %v9918_v34 = vld [vmem:[#allocation33 + $0xacc] sm:$0xf0]  ;;  %v8264_v15 = vld [vmem:[#allocation33 + $0xad0] sm:$0xf0] }
 0x359   :  { %3407 = vmatpush.bf16.msra.mxu1 %v7811_v25  ;;  %3637 = vmatpush.bf16.msra.mxu2 %v7927_v31  ;;  %v9845_v25 = vld [vmem:[#allocation33 + $0x88c] sm:$0xf]  ;;  %v7984_v31 = vld [vmem:[#allocation33 + $0x898] sm:$0xf0] }
 0x35a   :  { %3650 = vmatpush.bf16.msra.mxu3 %v7931_v1  ;;  %3920 = vmatpush.bf16.msrb.mxu0 %v8063_v33  ;;  %v9876_v1 = vld [vmem:[#allocation33 + $0x984] sm:$0xf]  ;;  %v8104_v33 = vld [vmem:[#allocation33 + $0x990] sm:$0xf0]  ;;  %v7987_v39 = vor.u32 %v9845_v25, %v7984_v31  ;;  %v9899_v25 = vld [vmem:[#allocation33 + $0xa34] sm:$0xf0]  ;;  %v7939_v31 = vor.u32 %v9833_v7, %v7936_v51  ;;  %v11720_v7 = vpack.c.b16 %v11543_v12, %v11543_v12 }
 0x35b   :  { %v8107_v2 = vor.u32 %v9876_v1, %v8104_v33 }
 0x35d   :  { %3408 = vmatpush.bf16.msra.mxu1 %v7795_v52  ;;  %3638 = vmatpush.bf16.msra.mxu2 %v7911_v54  ;;  %v2378_v35 = vpop.f32.mrf.mxu1  ;;  %v8239_v52 = vor.u32 %v9911_v17, %v8238_v8  ;;  %v8086_v54 = vld [vmem:[#allocation33 + $0x960] sm:$0xf]  ;;  %v9860_v17 = vld [vmem:[#allocation33 + $0x904] sm:$0xf] }
 0x35e   :  { %3651 = vmatpush.bf16.msra.mxu3 %v7915_v36  ;;  %3921 = vmatpush.bf16.msrb.mxu0 %v8047_v3  ;;  %v11707_v38 = vadd.f32 %v2378_v35, %v11687_v22  ;;  %v8222_v36 = vld [vmem:[#allocation33 + $0xa68] sm:$0xf]  ;;  %v9907_v3 = vld [vmem:[#allocation33 + $0xa74] sm:$0xf0]  ;;  %v7971_v22 = vor.u32 %v9841_v42, %v7968_v48  ;;  %v8040_v35 = vld [vmem:[#allocation33 + $0x910] sm:$0xf0] }
 0x35f   :  { %v9889_v42 = vld [vmem:[#allocation33 + $0x9ec] sm:$0xf]  ;;  %v8160_v48 = vld [vmem:[#allocation33 + $0x9f8] sm:$0xf0] }
 0x360   :  { %3409 = vmatmul.bf16.vlgmr.msra.gmra.mxu1 %v11660_v24  ;;  %3639 = vmatmul.bf16.vlgmr.msra.gmra.mxu2 %v11680_v9  ;;  %v8102_v24 = vld [vmem:[#allocation33 + $0x980] sm:$0xf]  ;;  %v2881_v0 = vpop.f32.mrf.mxu0 }
 0x361   :  { %3670 = vmatpush.bf16.msrb.mxu1 %v8035_v59  ;;  %3888 = vmatpush.bf16.msrb.mxu2 %v8151_v60  ;;  %v8103_v30 = vor.u32 %v9878_v23, %v8102_v24  ;;  %v11710_v50 = vadd.f32 %v2881_v0, %v11690_v45  ;;  %v8087_v59 = vor.u32 %v9874_v56, %v8086_v54  ;;  %v9837_v60 = vld [vmem:[#allocation33 + $0x84c] sm:$0xf]  ;;  %v8038_v24 = vld [vmem:[#allocation33 + $0x900] sm:$0xf]  ;;  %v9862_v23 = vld [vmem:[#allocation33 + $0x90c] sm:$0xf0] }
 0x362   :  { %3901 = vmatpush.bf16.msrb.mxu3 %v8155_v6  ;;  %4171 = vmatpush.bf16.msra.mxu0 %v8287_v20  ;;  %v8223_v6 = vor.u32 %v9907_v3, %v8222_v36  ;;  %v8070_v20 = vld [vmem:[#allocation33 + $0x940] sm:$0xf]  ;;  %v8174_v0 = vld [vmem:[#allocation33 + $0xa08] sm:$0xf]  ;;  %v9920_v54 = vld [vmem:[#allocation33 + $0xae4] sm:$0xf]  ;;  %v8039_v57 = vor.u32 %v9862_v23, %v8038_v24 }
 0x363   :  { %3652 = vmatmul.bf16.vlgmr.msra.gmra.mxu3 %v11680_v9  ;;  %3922 = vmatmul.bf16.vlgmr.msrb.gmra.mxu0 %v11700_v41  ;;  %v2597_v45 = vpop.f32.mrf.mxu2  ;;  %v8414_v36 = vld [vmem:[#allocation33 + $0xbe8] sm:$0xf]  ;;  %v9955_v3 = vld [vmem:[#allocation33 + $0xbf4] sm:$0xf0]  ;;  %v9910_v24 = vld [vmem:[#allocation33 + $0xa8c] sm:$0xf0] }
 0x364   :  { %v11713_v19 = vadd.f32 %v2597_v45, %v11693_v37  ;;  %v8283_v45 = vor.u32 %v9920_v54, %v8280_v32  ;;  %v9908_v23 = vld [vmem:[#allocation33 + $0xa84] sm:$0xf] }
 0x365   :  { %3671 = vmatpush.bf16.msrb.mxu1 %v8019_v62  ;;  %3889 = vmatpush.bf16.msrb.mxu2 %v8135_v28  ;;  %v9903_v62 = vld [vmem:[#allocation33 + $0xa54] sm:$0xf0]  ;;  %v2380_v11 = vpop.f32.mrf.mxu1  ;;  %v9904_v32 = vld [vmem:[#allocation33 + $0xa64] sm:$0xf] }
 0x366   :  { %3902 = vmatpush.bf16.msrb.mxu3 %v8139_v61  ;;  %4172 = vmatpush.bf16.msra.mxu0 %v8271_v40  ;;  %v2610_v14 = vpop.f32.mrf.mxu3  ;;  %v7955_v61 = vor.u32 %v9837_v60, %v7952_v63  ;;  %v8071_v40 = vor.u32 %v9870_v27, %v8070_v20  ;;  %v8207_v37 = vor.u32 %v9903_v62, %v8206_v4  ;;  %v8262_v27 = vld [vmem:[#allocation33 + $0xac0] sm:$0xf]  ;;  %v8398_v4 = vld [vmem:[#allocation33 + $0xbc8] sm:$0xf]  ;;  %v9951_v62 = vld [vmem:[#allocation33 + $0xbd4] sm:$0xf0] }
 0x367   :  { %v11716_v28 = vadd.f32 %v2610_v14, %v11696_v26  ;;  %v9829_v26 = vld [vmem:[#allocation33 + $0x80c] sm:$0xf]  ;;  %v8163_v60 = vor.u32 %v9889_v42, %v8160_v48  ;;  %v8415_v20 = vor.u32 %v9955_v3, %v8414_v36  ;;  %v9916_v14 = vld [vmem:[#allocation33 + $0xac4] sm:$0xf]  ;;  %v8096_v48 = vld [vmem:[#allocation33 + $0x978] sm:$0xf0] }
 0x368   :  { %v2883_v13 = vpop.f32.mrf.mxu0  ;;  %v8267_v51 = vor.u32 %v9916_v14, %v8264_v15  ;;  %v9873_v42 = vld [vmem:[#allocation33 + $0x96c] sm:$0xf]  ;;  %v8216_v36 = vld [vmem:[#allocation33 + $0xa70] sm:$0xf0]  ;;  %v8350_v3 = vld [vmem:[#allocation33 + $0xb68] sm:$0xf] }
 0x369   :  { %3672 = vmatpush.bf16.msrb.mxu1 %v8003_v55  ;;  %3890 = vmatpush.bf16.msrb.mxu2 %v8119_v47  ;;  %v8056_v55 = vld [vmem:[#allocation33 + $0x930] sm:$0xf0]  ;;  %v8190_v47 = vld [vmem:[#allocation33 + $0xa28] sm:$0xf]  ;;  %v8263_v13 = vor.u32 %v9918_v34, %v8262_v27  ;;  %v9900_v27 = vld [vmem:[#allocation33 + $0xa44] sm:$0xf] }
 0x36a   :  { %3903 = vmatpush.bf16.msrb.mxu3 %v8123_v44  ;;  %4173 = vmatpush.bf16.msra.mxu0 %v8255_v29  ;;  %v8055_v44 = vor.u32 %v9866_v58, %v8054_v16  ;;  %v7920_v29 = vld [vmem:[#allocation33 + $0x818] sm:$0xf0]  ;;  %v8059_v1 = vor.u32 %v9864_v43, %v8056_v55  ;;  %v8191_v33 = vor.u32 %v9899_v25, %v8190_v47  ;;  %v9914_v16 = vld [vmem:[#allocation33 + $0xaac] sm:$0xf0]  ;;  %v9912_v58 = vld [vmem:[#allocation33 + $0xaa4] sm:$0xf] }
 0x36b   :  { %v2599_v8 = vpop.f32.mrf.mxu2  ;;  %v7923_v56 = vor.u32 %v9829_v26, %v7920_v29  ;;  %v8248_v43 = vld [vmem:[#allocation33 + $0xab0] sm:$0xf0]  ;;  %v8382_v55 = vld [vmem:[#allocation33 + $0xba8] sm:$0xf]  ;;  %v9947_v47 = vld [vmem:[#allocation33 + $0xbb4] sm:$0xf0] }
 0x36c   :  { %v9877_v26 = vld [vmem:[#allocation33 + $0x98c] sm:$0xf]  ;;  %v8383_v29 = vor.u32 %v9947_v47, %v8382_v55  ;;  %v9943_v8 = vld [vmem:[#allocation33 + $0xb94] sm:$0xf0]  ;;  %v8200_v15 = vld [vmem:[#allocation33 + $0xa50] sm:$0xf0] }
 0x36d   :  { %3673 = vmatpush.bf16.msrb.mxu1 %v7987_v39  ;;  %3891 = vmatpush.bf16.msrb.mxu2 %v8103_v30  ;;  %v9895_v30 = vld [vmem:[#allocation33 + $0xa14] sm:$0xf0]  ;;  %v9896_v55 = vld [vmem:[#allocation33 + $0xa24] sm:$0xf]  ;;  %v8184_v47 = vld [vmem:[#allocation33 + $0xa30] sm:$0xf0] }
 0x36e   :  { %3904 = vmatpush.bf16.msrb.mxu3 %v8107_v2  ;;  %4174 = vmatpush.bf16.msra.mxu0 %v8239_v52  ;;  %v2612_v39 = vpop.f32.mrf.mxu3  ;;  %v8278_v2 = vld [vmem:[#allocation33 + $0xae0] sm:$0xf]  ;;  %v9922_v52 = vld [vmem:[#allocation33 + $0xaec] sm:$0xf0] }
 0x36f   :  { %v8279_v63 = vor.u32 %v9922_v52, %v8278_v2 }
 0x371   :  { %3674 = vmatpush.bf16.msrb.mxu1 %v7971_v22  ;;  %3892 = vmatpush.bf16.msrb.mxu2 %v8087_v59  ;;  %v8043_v22 = vor.u32 %v9860_v17, %v8040_v35  ;;  %v8175_v59 = vor.u32 %v9895_v30, %v8174_v0 }
 0x372   :  { %3905 = vmatpush.bf16.msrb.mxu3 %v8091_v49  ;;  %4175 = vmatpush.bf16.msra.mxu0 %v8223_v6  ;;  %v9885_v49 = vld [vmem:[#allocation33 + $0x9cc] sm:$0xf]  ;;  %v8144_v6 = vld [vmem:[#allocation33 + $0x9d8] sm:$0xf0] }
 0x373   :  { %v8147_v11 = vor.u32 %v9885_v49, %v8144_v6  ;;  %v8219_v49 = vor.u32 %v9904_v32, %v8216_v36  ;;  %v8408_v32 = vld [vmem:[#allocation33 + $0xbf0] sm:$0xf0]  ;;  %v8542_v36 = vld [vmem:[#allocation33 + $0xce8] sm:$0xf] }
 0x375   :  { %3675 = vmatpush.bf16.msrb.mxu1 %v7955_v61  ;;  %3893 = vmatpush.bf16.msrb.mxu2 %v8071_v40  ;;  %v9881_v61 = vld [vmem:[#allocation33 + $0x9ac] sm:$0xf]  ;;  %v8128_v40 = vld [vmem:[#allocation33 + $0x9b8] sm:$0xf0] }
 0x376   :  { %3906 = vmatpush.bf16.msrb.mxu3 %v8075_v5  ;;  %4176 = vmatpush.bf16.msra.mxu0 %v8207_v37  ;;  %v8399_v5 = vor.u32 %v9951_v62, %v8398_v4  ;;  %v8246_v37 = vld [vmem:[#allocation33 + $0xaa0] sm:$0xf]  ;;  %v8131_v12 = vor.u32 %v9881_v61, %v8128_v40  ;;  %v8334_v4 = vld [vmem:[#allocation33 + $0xb48] sm:$0xf]  ;;  %v9935_v62 = vld [vmem:[#allocation33 + $0xb54] sm:$0xf0] }
 0x377   :  { %v8247_v25 = vor.u32 %v9914_v16, %v8246_v37  ;;  %v8064_v37 = vld [vmem:[#allocation33 + $0x938] sm:$0xf0]  ;;  %v8203_v16 = vor.u32 %v9900_v27, %v8200_v15  ;;  %v9948_v27 = vld [vmem:[#allocation33 + $0xbc4] sm:$0xf]  ;;  %v8526_v15 = vld [vmem:[#allocation33 + $0xcc8] sm:$0xf] }
 0x379   :  { %3676 = vmatpush.bf16.msrb.mxu1 %v7939_v31  ;;  %3894 = vmatpush.bf16.msrb.mxu2 %v8055_v44  ;;  %v8112_v31 = vld [vmem:[#allocation33 + $0x998] sm:$0xf0]  ;;  %v8251_v44 = vor.u32 %v9912_v58, %v8248_v43  ;;  %v8182_v58 = vld [vmem:[#allocation33 + $0xa20] sm:$0xf]  ;;  %v9898_v43 = vld [vmem:[#allocation33 + $0xa2c] sm:$0xf0] }
 0x37a   :  { %3907 = vmatpush.bf16.msrb.mxu3 %v8059_v1  ;;  %4177 = vmatpush.bf16.msra.mxu0 %v8191_v33  ;;  %v8232_v1 = vld [vmem:[#allocation33 + $0xa90] sm:$0xf0]  ;;  %v8366_v33 = vld [vmem:[#allocation33 + $0xb88] sm:$0xf]  ;;  %v8115_v39 = vor.u32 %v9877_v26, %v8112_v31  ;;  %v8183_v31 = vor.u32 %v9898_v43, %v8182_v58  ;;  %v9944_v58 = vld [vmem:[#allocation33 + $0xba4] sm:$0xf] }
 0x37b   :  { %v8235_v52 = vor.u32 %v9908_v23, %v8232_v1  ;;  %v8367_v54 = vor.u32 %v9943_v8, %v8366_v33  ;;  %v9892_v33 = vld [vmem:[#allocation33 + $0xa04] sm:$0xf]  ;;  %v8168_v8 = vld [vmem:[#allocation33 + $0xa10] sm:$0xf0] }
 0x37c   :  { %v8376_v43 = vld [vmem:[#allocation33 + $0xbb0] sm:$0xf0] }
 0x37d   :  { %3677 = vmatpush.bf16.msrb.mxu1 %v7923_v56  ;;  %3895 = vmatpush.bf16.msrb.mxu2 %v8039_v57  ;;  %v2636_v17 = vpop.f32.mrf.mxu1  ;;  %v8214_v56 = vld [vmem:[#allocation33 + $0xa60] sm:$0xf]  ;;  %v9906_v57 = vld [vmem:[#allocation33 + $0xa6c] sm:$0xf0] }
 0x37e   :  { %3908 = vmatpush.bf16.msrb.mxu3 %v8043_v22  ;;  %4178 = vmatpush.bf16.msra.mxu0 %v8175_v59  ;;  %v11727_v35 = vadd.f32 %v2636_v17, %v11707_v38  ;;  %v9939_v22 = vld [vmem:[#allocation33 + $0xb74] sm:$0xf0]  ;;  %v8099_v38 = vor.u32 %v9873_v42, %v8096_v48  ;;  %v8215_v59 = vor.u32 %v9906_v57, %v8214_v56  ;;  %v8302_v17 = vld [vmem:[#allocation33 + $0xb08] sm:$0xf]  ;;  %v8288_v42 = vld [vmem:[#allocation33 + $0xaf8] sm:$0xf0] }
 0x37f   :  { %v8351_v6 = vor.u32 %v9939_v22, %v8350_v3  ;;  %v8406_v48 = vld [vmem:[#allocation33 + $0xbe0] sm:$0xf]  ;;  %v9987_v3 = vld [vmem:[#allocation33 + $0xcf4] sm:$0xf0]  ;;  %v8171_v22 = vor.u32 %v9892_v33, %v8168_v8 }
 0x380   :  { %3678 = vmatmul.bf16.vlgmr.msrb.gmra.mxu1 %v11680_v9  ;;  %3896 = vmatmul.bf16.vlgmr.msrb.gmra.mxu2 %v11700_v41  ;;  %v8230_v9 = vld [vmem:[#allocation33 + $0xa80] sm:$0xf]  ;;  %v3139_v0 = vpop.f32.mrf.mxu0 }
 0x381   :  { %3927 = vmatpush.bf16.msra.mxu1 %v8163_v60  ;;  %4145 = vmatpush.bf16.msra.mxu2 %v8279_v63  ;;  %v8231_v30 = vor.u32 %v9910_v24, %v8230_v9  ;;  %v11730_v2 = vadd.f32 %v3139_v0, %v11710_v50  ;;  %v9869_v60 = vld [vmem:[#allocation33 + $0x94c] sm:$0xf]  ;;  %v8080_v63 = vld [vmem:[#allocation33 + $0x958] sm:$0xf0]  ;;  %v9894_v9 = vld [vmem:[#allocation33 + $0xa0c] sm:$0xf0]  ;;  %v8187_v24 = vor.u32 %v9896_v55, %v8184_v47 }
 0x382   :  { %4158 = vmatpush.bf16.msra.mxu3 %v8283_v45  ;;  %4428 = vmatpush.bf16.msrb.mxu0 %v8415_v20  ;;  %v8198_v45 = vld [vmem:[#allocation33 + $0xa40] sm:$0xf]  ;;  %v9902_v20 = vld [vmem:[#allocation33 + $0xa4c] sm:$0xf0]  ;;  %v8083_v40 = vor.u32 %v9869_v60, %v8080_v63  ;;  %v9917_v63 = vld [vmem:[#allocation33 + $0xacc] sm:$0xf] }
 0x383   :  { %3909 = vmatmul.bf16.vlgmr.msrb.gmra.mxu3 %v11700_v41  ;;  %4179 = vmatmul.bf16.vlgmr.msra.gmra.mxu0 %v11720_v7  ;;  %v2855_v50 = vpop.f32.mrf.mxu2  ;;  %v8510_v55 = vld [vmem:[#allocation33 + $0xca8] sm:$0xf]  ;;  %v9979_v47 = vld [vmem:[#allocation33 + $0xcb4] sm:$0xf0] }
 0x384   :  { %v11733_v34 = vadd.f32 %v2855_v50, %v11713_v19  ;;  %v8335_v19 = vor.u32 %v9935_v62, %v8334_v4  ;;  %v8543_v50 = vor.u32 %v9987_v3, %v8542_v36  ;;  %v9983_v4 = vld [vmem:[#allocation33 + $0xcd4] sm:$0xf0]  ;;  %v8478_v36 = vld [vmem:[#allocation33 + $0xc68] sm:$0xf] }
 0x385   :  { %3928 = vmatpush.bf16.msra.mxu1 %v8147_v11  ;;  %4146 = vmatpush.bf16.msra.mxu2 %v8263_v13  ;;  %v2638_v13 = vpop.f32.mrf.mxu1  ;;  %v9971_v3 = vld [vmem:[#allocation33 + $0xc74] sm:$0xf0] }
 0x386   :  { %4159 = vmatpush.bf16.msra.mxu3 %v8267_v51  ;;  %4429 = vmatpush.bf16.msrb.mxu0 %v8399_v5  ;;  %v2868_v14 = vpop.f32.mrf.mxu3  ;;  %v8199_v51 = vor.u32 %v9902_v20, %v8198_v45  ;;  %v9865_v5 = vld [vmem:[#allocation33 + $0x92c] sm:$0xf]  ;;  %v8390_v45 = vld [vmem:[#allocation33 + $0xbc0] sm:$0xf]  ;;  %v9950_v20 = vld [vmem:[#allocation33 + $0xbcc] sm:$0xf0] }
 0x387   :  { %v11736_v11 = vadd.f32 %v2868_v14, %v11716_v28  ;;  %v9861_v28 = vld [vmem:[#allocation33 + $0x90c] sm:$0xf]  ;;  %v8067_v26 = vor.u32 %v9865_v5, %v8064_v37  ;;  %v8392_v14 = vld [vmem:[#allocation33 + $0xbd0] sm:$0xf0]  ;;  %v8391_v13 = vor.u32 %v9950_v20, %v8390_v45  ;;  %v8527_v37 = vor.u32 %v9983_v4, %v8526_v15  ;;  %v9967_v15 = vld [vmem:[#allocation33 + $0xc54] sm:$0xf0] }
 0x388   :  { %v3141_v61 = vpop.f32.mrf.mxu0  ;;  %v8395_v5 = vor.u32 %v9948_v27, %v8392_v14  ;;  %v8328_v27 = vld [vmem:[#allocation33 + $0xb50] sm:$0xf0]  ;;  %v8462_v14 = vld [vmem:[#allocation33 + $0xc48] sm:$0xf] }
 0x389   :  { %3929 = vmatpush.bf16.msra.mxu1 %v8131_v12  ;;  %4147 = vmatpush.bf16.msra.mxu2 %v8247_v25  ;;  %v8318_v12 = vld [vmem:[#allocation33 + $0xb28] sm:$0xf]  ;;  %v9931_v25 = vld [vmem:[#allocation33 + $0xb34] sm:$0xf0]  ;;  %v9913_v61 = vld [vmem:[#allocation33 + $0xaac] sm:$0xf] }
 0x38a   :  { %4160 = vmatpush.bf16.msra.mxu3 %v8251_v44  ;;  %4430 = vmatpush.bf16.msrb.mxu0 %v8383_v29  ;;  %v8048_v44 = vld [vmem:[#allocation33 + $0x918] sm:$0xf0]  ;;  %v8166_v29 = vld [vmem:[#allocation33 + $0xa00] sm:$0xf]  ;;  %v8319_v23 = vor.u32 %v9931_v25, %v8318_v12  ;;  %v9909_v25 = vld [vmem:[#allocation33 + $0xa8c] sm:$0xf] }
 0x38b   :  { %v2857_v1 = vpop.f32.mrf.mxu2  ;;  %v8051_v56 = vor.u32 %v9861_v28, %v8048_v44  ;;  %v8167_v57 = vor.u32 %v9894_v9, %v8166_v29  ;;  %v8240_v28 = vld [vmem:[#allocation33 + $0xa98] sm:$0xf0]  ;;  %v9942_v44 = vld [vmem:[#allocation33 + $0xb8c] sm:$0xf0]  ;;  %v9940_v29 = vld [vmem:[#allocation33 + $0xb84] sm:$0xf] }
 0x38c   :  { %v8360_v9 = vld [vmem:[#allocation33 + $0xb90] sm:$0xf0] }
 0x38d   :  { %3930 = vmatpush.bf16.msra.mxu1 %v8115_v39  ;;  %4148 = vmatpush.bf16.msra.mxu2 %v8231_v30  ;;  %v9927_v39 = vld [vmem:[#allocation33 + $0xb14] sm:$0xf0]  ;;  %v9921_v30 = vld [vmem:[#allocation33 + $0xaec] sm:$0xf] }
 0x38e   :  { %4161 = vmatpush.bf16.msra.mxu3 %v8235_v52  ;;  %4431 = vmatpush.bf16.msrb.mxu0 %v8367_v54  ;;  %v2870_v0 = vpop.f32.mrf.mxu3  ;;  %v9954_v52 = vld [vmem:[#allocation33 + $0xbec] sm:$0xf0]  ;;  %v9952_v54 = vld [vmem:[#allocation33 + $0xbe4] sm:$0xf] }
 0x38f   :  { %v8407_v60 = vor.u32 %v9954_v52, %v8406_v48  ;;  %v8363_v48 = vor.u32 %v9940_v29, %v8360_v9  ;;  %v9924_v9 = vld [vmem:[#allocation33 + $0xb04] sm:$0xf] }
 0x391   :  { %3931 = vmatpush.bf16.msra.mxu1 %v8099_v38  ;;  %4149 = vmatpush.bf16.msra.mxu2 %v8215_v59  ;;  %v8303_v38 = vor.u32 %v9927_v39, %v8302_v17  ;;  %v8291_v59 = vor.u32 %v9921_v30, %v8288_v42  ;;  %v8243_v17 = vor.u32 %v9909_v25, %v8240_v28  ;;  %v9905_v39 = vld [vmem:[#allocation33 + $0xa6c] sm:$0xf]  ;;  %v8224_v30 = vld [vmem:[#allocation33 + $0xa78] sm:$0xf0] }
 0x392   :  { %4162 = vmatpush.bf16.msra.mxu3 %v8219_v49  ;;  %4432 = vmatpush.bf16.msrb.mxu0 %v8351_v6  ;;  %v8272_v49 = vld [vmem:[#allocation33 + $0xad8] sm:$0xf0]  ;;  %v8411_v6 = vor.u32 %v9952_v54, %v8408_v32  ;;  %v8342_v54 = vld [vmem:[#allocation33 + $0xb60] sm:$0xf]  ;;  %v8344_v32 = vld [vmem:[#allocation33 + $0xb70] sm:$0xf0] }
 0x393   :  { %v8275_v62 = vor.u32 %v9917_v63, %v8272_v49  ;;  %v8479_v63 = vor.u32 %v9971_v3, %v8478_v36  ;;  %v8326_v49 = vld [vmem:[#allocation33 + $0xb40] sm:$0xf]  ;;  %v8176_v28 = vld [vmem:[#allocation33 + $0xa18] sm:$0xf0] }
 0x395   :  { %3932 = vmatpush.bf16.msra.mxu1 %v8083_v40  ;;  %4150 = vmatpush.bf16.msra.mxu2 %v8199_v51  ;;  %v8256_v40 = vld [vmem:[#allocation33 + $0xab8] sm:$0xf0]  ;;  %v11740_v51 = vpack.c.b16 %v11570_v10, %v11570_v10 }
 0x396   :  { %4163 = vmatpush.bf16.msra.mxu3 %v8203_v16  ;;  %4433 = vmatpush.bf16.msrb.mxu0 %v8335_v19  ;;  %v8374_v16 = vld [vmem:[#allocation33 + $0xba0] sm:$0xf]  ;;  %v9946_v19 = vld [vmem:[#allocation33 + $0xbac] sm:$0xf0]  ;;  %v8259_v10 = vor.u32 %v9913_v61, %v8256_v40 }
 0x397   :  { %v8375_v12 = vor.u32 %v9946_v19, %v8374_v16  ;;  %v8310_v19 = vld [vmem:[#allocation33 + $0xb20] sm:$0xf] }
 0x399   :  { %3933 = vmatpush.bf16.msra.mxu1 %v8067_v26  ;;  %4151 = vmatpush.bf16.msra.mxu2 %v8183_v31  ;;  %v8379_v26 = vor.u32 %v9944_v58, %v8376_v43  ;;  %v8511_v31 = vor.u32 %v9979_v47, %v8510_v55  ;;  %v9930_v58 = vld [vmem:[#allocation33 + $0xb2c] sm:$0xf0]  ;;  %v9928_v43 = vld [vmem:[#allocation33 + $0xb24] sm:$0xf]  ;;  %v8312_v55 = vld [vmem:[#allocation33 + $0xb30] sm:$0xf0] }
 0x39a   :  { %4164 = vmatpush.bf16.msra.mxu3 %v8187_v24  ;;  %4434 = vmatpush.bf16.msrb.mxu0 %v8319_v23  ;;  %v8494_v24 = vld [vmem:[#allocation33 + $0xc88] sm:$0xf]  ;;  %v9975_v23 = vld [vmem:[#allocation33 + $0xc94] sm:$0xf0]  ;;  %v8311_v25 = vor.u32 %v9930_v58, %v8310_v19  ;;  %v8504_v19 = vld [vmem:[#allocation33 + $0xcb0] sm:$0xf0] }
 0x39b   :  { %v8495_v52 = vor.u32 %v9975_v23, %v8494_v24  ;;  %v8446_v47 = vld [vmem:[#allocation33 + $0xc28] sm:$0xf]  ;;  %v8296_v24 = vld [vmem:[#allocation33 + $0xb10] sm:$0xf0] }
 0x39c   :  { %v8430_v23 = vld [vmem:[#allocation33 + $0xc08] sm:$0xf]  ;;  %v8299_v36 = vor.u32 %v9924_v9, %v8296_v24 }
 0x39d   :  { %3934 = vmatpush.bf16.msra.mxu1 %v8051_v56  ;;  %4152 = vmatpush.bf16.msra.mxu2 %v8167_v57  ;;  %v2894_v1 = vpop.f32.mrf.mxu1  ;;  %v9938_v56 = vld [vmem:[#allocation33 + $0xb6c] sm:$0xf0]  ;;  %v9936_v57 = vld [vmem:[#allocation33 + $0xb64] sm:$0xf]  ;;  %v8638_v58 = vld [vmem:[#allocation33 + $0xda8] sm:$0xf] }
 0x39e   :  { %4165 = vmatpush.bf16.msra.mxu3 %v8171_v22  ;;  %4435 = vmatpush.bf16.msrb.mxu0 %v8303_v38  ;;  %v11747_v33 = vadd.f32 %v2894_v1, %v11727_v35  ;;  %v8227_v35 = vor.u32 %v9905_v39, %v8224_v30  ;;  %v8343_v22 = vor.u32 %v9938_v56, %v8342_v54  ;;  %v9901_v38 = vld [vmem:[#allocation33 + $0xa4c] sm:$0xf]  ;;  %v8534_v39 = vld [vmem:[#allocation33 + $0xce0] sm:$0xf]  ;;  %v9986_v30 = vld [vmem:[#allocation33 + $0xcec] sm:$0xf0] }
 0x39f   :  { %v8536_v56 = vld [vmem:[#allocation33 + $0xcf0] sm:$0xf0] }
 0x3a0   :  { %3935 = vmatmul.bf16.vlgmr.msra.gmra.mxu1 %v11700_v41  ;;  %4153 = vmatmul.bf16.vlgmr.msra.gmra.mxu2 %v11720_v7  ;;  %v8358_v41 = vld [vmem:[#allocation33 + $0xb80] sm:$0xf]  ;;  %v3397_v8 = vpop.f32.mrf.mxu0 }
 0x3a1   :  { %4184 = vmatpush.bf16.msrb.mxu1 %v8291_v59  ;;  %4402 = vmatpush.bf16.msrb.mxu2 %v8407_v60  ;;  %v8359_v0 = vor.u32 %v9942_v44, %v8358_v41  ;;  %v11750_v42 = vadd.f32 %v3397_v8, %v11730_v2  ;;  %v8208_v59 = vld [vmem:[#allocation33 + $0xa58] sm:$0xf0]  ;;  %v8347_v60 = vor.u32 %v9936_v57, %v8344_v32  ;;  %v9959_v8 = vld [vmem:[#allocation33 + $0xc14] sm:$0xf0]  ;;  %v8670_v57 = vld [vmem:[#allocation33 + $0xde8] sm:$0xf] }
 0x3a2   :  { %4415 = vmatpush.bf16.msrb.mxu3 %v8411_v6  ;;  %4686 = vmatpush.bf16.msra.mxu0 %v8543_v50  ;;  %v9934_v6 = vld [vmem:[#allocation33 + $0xb4c] sm:$0xf0]  ;;  %v9932_v50 = vld [vmem:[#allocation33 + $0xb44] sm:$0xf]  ;;  %v8211_v61 = vor.u32 %v9901_v38, %v8208_v59  ;;  %v8315_v41 = vor.u32 %v9928_v43, %v8312_v55  ;;  %v10019_v32 = vld [vmem:[#allocation33 + $0xdf4] sm:$0xf0]  ;;  %v8431_v3 = vor.u32 %v9959_v8, %v8430_v23 }
 0x3a3   :  { %4166 = vmatmul.bf16.vlgmr.msra.gmra.mxu3 %v11720_v7  ;;  %4436 = vmatmul.bf16.vlgmr.msrb.gmra.mxu0 %v11740_v51  ;;  %v3113_v2 = vpop.f32.mrf.mxu2  ;;  %v8327_v40 = vor.u32 %v9934_v6, %v8326_v49  ;;  %v8331_v16 = vor.u32 %v9932_v50, %v8328_v27  ;;  %v9949_v38 = vld [vmem:[#allocation33 + $0xbcc] sm:$0xf]  ;;  %v8400_v59 = vld [vmem:[#allocation33 + $0xbd8] sm:$0xf0]  ;;  %v9982_v49 = vld [vmem:[#allocation33 + $0xccc] sm:$0xf0] }
 0x3a4   :  { %v11753_v45 = vadd.f32 %v3113_v2, %v11733_v34  ;;  %v8463_v34 = vor.u32 %v9967_v15, %v8462_v14  ;;  %v8518_v2 = vld [vmem:[#allocation33 + $0xcc0] sm:$0xf]  ;;  %v9980_v6 = vld [vmem:[#allocation33 + $0xcc4] sm:$0xf]  ;;  %v8520_v50 = vld [vmem:[#allocation33 + $0xcd0] sm:$0xf0]  ;;  %v8403_v14 = vor.u32 %v9949_v38, %v8400_v59 }
 0x3a5   :  { %4185 = vmatpush.bf16.msrb.mxu1 %v8275_v62  ;;  %4403 = vmatpush.bf16.msrb.mxu2 %v8391_v13  ;;  %v2896_v62 = vpop.f32.mrf.mxu1  ;;  %v10015_v27 = vld [vmem:[#allocation33 + $0xdd4] sm:$0xf0]  ;;  %v8519_v15 = vor.u32 %v9982_v49, %v8518_v2  ;;  %v8352_v8 = vld [vmem:[#allocation33 + $0xb78] sm:$0xf0]  ;;  %v8454_v38 = vld [vmem:[#allocation33 + $0xc40] sm:$0xf] }
 0x3a6   :  { %4416 = vmatpush.bf16.msrb.mxu3 %v8395_v5  ;;  %4687 = vmatpush.bf16.msra.mxu0 %v8527_v37  ;;  %v3126_v20 = vpop.f32.mrf.mxu3  ;;  %v9897_v5 = vld [vmem:[#allocation33 + $0xa2c] sm:$0xf]  ;;  %v8192_v37 = vld [vmem:[#allocation33 + $0xa38] sm:$0xf0]  ;;  %v10011_v43 = vld [vmem:[#allocation33 + $0xdb4] sm:$0xf0] }
 0x3a7   :  { %v11756_v4 = vadd.f32 %v3126_v20, %v11736_v11  ;;  %v9893_v11 = vld [vmem:[#allocation33 + $0xa0c] sm:$0xf]  ;;  %v8654_v20 = vld [vmem:[#allocation33 + $0xdc8] sm:$0xf]  ;;  %v9966_v59 = vld [vmem:[#allocation33 + $0xc4c] sm:$0xf0] }
 0x3a8   :  { %v3399_v13 = vpop.f32.mrf.mxu0  ;;  %v9945_v62 = vld [vmem:[#allocation33 + $0xbac] sm:$0xf]  ;;  %v8456_v49 = vld [vmem:[#allocation33 + $0xc50] sm:$0xf0] }
 0x3a9   :  { %4186 = vmatpush.bf16.msrb.mxu1 %v8259_v10  ;;  %4404 = vmatpush.bf16.msrb.mxu2 %v8375_v12  ;;  %v9963_v10 = vld [vmem:[#allocation33 + $0xc34] sm:$0xf0]  ;;  %v8195_v12 = vor.u32 %v9897_v5, %v8192_v37  ;;  %v8384_v13 = vld [vmem:[#allocation33 + $0xbb8] sm:$0xf0]  ;;  %v8655_v5 = vor.u32 %v10015_v27, %v8654_v20  ;;  %v8502_v37 = vld [vmem:[#allocation33 + $0xca0] sm:$0xf] }
 0x3aa   :  { %4417 = vmatpush.bf16.msrb.mxu3 %v8379_v26  ;;  %4688 = vmatpush.bf16.msra.mxu0 %v8511_v31  ;;  %v8294_v26 = vld [vmem:[#allocation33 + $0xb00] sm:$0xf]  ;;  %v9926_v31 = vld [vmem:[#allocation33 + $0xb0c] sm:$0xf0]  ;;  %v8447_v44 = vor.u32 %v9963_v10, %v8446_v47  ;;  %v9941_v47 = vld [vmem:[#allocation33 + $0xb8c] sm:$0xf] }
 0x3ab   :  { %v3115_v29 = vpop.f32.mrf.mxu2  ;;  %v8295_v54 = vor.u32 %v9926_v31, %v8294_v26  ;;  %v8368_v10 = vld [vmem:[#allocation33 + $0xb98] sm:$0xf0]  ;;  %v8488_v26 = vld [vmem:[#allocation33 + $0xc90] sm:$0xf0]  ;;  %v8622_v31 = vld [vmem:[#allocation33 + $0xd88] sm:$0xf] }
 0x3ac   :  { %v8371_v24 = vor.u32 %v9941_v47, %v8368_v10  ;;  %v8304_v47 = vld [vmem:[#allocation33 + $0xb18] sm:$0xf0]  ;;  %v8422_v10 = vld [vmem:[#allocation33 + $0xc00] sm:$0xf] }
 0x3ad   :  { %4187 = vmatpush.bf16.msrb.mxu1 %v8243_v17  ;;  %4405 = vmatpush.bf16.msrb.mxu2 %v8359_v0  ;;  %v9953_v17 = vld [vmem:[#allocation33 + $0xbec] sm:$0xf]  ;;  %v8416_v0 = vld [vmem:[#allocation33 + $0xbf8] sm:$0xf0] }
 0x3ae   :  { %4418 = vmatpush.bf16.msrb.mxu3 %v8363_v48  ;;  %4689 = vmatpush.bf16.msra.mxu0 %v8495_v52  ;;  %v3128_v1 = vpop.f32.mrf.mxu3  ;;  %v9984_v48 = vld [vmem:[#allocation33 + $0xce4] sm:$0xf]  ;;  %v8179_v52 = vor.u32 %v9893_v11, %v8176_v28 }
 0x3af   :  { %v9972_v28 = vld [vmem:[#allocation33 + $0xc84] sm:$0xf]  ;;  %v9937_v1 = vld [vmem:[#allocation33 + $0xb6c] sm:$0xf] }
 0x3b1   :  { %4188 = vmatpush.bf16.msrb.mxu1 %v8227_v35  ;;  %4406 = vmatpush.bf16.msrb.mxu2 %v8343_v22  ;;  %v8419_v35 = vor.u32 %v9953_v17, %v8416_v0  ;;  %v8535_v22 = vor.u32 %v9986_v30, %v8534_v39  ;;  %v8491_v0 = vor.u32 %v9972_v28, %v8488_v26  ;;  %v8470_v30 = vld [vmem:[#allocation33 + $0xc60] sm:$0xf]  ;;  %v9956_v28 = vld [vmem:[#allocation33 + $0xc04] sm:$0xf]  ;;  %v8424_v26 = vld [vmem:[#allocation33 + $0xc10] sm:$0xf0] }
 0x3b2   :  { %4419 = vmatpush.bf16.msrb.mxu3 %v8347_v60  ;;  %4690 = vmatpush.bf16.msra.mxu0 %v8479_v63  ;;  %v8539_v60 = vor.u32 %v9984_v48, %v8536_v56  ;;  %v8671_v63 = vor.u32 %v10019_v32, %v8670_v57  ;;  %v9970_v48 = vld [vmem:[#allocation33 + $0xc6c] sm:$0xf0]  ;;  %v8606_v56 = vld [vmem:[#allocation33 + $0xd68] sm:$0xf]  ;;  %v10003_v57 = vld [vmem:[#allocation33 + $0xd74] sm:$0xf0] }
 0x3b3   :  { %v8471_v32 = vor.u32 %v9970_v48, %v8470_v30  ;;  %v8664_v30 = vld [vmem:[#allocation33 + $0xdf0] sm:$0xf0]  ;;  %v8798_v48 = vld [vmem:[#allocation33 + $0xee8] sm:$0xf] }
 0x3b5   :  { %4189 = vmatpush.bf16.msrb.mxu1 %v8211_v61  ;;  %4407 = vmatpush.bf16.msrb.mxu2 %v8327_v40  ;;  %v11760_v61 = vpack.c.b16 %v11595_v18, %v11595_v18  ;;  %v8523_v40 = vor.u32 %v9980_v6, %v8520_v50  ;;  %v8387_v18 = vor.u32 %v9945_v62, %v8384_v13  ;;  %v8590_v6 = vld [vmem:[#allocation33 + $0xd48] sm:$0xf]  ;;  %v9999_v50 = vld [vmem:[#allocation33 + $0xd54] sm:$0xf0]  ;;  %v9929_v13 = vld [vmem:[#allocation33 + $0xb2c] sm:$0xf] }
 0x3b6   :  { %4420 = vmatpush.bf16.msrb.mxu3 %v8331_v16  ;;  %4691 = vmatpush.bf16.msra.mxu0 %v8463_v34  ;;  %v9978_v16 = vld [vmem:[#allocation33 + $0xcac] sm:$0xf0]  ;;  %v9976_v34 = vld [vmem:[#allocation33 + $0xca4] sm:$0xf]  ;;  %v8455_v62 = vor.u32 %v9966_v59, %v8454_v38  ;;  %v8648_v59 = vld [vmem:[#allocation33 + $0xdd0] sm:$0xf0] }
 0x3b7   :  { %v8503_v55 = vor.u32 %v9978_v16, %v8502_v37  ;;  %v8507_v11 = vor.u32 %v9976_v34, %v8504_v19  ;;  %v8438_v37 = vld [vmem:[#allocation33 + $0xc20] sm:$0xf]  ;;  %v9962_v16 = vld [vmem:[#allocation33 + $0xc2c] sm:$0xf0]  ;;  %v9960_v34 = vld [vmem:[#allocation33 + $0xc24] sm:$0xf] }
 0x3b8   :  { %v8440_v19 = vld [vmem:[#allocation33 + $0xc30] sm:$0xf0]  ;;  %v10012_v38 = vld [vmem:[#allocation33 + $0xdc4] sm:$0xf] }
 0x3b9   :  { %4190 = vmatpush.bf16.msrb.mxu1 %v8195_v12  ;;  %4408 = vmatpush.bf16.msrb.mxu2 %v8311_v25  ;;  %v8639_v12 = vor.u32 %v10011_v43, %v8638_v58  ;;  %v9974_v25 = vld [vmem:[#allocation33 + $0xc8c] sm:$0xf0]  ;;  %v8574_v58 = vld [vmem:[#allocation33 + $0xd28] sm:$0xf]  ;;  %v9995_v43 = vld [vmem:[#allocation33 + $0xd34] sm:$0xf0] }
 0x3ba   :  { %4421 = vmatpush.bf16.msrb.mxu3 %v8315_v41  ;;  %4692 = vmatpush.bf16.msra.mxu0 %v8447_v44  ;;  %v10007_v41 = vld [vmem:[#allocation33 + $0xd94] sm:$0xf0] }
 0x3bb   :  { %v8623_v39 = vor.u32 %v10007_v41, %v8622_v31  ;;  %v8558_v31 = vld [vmem:[#allocation33 + $0xd08] sm:$0xf] }
 0x3bd   :  { %4191 = vmatpush.bf16.msrb.mxu1 %v8179_v52  ;;  %4409 = vmatpush.bf16.msrb.mxu2 %v8295_v54  ;;  %v3152_v44 = vpop.f32.mrf.mxu1  ;;  %v9968_v52 = vld [vmem:[#allocation33 + $0xc64] sm:$0xf]  ;;  %v8472_v54 = vld [vmem:[#allocation33 + $0xc70] sm:$0xf0] }
 0x3be   :  { %4422 = vmatpush.bf16.msrb.mxu3 %v8299_v36  ;;  %4693 = vmatpush.bf16.msra.mxu0 %v8431_v3  ;;  %v11767_v29 = vadd.f32 %v3152_v44, %v11747_v33  ;;  %v8355_v33 = vor.u32 %v9937_v1, %v8352_v8  ;;  %v9933_v36 = vld [vmem:[#allocation33 + $0xb4c] sm:$0xf]  ;;  %v8336_v3 = vld [vmem:[#allocation33 + $0xb58] sm:$0xf0]  ;;  %v9991_v44 = vld [vmem:[#allocation33 + $0xd14] sm:$0xf0] }
 0x3bf   :  { %v10018_v1 = vld [vmem:[#allocation33 + $0xdec] sm:$0xf0]  ;;  %v10016_v8 = vld [vmem:[#allocation33 + $0xde4] sm:$0xf] }
 0x3c0   :  { %4192 = vmatmul.bf16.vlgmr.msrb.gmra.mxu1 %v11720_v7  ;;  %4410 = vmatmul.bf16.vlgmr.msrb.gmra.mxu2 %v11740_v51  ;;  %v8486_v7 = vld [vmem:[#allocation33 + $0xc80] sm:$0xf]  ;;  %v3666_v9 = vpop.f32.mrf.mxu0 }
 0x3c1   :  { %4441 = vmatpush.bf16.msra.mxu1 %v8419_v35  ;;  %4660 = vmatpush.bf16.msra.mxu2 %v8535_v22  ;;  %v8487_v23 = vor.u32 %v9974_v25, %v8486_v7  ;;  %v11770_v17 = vadd.f32 %v3666_v9, %v11750_v42  ;;  %v8475_v35 = vor.u32 %v9968_v52, %v8472_v54  ;;  %v9985_v9 = vld [vmem:[#allocation33 + $0xcec] sm:$0xf]  ;;  %v10051_v52 = vld [vmem:[#allocation33 + $0xef4] sm:$0xf0] }
 0x3c2   :  { %4673 = vmatpush.bf16.msra.mxu3 %v8539_v60  ;;  %4944 = vmatpush.bf16.msrb.mxu0 %v8671_v63  ;;  %v8607_v22 = vor.u32 %v10003_v57, %v8606_v56  ;;  %v9964_v60 = vld [vmem:[#allocation33 + $0xc44] sm:$0xf]  ;;  %v8575_v7 = vor.u32 %v9995_v43, %v8574_v58  ;;  %v8427_v54 = vor.u32 %v9956_v28, %v8424_v26  ;;  %v8496_v58 = vld [vmem:[#allocation33 + $0xc98] sm:$0xf0] }
 0x3c3   :  { %4423 = vmatmul.bf16.vlgmr.msrb.gmra.mxu3 %v11740_v51  ;;  %4694 = vmatmul.bf16.vlgmr.msra.gmra.mxu0 %v11760_v61  ;;  %v3371_v42 = vpop.f32.mrf.mxu2  ;;  %v8559_v56 = vor.u32 %v9991_v44, %v8558_v31  ;;  %v9969_v31 = vld [vmem:[#allocation33 + $0xc6c] sm:$0xf] }
 0x3c4   :  { %v11773_v63 = vadd.f32 %v3371_v42, %v11753_v45  ;;  %v8591_v45 = vor.u32 %v9999_v50, %v8590_v6  ;;  %v10014_v42 = vld [vmem:[#allocation33 + $0xdcc] sm:$0xf0]  ;;  %v9977_v50 = vld [vmem:[#allocation33 + $0xcac] sm:$0xf] }
 0x3c5   :  { %4442 = vmatpush.bf16.msra.mxu1 %v8403_v14  ;;  %4661 = vmatpush.bf16.msra.mxu2 %v8519_v15  ;;  %v3154_v27 = vpop.f32.mrf.mxu1  ;;  %v8339_v15 = vor.u32 %v9933_v36, %v8336_v3  ;;  %v8528_v36 = vld [vmem:[#allocation33 + $0xcd8] sm:$0xf0]  ;;  %v8667_v3 = vor.u32 %v10016_v8, %v8664_v30  ;;  %v10000_v8 = vld [vmem:[#allocation33 + $0xd64] sm:$0xf]  ;;  %v10035_v30 = vld [vmem:[#allocation33 + $0xe74] sm:$0xf0] }
 0x3c6   :  { %4674 = vmatpush.bf16.msra.mxu3 %v8523_v40  ;;  %4945 = vmatpush.bf16.msrb.mxu0 %v8655_v5  ;;  %v3384_v2 = vpop.f32.mrf.mxu3  ;;  %v8320_v40 = vld [vmem:[#allocation33 + $0xb38] sm:$0xf0]  ;;  %v8459_v5 = vor.u32 %v9964_v60, %v8456_v49  ;;  %v8782_v60 = vld [vmem:[#allocation33 + $0xec8] sm:$0xf] }
 0x3c7   :  { %v11776_v20 = vadd.f32 %v3384_v2, %v11756_v4  ;;  %v9925_v4 = vld [vmem:[#allocation33 + $0xb0c] sm:$0xf]  ;;  %v10047_v2 = vld [vmem:[#allocation33 + $0xed4] sm:$0xf0]  ;;  %v8512_v27 = vld [vmem:[#allocation33 + $0xcb8] sm:$0xf0] }
 0x3c8   :  { %v3668_v14 = vpop.f32.mrf.mxu0 }
 0x3c9   :  { %4443 = vmatpush.bf16.msra.mxu1 %v8387_v18  ;;  %4662 = vmatpush.bf16.msra.mxu2 %v8503_v55  ;;  %v8323_v18 = vor.u32 %v9929_v13, %v8320_v40  ;;  %v8439_v55 = vor.u32 %v9962_v16, %v8438_v37  ;;  %v11780_v14 = vpack.c.b16 %v11607_v21, %v11607_v21  ;;  %v8630_v13 = vld [vmem:[#allocation33 + $0xda0] sm:$0xf]  ;;  %v10010_v40 = vld [vmem:[#allocation33 + $0xdac] sm:$0xf0]  ;;  %v8766_v37 = vld [vmem:[#allocation33 + $0xea8] sm:$0xf] }
 0x3ca   :  { %4675 = vmatpush.bf16.msra.mxu3 %v8507_v11  ;;  %4946 = vmatpush.bf16.msrb.mxu0 %v8639_v12  ;;  %v9958_v11 = vld [vmem:[#allocation33 + $0xc0c] sm:$0xf0]  ;;  %v8443_v12 = vor.u32 %v9960_v34, %v8440_v19  ;;  %v10043_v16 = vld [vmem:[#allocation33 + $0xeb4] sm:$0xf0]  ;;  %v8515_v21 = vor.u32 %v9977_v50, %v8512_v27  ;;  %v8631_v34 = vor.u32 %v10010_v40, %v8630_v13  ;;  %v9973_v19 = vld [vmem:[#allocation33 + $0xc8c] sm:$0xf] }
 0x3cb   :  { %v3373_v25 = vpop.f32.mrf.mxu2  ;;  %v8499_v28 = vor.u32 %v9973_v19, %v8496_v58  ;;  %v9961_v50 = vld [vmem:[#allocation33 + $0xc2c] sm:$0xf]  ;;  %v8448_v27 = vld [vmem:[#allocation33 + $0xc38] sm:$0xf0]  ;;  %v9994_v13 = vld [vmem:[#allocation33 + $0xd2c] sm:$0xf0] }
 0x3cc   :  { %v9992_v40 = vld [vmem:[#allocation33 + $0xd24] sm:$0xf]  ;;  %v8550_v19 = vld [vmem:[#allocation33 + $0xd00] sm:$0xf]  ;;  %v9990_v58 = vld [vmem:[#allocation33 + $0xd0c] sm:$0xf0] }
 0x3cd   :  { %4444 = vmatpush.bf16.msra.mxu1 %v8371_v24  ;;  %4663 = vmatpush.bf16.msra.mxu2 %v8487_v23  ;;  %v8544_v24 = vld [vmem:[#allocation33 + $0xcf8] sm:$0xf0]  ;;  %v8662_v23 = vld [vmem:[#allocation33 + $0xde0] sm:$0xf] }
 0x3ce   :  { %4676 = vmatpush.bf16.msra.mxu3 %v8491_v0  ;;  %4947 = vmatpush.bf16.msrb.mxu0 %v8623_v39  ;;  %v3386_v41 = vpop.f32.mrf.mxu3  ;;  %v8307_v0 = vor.u32 %v9925_v4, %v8304_v47  ;;  %v8423_v39 = vor.u32 %v9958_v11, %v8422_v10  ;;  %v8547_v57 = vor.u32 %v9985_v9, %v8544_v24  ;;  %v8616_v47 = vld [vmem:[#allocation33 + $0xd90] sm:$0xf0]  ;;  %v8750_v10 = vld [vmem:[#allocation33 + $0xe88] sm:$0xf]  ;;  %v10039_v11 = vld [vmem:[#allocation33 + $0xe94] sm:$0xf0] }
 0x3cf   :  { %v8767_v4 = vor.u32 %v10043_v16, %v8766_v37  ;;  %v8480_v41 = vld [vmem:[#allocation33 + $0xc78] sm:$0xf0]  ;;  %v8751_v24 = vor.u32 %v10039_v11, %v8750_v10  ;;  %v10027_v37 = vld [vmem:[#allocation33 + $0xe34] sm:$0xf0]  ;;  %v8451_v16 = vor.u32 %v9961_v50, %v8448_v27  ;;  %v10042_v50 = vld [vmem:[#allocation33 + $0xeac] sm:$0xf0] }
 0x3d0   :  { %v10023_v11 = vld [vmem:[#allocation33 + $0xe14] sm:$0xf0]  ;;  %v10040_v27 = vld [vmem:[#allocation33 + $0xea4] sm:$0xf] }
 0x3d1   :  { %4445 = vmatpush.bf16.msra.mxu1 %v8355_v33  ;;  %4664 = vmatpush.bf16.msra.mxu2 %v8471_v32  ;;  %v8663_v33 = vor.u32 %v10018_v1, %v8662_v23  ;;  %v9981_v32 = vld [vmem:[#allocation33 + $0xccc] sm:$0xf]  ;;  %v8598_v23 = vld [vmem:[#allocation33 + $0xd60] sm:$0xf]  ;;  %v10002_v1 = vld [vmem:[#allocation33 + $0xd6c] sm:$0xf0] }
 0x3d2   :  { %4677 = vmatpush.bf16.msra.mxu3 %v8475_v35  ;;  %4948 = vmatpush.bf16.msrb.mxu0 %v8607_v22  ;;  %v8799_v35 = vor.u32 %v10051_v52, %v8798_v48  ;;  %v8646_v22 = vld [vmem:[#allocation33 + $0xdc0] sm:$0xf]  ;;  %v8531_v49 = vor.u32 %v9981_v32, %v8528_v36  ;;  %v8599_v48 = vor.u32 %v10002_v1, %v8598_v23  ;;  %v9965_v52 = vld [vmem:[#allocation33 + $0xc4c] sm:$0xf]  ;;  %v9998_v32 = vld [vmem:[#allocation33 + $0xd4c] sm:$0xf0] }
 0x3d3   :  { %v8647_v6 = vor.u32 %v10014_v42, %v8646_v22  ;;  %v9996_v36 = vld [vmem:[#allocation33 + $0xd44] sm:$0xf]  ;;  %v8584_v22 = vld [vmem:[#allocation33 + $0xd50] sm:$0xf0]  ;;  %v8718_v42 = vld [vmem:[#allocation33 + $0xe48] sm:$0xf] }
 0x3d4   :  { %v8926_v23 = vld [vmem:[#allocation33 + $0xfe8] sm:$0xf]  ;;  %v10083_v1 = vld [vmem:[#allocation33 + $0xff4] sm:$0xf0] }
 0x3d5   :  { %4446 = vmatpush.bf16.msra.mxu1 %v8339_v15  ;;  %4665 = vmatpush.bf16.msra.mxu2 %v8455_v62  ;;  %v8651_v15 = vor.u32 %v10012_v38, %v8648_v59  ;;  %v8783_v62 = vor.u32 %v10047_v2, %v8782_v60  ;;  %v10031_v38 = vld [vmem:[#allocation33 + $0xe54] sm:$0xf0] }
 0x3d6   :  { %4678 = vmatpush.bf16.msra.mxu3 %v8459_v5  ;;  %4949 = vmatpush.bf16.msrb.mxu0 %v8591_v45  ;;  %v10008_v5 = vld [vmem:[#allocation33 + $0xda4] sm:$0xf]  ;;  %v8632_v45 = vld [vmem:[#allocation33 + $0xdb0] sm:$0xf0] }
 0x3d7   :  { %v8635_v43 = vor.u32 %v10008_v5, %v8632_v45  ;;  %v8568_v5 = vld [vmem:[#allocation33 + $0xd30] sm:$0xf0]  ;;  %v8702_v45 = vld [vmem:[#allocation33 + $0xe28] sm:$0xf] }
 0x3d9   :  { %4447 = vmatpush.bf16.msra.mxu1 %v8323_v18  ;;  %4666 = vmatpush.bf16.msra.mxu2 %v8439_v55  ;;  %v10006_v18 = vld [vmem:[#allocation33 + $0xd8c] sm:$0xf0]  ;;  %v10004_v55 = vld [vmem:[#allocation33 + $0xd84] sm:$0xf] }
 0x3da   :  { %4679 = vmatpush.bf16.msra.mxu3 %v8443_v12  ;;  %4950 = vmatpush.bf16.msrb.mxu0 %v8575_v7  ;;  %v8619_v9 = vor.u32 %v10004_v55, %v8616_v47  ;;  %v8552_v55 = vld [vmem:[#allocation33 + $0xd10] sm:$0xf0]  ;;  %v8686_v47 = vld [vmem:[#allocation33 + $0xe08] sm:$0xf] }
 0x3dd   :  { %4448 = vmatpush.bf16.msra.mxu1 %v8307_v0  ;;  %4667 = vmatpush.bf16.msra.mxu2 %v8423_v39  ;;  %v3410_v12 = vpop.f32.mrf.mxu1  ;;  %v8600_v0 = vld [vmem:[#allocation33 + $0xd70] sm:$0xf0]  ;;  %v8734_v39 = vld [vmem:[#allocation33 + $0xe68] sm:$0xf] }
 0x3de   :  { %4680 = vmatpush.bf16.msra.mxu3 %v8427_v54  ;;  %4951 = vmatpush.bf16.msrb.mxu0 %v8559_v56  ;;  %v11787_v7 = vadd.f32 %v3410_v12, %v11767_v29  ;;  %v8483_v29 = vor.u32 %v9969_v31, %v8480_v41  ;;  %v8464_v54 = vld [vmem:[#allocation33 + $0xc58] sm:$0xf0]  ;;  %v8603_v56 = vor.u32 %v10000_v8, %v8600_v0  ;;  %v10017_v12 = vld [vmem:[#allocation33 + $0xdec] sm:$0xf]  ;;  %v10048_v31 = vld [vmem:[#allocation33 + $0xee4] sm:$0xf] }
 0x3df   :  { %v8687_v0 = vor.u32 %v10023_v11, %v8686_v47  ;;  %v8608_v47 = vld [vmem:[#allocation33 + $0xd78] sm:$0xf0] }
 0x3e0   :  { %4449 = vmatmul.bf16.vlgmr.msra.gmra.mxu1 %v11740_v51  ;;  %4668 = vmatmul.bf16.vlgmr.msra.gmra.mxu2 %v11760_v61  ;;  %v8614_v51 = vld [vmem:[#allocation33 + $0xd80] sm:$0xf]  ;;  %v3923_v25 = vpop.f32.mrf.mxu0 }
 0x3e1   :  { %4699 = vmatpush.bf16.msrb.mxu1 %v8547_v57  ;;  %4918 = vmatpush.bf16.msrb.mxu2 %v8663_v33  ;;  %v8615_v26 = vor.u32 %v10006_v18, %v8614_v51  ;;  %v11790_v44 = vadd.f32 %v3923_v25, %v11770_v17  ;;  %v8735_v57 = vor.u32 %v10035_v30, %v8734_v39  ;;  %v8582_v33 = vld [vmem:[#allocation33 + $0xd40] sm:$0xf]  ;;  %v9988_v18 = vld [vmem:[#allocation33 + $0xd04] sm:$0xf]  ;;  %v8672_v25 = vld [vmem:[#allocation33 + $0xdf8] sm:$0xf0] }
 0x3e2   :  { %4931 = vmatpush.bf16.msrb.mxu3 %v8667_v3  ;;  %5202 = vmatpush.bf16.msra.mxu0 %v8799_v35  ;;  %v8555_v8 = vor.u32 %v9988_v18, %v8552_v55  ;;  %v8675_v39 = vor.u32 %v10017_v12, %v8672_v25  ;;  %v10001_v55 = vld [vmem:[#allocation33 + $0xd6c] sm:$0xf]  ;;  %v8726_v25 = vld [vmem:[#allocation33 + $0xe60] sm:$0xf] }
 0x3e3   :  { %4681 = vmatmul.bf16.vlgmr.msra.gmra.mxu3 %v11760_v61  ;;  %4952 = vmatmul.bf16.vlgmr.msrb.gmra.mxu0 %v11780_v14  ;;  %v3640_v17 = vpop.f32.mrf.mxu2 }
 0x3e4   :  { %v11793_v3 = vadd.f32 %v3640_v17, %v11773_v63  ;;  %v8719_v63 = vor.u32 %v10031_v38, %v8718_v42  ;;  %v10044_v17 = vld [vmem:[#allocation33 + $0xec4] sm:$0xf]  ;;  %v10009_v42 = vld [vmem:[#allocation33 + $0xdac] sm:$0xf]  ;;  %v8640_v38 = vld [vmem:[#allocation33 + $0xdb8] sm:$0xf0] }
 0x3e5   :  { %4700 = vmatpush.bf16.msrb.mxu1 %v8531_v49  ;;  %4919 = vmatpush.bf16.msrb.mxu2 %v8647_v6  ;;  %v3412_v60 = vpop.f32.mrf.mxu1  ;;  %v8467_v49 = vor.u32 %v9965_v52, %v8464_v54  ;;  %v8583_v6 = vor.u32 %v9998_v32, %v8582_v33  ;;  %v8927_v54 = vor.u32 %v10083_v1, %v8926_v23  ;;  %v8776_v33 = vld [vmem:[#allocation33 + $0xed0] sm:$0xf0]  ;;  %v8910_v32 = vld [vmem:[#allocation33 + $0xfc8] sm:$0xf]  ;;  %v9997_v23 = vld [vmem:[#allocation33 + $0xd4c] sm:$0xf] }
 0x3e6   :  { %4932 = vmatpush.bf16.msrb.mxu3 %v8651_v15  ;;  %5203 = vmatpush.bf16.msra.mxu0 %v8783_v62  ;;  %v3653_v35 = vpop.f32.mrf.mxu3  ;;  %v8587_v15 = vor.u32 %v9996_v36, %v8584_v22  ;;  %v8566_v62 = vld [vmem:[#allocation33 + $0xd20] sm:$0xf]  ;;  %v10079_v36 = vld [vmem:[#allocation33 + $0xfd4] sm:$0xf0]  ;;  %v11800_v60 = vpack.c.b16 %v11611_v46, %v11611_v46  ;;  %v8643_v46 = vor.u32 %v10009_v42, %v8640_v38  ;;  %v8592_v1 = vld [vmem:[#allocation33 + $0xd58] sm:$0xf0] }
 0x3e7   :  { %v11796_v59 = vadd.f32 %v3653_v35, %v11776_v20  ;;  %v9957_v20 = vld [vmem:[#allocation33 + $0xc0c] sm:$0xf]  ;;  %v8576_v42 = vld [vmem:[#allocation33 + $0xd38] sm:$0xf0] }
 0x3e8   :  { %v3925_v2 = vpop.f32.mrf.mxu0 }
 0x3e9   :  { %4701 = vmatpush.bf16.msrb.mxu1 %v8515_v21  ;;  %4920 = vmatpush.bf16.msrb.mxu2 %v8631_v34  ;;  %v8567_v21 = vor.u32 %v9994_v13, %v8566_v62  ;;  %v8432_v34 = vld [vmem:[#allocation33 + $0xc18] sm:$0xf0]  ;;  %v8779_v2 = vor.u32 %v10044_v17, %v8776_v33  ;;  %v10075_v62 = vld [vmem:[#allocation33 + $0xfb4] sm:$0xf0] }
 0x3ea   :  { %4933 = vmatpush.bf16.msrb.mxu3 %v8635_v43  ;;  %5204 = vmatpush.bf16.msra.mxu0 %v8767_v4  ;;  %v8571_v43 = vor.u32 %v9992_v40, %v8568_v5  ;;  %v8703_v4 = vor.u32 %v10027_v37, %v8702_v45  ;;  %v8435_v41 = vor.u32 %v9957_v20, %v8432_v34  ;;  %v10005_v40 = vld [vmem:[#allocation33 + $0xd8c] sm:$0xf]  ;;  %v8624_v5 = vld [vmem:[#allocation33 + $0xd98] sm:$0xf0]  ;;  %v10038_v20 = vld [vmem:[#allocation33 + $0xe8c] sm:$0xf0] }
 0x3eb   :  { %v3642_v51 = vpop.f32.mrf.mxu2  ;;  %v8878_v34 = vld [vmem:[#allocation33 + $0xf88] sm:$0xf] }
 0x3ec   :  { %v8627_v51 = vor.u32 %v10005_v40, %v8624_v5 }
 0x3ed   :  { %4702 = vmatpush.bf16.msrb.mxu1 %v8499_v28  ;;  %4921 = vmatpush.bf16.msrb.mxu2 %v8615_v26  ;;  %v8790_v28 = vld [vmem:[#allocation33 + $0xee0] sm:$0xf]  ;;  %v10050_v26 = vld [vmem:[#allocation33 + $0xeec] sm:$0xf0] }
 0x3ee   :  { %4934 = vmatpush.bf16.msrb.mxu3 %v8619_v9  ;;  %5205 = vmatpush.bf16.msra.mxu0 %v8751_v24  ;;  %v3655_v10 = vpop.f32.mrf.mxu3  ;;  %v8551_v9 = vor.u32 %v9990_v58, %v8550_v19  ;;  %v8792_v24 = vld [vmem:[#allocation33 + $0xef0] sm:$0xf0]  ;;  %v8791_v30 = vor.u32 %v10050_v26, %v8790_v28  ;;  %v10071_v19 = vld [vmem:[#allocation33 + $0xf94] sm:$0xf0]  ;;  %v10034_v28 = vld [vmem:[#allocation33 + $0xe6c] sm:$0xf0] }
 0x3ef   :  { %v8795_v52 = vor.u32 %v10048_v31, %v8792_v24  ;;  %v8879_v12 = vor.u32 %v10071_v19, %v8878_v34  ;;  %v10032_v26 = vld [vmem:[#allocation33 + $0xe64] sm:$0xf]  ;;  %v8728_v31 = vld [vmem:[#allocation33 + $0xe70] sm:$0xf0]  ;;  %v8727_v24 = vor.u32 %v10034_v28, %v8726_v25  ;;  %v10055_v34 = vld [vmem:[#allocation33 + $0xf14] sm:$0xf0] }
 0x3f0   :  { %v10049_v19 = vld [vmem:[#allocation33 + $0xeec] sm:$0xf] }
 0x3f1   :  { %4703 = vmatpush.bf16.msrb.mxu1 %v8483_v29  ;;  %4922 = vmatpush.bf16.msrb.mxu2 %v8599_v48  ;;  %v10013_v29 = vld [vmem:[#allocation33 + $0xdcc] sm:$0xf]  ;;  %v8656_v48 = vld [vmem:[#allocation33 + $0xdd8] sm:$0xf0] }
 0x3f2   :  { %4935 = vmatpush.bf16.msrb.mxu3 %v8603_v56  ;;  %5206 = vmatpush.bf16.msra.mxu0 %v8735_v57  ;;  %v8774_v56 = vld [vmem:[#allocation33 + $0xec0] sm:$0xf]  ;;  %v10046_v57 = vld [vmem:[#allocation33 + $0xecc] sm:$0xf0]  ;;  %v8659_v35 = vor.u32 %v10013_v29, %v8656_v48  ;;  %v10028_v29 = vld [vmem:[#allocation33 + $0xe44] sm:$0xf] }
 0x3f3   :  { %v8775_v22 = vor.u32 %v10046_v57, %v8774_v56  ;;  %v8846_v56 = vld [vmem:[#allocation33 + $0xf48] sm:$0xf]  ;;  %v10063_v57 = vld [vmem:[#allocation33 + $0xf54] sm:$0xf0] }
 0x3f5   :  { %4704 = vmatpush.bf16.msrb.mxu1 %v8467_v49  ;;  %4923 = vmatpush.bf16.msrb.mxu2 %v8583_v6  ;;  %v8911_v49 = vor.u32 %v10079_v36, %v8910_v32  ;;  %v8758_v6 = vld [vmem:[#allocation33 + $0xea0] sm:$0xf]  ;;  %v8595_v36 = vor.u32 %v9997_v23, %v8592_v1  ;;  %v10076_v23 = vld [vmem:[#allocation33 + $0xfc4] sm:$0xf]  ;;  %v8904_v1 = vld [vmem:[#allocation33 + $0xfd0] sm:$0xf0] }
 0x3f6   :  { %4936 = vmatpush.bf16.msrb.mxu3 %v8587_v15  ;;  %5207 = vmatpush.bf16.msra.mxu0 %v8719_v63  ;;  %v8760_v15 = vld [vmem:[#allocation33 + $0xeb0] sm:$0xf0]  ;;  %v8894_v63 = vld [vmem:[#allocation33 + $0xfa8] sm:$0xf]  ;;  %v8759_v13 = vor.u32 %v10042_v50, %v8758_v6  ;;  %v10024_v6 = vld [vmem:[#allocation33 + $0xe24] sm:$0xf] }
 0x3f7   :  { %v8763_v45 = vor.u32 %v10040_v27, %v8760_v15  ;;  %v8895_v37 = vor.u32 %v10075_v62, %v8894_v63  ;;  %v8696_v50 = vld [vmem:[#allocation33 + $0xe30] sm:$0xf0]  ;;  %v8830_v27 = vld [vmem:[#allocation33 + $0xf28] sm:$0xf]  ;;  %v10059_v15 = vld [vmem:[#allocation33 + $0xf34] sm:$0xf0] }
 0x3f8   :  { %v9989_v62 = vld [vmem:[#allocation33 + $0xd0c] sm:$0xf]  ;;  %v8699_v40 = vor.u32 %v10024_v6, %v8696_v50  ;;  %v8831_v5 = vor.u32 %v10059_v15, %v8830_v27 }
 0x3f9   :  { %4705 = vmatpush.bf16.msrb.mxu1 %v8451_v16  ;;  %4924 = vmatpush.bf16.msrb.mxu2 %v8567_v21  ;;  %v10036_v16 = vld [vmem:[#allocation33 + $0xe84] sm:$0xf]  ;;  %v8744_v21 = vld [vmem:[#allocation33 + $0xe90] sm:$0xf0]  ;;  %v10033_v27 = vld [vmem:[#allocation33 + $0xe6c] sm:$0xf] }
 0x3fa   :  { %4937 = vmatpush.bf16.msrb.mxu3 %v8571_v43  ;;  %5208 = vmatpush.bf16.msra.mxu0 %v8703_v4  ;;  %v8747_v11 = vor.u32 %v10036_v16, %v8744_v21  ;;  %v8814_v21 = vld [vmem:[#allocation33 + $0xf08] sm:$0xf] }
 0x3fb   :  { %v8815_v25 = vor.u32 %v10055_v34, %v8814_v21  ;;  %v10062_v21 = vld [vmem:[#allocation33 + $0xf4c] sm:$0xf0] }
 0x3fd   :  { %4706 = vmatpush.bf16.msrb.mxu1 %v8435_v41  ;;  %4925 = vmatpush.bf16.msrb.mxu2 %v8551_v9  ;;  %v3679_v58 = vpop.f32.mrf.mxu1  ;;  %v8862_v41 = vld [vmem:[#allocation33 + $0xf68] sm:$0xf]  ;;  %v10067_v9 = vld [vmem:[#allocation33 + $0xf74] sm:$0xf0] }
 0x3fe   :  { %4938 = vmatpush.bf16.msrb.mxu3 %v8555_v8  ;;  %5209 = vmatpush.bf16.msra.mxu0 %v8687_v0  ;;  %v11807_v43 = vadd.f32 %v3679_v58, %v11787_v7  ;;  %v8611_v7 = vor.u32 %v10001_v55, %v8608_v47  ;;  %v8731_v8 = vor.u32 %v10032_v26, %v8728_v31  ;;  %v8800_v58 = vld [vmem:[#allocation33 + $0xef8] sm:$0xf0]  ;;  %v10080_v47 = vld [vmem:[#allocation33 + $0xfe4] sm:$0xf]  ;;  %v10045_v31 = vld [vmem:[#allocation33 + $0xecc] sm:$0xf] }
 0x3ff   :  { %v8863_v0 = vor.u32 %v10067_v9, %v8862_v41  ;;  %v8803_v28 = vor.u32 %v10049_v19, %v8800_v58  ;;  %v8784_v9 = vld [vmem:[#allocation33 + $0xed8] sm:$0xf0]  ;;  %v10060_v19 = vld [vmem:[#allocation33 + $0xf44] sm:$0xf]  ;;  %v8840_v58 = vld [vmem:[#allocation33 + $0xf50] sm:$0xf0] }
 0x400   :  { %4707 = vmatmul.bf16.vlgmr.msrb.gmra.mxu1 %v11760_v61  ;;  %4926 = vmatmul.bf16.vlgmr.msrb.gmra.mxu2 %v11780_v14  ;;  %v8742_v61 = vld [vmem:[#allocation33 + $0xe80] sm:$0xf]  ;;  %v4180_v4 = vpop.f32.mrf.mxu0 }
 0x401   :  { %4957 = vmatpush.bf16.msra.mxu1 %v8675_v39  ;;  %5176 = vmatpush.bf16.msra.mxu2 %v8791_v30  ;;  %v8743_v18 = vor.u32 %v10038_v20, %v8742_v61  ;;  %v11810_v10 = vadd.f32 %v4180_v4, %v11790_v44  ;;  %v8710_v39 = vld [vmem:[#allocation33 + $0xe40] sm:$0xf]  ;;  %v10030_v30 = vld [vmem:[#allocation33 + $0xe4c] sm:$0xf0]  ;;  %v10020_v61 = vld [vmem:[#allocation33 + $0xe04] sm:$0xf] }
 0x402   :  { %5189 = vmatpush.bf16.msra.mxu3 %v8795_v52  ;;  %5460 = vmatpush.bf16.msrb.mxu0 %v8927_v54  ;;  %v8712_v54 = vld [vmem:[#allocation33 + $0xe50] sm:$0xf0]  ;;  %v8918_v4 = vld [vmem:[#allocation33 + $0xfe0] sm:$0xf] }
 0x403   :  { %4939 = vmatmul.bf16.vlgmr.msrb.gmra.mxu3 %v11780_v14  ;;  %5210 = vmatmul.bf16.vlgmr.msra.gmra.mxu0 %v11800_v60  ;;  %v3897_v44 = vpop.f32.mrf.mxu2  ;;  %v8715_v38 = vor.u32 %v10028_v29, %v8712_v54  ;;  %v8680_v20 = vld [vmem:[#allocation33 + $0xe10] sm:$0xf0]  ;;  %v8768_v29 = vld [vmem:[#allocation33 + $0xeb8] sm:$0xf0]  ;;  %v10074_v54 = vld [vmem:[#allocation33 + $0xfac] sm:$0xf0] }
 0x404   :  { %v11813_v48 = vadd.f32 %v3897_v44, %v11793_v3  ;;  %v8847_v3 = vor.u32 %v10063_v57, %v8846_v56  ;;  %v10041_v44 = vld [vmem:[#allocation33 + $0xeac] sm:$0xf]  ;;  %v10072_v56 = vld [vmem:[#allocation33 + $0xfa4] sm:$0xf]  ;;  %v8888_v57 = vld [vmem:[#allocation33 + $0xfb0] sm:$0xf0] }
 0x405   :  { %4958 = vmatpush.bf16.msra.mxu1 %v8659_v35  ;;  %5177 = vmatpush.bf16.msra.mxu2 %v8775_v22  ;;  %v3681_v33 = vpop.f32.mrf.mxu1  ;;  %v8711_v35 = vor.u32 %v10030_v30, %v8710_v39  ;;  %v9993_v22 = vld [vmem:[#allocation33 + $0xd2c] sm:$0xf]  ;;  %v11821_v39 = vpack.c.b16 %v11618_v53, %v11618_v53  ;;  %v8907_v30 = vor.u32 %v10076_v23, %v8904_v1  ;;  %v8806_v1 = vld [vmem:[#allocation33 + $0xf00] sm:$0xf] }
 0x406   :  { %5190 = vmatpush.bf16.msra.mxu3 %v8779_v2  ;;  %5461 = vmatpush.bf16.msrb.mxu0 %v8911_v49  ;;  %v3910_v52 = vpop.f32.mrf.mxu3  ;;  %v8694_v2 = vld [vmem:[#allocation33 + $0xe20] sm:$0xf]  ;;  %v10026_v49 = vld [vmem:[#allocation33 + $0xe2c] sm:$0xf0]  ;;  %v8771_v33 = vor.u32 %v10041_v44, %v8768_v29  ;;  %v8891_v53 = vor.u32 %v10072_v56, %v8888_v57  ;;  %v10081_v29 = vld [vmem:[#allocation33 + $0xfec] sm:$0xf] }
 0x407   :  { %v11816_v17 = vadd.f32 %v3910_v52, %v11796_v59  ;;  %v8579_v59 = vor.u32 %v9993_v22, %v8576_v42  ;;  %v8695_v63 = vor.u32 %v10026_v49, %v8694_v2  ;;  %v8886_v52 = vld [vmem:[#allocation33 + $0xfa0] sm:$0xf]  ;;  %v10070_v22 = vld [vmem:[#allocation33 + $0xf8c] sm:$0xf0]  ;;  %v10068_v42 = vld [vmem:[#allocation33 + $0xf84] sm:$0xf] }
 0x408   :  { %v4182_v32 = vpop.f32.mrf.mxu0 }
 0x409   :  { %4959 = vmatpush.bf16.msra.mxu1 %v8643_v46  ;;  %5178 = vmatpush.bf16.msra.mxu2 %v8759_v13  ;;  %v8560_v46 = vld [vmem:[#allocation33 + $0xd18] sm:$0xf0]  ;;  %v8678_v13 = vld [vmem:[#allocation33 + $0xe00] sm:$0xf]  ;;  %v10037_v32 = vld [vmem:[#allocation33 + $0xe8c] sm:$0xf] }
 0x40a   :  { %5191 = vmatpush.bf16.msra.mxu3 %v8763_v45  ;;  %5462 = vmatpush.bf16.msrb.mxu0 %v8895_v37  ;;  %v10022_v37 = vld [vmem:[#allocation33 + $0xe0c] sm:$0xf0] }
 0x40b   :  { %v3899_v45 = vpop.f32.mrf.mxu2  ;;  %v8679_v55 = vor.u32 %v10022_v37, %v8678_v13  ;;  %v10064_v13 = vld [vmem:[#allocation33 + $0xf64] sm:$0xf] }
 0x40d   :  { %4960 = vmatpush.bf16.msra.mxu1 %v8627_v51  ;;  %5179 = vmatpush.bf16.msra.mxu2 %v8743_v18  ;;  %v10082_v51 = vld [vmem:[#allocation33 + $0xfec] sm:$0xf0]  ;;  %v8563_v18 = vor.u32 %v9989_v62, %v8560_v46  ;;  %v8854_v62 = vld [vmem:[#allocation33 + $0xf60] sm:$0xf] }
 0x40e   :  { %5192 = vmatpush.bf16.msra.mxu3 %v8747_v11  ;;  %5463 = vmatpush.bf16.msrb.mxu0 %v8879_v12  ;;  %v3912_v16 = vpop.f32.mrf.mxu3  ;;  %v8920_v11 = vld [vmem:[#allocation33 + $0xff0] sm:$0xf0]  ;;  %v8683_v12 = vor.u32 %v10020_v61, %v8680_v20  ;;  %v8919_v26 = vor.u32 %v10082_v51, %v8918_v4  ;;  %v10066_v46 = vld [vmem:[#allocation33 + $0xf6c] sm:$0xf0]  ;;  %v8720_v20 = vld [vmem:[#allocation33 + $0xe58] sm:$0xf0] }
 0x40f   :  { %v8923_v41 = vor.u32 %v10080_v47, %v8920_v11  ;;  %v8855_v45 = vor.u32 %v10066_v46, %v8854_v62  ;;  %v8838_v16 = vld [vmem:[#allocation33 + $0xf40] sm:$0xf]  ;;  %v10025_v11 = vld [vmem:[#allocation33 + $0xe2c] sm:$0xf]  ;;  %v8848_v46 = vld [vmem:[#allocation33 + $0xf58] sm:$0xf0] }
 0x410   :  { %v8839_v47 = vor.u32 %v10062_v21, %v8838_v16  ;;  %v10061_v62 = vld [vmem:[#allocation33 + $0xf4c] sm:$0xf]  ;;  %v10174_v21 = vld [vmem:[#allocation36 + $0x2cc] sm:$0xf0] }
 0x411   :  { %4961 = vmatpush.bf16.msra.mxu1 %v8611_v7  ;;  %5180 = vmatpush.bf16.msra.mxu2 %v8727_v24  ;;  %v8902_v7 = vld [vmem:[#allocation33 + $0xfc0] sm:$0xf]  ;;  %v10078_v24 = vld [vmem:[#allocation33 + $0xfcc] sm:$0xf0] }
 0x412   :  { %5193 = vmatpush.bf16.msra.mxu3 %v8731_v8  ;;  %5464 = vmatpush.bf16.msrb.mxu0 %v8863_v0  ;;  %v8787_v8 = vor.u32 %v10045_v31, %v8784_v9  ;;  %v8903_v0 = vor.u32 %v10078_v24, %v8902_v7  ;;  %v8824_v31 = vld [vmem:[#allocation33 + $0xf30] sm:$0xf0]  ;;  %v8688_v7 = vld [vmem:[#allocation33 + $0xe18] sm:$0xf0] }
 0x415   :  { %4962 = vmatpush.bf16.msra.mxu1 %v8595_v36  ;;  %5181 = vmatpush.bf16.msra.mxu2 %v8711_v35  ;;  %v8752_v36 = vld [vmem:[#allocation33 + $0xe98] sm:$0xf0]  ;;  %v8870_v35 = vld [vmem:[#allocation33 + $0xf80] sm:$0xf] }
 0x416   :  { %5194 = vmatpush.bf16.msra.mxu3 %v8715_v38  ;;  %5465 = vmatpush.bf16.msrb.mxu0 %v8847_v3  ;;  %v8872_v38 = vld [vmem:[#allocation33 + $0xf90] sm:$0xf0]  ;;  %v8755_v6 = vor.u32 %v10037_v32, %v8752_v36  ;;  %v8871_v50 = vor.u32 %v10070_v22, %v8870_v35  ;;  %v8912_v32 = vld [vmem:[#allocation33 + $0xfd8] sm:$0xf0]  ;;  %v10073_v36 = vld [vmem:[#allocation33 + $0xfac] sm:$0xf] }
 0x417   :  { %v8896_v35 = vld [vmem:[#allocation33 + $0xfb8] sm:$0xf0] }
 0x418   :  { %v8899_v22 = vor.u32 %v10073_v36, %v8896_v35 }
 0x419   :  { %4963 = vmatpush.bf16.msra.mxu1 %v8579_v59  ;;  %5182 = vmatpush.bf16.msra.mxu2 %v8695_v63  ;;  %v8875_v59 = vor.u32 %v10068_v42, %v8872_v38  ;;  %v8736_v63 = vld [vmem:[#allocation33 + $0xe78] sm:$0xf0]  ;;  %v10069_v42 = vld [vmem:[#allocation33 + $0xf8c] sm:$0xf] }
 0x41a   :  { %5195 = vmatpush.bf16.msra.mxu3 %v8699_v40  ;;  %5466 = vmatpush.bf16.msrb.mxu0 %v8831_v5  ;;  %v8856_v40 = vld [vmem:[#allocation33 + $0xf70] sm:$0xf0]  ;;  %v8739_v5 = vor.u32 %v10033_v27, %v8736_v63  ;;  %v8880_v38 = vld [vmem:[#allocation33 + $0xf98] sm:$0xf0]  ;;  %v10065_v27 = vld [vmem:[#allocation33 + $0xf6c] sm:$0xf] }
 0x41b   :  { %v8859_v37 = vor.u32 %v10064_v13, %v8856_v40 }
 0x41d   :  { %4964 = vmatpush.bf16.msra.mxu1 %v8563_v18  ;;  %5183 = vmatpush.bf16.msra.mxu2 %v8679_v55  ;;  %v3936_v3 = vpop.f32.mrf.mxu1 }
 0x41e   :  { %5196 = vmatpush.bf16.msra.mxu3 %v8683_v12  ;;  %5467 = vmatpush.bf16.msrb.mxu0 %v8815_v25  ;;  %v11827_v2 = vadd.f32 %v3936_v3, %v11807_v43  ;;  %v10029_v43 = vld [vmem:[#allocation33 + $0xe4c] sm:$0xf]  ;;  %v8843_v12 = vor.u32 %v10060_v19, %v8840_v58  ;;  %v8704_v25 = vld [vmem:[#allocation33 + $0xe38] sm:$0xf0] }
 0x41f   :  { %v8723_v55 = vor.u32 %v10029_v43, %v8720_v20  ;;  %v10178_v43 = vld [vmem:[#allocation36 + $0x2ec] sm:$0xf0]  ;;  %v8851_v20 = vor.u32 %v10061_v62, %v8848_v46  ;;  %v8832_v19 = vld [vmem:[#allocation33 + $0xf38] sm:$0xf0]  ;;  %v9272_v62 = vld [vmem:[#allocation36 + $0x2b0] sm:$0xf0] }
 0x420   :  { %4965 = vmatmul.bf16.vlgmr.msra.gmra.mxu1 %v11780_v14  ;;  %5184 = vmatmul.bf16.vlgmr.msra.gmra.mxu2 %v11800_v60  ;;  %v8887_v14 = vor.u32 %v10074_v54, %v8886_v52  ;;  %v4437_v49 = vpop.f32.mrf.mxu0  ;;  %v8928_v52 = vld [vmem:[#allocation33 + $0xff8] sm:$0xf0] }
 0x421   :  { %5215 = vmatpush.bf16.msrb.mxu1 %v8803_v28  ;;  %5434 = vmatpush.bf16.msrb.mxu2 %v8919_v26  ;;  %v11830_v15 = vadd.f32 %v4437_v49, %v11810_v10  ;;  %v8822_v28 = vld [vmem:[#allocation33 + $0xf20] sm:$0xf]  ;;  %v10058_v26 = vld [vmem:[#allocation33 + $0xf2c] sm:$0xf0]  ;;  %v8883_v49 = vor.u32 %v10069_v42, %v8880_v38  ;;  %v9288_v42 = vld [vmem:[#allocation36 + $0x2d0] sm:$0xf0] }
 0x422   :  { %5447 = vmatpush.bf16.msrb.mxu3 %v8923_v41  ;;  %5468 = vmatmul.bf16.vlgmr.msrb.gmra.mxu0 %v11821_v39  ;;  %v8707_v41 = vor.u32 %v10025_v11, %v8704_v25  ;;  %v8823_v9 = vor.u32 %v10058_v26, %v8822_v28  ;;  %v10166_v28 = vld [vmem:[#allocation36 + $0x28c] sm:$0xf0] }
 0x423   :  { %5197 = vmatmul.bf16.vlgmr.msra.gmra.mxu3 %v11800_v60  ;;  %v4154_v61 = vpop.f32.mrf.mxu2 }
 0x424   :  { %v11833_v10 = vadd.f32 %v4154_v61, %v11813_v48  ;;  %v10056_v48 = vld [vmem:[#allocation33 + $0xf24] sm:$0xf] }
 0x425   :  { %5216 = vmatpush.bf16.msrb.mxu1 %v8787_v8  ;;  %5435 = vmatpush.bf16.msrb.mxu2 %v8903_v0  ;;  %v3938_v51 = vpop.f32.mrf.mxu1  ;;  %v8827_v24 = vor.u32 %v10056_v48, %v8824_v31  ;;  %v10054_v8 = vld [vmem:[#allocation33 + $0xf0c] sm:$0xf0]  ;;  %v10052_v0 = vld [vmem:[#allocation33 + $0xf04] sm:$0xf] }
 0x426   :  { %5448 = vmatpush.bf16.msrb.mxu3 %v8907_v30  ;;  %v4167_v34 = vpop.f32.mrf.mxu3  ;;  %v8808_v30 = vld [vmem:[#allocation33 + $0xf10] sm:$0xf0]  ;;  %v8807_v56 = vor.u32 %v10054_v8, %v8806_v1  ;;  %v9238_v31 = vld [vmem:[#allocation36 + $0x260] sm:$0xf] }
 0x427   :  { %v11836_v4 = vadd.f32 %v4167_v34, %v11816_v17  ;;  %v10021_v17 = vld [vmem:[#allocation33 + $0xe0c] sm:$0xf]  ;;  %v8811_v57 = vor.u32 %v10052_v0, %v8808_v30 }
 0x428   :  { %v4439_v18 = vpop.f32.mrf.mxu0  ;;  %v8691_v54 = vor.u32 %v10021_v17, %v8688_v7  ;;  %v10057_v34 = vld [vmem:[#allocation33 + $0xf2c] sm:$0xf]  ;;  %v9222_v7 = vld [vmem:[#allocation36 + $0x240] sm:$0xf] }
 0x429   :  { %5217 = vmatpush.bf16.msrb.mxu1 %v8771_v33  ;;  %5436 = vmatpush.bf16.msrb.mxu2 %v8887_v14  ;;  %v8931_v33 = vor.u32 %v10081_v29, %v8928_v52  ;;  %v10077_v14 = vld [vmem:[#allocation33 + $0xfcc] sm:$0xf]  ;;  %v8835_v51 = vor.u32 %v10057_v34, %v8832_v19  ;;  %v9142_v34 = vld [vmem:[#allocation36 + $0x1a0] sm:$0xf]  ;;  %v10138_v19 = vld [vmem:[#allocation36 + $0x1ac] sm:$0xf0] }
 0x42a   :  { %5449 = vmatpush.bf16.msrb.mxu3 %v8891_v53  ;;  %v8915_v53 = vor.u32 %v10077_v14, %v8912_v32  ;;  %v10053_v18 = vld [vmem:[#allocation33 + $0xf0c] sm:$0xf] }
 0x42b   :  { %v4156_v23 = vpop.f32.mrf.mxu2 }
 0x42c   :  { %v9206_v23 = vld [vmem:[#allocation36 + $0x220] sm:$0xf] }
 0x42d   :  { %5218 = vmatpush.bf16.msrb.mxu1 %v8755_v6  ;;  %5437 = vmatpush.bf16.msrb.mxu2 %v8871_v50 }
 0x42e   :  { %5450 = vmatpush.bf16.msrb.mxu3 %v8875_v59  ;;  %v4169_v44 = vpop.f32.mrf.mxu3  ;;  %v8864_v59 = vld [vmem:[#allocation33 + $0xf78] sm:$0xf0] }
 0x42f   :  { %v10154_v44 = vld [vmem:[#allocation36 + $0x22c] sm:$0xf0] }
 0x430   :  { %v9207_v30 = vor.u32 %v10154_v44, %v9206_v23  ;;  %v10098_v44 = vld [vmem:[#allocation36 + $0x6c] sm:$0xf0] }
 0x431   :  { %5219 = vmatpush.bf16.msrb.mxu1 %v8739_v5  ;;  %5438 = vmatpush.bf16.msrb.mxu2 %v8855_v45  ;;  %v9302_v45 = vld [vmem:[#allocation36 + $0x2e0] sm:$0xf] }
 0x432   :  { %5451 = vmatpush.bf16.msrb.mxu3 %v8859_v37  ;;  %v9286_v37 = vld [vmem:[#allocation36 + $0x2c0] sm:$0xf]  ;;  %v9303_v16 = vor.u32 %v10178_v43, %v9302_v45 }
 0x433   :  { %v9287_v58 = vor.u32 %v10174_v21, %v9286_v37  ;;  %v9158_v45 = vld [vmem:[#allocation36 + $0x1c0] sm:$0xf] }
 0x434   :  { %6316 = vmatpush.bf16.msra.mxu0 %v9303_v16  ;;  %v9256_v16 = vld [vmem:[#allocation36 + $0x290] sm:$0xf0]  ;;  %v9014_v21 = vld [vmem:[#allocation36 + $0xa0] sm:$0xf] }
 0x435   :  { %5220 = vmatpush.bf16.msrb.mxu1 %v8723_v55  ;;  %5439 = vmatpush.bf16.msrb.mxu2 %v8839_v47  ;;  %v9270_v55 = vld [vmem:[#allocation36 + $0x2a0] sm:$0xf]  ;;  %v10170_v47 = vld [vmem:[#allocation36 + $0x2ac] sm:$0xf0] }
 0x436   :  { %5452 = vmatpush.bf16.msrb.mxu3 %v8843_v12  ;;  %v9271_v12 = vor.u32 %v10170_v47, %v9270_v55  ;;  %v9240_v55 = vld [vmem:[#allocation36 + $0x270] sm:$0xf0]  ;;  %v8998_v47 = vld [vmem:[#allocation36 + $0x80] sm:$0xf] }
 0x438   :  { %6317 = vmatpush.bf16.msra.mxu0 %v9287_v58 }
 0x439   :  { %5221 = vmatpush.bf16.msrb.mxu1 %v8707_v41  ;;  %5440 = vmatpush.bf16.msrb.mxu2 %v8823_v9  ;;  %v10162_v41 = vld [vmem:[#allocation36 + $0x26c] sm:$0xf0] }
 0x43a   :  { %5453 = vmatpush.bf16.msrb.mxu3 %v8827_v24  ;;  %v9239_v9 = vor.u32 %v10162_v41, %v9238_v31  ;;  %v10158_v24 = vld [vmem:[#allocation36 + $0x24c] sm:$0xf0] }
 0x43b   :  { %v9223_v0 = vor.u32 %v10158_v24, %v9222_v7  ;;  %v9224_v7 = vld [vmem:[#allocation36 + $0x250] sm:$0xf0]  ;;  %v8982_v24 = vld [vmem:[#allocation36 + $0x60] sm:$0xf] }
 0x43c   :  { %6318 = vmatpush.bf16.msra.mxu0 %v9271_v12  ;;  %v9126_v12 = vld [vmem:[#allocation36 + $0x180] sm:$0xf] }
 0x43d   :  { %5222 = vmatpush.bf16.msrb.mxu1 %v8691_v54  ;;  %5441 = vmatpush.bf16.msrb.mxu2 %v8807_v56  ;;  %v4193_v3 = vpop.f32.mrf.mxu1  ;;  %v9190_v56 = vld [vmem:[#allocation36 + $0x200] sm:$0xf] }
 0x43e   :  { %5454 = vmatpush.bf16.msrb.mxu3 %v8811_v57  ;;  %v4200_v6 = vadd.f32 %v4193_v3, %v11827_v2  ;;  %v10176_v57 = vld [vmem:[#allocation36 + $0x2e4] sm:$0xf]  ;;  %v9046_v3 = vld [vmem:[#allocation36 + $0xe0] sm:$0xf] }
 0x440   :  { %5223 = vmatmul.bf16.vlgmr.msrb.gmra.mxu1 %v11800_v60  ;;  %5442 = vmatmul.bf16.vlgmr.msrb.gmra.mxu2 %v11821_v39  ;;  %v4695_v50 = vpop.f32.mrf.mxu0  ;;  %v8867_v60 = vor.u32 %v10065_v27, %v8864_v59  ;;  %v10146_v59 = vld [vmem:[#allocation36 + $0x1ec] sm:$0xf0] }
 0x441   :  { %5473 = vmatpush.bf16.msra.mxu1 %v8931_v33  ;;  %5455 = vmatmul.bf16.vlgmr.msrb.gmra.mxu3 %v11821_v39  ;;  %v11843_v63 = vadd.f32 %v4695_v50, %v11830_v15 }
 0x443   :  { %v4411_v13 = vpop.f32.mrf.mxu2 }
 0x444   :  { %v4454_v40 = vadd.f32 %v4411_v13, %v11833_v10  ;;  %v8816_v10 = vld [vmem:[#allocation33 + $0xf18] sm:$0xf0] }
 0x445   :  { %5474 = vmatpush.bf16.msra.mxu1 %v8915_v53  ;;  %v4195_v61 = vpop.f32.mrf.mxu1  ;;  %v8819_v26 = vor.u32 %v10053_v18, %v8816_v10  ;;  %v9304_v53 = vld [vmem:[#allocation36 + $0x2f0] sm:$0xf0]  ;;  %v10160_v18 = vld [vmem:[#allocation36 + $0x264] sm:$0xf]  ;;  %v9143_v10 = vor.u32 %v10138_v19, %v9142_v34 }
 0x446   :  { %v4424_v5 = vpop.f32.mrf.mxu3  ;;  %v9307_v35 = vor.u32 %v10176_v57, %v9304_v53  ;;  %v10164_v61 = vld [vmem:[#allocation36 + $0x284] sm:$0xf]  ;;  %v9048_v19 = vld [vmem:[#allocation36 + $0xf0] sm:$0xf0] }
 0x447   :  { %v4455_v2 = vadd.f32 %v4424_v5, %v11836_v4  ;;  %v9254_v4 = vld [vmem:[#allocation36 + $0x280] sm:$0xf]  ;;  %v10110_v5 = vld [vmem:[#allocation36 + $0xcc] sm:$0xf0]  ;;  %v9259_v58 = vor.u32 %v10164_v61, %v9256_v16  ;;  %v10152_v57 = vld [vmem:[#allocation36 + $0x224] sm:$0xf] }
 0x448   :  { %v4697_v15 = vpop.f32.mrf.mxu0  ;;  %v9255_v48 = vor.u32 %v10166_v28, %v9254_v4  ;;  %v9243_v4 = vor.u32 %v10160_v18, %v9240_v55  ;;  %v10086_v16 = vld [vmem:[#allocation36 + $0xc] sm:$0xf0]  ;;  %v10112_v34 = vld [vmem:[#allocation36 + $0xe4] sm:$0xf]  ;;  %v9398_v18 = vld [vmem:[#allocation36 + $0x3a0] sm:$0xf] }
 0x449   :  { %5475 = vmatpush.bf16.msra.mxu1 %v8899_v22  ;;  %v10172_v22 = vld [vmem:[#allocation36 + $0x2c4] sm:$0xf]  ;;  %v10106_v15 = vld [vmem:[#allocation36 + $0xac] sm:$0xf0] }
 0x44a   :  { %6319 = vmatpush.bf16.msra.mxu0 %v9255_v48  ;;  %v9291_v38 = vor.u32 %v10172_v22, %v9288_v42  ;;  %v10126_v22 = vld [vmem:[#allocation36 + $0x14c] sm:$0xf0] }
 0x44b   :  { %v4413_v11 = vpop.f32.mrf.mxu2 }
 0x44c   :  { %v10102_v11 = vld [vmem:[#allocation36 + $0x8c] sm:$0xf0] }
 0x44d   :  { %5476 = vmatpush.bf16.msra.mxu1 %v8883_v49  ;;  %v10114_v49 = vld [vmem:[#allocation36 + $0xec] sm:$0xf0]  ;;  %v8999_v28 = vor.u32 %v10102_v11, %v8998_v47  ;;  %v9051_v11 = vor.u32 %v10112_v34, %v9048_v19 }
 0x44e   :  { %v4426_v25 = vpop.f32.mrf.mxu3  ;;  %6320 = vmatpush.bf16.msra.mxu0 %v9239_v9  ;;  %v9047_v27 = vor.u32 %v10114_v49, %v9046_v3  ;;  %v10148_v3 = vld [vmem:[#allocation36 + $0x204] sm:$0xf]  ;;  %v9192_v49 = vld [vmem:[#allocation36 + $0x210] sm:$0xf0] }
 0x44f   :  { %v10134_v25 = vld [vmem:[#allocation36 + $0x18c] sm:$0xf0] }
 0x450   :  { %6290 = vmatpush.bf16.msra.mxu2 %v9047_v27 }
 0x451   :  { %5477 = vmatpush.bf16.msra.mxu1 %v8867_v60  ;;  %v10168_v60 = vld [vmem:[#allocation36 + $0x2a4] sm:$0xf] }
 0x452   :  { %6321 = vmatpush.bf16.msra.mxu0 %v9223_v0  ;;  %v9275_v43 = vor.u32 %v10168_v60, %v9272_v62  ;;  %v10090_v60 = vld [vmem:[#allocation36 + $0x2c] sm:$0xf0]  ;;  %v9078_v62 = vld [vmem:[#allocation36 + $0x120] sm:$0xf] }
 0x455   :  { %5478 = vmatpush.bf16.msra.mxu1 %v8851_v20 }
 0x456   :  { %6322 = vmatpush.bf16.msra.mxu0 %v9207_v30  ;;  %v9110_v30 = vld [vmem:[#allocation36 + $0x160] sm:$0xf] }
 0x459   :  { %5479 = vmatpush.bf16.msra.mxu1 %v8835_v51  ;;  %v9015_v51 = vor.u32 %v10106_v15, %v9014_v21  ;;  %v9062_v21 = vld [vmem:[#allocation36 + $0x100] sm:$0xf]  ;;  %v10118_v15 = vld [vmem:[#allocation36 + $0x10c] sm:$0xf0] }
 0x45a   :  { %v9063_v47 = vor.u32 %v10118_v15, %v9062_v21 }
 0x45d   :  { %5480 = vmatpush.bf16.msra.mxu1 %v8819_v26  ;;  %v4450_v17 = vpop.f32.mrf.mxu1  ;;  %v9127_v26 = vor.u32 %v10134_v25, %v9126_v12  ;;  %v10108_v25 = vld [vmem:[#allocation36 + $0xc4] sm:$0xf] }
 0x45e   :  { %v11848_v1 = vadd.f32 %v4450_v17, %v4200_v6  ;;  %v9174_v6 = vld [vmem:[#allocation36 + $0x1e0] sm:$0xf]  ;;  %v10156_v17 = vld [vmem:[#allocation36 + $0x244] sm:$0xf] }
 0x45f   :  { %v9175_v13 = vor.u32 %v10146_v59, %v9174_v6  ;;  %v9227_v0 = vor.u32 %v10156_v17, %v9224_v7  ;;  %v9430_v6 = vld [vmem:[#allocation36 + $0x3e0] sm:$0xf]  ;;  %v10198_v7 = vld [vmem:[#allocation36 + $0x38c] sm:$0xf0] }
 0x460   :  { %5481 = vmatmul.bf16.vlgmr.msra.gmra.mxu1 %v11821_v39  ;;  %v11850_v8 = vpop.f32.mrf.mxu0  ;;  %v10150_v39 = vld [vmem:[#allocation36 + $0x20c] sm:$0xf0]  ;;  %v8950_v59 = vld [vmem:[#allocation36 + $0x20] sm:$0xf] }
 0x461   :  { %v9191_v32 = vor.u32 %v10150_v39, %v9190_v56  ;;  %6303 = vmatpush.bf16.msra.mxu3 %v9175_v13  ;;  %v8983_v56 = vor.u32 %v10098_v44, %v8982_v24  ;;  %v10122_v13 = vld [vmem:[#allocation36 + $0x12c] sm:$0xf0]  ;;  %v9382_v17 = vld [vmem:[#allocation36 + $0x380] sm:$0xf]  ;;  %v10104_v44 = vld [vmem:[#allocation36 + $0xa4] sm:$0xf] }
 0x463   :  { %v4669_v29 = vpop.f32.mrf.mxu2  ;;  %6323 = vmatpush.bf16.msra.mxu0 %v9191_v32 }
 0x464   :  { %v11852_v52 = vadd.f32 %v4669_v29, %v4454_v40  ;;  %v9030_v40 = vld [vmem:[#allocation36 + $0xc0] sm:$0xf]  ;;  %v10130_v29 = vld [vmem:[#allocation36 + $0x16c] sm:$0xf0] }
 0x465   :  { %v4452_v14 = vpop.f32.mrf.mxu1  ;;  %v9031_v37 = vor.u32 %v10110_v5, %v9030_v40  ;;  %v9111_v39 = vor.u32 %v10130_v29, %v9110_v30  ;;  %v9414_v40 = vld [vmem:[#allocation36 + $0x3c0] sm:$0xf]  ;;  %v10206_v5 = vld [vmem:[#allocation36 + $0x3cc] sm:$0xf0]  ;;  %v9383_v30 = vor.u32 %v10198_v7, %v9382_v17  ;;  %v9016_v29 = vld [vmem:[#allocation36 + $0xb0] sm:$0xf0] }
 0x466   :  { %v4682_v54 = vpop.f32.mrf.mxu3  ;;  %v9208_v14 = vld [vmem:[#allocation36 + $0x230] sm:$0xf0]  ;;  %v9318_v17 = vld [vmem:[#allocation36 + $0x300] sm:$0xf]  ;;  %v10182_v7 = vld [vmem:[#allocation36 + $0x30c] sm:$0xf0] }
 0x467   :  { %v11854_v33 = vadd.f32 %v4682_v54, %v4455_v2  ;;  %6368 = vmatpush.bf16.msrb.mxu0 %v9307_v35  ;;  %v10142_v2 = vld [vmem:[#allocation36 + $0x1cc] sm:$0xf0]  ;;  %6291 = vmatpush.bf16.msra.mxu2 %v9031_v37  ;;  %v9211_v53 = vor.u32 %v10152_v57, %v9208_v14  ;;  %v9094_v35 = vld [vmem:[#allocation36 + $0x140] sm:$0xf]  ;;  %v9079_v37 = vor.u32 %v10122_v13, %v9078_v62  ;;  %v11865_v14 = vld [vmem:[#allocation34] sm:$0xf] }
 0x468   :  { %v4955_v36 = vpop.f32.mrf.mxu0  ;;  %v9159_v20 = vor.u32 %v10142_v2, %v9158_v45  ;;  %v8934_v2 = vld [vmem:[#allocation36] sm:$0xf]  ;;  %v10194_v57 = vld [vmem:[#allocation36 + $0x36c] sm:$0xf0]  ;;  %v8984_v13 = vld [vmem:[#allocation36 + $0x70] sm:$0xf0] }
 0x469   :  { %v10094_v36 = vld [vmem:[#allocation36 + $0x4c] sm:$0xf0]  ;;  %v8935_v55 = vor.u32 %v10086_v16, %v8934_v2  ;;  %v9310_v2 = vld [vmem:[#allocation36 + $0x2e8] sm:$0xf] }
 0x46a   :  { %6304 = vmatpush.bf16.msra.mxu3 %v9159_v20  ;;  %v9415_v20 = vor.u32 %v10206_v5, %v9414_v40  ;;  %v10128_v40 = vld [vmem:[#allocation36 + $0x164] sm:$0xf]  ;;  %v9112_v5 = vld [vmem:[#allocation36 + $0x170] sm:$0xf0] }
 0x46b   :  { %v4671_v50 = vpop.f32.mrf.mxu2  ;;  %6369 = vmatpush.bf16.msrb.mxu0 %v9291_v38  ;;  %6292 = vmatpush.bf16.msra.mxu2 %v9015_v51  ;;  %v9095_v38 = vor.u32 %v10126_v22, %v9094_v35  ;;  %v9176_v51 = vld [vmem:[#allocation36 + $0x1f0] sm:$0xf0] }
 0x46c   :  { %v10210_v50 = vld [vmem:[#allocation36 + $0x3ec] sm:$0xf0]  ;;  %v9000_v22 = vld [vmem:[#allocation36 + $0x90] sm:$0xf0] }
 0x46d   :  { %v9431_v27 = vor.u32 %v10210_v50, %v9430_v6  ;;  %v10190_v6 = vld [vmem:[#allocation36 + $0x34c] sm:$0xf0] }
 0x46e   :  { %v4684_v46 = vpop.f32.mrf.mxu3  ;;  %6305 = vmatpush.bf16.msra.mxu3 %v9143_v10  ;;  %v10202_v10 = vld [vmem:[#allocation36 + $0x3ac] sm:$0xf0] }
 0x46f   :  { %6370 = vmatpush.bf16.msrb.mxu0 %v9275_v43  ;;  %6293 = vmatpush.bf16.msra.mxu2 %v8999_v28  ;;  %v9195_v46 = vor.u32 %v10148_v3, %v9192_v49  ;;  %v8951_v43 = vor.u32 %v10090_v60, %v8950_v59  ;;  %v9032_v28 = vld [vmem:[#allocation36 + $0xd0] sm:$0xf0]  ;;  %v9350_v49 = vld [vmem:[#allocation36 + $0x340] sm:$0xf] }
 0x470   :  { %6329 = vmatpush.bf16.msrb.mxu1 %v9431_v27  ;;  %v9035_v24 = vor.u32 %v10108_v25, %v9032_v28  ;;  %v5494_v27 = vperm.slane %v11865_v14, 2  ;;  %v10092_v25 = vld [vmem:[#allocation36 + $0x44] sm:$0xf] }
 0x471   :  { %v10124_v28 = vld [vmem:[#allocation36 + $0x144] sm:$0xf] }
 0x472   :  { %6306 = vmatpush.bf16.msra.mxu3 %v9127_v26  ;;  %v10140_v26 = vld [vmem:[#allocation36 + $0x1c4] sm:$0xf] }
 0x473   :  { %6371 = vmatpush.bf16.msrb.mxu0 %v9259_v58  ;;  %6294 = vmatpush.bf16.msra.mxu2 %v8983_v56  ;;  %v10144_v58 = vld [vmem:[#allocation36 + $0x1e4] sm:$0xf]  ;;  %v9144_v56 = vld [vmem:[#allocation36 + $0x1b0] sm:$0xf0] }
 0x474   :  { %6330 = vmatpush.bf16.msrb.mxu1 %v9415_v20  ;;  %v9179_v12 = vor.u32 %v10144_v58, %v9176_v51  ;;  %v9115_v20 = vor.u32 %v10128_v40, %v9112_v5  ;;  %v10200_v40 = vld [vmem:[#allocation36 + $0x3a4] sm:$0xf]  ;;  %v9400_v5 = vld [vmem:[#allocation36 + $0x3b0] sm:$0xf0] }
 0x476   :  { %6307 = vmatpush.bf16.msra.mxu3 %v9111_v39  ;;  %v9366_v39 = vld [vmem:[#allocation36 + $0x360] sm:$0xf] }
 0x477   :  { %6372 = vmatpush.bf16.msrb.mxu0 %v9243_v4  ;;  %v9399_v4 = vor.u32 %v10202_v10, %v9398_v18  ;;  %v9367_v35 = vor.u32 %v10194_v57, %v9366_v39  ;;  %v9294_v18 = vld [vmem:[#allocation36 + $0x2c8] sm:$0xf]  ;;  %v10175_v10 = vld [vmem:[#allocation36 + $0x2d4] sm:$0xf0]  ;;  %v9432_v39 = vld [vmem:[#allocation36 + $0x3f0] sm:$0xf0] }
 0x479   :  { %6331 = vmatpush.bf16.msrb.mxu1 %v9399_v4  ;;  %v8968_v4 = vld [vmem:[#allocation36 + $0x50] sm:$0xf0] }
 0x47a   :  { %6308 = vmatpush.bf16.msra.mxu3 %v9095_v38  ;;  %v9128_v38 = vld [vmem:[#allocation36 + $0x190] sm:$0xf0] }
 0x47b   :  { %6373 = vmatpush.bf16.msrb.mxu0 %v9227_v0 }
 0x47d   :  { %v4708_v48 = vpop.f32.mrf.mxu1  ;;  %6332 = vmatpush.bf16.msrb.mxu1 %v9383_v30 }
 0x47e   :  { %v11857_v31 = vadd.f32 %v4708_v48, %v11848_v1  ;;  %v8966_v1 = vld [vmem:[#allocation36 + $0x40] sm:$0xf]  ;;  %6309 = vmatpush.bf16.msra.mxu3 %v9079_v37  ;;  %v9160_v48 = vld [vmem:[#allocation36 + $0x1d0] sm:$0xf0] }
 0x47f   :  { %v8967_v42 = vor.u32 %v10094_v36, %v8966_v1  ;;  %6374 = vmatpush.bf16.msrb.mxu0 %v9211_v53  ;;  %v9163_v0 = vor.u32 %v10140_v26, %v9160_v48  ;;  %v9019_v1 = vor.u32 %v10104_v44, %v9016_v29  ;;  %v10100_v53 = vld [vmem:[#allocation36 + $0x84] sm:$0xf]  ;;  %v4972_v36 = vadd.f32 %v11850_v8, %v11843_v63  ;;  %v9096_v48 = vld [vmem:[#allocation36 + $0x150] sm:$0xf0] }
 0x480   :  { %v11859_v41 = vpop.f32.mrf.mxu0  ;;  %v9003_v60 = vor.u32 %v10100_v53, %v9000_v22  ;;  %v9351_v8 = vor.u32 %v10190_v6, %v9350_v49  ;;  %v8971_v26 = vor.u32 %v10092_v25, %v8968_v4  ;;  %v10208_v44 = vld [vmem:[#allocation36 + $0x3e4] sm:$0xf]  ;;  %v8952_v53 = vld [vmem:[#allocation36 + $0x30] sm:$0xf0]  ;;  %v10151_v25 = vld [vmem:[#allocation36 + $0x214] sm:$0xf0] }
 0x481   :  { %6295 = vmatpush.bf16.msra.mxu2 %v8967_v42  ;;  %v10132_v42 = vld [vmem:[#allocation36 + $0x184] sm:$0xf]  ;;  %v5230_v50 = vadd.f32 %v11859_v41, %v4972_v36  ;;  %6333 = vmatpush.bf16.msrb.mxu1 %v9367_v35  ;;  %v9080_v22 = vld [vmem:[#allocation36 + $0x130] sm:$0xf0]  ;;  %v10177_v4 = vld [vmem:[#allocation36 + $0x2ec] sm:$0xf] }
 0x482   :  { %6310 = vmatpush.bf16.msra.mxu3 %v9063_v47  ;;  %v9131_v62 = vor.u32 %v10132_v42, %v9128_v38  ;;  %v9278_v47 = vld [vmem:[#allocation36 + $0x2a8] sm:$0xf]  ;;  %v10120_v36 = vld [vmem:[#allocation36 + $0x124] sm:$0xf]  ;;  %v9416_v38 = vld [vmem:[#allocation36 + $0x3d0] sm:$0xf0] }
 0x483   :  { %v11861_v9 = vpop.f32.mrf.mxu2  ;;  %6375 = vmatpush.bf16.msrb.mxu0 %v9195_v46  ;;  %v10096_v46 = vld [vmem:[#allocation36 + $0x64] sm:$0xf]  ;;  %v9083_v49 = vor.u32 %v10120_v36, %v9080_v22  ;;  %v9054_v36 = vld [vmem:[#allocation36 + $0xe8] sm:$0xf] }
 0x484   :  { %v8987_v41 = vor.u32 %v10096_v46, %v8984_v13  ;;  %v10204_v42 = vld [vmem:[#allocation36 + $0x3c4] sm:$0xf]  ;;  %v9246_v46 = vld [vmem:[#allocation36 + $0x268] sm:$0xf]  ;;  %v10163_v13 = vld [vmem:[#allocation36 + $0x274] sm:$0xf0] }
 0x485   :  { %v4710_v54 = vpop.f32.mrf.mxu1  ;;  %6296 = vmatpush.bf16.msra.mxu2 %v8951_v43  ;;  %v10186_v43 = vld [vmem:[#allocation36 + $0x32c] sm:$0xf0]  ;;  %6334 = vmatpush.bf16.msrb.mxu1 %v9351_v8  ;;  %v9419_v6 = vor.u32 %v10204_v42, %v9416_v38  ;;  %v10147_v42 = vld [vmem:[#allocation36 + $0x1f4] sm:$0xf0]  ;;  %v10180_v38 = vld [vmem:[#allocation36 + $0x304] sm:$0xf] }
 0x486   :  { %v11863_v23 = vpop.f32.mrf.mxu3  ;;  %6355 = vmatpush.bf16.msrb.mxu3 %v9179_v12  ;;  %v10136_v54 = vld [vmem:[#allocation36 + $0x1a4] sm:$0xf]  ;;  %v9295_v12 = vor.u32 %v10175_v10, %v9294_v18  ;;  %v10155_v18 = vld [vmem:[#allocation36 + $0x234] sm:$0xf0] }
 0x488   :  { %v5213_v32 = vpop.f32.mrf.mxu0 }
 0x489   :  { %6297 = vmatpush.bf16.msra.mxu2 %v8935_v55  ;;  %v9147_v32 = vor.u32 %v10136_v54, %v9144_v56  ;;  %v9262_v54 = vld [vmem:[#allocation36 + $0x288] sm:$0xf]  ;;  %v10167_v56 = vld [vmem:[#allocation36 + $0x294] sm:$0xf0] }
 0x48a   :  { %6356 = vmatpush.bf16.msrb.mxu3 %v9163_v0  ;;  %v9319_v0 = vor.u32 %v10182_v7, %v9318_v17  ;;  %v9352_v17 = vld [vmem:[#allocation36 + $0x350] sm:$0xf0] }
 0x48b   :  { %v4929_v45 = vpop.f32.mrf.mxu2 }
 0x48c   :  { %v9334_v45 = vld [vmem:[#allocation36 + $0x320] sm:$0xf] }
 0x48d   :  { %6342 = vmatpush.bf16.msrb.mxu2 %v9051_v11  ;;  %v9335_v34 = vor.u32 %v10186_v43, %v9334_v45  ;;  %v10171_v11 = vld [vmem:[#allocation36 + $0x2b4] sm:$0xf0]  ;;  %v9403_v45 = vor.u32 %v10200_v40, %v9400_v5  ;;  %v9247_v43 = vor.u32 %v10163_v13, %v9246_v46 }
 0x48e   :  { %v4942_v61 = vpop.f32.mrf.mxu3  ;;  %6357 = vmatpush.bf16.msrb.mxu3 %v9147_v32  ;;  %v9279_v57 = vor.u32 %v10171_v11, %v9278_v47  ;;  %v10088_v32 = vld [vmem:[#allocation36 + $0x24] sm:$0xf]  ;;  %v4970_v11 = vadd.f32 %v11861_v9, %v11852_v52  ;;  %v5493_v52 = vperm.slane %v11865_v14, 1  ;;  %v10111_v13 = vld [vmem:[#allocation36 + $0xd4] sm:$0xf0] }
 0x48f   :  { %v10179_v61 = vld [vmem:[#allocation36 + $0x2f4] sm:$0xf0]  ;;  %6335 = vmatpush.bf16.msrb.mxu1 %v9335_v34  ;;  %v8955_v35 = vor.u32 %v10088_v32, %v8952_v53  ;;  %v9368_v34 = vld [vmem:[#allocation36 + $0x370] sm:$0xf0]  ;;  %v9296_v32 = vld [vmem:[#allocation36 + $0x2d8] sm:$0xf0] }
 0x490   :  { %v9311_v58 = vor.u32 %v10179_v61, %v9310_v2  ;;  %v9384_v2 = vld [vmem:[#allocation36 + $0x390] sm:$0xf0]  ;;  %v9230_v61 = vld [vmem:[#allocation36 + $0x248] sm:$0xf] }
 0x491   :  { %6343 = vmatpush.bf16.msrb.mxu2 %v9035_v24  ;;  %v9099_v24 = vor.u32 %v10124_v28, %v9096_v48  ;;  %v4971_v28 = vadd.f32 %v11863_v23, %v11854_v33  ;;  %v10188_v48 = vld [vmem:[#allocation36 + $0x344] sm:$0xf]  ;;  %v9336_v23 = vld [vmem:[#allocation36 + $0x330] sm:$0xf0] }
 0x492   :  { %6358 = vmatpush.bf16.msrb.mxu3 %v9131_v62  ;;  %v9263_v62 = vor.u32 %v10167_v56, %v9262_v54 }
 0x493   :  { %6336 = vmatpush.bf16.msrb.mxu1 %v9319_v0  ;;  %v9355_v0 = vor.u32 %v10188_v48, %v9352_v17  ;;  %v9134_v48 = vld [vmem:[#allocation36 + $0x188] sm:$0xf]  ;;  %v10135_v17 = vld [vmem:[#allocation36 + $0x194] sm:$0xf0] }
 0x495   :  { %6344 = vmatpush.bf16.msrb.mxu2 %v9019_v1  ;;  %v9435_v1 = vor.u32 %v10208_v44, %v9432_v39 }
 0x496   :  { %6359 = vmatpush.bf16.msrb.mxu3 %v9115_v20 }
 0x497   :  { %6381 = vmatpush.bf16.msra.mxu1 %v9435_v1  ;;  %v10173_v1 = vld [vmem:[#allocation36 + $0x2cc] sm:$0xf] }
 0x499   :  { %6345 = vmatpush.bf16.msrb.mxu2 %v9003_v60  ;;  %v9064_v60 = vld [vmem:[#allocation36 + $0x110] sm:$0xf0] }
 0x49a   :  { %6360 = vmatpush.bf16.msrb.mxu3 %v9099_v24  ;;  %v5492_v24 = vperm.slane %v11865_v14, 0 }
 0x49b   :  { %6382 = vmatpush.bf16.msra.mxu1 %v9419_v6 }
 0x49d   :  { %v11869_v3 = vpop.f32.mrf.mxu1  ;;  %6346 = vmatpush.bf16.msrb.mxu2 %v8987_v41  ;;  %v10159_v41 = vld [vmem:[#allocation36 + $0x254] sm:$0xf0] }
 0x49e   :  { %6361 = vmatpush.bf16.msrb.mxu3 %v9083_v49  ;;  %v9320_v49 = vld [vmem:[#allocation36 + $0x310] sm:$0xf0] }
 0x49f   :  { %v5469_v59 = vpop.f32.mrf.mxu0  ;;  %6383 = vmatpush.bf16.msra.mxu1 %v9403_v45  ;;  %v9323_v40 = vor.u32 %v10180_v38, %v9320_v49  ;;  %v9200_v38 = vld [vmem:[#allocation36 + $0x218] sm:$0xf0]  ;;  %v9438_v49 = vld [vmem:[#allocation36 + $0x3e8] sm:$0xf] }
 0x4a0   :  { %v5488_v63 = vadd.f32 %v5469_v59, %v5230_v50  ;;  %v10084_v50 = vld [vmem:[#allocation36 + $0x4] sm:$0xf] }
 0x4a1   :  { %6347 = vmatpush.bf16.msrb.mxu2 %v8971_v26  ;;  %v10116_v59 = vld [vmem:[#allocation36 + $0x104] sm:$0xf]  ;;  %v9312_v26 = vld [vmem:[#allocation36 + $0x2f8] sm:$0xf0] }
 0x4a2   :  { %v5502_v37 = vadd.f32 %v5494_v27, %v5488_v63  ;;  %v8936_v27 = vld [vmem:[#allocation36 + $0x10] sm:$0xf0]  ;;  %v9067_v8 = vor.u32 %v10116_v59, %v9064_v60  ;;  %v9315_v33 = vor.u32 %v10177_v4, %v9312_v26  ;;  %v10169_v60 = vld [vmem:[#allocation36 + $0x2ac] sm:$0xf]  ;;  %v10103_v26 = vld [vmem:[#allocation36 + $0x94] sm:$0xf0] }
 0x4a3   :  { %v11873_v21 = vpop.f32.mrf.mxu2  ;;  %v8939_v63 = vor.u32 %v10084_v50, %v8936_v27  ;;  %v9299_v50 = vor.u32 %v10173_v1, %v9296_v32  ;;  %v10153_v1 = vld [vmem:[#allocation36 + $0x22c] sm:$0xf]  ;;  %v9216_v32 = vld [vmem:[#allocation36 + $0x238] sm:$0xf0] }
 0x4a4   :  { %v5506_v16 = vmax.f32 %v5502_v37, 0.0  ;;  %6362 = vmatpush.bf16.msrb.mxu3 %v9067_v8  ;;  %v10196_v37 = vld [vmem:[#allocation36 + $0x384] sm:$0xf]  ;;  %v5228_v7 = vadd.f32 %v11873_v21, %v4970_v11  ;;  %v9038_v8 = vld [vmem:[#allocation36 + $0xc8] sm:$0xf] }
 0x4a5   :  { %v4968_v19 = vpop.f32.mrf.mxu1  ;;  %6348 = vmatpush.bf16.msrb.mxu2 %v8955_v35  ;;  %v9387_v20 = vor.u32 %v10196_v37, %v9384_v2  ;;  %v10115_v35 = vld [vmem:[#allocation36 + $0xf4] sm:$0xf0] }
 0x4a6   :  { %v11875_v15 = vpop.f32.mrf.mxu3  ;;  %v11877_v51 = vpack.c.bf16 %v5506_v16, %v5506_v16  ;;  %v10192_v16 = vld [vmem:[#allocation36 + $0x364] sm:$0xf]  ;;  %v9231_v19 = vor.u32 %v10159_v41, %v9230_v61  ;;  %v9055_v59 = vor.u32 %v10115_v35, %v9054_v36  ;;  %v10143_v37 = vld [vmem:[#allocation36 + $0x1d4] sm:$0xf0]  ;;  %v9039_v41 = vor.u32 %v10111_v13, %v9038_v8  ;;  %v8974_v36 = vld [vmem:[#allocation36 + $0x48] sm:$0xf] }
 0x4a7   :  { %v5471_v55 = vpop.f32.mrf.mxu0  ;;  %6384 = vmatpush.bf16.msra.mxu1 %v9387_v20  ;;  %v5229_v44 = vadd.f32 %v11875_v15, %v4971_v28  ;;  %v9182_v15 = vld [vmem:[#allocation36 + $0x1e8] sm:$0xf]  ;;  %v10165_v20 = vld [vmem:[#allocation36 + $0x28c] sm:$0xf]  ;;  %v10095_v35 = vld [vmem:[#allocation36 + $0x54] sm:$0xf0] }
 0x4a8   :  { %6324 = vmatmul.bf16.vlgmr.msra.gmra.mxu0 %v11877_v51  ;;  %v9371_v55 = vor.u32 %v10192_v16, %v9368_v34  ;;  %v9264_v16 = vld [vmem:[#allocation36 + $0x298] sm:$0xf0]  ;;  %v9006_v28 = vld [vmem:[#allocation36 + $0x88] sm:$0xf] }
 0x4a9   :  { %6420 = vmatpush.bf16.msra.mxu0 %v9311_v58  ;;  %6349 = vmatpush.bf16.msrb.mxu2 %v8939_v63  ;;  %v9214_v58 = vld [vmem:[#allocation36 + $0x228] sm:$0xf]  ;;  %v9183_v63 = vor.u32 %v10147_v42, %v9182_v15  ;;  %v10149_v42 = vld [vmem:[#allocation36 + $0x20c] sm:$0xf] }
 0x4aa   :  { %v9215_v47 = vor.u32 %v10155_v18, %v9214_v58  ;;  %v10107_v58 = vld [vmem:[#allocation36 + $0xb4] sm:$0xf0]  ;;  %v9150_v18 = vld [vmem:[#allocation36 + $0x1a8] sm:$0xf]  ;;  %v9203_v8 = vor.u32 %v10149_v42, %v9200_v38  ;;  %v10097_v42 = vld [vmem:[#allocation36 + $0x6c] sm:$0xf] }
 0x4ab   :  { %v5187_v30 = vpop.f32.mrf.mxu2  ;;  %6385 = vmatpush.bf16.msra.mxu1 %v9371_v55  ;;  %v10139_v55 = vld [vmem:[#allocation36 + $0x1b4] sm:$0xf0]  ;;  %v10129_v38 = vld [vmem:[#allocation36 + $0x16c] sm:$0xf] }
 0x4ac   :  { %v9151_v4 = vor.u32 %v10139_v55, %v9150_v18  ;;  %v10145_v55 = vld [vmem:[#allocation36 + $0x1ec] sm:$0xf] }
 0x4ad   :  { %6421 = vmatpush.bf16.msra.mxu0 %v9295_v12  ;;  %v9198_v12 = vld [vmem:[#allocation36 + $0x208] sm:$0xf] }
 0x4ae   :  { %v5200_v29 = vpop.f32.mrf.mxu3  ;;  %v9199_v9 = vor.u32 %v10151_v25, %v9198_v12  ;;  %v10161_v12 = vld [vmem:[#allocation36 + $0x26c] sm:$0xf]  ;;  %v9248_v25 = vld [vmem:[#allocation36 + $0x278] sm:$0xf0] }
 0x4af   :  { %v10184_v29 = vld [vmem:[#allocation36 + $0x324] sm:$0xf]  ;;  %6386 = vmatpush.bf16.msra.mxu1 %v9355_v0  ;;  %v10157_v0 = vld [vmem:[#allocation36 + $0x24c] sm:$0xf] }
 0x4b0   :  { %v9339_v21 = vor.u32 %v10184_v29, %v9336_v23  ;;  %v4973_v29 = vadd.f32 %v11869_v3, %v11857_v31  ;;  %v10127_v31 = vld [vmem:[#allocation36 + $0x154] sm:$0xf0]  ;;  %v9219_v3 = vor.u32 %v10153_v1, %v9216_v32  ;;  %v10101_v32 = vld [vmem:[#allocation36 + $0x8c] sm:$0xf] }
 0x4b1   :  { %6422 = vmatpush.bf16.msra.mxu0 %v9279_v57 }
 0x4b3   :  { %6387 = vmatpush.bf16.msra.mxu1 %v9339_v21 }
 0x4b5   :  { %6423 = vmatpush.bf16.msra.mxu0 %v9263_v62  ;;  %v9280_v62 = vld [vmem:[#allocation36 + $0x2b8] sm:$0xf0] }
 0x4b6   :  { %v9283_v61 = vor.u32 %v10169_v60, %v9280_v62  ;;  %v9086_v62 = vld [vmem:[#allocation36 + $0x128] sm:$0xf] }
 0x4b7   :  { %6388 = vmatpush.bf16.msra.mxu1 %v9323_v40 }
 0x4b8   :  { %6376 = vmatmul.bf16.vlgmr.msrb.gmra.mxu0 %v11877_v51 }
 0x4b9   :  { %6424 = vmatpush.bf16.msra.mxu0 %v9247_v43  ;;  %v9166_v43 = vld [vmem:[#allocation36 + $0x1c8] sm:$0xf] }
 0x4ba   :  { %v9167_v34 = vor.u32 %v10143_v37, %v9166_v43  ;;  %v9422_v43 = vld [vmem:[#allocation36 + $0x3c8] sm:$0xf]  ;;  %v10207_v37 = vld [vmem:[#allocation36 + $0x3d4] sm:$0xf0] }
 0x4bb   :  { %v9423_v18 = vor.u32 %v10207_v37, %v9422_v43  ;;  %v10183_v43 = vld [vmem:[#allocation36 + $0x314] sm:$0xf0] }
 0x4bd   :  { %v11881_v10 = vpop.f32.mrf.mxu1  ;;  %6425 = vmatpush.bf16.msra.mxu0 %v9231_v19  ;;  %v9022_v19 = vld [vmem:[#allocation36 + $0xa8] sm:$0xf] }
 0x4be   :  { %v9023_v11 = vor.u32 %v10107_v58, %v9022_v19  ;;  %v5231_v23 = vadd.f32 %v11881_v10, %v4973_v29  ;;  %v10113_v19 = vld [vmem:[#allocation36 + $0xec] sm:$0xf]  ;;  %v9056_v58 = vld [vmem:[#allocation36 + $0xf8] sm:$0xf0] }
 0x4bf   :  { %v10105_v29 = vld [vmem:[#allocation36 + $0xac] sm:$0xf] }
 0x4c1   :  { %6426 = vmatpush.bf16.msra.mxu0 %v9215_v47  ;;  %v9267_v47 = vor.u32 %v10165_v20, %v9264_v16  ;;  %v10087_v20 = vld [vmem:[#allocation36 + $0x14] sm:$0xf0]  ;;  %v9070_v16 = vld [vmem:[#allocation36 + $0x108] sm:$0xf] }
 0x4c3   :  { %v5443_v30 = vpop.f32.mrf.mxu2 }
 0x4c4   :  { %v5486_v54 = vadd.f32 %v5443_v30, %v5228_v7  ;;  %v5456_v56 = vpop.f32.mrf.mxu3  ;;  %v9251_v7 = vor.u32 %v10161_v12, %v9248_v25  ;;  %v9135_v30 = vor.u32 %v10135_v17, %v9134_v48  ;;  %v9406_v12 = vld [vmem:[#allocation36 + $0x3a8] sm:$0xf]  ;;  %v10203_v25 = vld [vmem:[#allocation36 + $0x3b4] sm:$0xf0]  ;;  %v10109_v48 = vld [vmem:[#allocation36 + $0xcc] sm:$0xf] }
 0x4c5   :  { %v5487_v39 = vadd.f32 %v5456_v56, %v5229_v44  ;;  %v5226_v57 = vpop.f32.mrf.mxu1  ;;  %6427 = vmatpush.bf16.msra.mxu0 %v9199_v9  ;;  %v9232_v44 = vld [vmem:[#allocation36 + $0x258] sm:$0xf0]  ;;  %v10099_v9 = vld [vmem:[#allocation36 + $0x74] sm:$0xf0] }
 0x4c6   :  { %v5500_v53 = vadd.f32 %v5492_v24, %v5486_v54  ;;  %v9007_v24 = vor.u32 %v10103_v26, %v9006_v28  ;;  %v9118_v54 = vld [vmem:[#allocation36 + $0x168] sm:$0xf]  ;;  %v10131_v56 = vld [vmem:[#allocation36 + $0x174] sm:$0xf0]  ;;  %v9059_v28 = vor.u32 %v10113_v19, %v9056_v58  ;;  %v9040_v17 = vld [vmem:[#allocation36 + $0xd8] sm:$0xf0] }
 0x4c7   :  { %v5501_v22 = vadd.f32 %v5493_v52, %v5487_v39  ;;  %v8990_v52 = vld [vmem:[#allocation36 + $0x68] sm:$0xf]  ;;  %v5495_v39 = vperm.slane %v11865_v14, 3  ;;  %v8975_v14 = vor.u32 %v10095_v35, %v8974_v36  ;;  %v10133_v36 = vld [vmem:[#allocation36 + $0x18c] sm:$0xf] }
 0x4c8   :  { %v5504_v6 = vmax.f32 %v5500_v53, 0.0  ;;  %6428 = vmatmul.bf16.vlgmr.msra.gmra.mxu0 %v11877_v51  ;;  %v8991_v57 = vor.u32 %v10099_v9, %v8990_v52  ;;  %v9119_v53 = vor.u32 %v10131_v56, %v9118_v54  ;;  %v9043_v52 = vor.u32 %v10109_v48, %v9040_v17  ;;  %v9024_v54 = vld [vmem:[#allocation36 + $0xb8] sm:$0xf0]  ;;  %v10137_v56 = vld [vmem:[#allocation36 + $0x1ac] sm:$0xf] }
 0x4c9   :  { %6472 = vmatpush.bf16.msrb.mxu0 %v9315_v33  ;;  %v5505_v27 = vmax.f32 %v5501_v22, 0.0  ;;  %v9235_v33 = vor.u32 %v10157_v0, %v9232_v44  ;;  %v9102_v22 = vld [vmem:[#allocation36 + $0x148] sm:$0xf]  ;;  %v9168_v0 = vld [vmem:[#allocation36 + $0x1d8] sm:$0xf0] }
 0x4ca   :  { %v11891_v46 = vpack.c.bf16 %v5504_v6, %v5504_v6  ;;  %v10211_v6 = vld [vmem:[#allocation36 + $0x3f4] sm:$0xf0]  ;;  %v9390_v44 = vld [vmem:[#allocation36 + $0x388] sm:$0xf]  ;;  %v9136_v35 = vld [vmem:[#allocation36 + $0x198] sm:$0xf0] }
 0x4cb   :  { %v11894_v5 = vpack.c.bf16 %v5505_v27, %v5505_v27  ;;  %v5445_v45 = vpop.f32.mrf.mxu2  ;;  %v8958_v27 = vld [vmem:[#allocation36 + $0x28] sm:$0xf]  ;;  %v9439_v13 = vor.u32 %v10211_v6, %v9438_v49  ;;  %v9120_v49 = vld [vmem:[#allocation36 + $0x178] sm:$0xf0]  ;;  %v10121_v19 = vld [vmem:[#allocation36 + $0x12c] sm:$0xf] }
 0x4cc   :  { %v5458_v2 = vpop.f32.mrf.mxu3  ;;  %6298 = vmatmul.bf16.vlgmr.msra.gmra.mxu2 %v11891_v46  ;;  %v9342_v6 = vld [vmem:[#allocation36 + $0x328] sm:$0xf]  ;;  %v9088_v58 = vld [vmem:[#allocation36 + $0x138] sm:$0xf0] }
 0x4cd   :  { %6473 = vmatpush.bf16.msrb.mxu0 %v9299_v50  ;;  %6311 = vmatmul.bf16.vlgmr.msra.gmra.mxu3 %v11894_v5  ;;  %v9103_v50 = vor.u32 %v10127_v31, %v9102_v22  ;;  %v10191_v22 = vld [vmem:[#allocation36 + $0x354] sm:$0xf0] }
 0x4ce   :  { %6394 = vmatpush.bf16.msra.mxu2 %v9055_v59  ;;  %6407 = vmatpush.bf16.msra.mxu3 %v9183_v63  ;;  %v10091_v59 = vld [vmem:[#allocation36 + $0x34] sm:$0xf0] }
 0x4cf   :  { %v10123_v63 = vld [vmem:[#allocation36 + $0x134] sm:$0xf0]  ;;  %v8959_v45 = vor.u32 %v10091_v59, %v8958_v27  ;;  %v9123_v59 = vor.u32 %v10129_v38, %v9120_v49  ;;  %v10213_v38 = vld [vmem:[#allocation39 + $0x8] sm:$0xff] }
 0x4d0   :  { %v10225_v49 = vld [vmem:[#allocation39 + $0x68] sm:$0xff] }
 0x4d1   :  { %6474 = vmatpush.bf16.msrb.mxu0 %v9283_v61  ;;  %v9087_v61 = vor.u32 %v10123_v63, %v9086_v62  ;;  %v8976_v62 = vld [vmem:[#allocation36 + $0x58] sm:$0xf0] }
 0x4d2   :  { %6395 = vmatpush.bf16.msra.mxu2 %v9039_v41  ;;  %6408 = vmatpush.bf16.msra.mxu3 %v9167_v34  ;;  %v8942_v41 = vld [vmem:[#allocation36 + $0x8] sm:$0xf]  ;;  %v10119_v34 = vld [vmem:[#allocation36 + $0x114] sm:$0xf0] }
 0x4d5   :  { %6475 = vmatpush.bf16.msrb.mxu0 %v9267_v47  ;;  %v9184_v47 = vld [vmem:[#allocation36 + $0x1f8] sm:$0xf0] }
 0x4d6   :  { %6396 = vmatpush.bf16.msra.mxu2 %v9023_v11  ;;  %6409 = vmatpush.bf16.msra.mxu3 %v9151_v4  ;;  %v8943_v11 = vor.u32 %v10087_v20, %v8942_v41  ;;  %v9071_v4 = vor.u32 %v10119_v34, %v9070_v16  ;;  %v9187_v26 = vor.u32 %v10145_v55, %v9184_v47  ;;  %v10089_v20 = vld [vmem:[#allocation36 + $0x2c] sm:$0xf]  ;;  %v8960_v16 = vld [vmem:[#allocation36 + $0x38] sm:$0xf0] }
 0x4d7   :  { %v8963_v55 = vor.u32 %v10089_v20, %v8960_v16  ;;  %v10205_v47 = vld [vmem:[#allocation36 + $0x3cc] sm:$0xf]  ;;  %v10220_v16 = vld [vmem:[#allocation39 + $0x40] sm:$0xff] }
 0x4d9   :  { %6476 = vmatpush.bf16.msrb.mxu0 %v9251_v7  ;;  %v9407_v7 = vor.u32 %v10203_v25, %v9406_v12  ;;  %v9091_v12 = vor.u32 %v10121_v19, %v9088_v58  ;;  %v10085_v25 = vld [vmem:[#allocation36 + $0xc] sm:$0xf] }
 0x4da   :  { %6397 = vmatpush.bf16.msra.mxu2 %v9007_v24  ;;  %6410 = vmatpush.bf16.msra.mxu3 %v9135_v30  ;;  %v10141_v24 = vld [vmem:[#allocation36 + $0x1cc] sm:$0xf]  ;;  %v10199_v30 = vld [vmem:[#allocation36 + $0x394] sm:$0xf0] }
 0x4db   :  { %v9171_v9 = vor.u32 %v10141_v24, %v9168_v0  ;;  %v9408_v24 = vld [vmem:[#allocation36 + $0x3b8] sm:$0xf0] }
 0x4dc   :  { %6350 = vmatmul.bf16.vlgmr.msrb.gmra.mxu2 %v11891_v46 }
 0x4dd   :  { %v5482_v21 = vpop.f32.mrf.mxu1  ;;  %6477 = vmatpush.bf16.msrb.mxu0 %v9235_v33  ;;  %6363 = vmatmul.bf16.vlgmr.msrb.gmra.mxu3 %v11894_v5  ;;  %v9152_v33 = vld [vmem:[#allocation36 + $0x1b8] sm:$0xf0] }
 0x4de   :  { %v5489_v15 = vadd.f32 %v5482_v21, %v5231_v23  ;;  %6398 = vmatpush.bf16.msra.mxu2 %v8991_v57  ;;  %6411 = vmatpush.bf16.msra.mxu3 %v9119_v53  ;;  %v9374_v23 = vld [vmem:[#allocation36 + $0x368] sm:$0xf]  ;;  %v9027_v57 = vor.u32 %v10105_v29, %v9024_v54  ;;  %v9155_v1 = vor.u32 %v10137_v56, %v9152_v33  ;;  %v9008_v21 = vld [vmem:[#allocation36 + $0x98] sm:$0xf0]  ;;  %v10193_v29 = vld [vmem:[#allocation36 + $0x36c] sm:$0xf] }
 0x4df   :  { %v9011_v31 = vor.u32 %v10101_v32, %v9008_v21  ;;  %v9376_v54 = vld [vmem:[#allocation36 + $0x378] sm:$0xf0]  ;;  %v10189_v56 = vld [vmem:[#allocation36 + $0x34c] sm:$0xf] }
 0x4e0   :  { %v5503_v10 = vadd.f32 %v5495_v39, %v5489_v15  ;;  %v10195_v39 = vld [vmem:[#allocation36 + $0x374] sm:$0xf0]  ;;  %v9358_v15 = vld [vmem:[#allocation36 + $0x348] sm:$0xf]  ;;  %v9360_v33 = vld [vmem:[#allocation36 + $0x358] sm:$0xf0] }
 0x4e1   :  { %6478 = vmatpush.bf16.msrb.mxu0 %v9219_v3  ;;  %v9375_v53 = vor.u32 %v10195_v39, %v9374_v23  ;;  %v9139_v3 = vor.u32 %v10133_v36, %v9136_v35  ;;  %v9363_v23 = vor.u32 %v10189_v56, %v9360_v33  ;;  %v10185_v39 = vld [vmem:[#allocation36 + $0x32c] sm:$0xf]  ;;  %v9328_v21 = vld [vmem:[#allocation36 + $0x318] sm:$0xf0]  ;;  %v10218_v36 = vld [vmem:[#allocation39 + $0x30] sm:$0xff] }
 0x4e2   :  { %v5507_v60 = vmax.f32 %v5503_v10, 0.0  ;;  %6399 = vmatpush.bf16.msra.mxu2 %v8975_v14  ;;  %6412 = vmatpush.bf16.msra.mxu3 %v9103_v50  ;;  %v8992_v10 = vld [vmem:[#allocation36 + $0x78] sm:$0xf0]  ;;  %v9359_v14 = vor.u32 %v10191_v22, %v9358_v15  ;;  %v10187_v50 = vld [vmem:[#allocation36 + $0x334] sm:$0xf0]  ;;  %v10217_v15 = vld [vmem:[#allocation39 + $0x28] sm:$0xff] }
 0x4e3   :  { %v8995_v27 = vor.u32 %v10097_v42, %v8992_v10  ;;  %v9343_v63 = vor.u32 %v10187_v50, %v9342_v6  ;;  %v10181_v32 = vld [vmem:[#allocation36 + $0x30c] sm:$0xf]  ;;  %v10216_v22 = vld [vmem:[#allocation39 + $0x20] sm:$0xff]  ;;  %v10227_v42 = vld [vmem:[#allocation39 + $0x78] sm:$0xff] }
 0x4e4   :  { %v11904_v40 = vpack.c.bf16 %v5507_v60, %v5507_v60  ;;  %v10093_v60 = vld [vmem:[#allocation36 + $0x4c] sm:$0xf]  ;;  %v10226_v10 = vld [vmem:[#allocation39 + $0x70] sm:$0xff]  ;;  %v10212_v50 = vld [vmem:[#allocation39] sm:$0xff] }
 0x4e5   :  { %v5484_v2 = vpop.f32.mrf.mxu1  ;;  %6479 = vmatpush.bf16.msrb.mxu0 %v9203_v8  ;;  %v10125_v8 = vld [vmem:[#allocation36 + $0x14c] sm:$0xf]  ;;  %v8979_v37 = vor.u32 %v10093_v60, %v8976_v62  ;;  %v10223_v60 = vld [vmem:[#allocation39 + $0x58] sm:$0xff]  ;;  %v10234_v62 = vld [vmem:[#allocation39 + $0xb0] sm:$0xff] }
 0x4e6   :  { %6337 = vmatmul.bf16.vlgmr.msrb.gmra.mxu1 %v11904_v40  ;;  %6400 = vmatpush.bf16.msra.mxu2 %v8959_v45  ;;  %v9326_v45 = vld [vmem:[#allocation36 + $0x308] sm:$0xf]  ;;  %v10209_v2 = vld [vmem:[#allocation36 + $0x3ec] sm:$0xf] }
 0x4e7   :  { %6433 = vmatpush.bf16.msrb.mxu1 %v9439_v13  ;;  %6413 = vmatpush.bf16.msra.mxu3 %v9087_v61  ;;  %v9104_v13 = vld [vmem:[#allocation36 + $0x158] sm:$0xf0]  ;;  %v9327_v34 = vor.u32 %v10183_v43, %v9326_v45  ;;  %v11919_v45 = vld [vmem:[#allocation37] sm:$0xf] }
 0x4e8   :  { %6480 = vmatmul.bf16.vlgmr.msrb.gmra.mxu0 %v11877_v51  ;;  %v9391_v51 = vor.u32 %v10199_v30, %v9390_v44  ;;  %v9440_v61 = vld [vmem:[#allocation36 + $0x3f8] sm:$0xf0]  ;;  %v9107_v41 = vor.u32 %v10125_v8, %v9104_v13  ;;  %v10197_v30 = vld [vmem:[#allocation36 + $0x38c] sm:$0xf]  ;;  %v10222_v13 = vld [vmem:[#allocation39 + $0x50] sm:$0xff] }
 0x4ea   :  { %6401 = vmatpush.bf16.msra.mxu2 %v8943_v11  ;;  %v9424_v11 = vld [vmem:[#allocation36 + $0x3d8] sm:$0xf0] }
 0x4eb   :  { %6434 = vmatpush.bf16.msrb.mxu1 %v9423_v18  ;;  %6414 = vmatpush.bf16.msra.mxu3 %v9071_v4  ;;  %v9443_v18 = vor.u32 %v10209_v2, %v9440_v61  ;;  %v8944_v4 = vld [vmem:[#allocation36 + $0x18] sm:$0xf0]  ;;  %v9427_v48 = vor.u32 %v10205_v47, %v9424_v11  ;;  %v10221_v2 = vld [vmem:[#allocation39 + $0x48] sm:$0xff]  ;;  %v10230_v11 = vld [vmem:[#allocation39 + $0x90] sm:$0xff] }
 0x4ec   :  { %v8947_v17 = vor.u32 %v10085_v25, %v8944_v4  ;;  %v10233_v61 = vld [vmem:[#allocation39 + $0xa8] sm:$0xff] }
 0x4ed   :  { %6402 = vmatmul.bf16.vlgmr.msra.gmra.mxu2 %v11891_v46 }
 0x4ee   :  { %6446 = vmatpush.bf16.msrb.mxu2 %v9059_v28  ;;  %6415 = vmatmul.bf16.vlgmr.msra.gmra.mxu3 %v11894_v5  ;;  %v10117_v28 = vld [vmem:[#allocation36 + $0x10c] sm:$0xf] }
 0x4ef   :  { %6459 = vmatpush.bf16.msrb.mxu3 %v9187_v26  ;;  %6435 = vmatpush.bf16.msrb.mxu1 %v9407_v7  ;;  %v9072_v26 = vld [vmem:[#allocation36 + $0x118] sm:$0xf0]  ;;  %v10201_v7 = vld [vmem:[#allocation36 + $0x3ac] sm:$0xf] }
 0x4f0   :  { %v9075_v0 = vor.u32 %v10117_v28, %v9072_v26  ;;  %v9411_v44 = vor.u32 %v10201_v7, %v9408_v24  ;;  %v5643_v28 = vperm.slane %v11919_v45, 1  ;;  %v10229_v7 = vld [vmem:[#allocation39 + $0x88] sm:$0xff]  ;;  %v10243_v24 = vld [vmem:[#allocation39 + $0xf8] sm:$0xff] }
 0x4f2   :  { %6447 = vmatpush.bf16.msrb.mxu2 %v9043_v52  ;;  %v9392_v52 = vld [vmem:[#allocation36 + $0x398] sm:$0xf0] }
 0x4f3   :  { %6460 = vmatpush.bf16.msrb.mxu3 %v9171_v9  ;;  %6436 = vmatpush.bf16.msrb.mxu1 %v9391_v51  ;;  %v9395_v9 = vor.u32 %v10197_v30, %v9392_v52  ;;  %v9379_v51 = vor.u32 %v10193_v29, %v9376_v54  ;;  %v10228_v30 = vld [vmem:[#allocation39 + $0x80] sm:$0xff]  ;;  %v10242_v29 = vld [vmem:[#allocation39 + $0xf0] sm:$0xff] }
 0x4f6   :  { %6448 = vmatpush.bf16.msrb.mxu2 %v9027_v57  ;;  %6389 = vmatmul.bf16.vlgmr.msra.gmra.mxu1 %v11904_v40  ;;  %v9344_v57 = vld [vmem:[#allocation36 + $0x338] sm:$0xf0] }
 0x4f7   :  { %6461 = vmatpush.bf16.msrb.mxu3 %v9155_v1  ;;  %6437 = vmatpush.bf16.msrb.mxu1 %v9375_v53  ;;  %v9347_v1 = vor.u32 %v10185_v39, %v9344_v57  ;;  %v10219_v53 = vld [vmem:[#allocation39 + $0x38] sm:$0xff] }
 0x4fa   :  { %6449 = vmatpush.bf16.msrb.mxu2 %v9011_v31 }
 0x4fb   :  { %6462 = vmatpush.bf16.msrb.mxu3 %v9139_v3  ;;  %6438 = vmatpush.bf16.msrb.mxu1 %v9359_v14  ;;  %v10215_v3 = vld [vmem:[#allocation39 + $0x18] sm:$0xff]  ;;  %v10214_v14 = vld [vmem:[#allocation39 + $0x10] sm:$0xff] }
 0x4fe   :  { %6450 = vmatpush.bf16.msrb.mxu2 %v8995_v27  ;;  %v10224_v27 = vld [vmem:[#allocation39 + $0x60] sm:$0xff] }
 0x4ff   :  { %6463 = vmatpush.bf16.msrb.mxu3 %v9123_v59  ;;  %6439 = vmatpush.bf16.msrb.mxu1 %v9343_v63  ;;  %v10235_v59 = vld [vmem:[#allocation39 + $0xb8] sm:$0xff] }
 0x500   :  { %6792 = vmatpush.bf16.msra.mxu0 %v10235_v59 }
 0x502   :  { %6451 = vmatpush.bf16.msrb.mxu2 %v8979_v37  ;;  %v5642_v37 = vperm.slane %v11919_v45, 0 }
 0x503   :  { %6464 = vmatpush.bf16.msrb.mxu3 %v9107_v41  ;;  %6440 = vmatpush.bf16.msrb.mxu1 %v9327_v34  ;;  %v10232_v34 = vld [vmem:[#allocation39 + $0xa0] sm:$0xff] }
 0x504   :  { %6793 = vmatpush.bf16.msra.mxu0 %v10234_v62  ;;  %v5645_v62 = vperm.slane %v11919_v45, 3 }
 0x506   :  { %6452 = vmatpush.bf16.msrb.mxu2 %v8963_v55  ;;  %6441 = vmatmul.bf16.vlgmr.msrb.gmra.mxu1 %v11904_v40 }
 0x507   :  { %6485 = vmatpush.bf16.msra.mxu1 %v9443_v18  ;;  %6465 = vmatpush.bf16.msrb.mxu3 %v9091_v12  ;;  %v10231_v18 = vld [vmem:[#allocation39 + $0x98] sm:$0xff] }
 0x508   :  { %6794 = vmatpush.bf16.msra.mxu0 %v10233_v61 }
 0x50a   :  { %6453 = vmatpush.bf16.msrb.mxu2 %v8947_v17 }
 0x50b   :  { %6486 = vmatpush.bf16.msra.mxu1 %v9427_v48  ;;  %6466 = vmatpush.bf16.msrb.mxu3 %v9075_v0 }
 0x50c   :  { %6795 = vmatpush.bf16.msra.mxu0 %v10232_v34 }
 0x50d   :  { %6454 = vmatmul.bf16.vlgmr.msrb.gmra.mxu2 %v11891_v46  ;;  %v9331_v46 = vor.u32 %v10181_v32, %v9328_v21  ;;  %v10240_v32 = vld [vmem:[#allocation39 + $0xe0] sm:$0xff]  ;;  %v5644_v21 = vperm.slane %v11919_v45, 2  ;;  %v10288_v45 = vld [vmem:[%s11986_s3] ss:$0 sm:$0xff] }
 0x50e   :  { %6467 = vmatmul.bf16.vlgmr.msrb.gmra.mxu3 %v11894_v5  ;;  %6766 = vmatpush.bf16.msra.mxu2 %v10219_v53  ;;  %v10239_v53 = vld [vmem:[#allocation39 + $0xd8] sm:$0xff] }
 0x50f   :  { %6487 = vmatpush.bf16.msra.mxu1 %v9411_v44  ;;  %6779 = vmatpush.bf16.msra.mxu3 %v10227_v42 }
 0x510   :  { %6796 = vmatpush.bf16.msra.mxu0 %v10231_v18 }
 0x512   :  { %6767 = vmatpush.bf16.msra.mxu2 %v10218_v36 }
 0x513   :  { %6488 = vmatpush.bf16.msra.mxu1 %v9395_v9  ;;  %6780 = vmatpush.bf16.msra.mxu3 %v10226_v10 }
 0x514   :  { %6797 = vmatpush.bf16.msra.mxu0 %v10230_v11 }
 0x516   :  { %6768 = vmatpush.bf16.msra.mxu2 %v10217_v15 }
 0x517   :  { %6489 = vmatpush.bf16.msra.mxu1 %v9379_v51  ;;  %6781 = vmatpush.bf16.msra.mxu3 %v10225_v49  ;;  %v10236_v49 = vld [vmem:[#allocation39 + $0xc0] sm:$0xff] }
 0x518   :  { %6798 = vmatpush.bf16.msra.mxu0 %v10229_v7 }
 0x51a   :  { %6769 = vmatpush.bf16.msra.mxu2 %v10216_v22 }
 0x51b   :  { %6490 = vmatpush.bf16.msra.mxu1 %v9363_v23  ;;  %6782 = vmatpush.bf16.msra.mxu3 %v10224_v27  ;;  %v10241_v23 = vld [vmem:[#allocation39 + $0xe8] sm:$0xff] }
 0x51c   :  { %6799 = vmatpush.bf16.msra.mxu0 %v10228_v30 }
 0x51e   :  { %6770 = vmatpush.bf16.msra.mxu2 %v10215_v3  ;;  %v10238_v3 = vld [vmem:[#allocation39 + $0xd0] sm:$0xff] }
 0x51f   :  { %6491 = vmatpush.bf16.msra.mxu1 %v9347_v1  ;;  %6783 = vmatpush.bf16.msra.mxu3 %v10223_v60 }
 0x522   :  { %6771 = vmatpush.bf16.msra.mxu2 %v10214_v14 }
 0x523   :  { %6492 = vmatpush.bf16.msra.mxu1 %v9331_v46  ;;  %6784 = vmatpush.bf16.msra.mxu3 %v10222_v13 }
 0x525   :  { %v6325_v5 = vpop.f32.mrf.mxu0 }
 0x526   :  { %6493 = vmatmul.bf16.vlgmr.msra.gmra.mxu1 %v11904_v40  ;;  %6772 = vmatpush.bf16.msra.mxu2 %v10213_v38 }
 0x527   :  { %6785 = vmatpush.bf16.msra.mxu3 %v10221_v2  ;;  %6805 = vmatpush.bf16.msrb.mxu1 %v10243_v24 }
 0x52a   :  { %6773 = vmatpush.bf16.msra.mxu2 %v10212_v50 }
 0x52b   :  { %6786 = vmatpush.bf16.msra.mxu3 %v10220_v16  ;;  %6806 = vmatpush.bf16.msrb.mxu1 %v10242_v29 }
 0x52d   :  { %v6327_v35 = vpop.f32.mrf.mxu0 }
 0x52f   :  { %6807 = vmatpush.bf16.msrb.mxu1 %v10241_v23 }
 0x533   :  { %6808 = vmatpush.bf16.msrb.mxu1 %v10240_v32 }
 0x535   :  { %v11915_v31 = vpop.f32.mrf.mxu0 }
 0x537   :  { %6809 = vmatpush.bf16.msrb.mxu1 %v10239_v53 }
 0x53b   :  { %6810 = vmatpush.bf16.msrb.mxu1 %v10238_v3 }
 0x53d   :  { %v6379_v40 = vpop.f32.mrf.mxu0 }
 0x53e   :  { %v10237_v40 = vld [vmem:[#allocation39 + $0xc8] sm:$0xff] }
 0x53f   :  { %6811 = vmatpush.bf16.msrb.mxu1 %v10237_v40 }
 0x543   :  { %6812 = vmatpush.bf16.msrb.mxu1 %v10236_v49 }
 0x545   :  { %v11917_v6 = vpop.f32.mrf.mxu0 }
 0x54d   :  { %v6431_v63 = vpop.f32.mrf.mxu0 }
 0x54f   :  { %v6299_v8 = vpop.f32.mrf.mxu2 }
 0x550   :  { %v6312_v43 = vpop.f32.mrf.mxu3  ;;  %v6300_v41 = vadd.f32 %v6299_v8, %v5642_v37 }
 0x552   :  { %v6313_v58 = vadd.f32 %v6312_v43, %v6300_v41 }
 0x554   :  { %v6326_v47 = vadd.f32 %v6325_v5, %v6313_v58 }
 0x557   :  { %v6301_v20 = vpop.f32.mrf.mxu2 }
 0x558   :  { %v6314_v19 = vpop.f32.mrf.mxu3 }
 0x55f   :  { %v6351_v55 = vpop.f32.mrf.mxu2 }
 0x560   :  { %v6364_v12 = vpop.f32.mrf.mxu3  ;;  %v6352_v0 = vadd.f32 %v6351_v55, %v5643_v28 }
 0x562   :  { %v6365_v54 = vadd.f32 %v6364_v12, %v6352_v0 }
 0x563   :  { %v6338_v25 = vpop.f32.mrf.mxu1 }
 0x564   :  { %v6339_v4 = vadd.f32 %v6338_v25, %v6326_v47  ;;  %v6378_v33 = vadd.f32 %v11915_v31, %v6365_v54 }
 0x565   :  { %v6481_v48 = vpop.f32.mrf.mxu0 }
 0x566   :  { %v6498_v26 = vmax.f32 %v6339_v4, 0.0 }
 0x567   :  { %v6353_v44 = vpop.f32.mrf.mxu2 }
 0x568   :  { %v6566_v17 = vpack.c.bf16 %v6498_v26, %v6498_v26  ;;  %v6366_v52 = vpop.f32.mrf.mxu3 }
 0x56a   :  { %6774 = vmatmul.bf16.vlgmr.msra.gmra.mxu2 %v6566_v17 }
 0x56b   :  { %v6340_v9 = vpop.f32.mrf.mxu1 }
 0x56d   :  { %v6483_v51 = vpop.f32.mrf.mxu0 }
 0x570   :  { %v6403_v56 = vpop.f32.mrf.mxu2 }
 0x571   :  { %v6416_v39 = vpop.f32.mrf.mxu3  ;;  %v6404_v36 = vadd.f32 %v6403_v56, %v5644_v21 }
 0x573   :  { %v6390_v57 = vpop.f32.mrf.mxu1  ;;  %v6417_v31 = vadd.f32 %v6416_v39, %v6404_v36 }
 0x574   :  { %v6391_v1 = vadd.f32 %v6390_v57, %v6378_v33 }
 0x575   :  { %v6430_v42 = vadd.f32 %v11917_v6, %v6417_v31 }
 0x576   :  { %v6499_v46 = vmax.f32 %v6391_v1, 0.0 }
 0x578   :  { %v6567_v5 = vpack.c.bf16 %v6499_v46, %v6499_v46  ;;  %v6405_v35 = vpop.f32.mrf.mxu2 }
 0x579   :  { %v6418_v15 = vpop.f32.mrf.mxu3 }
 0x57a   :  { %6787 = vmatmul.bf16.vlgmr.msra.gmra.mxu3 %v6567_v5 }
 0x57b   :  { %v6392_v22 = vpop.f32.mrf.mxu1 }
 0x583   :  { %v6442_v10 = vpop.f32.mrf.mxu1 }
 0x584   :  { %v6443_v14 = vadd.f32 %v6442_v10, %v6430_v42 }
 0x586   :  { %v6500_v38 = vmax.f32 %v6443_v14, 0.0 }
 0x588   :  { %v6568_v50 = vpack.c.bf16 %v6500_v38, %v6500_v38 }
 0x58a   :  { %6800 = vmatmul.bf16.vlgmr.msra.gmra.mxu0 %v6568_v50 }
 0x58b   :  { %v6444_v27 = vpop.f32.mrf.mxu1 }
 0x590   :  { %v6455_v59 = vpop.f32.mrf.mxu2 }
 0x591   :  { %v6468_v60 = vpop.f32.mrf.mxu3  ;;  %v6456_v63 = vadd.f32 %v6455_v59, %v5645_v62 }
 0x593   :  { %v6469_v43 = vadd.f32 %v6468_v60, %v6456_v63 }
 0x595   :  { %v6482_v37 = vadd.f32 %v6481_v48, %v6469_v43 }
 0x598   :  { %v6457_v8 = vpop.f32.mrf.mxu2 }
 0x599   :  { %v6470_v13 = vpop.f32.mrf.mxu3 }
 0x5a3   :  { %v6494_v6 = vpop.f32.mrf.mxu1 }
 0x5a4   :  { %v6495_v2 = vadd.f32 %v6494_v6, %v6482_v37 }
 0x5a6   :  { %v6501_v61 = vmax.f32 %v6495_v2, 0.0 }
 0x5a8   :  { %v6569_v41 = vpack.c.bf16 %v6501_v61, %v6501_v61 }
 0x5aa   :  { %6813 = vmatmul.bf16.vlgmr.msrb.gmra.mxu1 %v6569_v41 }
 0x5ab   :  { %v6496_v20 = vpop.f32.mrf.mxu1 }
 0x5ed   :  { %v6775_v16 = vpop.f32.mrf.mxu2 }
 0x5ee   :  { %v6776_v47 = vadd.f32 %v10288_v45, %v6775_v16 }
 0x5f5   :  { %v6777_v34 = vpop.f32.mrf.mxu2 }
 0x5fd   :  { %v6788_v19 = vpop.f32.mrf.mxu3 }
 0x5fe   :  { %v6789_v11 = vadd.f32 %v6788_v19, %v6776_v47 }
 0x605   :  { %v6790_v58 = vpop.f32.mrf.mxu3 }
 0x607   :  { %v6801_v18 = vpop.f32.mrf.mxu0 }
 0x608   :  { %v6802_v12 = vadd.f32 %v6801_v18, %v6789_v11 }
 0x60f   :  { %v6803_v55 = vpop.f32.mrf.mxu0 }
 0x627   :  { %v6814_v25 = vpop.f32.mrf.mxu1 }
 0x628   :  { %v6815_v4 = vadd.f32 %v6814_v25, %v6802_v12 }
 0x62a   :  { %6818 = vst [vmem:[%s11987_s8] sm:$0xf] %v6815_v4 }
 0x62f   :  { %v6816_v28 = vpop.f32.mrf.mxu1 }
 0x630   :  { %6823 = vsyncpa [#allocation3], 1 }
 0x631   :  { %6824 = vsyncpa [#allocation5], 1 }
 0x632   :  { %6825 = vsyncpa [#allocation8], 1 }
 0x633   :  { %6826 = vsyncpa [#allocation11], 1 }
 0x634   :  { %6827 = vsyncpa [#allocation14], 1 }
 0x635   :  { %6828 = vsyncpa [#allocation17], 1 }
 0x636   :  { %6829 = vsyncpa [#allocation20], 1 }
 0x637   :  { %6830 = vsyncpa [#allocation23], 1 }
 0x638   :  { %6831 = vsyncpa [#allocation26], 1 }
 0x639   :  { %6832 = vsyncpa [#allocation29], 1 }
 0x63a   :  { %6833 = vsyncpa [#allocation32], 1 }
 0x63b   :  { %6834 = vsyncpa [#allocation35], 1 }
 0x63c   :  { %6835 = vsyncpa [#allocation38], 1 }

</bundles_post_ra>
